<compile_context>
chip_gen: v7x
topology: tpu7x:2x2x1
jax: 0.10.0
libtpu: 0.0.40
codegen_flags: <defaults>
</compile_context>

<pallas_src>
import functools

import jax
import jax.numpy as jnp
from jax.experimental import pallas as pl
from jax.experimental.pallas import tpu as pltpu

LANE = 128


def _round_up(n, m):
    return ((n + m - 1) // m) * m


def _pad_to(x, shape):
    """Zero-pad `x` up to `shape` (same rank)."""
    return jnp.pad(x, [(0, t - s) for s, t in zip(x.shape, shape)])


def _layer_norm_padded(x, gamma, beta, n_valid, eps):
    """LayerNorm over the first `n_valid` columns of a zero-padded (M, C_p) x.

    Padded columns of x are exactly zero, so plain sums give the correct
    mean / E[x^2]; gamma/beta are zero-padded, so padded output columns stay
    exactly zero.
    """
    inv_n = 1.0 / n_valid
    mu = jnp.sum(x, axis=-1, keepdims=True) * inv_n
    ex2 = jnp.sum(x * x, axis=-1, keepdims=True) * inv_n
    var = ex2 - mu * mu
    return (x - mu) * jax.lax.rsqrt(var + eps) * gamma + beta


def _gpt_kernel(
    # scalar prefetch (SMEM)
    idx_ref,
    # grid-invariant inputs (single-buffered)
    tok_ref, pos_ref, mask_ref,
    # per-layer blocked weights (layer axis of the grid selects the block)
    ln1g_ref, ln1b_ref, wq_ref, wk_ref, wv_ref, wproj_ref, bproj_ref,
    ln2g_ref, ln2b_ref, w1_ref, b1_ref, w2_ref, b2_ref,
    # grid-invariant lm_head
    lmw_ref, lmb_ref,
    # output
    o_ref,
    # scratch: residual stream, persists across the layer grid axis
    x_sc,
    *, num_heads, head_dim, seq_len, batch_block, embed_dim, ln_eps):
    b = pl.program_id(0)            # batch-tile index  ("parallel")
    l = pl.program_id(1)            # layer index       ("arbitrary")
    T = seq_len
    BB = batch_block
    C_p = x_sc.shape[1]
    bf16 = jnp.bfloat16
    scale = head_dim ** -0.5

    # ---- layer 0: token gather (SMEM ids -> dynamic row slice) + pos embed ----
    @pl.when(l == 0)
    def _embed():
        pos = pos_ref[...]                                        # (T, C_p) f32
        for bb in range(BB):
            rows = [tok_ref[pl.ds(idx_ref[b * BB + bb, t], 1), :] for t in range(T)]
            x_sc[pl.ds(bb * T, T), :] = jnp.concatenate(rows, axis=0) + pos

    x = x_sc[...]                                                 # (M, C_p) f32
    mask = mask_ref[...]                                          # (T, T) additive bias

    # -------------------- multi-head causal self-attention --------------------
    h = _layer_norm_padded(x, ln1g_ref[0], ln1b_ref[0], embed_dim, ln_eps)
    hb = h.astype(bf16)

    # Per-head Q/K/V, each a full-width (M, 128)x(128, 128) MXU matmul.
    q = [jnp.dot(hb, wq_ref[0, hd], preferred_element_type=jnp.float32)
         for hd in range(num_heads)]
    k = [jnp.dot(hb, wk_ref[0, hd], preferred_element_type=jnp.float32)
         for hd in range(num_heads)]
    v = [jnp.dot(hb, wv_ref[0, hd], preferred_element_type=jnp.float32)
         for hd in range(num_heads)]

    attn_rows = []
    for bb in range(BB):                     # per-batch-element (T, T) attention
        rows = slice(bb * T, (bb + 1) * T)   # static sublane slice (rows)
        acc = jnp.zeros((T, C_p), jnp.float32)
        for hd in range(num_heads):
            qb = q[hd][rows].astype(bf16)
            kb = k[hd][rows].astype(bf16)
            s = jax.lax.dot_general(qb, kb, (((1,), (1,)), ((), ())),
                                    preferred_element_type=jnp.float32)
            s = s * scale + mask                           # f32 softmax path
            m = jnp.max(s, axis=-1, keepdims=True)
            p = jnp.exp(s - m)
            denom = jnp.sum(p, axis=-1, keepdims=True)
            p = p * pl.reciprocal(denom, approx=True)      # EUP vrcp
            out = jnp.dot(p.astype(bf16), v[hd][rows].astype(bf16),
                          preferred_element_type=jnp.float32)   # (T, Dh_p)
            # Concat-free head merge: head hd's slice of W_proj is stored
            # zero-padded as (Dh_p, C_p); accumulating the per-head projection
            # is exactly concat(heads) @ W_proj.
            acc = acc + jnp.dot(out.astype(bf16), wproj_ref[0, hd],
                                preferred_element_type=jnp.float32)
        attn_rows.append(acc)
    attn = attn_rows[0] if BB == 1 else jnp.concatenate(attn_rows, axis=0)
    x = x + attn + bproj_ref[0]

    # ------------------------------ feed-forward ------------------------------
    h2 = _layer_norm_padded(x, ln2g_ref[0], ln2b_ref[0], embed_dim, ln_eps)
    ff = jnp.dot(h2.astype(bf16), w1_ref[0],
                 preferred_element_type=jnp.float32) + b1_ref[0]
    ff = jnp.maximum(ff, 0.0)
    ff = jnp.dot(ff.astype(bf16), w2_ref[0],
                 preferred_element_type=jnp.float32) + b2_ref[0]
    x = x + ff
    x_sc[...] = x                       # carry residual stream to the next layer

    # -------------------- lm_head (last layer only), lane-dense --------------------
    @pl.when(l == pl.num_programs(1) - 1)
    def _lm_head():
        logits = jnp.dot(x.astype(bf16), lmw_ref[...],
                         preferred_element_type=jnp.float32) + lmb_ref[...]
        o_ref[...] = logits             # (BB*T, 128) full-lane store


def gpt_forward(idx, fused, *, num_batch_tiles=None):
    """Pallas forward pass for GPTLanguageModel (eval mode): returns logits."""
    B, T = idx.shape
    p = fused
    H, Dh, L = p["num_heads"], p["head_dim"], p["num_layers"]
    C = p["embed_dim"]
    V = p["vocab_size"]
    C_p = p["tok_table"].shape[1]
    V_p = p["lm_w"].shape[1]

    if num_batch_tiles is None:
        # >=2-way "parallel" batch axis keeps both v7x TensorCores busy; the rest
        # of the batch is folded into the matmul M dimension.
        num_batch_tiles = 2 if (B >= 2 and B % 2 == 0) else 1
    assert B % num_batch_tiles == 0
    BB = B // num_batch_tiles
    M = BB * T
    assert M % 8 == 0, "batch_block * seq_len must be a multiple of 8 (sublanes)"

    idx = idx.astype(jnp.int32)
    pos = p["pos_table"][:T]            # (T, C_p)

    # Causal additive mask bias, built once on the host (tiny replicated input).
    row = jax.lax.broadcasted_iota(jnp.int32, (T, T), 0)
    col = jax.lax.broadcasted_iota(jnp.int32, (T, T), 1)
    mask = jnp.where(row >= col, 0.0, -1e30).astype(jnp.float32)

    kernel = functools.partial(
        _gpt_kernel, num_heads=H, head_dim=Dh, seq_len=T,
        batch_block=BB, embed_dim=C, ln_eps=1e-5)

    layer_names = ("ln1_g", "ln1_b", "wq", "wk", "wv", "w_proj", "b_proj",
                   "ln2_g", "ln2_b", "w1", "b1", "w2", "b2")
    operands = (idx, p["tok_table"], pos, mask,
                *[p[nm] for nm in layer_names], p["lm_w"], p["lm_b"])

    def build_call(single_buffer_consts):
        const_kw = dict(pipeline_mode=pl.Buffered(1)) if single_buffer_consts else {}

        def const_spec(arr):            # grid-invariant input, resident once
            zeros = (0,) * arr.ndim
            return pl.BlockSpec(arr.shape,
                                lambda b, l, idx_s, _z=zeros: _z, **const_kw)

        def layer_spec(arr):            # per-layer block, double-buffered
            blk = (1,) + arr.shape[1:]
            zeros = (0,) * (arr.ndim - 1)
            return pl.BlockSpec(blk,
                                lambda b, l, idx_s, _z=zeros: (l,) + _z)

        in_specs = ([const_spec(p["tok_table"]), const_spec(pos), const_spec(mask)]
                    + [layer_spec(p[nm]) for nm in layer_names]
                    + [const_spec(p["lm_w"]), const_spec(p["lm_b"])])

        return pl.pallas_call(
            kernel,
            out_shape=jax.ShapeDtypeStruct((B * T, V_p), jnp.float32),
            grid_spec=pltpu.PrefetchScalarGridSpec(
                num_scalar_prefetch=1,
                grid=(num_batch_tiles, L),
                in_specs=in_specs,
                out_specs=pl.BlockSpec((M, V_p), lambda b, l, idx_s: (b, 0)),
                scratch_shapes=[pltpu.VMEM((M, C_p), jnp.float32)],
            ),
            compiler_params=pltpu.CompilerParams(
                dimension_semantics=("parallel", "arbitrary"),
                vmem_limit_bytes=32 * 1024 * 1024),
        )

    try:
        out = build_call(True)(*operands)
    except Exception:
        # Fallback if this JAX build rejects single-buffered (Buffered(1)) inputs.
        out = build_call(False)(*operands)

    return out.reshape(B, T, V_p)[:, :, :V]     # slice off lane padding


# ----------------------------- host-side helpers -----------------------------

def build_fused_params(raw):
    """Pad every lane dim to 128, store per-head Q/K/V/proj weights (bf16),
    and keep LN/bias params in f32.  LN gamma/beta are ZERO-padded so padded
    activation columns stay exactly zero through the whole network."""
    L, H, Dh = raw["num_layers"], raw["num_heads"], raw["head_dim"]
    V, C = raw["tok_table"].shape
    Dhid = raw["w1"].shape[-1]

    C_p = _round_up(C, LANE)
    Dh_p = _round_up(Dh, LANE)      # toy Dh=8 -> 128; a real Dh (64/128) pads ~1x
    Dhid_p = _round_up(Dhid, LANE)
    V_p = _round_up(V, LANE)
    bf16, f32 = jnp.bfloat16, jnp.float32

    def pad_heads(w):               # (L, H, C, Dh) -> (L, H, C_p, Dh_p) bf16
        return _pad_to(w, (L, H, C_p, Dh_p)).astype(bf16)

    # Output projection rows grouped per head: (L, HS, C) -> (L, H, Dh_p, C_p).
    wproj = _pad_to(raw["w_proj"].reshape(L, H, Dh, C), (L, H, Dh_p, C_p)).astype(bf16)

    def pad_vec(v, d_p):            # (L, D) -> (L, 1, D_p) f32
        d = v.shape[-1]
        return _pad_to(v.reshape(L, 1, d), (L, 1, d_p)).astype(f32)

    return {
        "num_heads": H, "head_dim": Dh, "num_layers": L,
        "embed_dim": C, "vocab_size": V,
        "tok_table": _pad_to(raw["tok_table"], (V, C_p)).astype(f32),
        "pos_table": _pad_to(raw["pos_table"], (raw["pos_table"].shape[0], C_p)).astype(f32),
        "ln1_g": pad_vec(raw["ln1_g"], C_p), "ln1_b": pad_vec(raw["ln1_b"], C_p),
        "wq": pad_heads(raw["wq"]), "wk": pad_heads(raw["wk"]), "wv": pad_heads(raw["wv"]),
        "w_proj": wproj,
        "b_proj": pad_vec(raw["b_proj"], C_p),
        "ln2_g": pad_vec(raw["ln2_g"], C_p), "ln2_b": pad_vec(raw["ln2_b"], C_p),
        "w1": _pad_to(raw["w1"], (L, C_p, Dhid_p)).astype(bf16),
        "b1": pad_vec(raw["b1"], Dhid_p),
        "w2": _pad_to(raw["w2"], (L, Dhid_p, C_p)).astype(bf16),
        "b2": pad_vec(raw["b2"], C_p),
        "lm_w": _pad_to(raw["lm_w"], (C_p, V_p)).astype(bf16),
        "lm_b": _pad_to(raw["lm_b"].reshape(1, V), (1, V_p)).astype(f32),
    }


def _bf16w(w):
    """Round a weight through bf16 (the kernel stores matmul weights as bf16)."""
    return w.astype(jnp.bfloat16).astype(jnp.float32)


def _layer_norm_ref(x, g, b, eps=1e-5):
    mu = x.mean(-1, keepdims=True)
    var = ((x - mu) ** 2).mean(-1, keepdims=True)
    return (x - mu) / jnp.sqrt(var + eps) * g + b


def gpt_reference(idx, raw):
    """Pure-JAX reference mirroring the PyTorch GPTLanguageModel (eval mode).

    Matmul weights are rounded through bf16 (as stored for the kernel); the
    remaining kernel/reference divergence comes from bf16 activation operands
    on the MXU path and the approximate softmax reciprocal."""
    B, T = idx.shape
    H, Dh, L = raw["num_heads"], raw["head_dim"], raw["num_layers"]
    x = raw["tok_table"][idx] + raw["pos_table"][:T]
    tril = jnp.tril(jnp.ones((T, T), dtype=bool))
    for l in range(L):
        h = _layer_norm_ref(x, raw["ln1_g"][l], raw["ln1_b"][l])
        heads = []
        for i in range(H):
            q = h @ _bf16w(raw["wq"][l, i])
            k = h @ _bf16w(raw["wk"][l, i])
            v = h @ _bf16w(raw["wv"][l, i])
            s = jnp.einsum("btd,bsd->bts", q, k) * (Dh ** -0.5)
            s = jnp.where(tril, s, -jnp.inf)
            w = jax.nn.softmax(s, axis=-1)
            heads.append(jnp.einsum("bts,bsd->btd", w, v))
        attn = jnp.concatenate(heads, -1) @ _bf16w(raw["w_proj"][l]) + raw["b_proj"][l]
        x = x + attn
        h2 = _layer_norm_ref(x, raw["ln2_g"][l], raw["ln2_b"][l])
        ff = jax.nn.relu(h2 @ _bf16w(raw["w1"][l]) + raw["b1"][l])
        ff = ff @ _bf16w(raw["w2"][l]) + raw["b2"][l]
        x = x + ff
    return x @ _bf16w(raw["lm_w"]) + raw["lm_b"]


if __name__ == "__main__":
    # Small hyperparameters consistent with the module (head_size == embedding_dim
    # is required by the residual connections in Block).
    vocab_size = 64
    embedding_dim = 32          # C
    head_size = 32              # HS
    num_heads = 4
    head_dim = head_size // num_heads   # 8
    block_size = 8
    num_layers = 2
    B, T = 2, 8                 # T == block_size

    key = jax.random.PRNGKey(0)
    ks = jax.random.split(key, 18)
    std = 0.1
    f32 = jnp.float32

    raw = {
        "num_heads": num_heads, "head_dim": head_dim, "num_layers": num_layers,
        "tok_table": jax.random.normal(ks[0], (vocab_size, embedding_dim), f32) * std,
        "pos_table": jax.random.normal(ks[1], (block_size, embedding_dim), f32) * std,
        "ln1_g": 1.0 + 0.05 * jax.random.normal(ks[2], (num_layers, embedding_dim), f32),
        "ln1_b": 0.05 * jax.random.normal(ks[3], (num_layers, embedding_dim), f32),
        "wq": jax.random.normal(ks[4], (num_layers, num_heads, embedding_dim, head_dim), f32) * std,
        "wk": jax.random.normal(ks[5], (num_layers, num_heads, embedding_dim, head_dim), f32) * std,
        "wv": jax.random.normal(ks[6], (num_layers, num_heads, embedding_dim, head_dim), f32) * std,
        "w_proj": jax.random.normal(ks[7], (num_layers, head_size, head_size), f32) * std,
        "b_proj": 0.05 * jax.random.normal(ks[8], (num_layers, head_size), f32),
        "ln2_g": 1.0 + 0.05 * jax.random.normal(ks[9], (num_layers, head_size), f32),
        "ln2_b": 0.05 * jax.random.normal(ks[10], (num_layers, head_size), f32),
        "w1": jax.random.normal(ks[11], (num_layers, head_size, 4 * embedding_dim), f32) * std,
        "b1": 0.05 * jax.random.normal(ks[12], (num_layers, 4 * embedding_dim), f32),
        "w2": jax.random.normal(ks[13], (num_layers, 4 * embedding_dim, embedding_dim), f32) * std,
        "b2": 0.05 * jax.random.normal(ks[14], (num_layers, embedding_dim), f32),
        "lm_w": jax.random.normal(ks[15], (embedding_dim, vocab_size), f32) * std,
        "lm_b": 0.05 * jax.random.normal(ks[16], (vocab_size,), f32),
    }
    idx = jax.random.randint(ks[17], (B, T), 0, vocab_size, dtype=jnp.int32)

    fused = build_fused_params(raw)

    logits = gpt_forward(idx, fused)
    logits = jax.block_until_ready(logits)

    ref = gpt_reference(idx, raw)
    assert logits.shape == (B, T, vocab_size)
    # Tolerance covers bf16 matmul operands (activations) and the approximate
    # softmax reciprocal; weights are identically bf16-rounded on both sides.
    assert jnp.allclose(logits, ref, atol=5e-2, rtol=5e-2), "mismatch vs reference"

    print("KERNEL_OK")
</pallas_src>

<mosaic_0001>
module attributes {stable_mosaic.version = 11 : i64} {
  func.func @_gpt_kernel(%arg0: i32, %arg1: i32, %arg2: memref<2x8xi32, #tpu.memory_space<smem>>, %arg3: memref<64x128xf32, #tpu.memory_space<vmem>>, %arg4: memref<8x128xf32, #tpu.memory_space<vmem>>, %arg5: memref<8x8xf32, #tpu.memory_space<vmem>>, %arg6: memref<1x1x128xf32, #tpu.memory_space<vmem>>, %arg7: memref<1x1x128xf32, #tpu.memory_space<vmem>>, %arg8: memref<1x4x128x128xbf16, #tpu.memory_space<vmem>>, %arg9: memref<1x4x128x128xbf16, #tpu.memory_space<vmem>>, %arg10: memref<1x4x128x128xbf16, #tpu.memory_space<vmem>>, %arg11: memref<1x4x128x128xbf16, #tpu.memory_space<vmem>>, %arg12: memref<1x1x128xf32, #tpu.memory_space<vmem>>, %arg13: memref<1x1x128xf32, #tpu.memory_space<vmem>>, %arg14: memref<1x1x128xf32, #tpu.memory_space<vmem>>, %arg15: memref<1x128x128xbf16, #tpu.memory_space<vmem>>, %arg16: memref<1x1x128xf32, #tpu.memory_space<vmem>>, %arg17: memref<1x128x128xbf16, #tpu.memory_space<vmem>>, %arg18: memref<1x1x128xf32, #tpu.memory_space<vmem>>, %arg19: memref<128x128xbf16, #tpu.memory_space<vmem>>, %arg20: memref<1x128xf32, #tpu.memory_space<vmem>>, %arg21: memref<8x128xf32, #tpu.memory_space<vmem>>, %arg22: memref<8x128xf32, #tpu.memory_space<vmem>>) attributes {dimension_semantics = [#tpu.dimension_semantics<parallel>, #tpu.dimension_semantics<arbitrary>], iteration_bounds = array<i64: 2, 2>, scalar_prefetch = 1 : i64, scratch_operands = 1 : i64, tpu.core_type = #tpu.core_type<tc>, window_params = [{pipeline_mode = #tpu.pipeline_mode<synchronous>, transform_indices = @transform_0, window_bounds = array<i64: 64, 128>}, {pipeline_mode = #tpu.pipeline_mode<synchronous>, transform_indices = @transform_1, window_bounds = array<i64: 8, 128>}, {pipeline_mode = #tpu.pipeline_mode<synchronous>, transform_indices = @transform_2, window_bounds = array<i64: 8, 8>}, {transform_indices = @transform_3, window_bounds = array<i64: 1, 1, 128>}, {transform_indices = @transform_4, window_bounds = array<i64: 1, 1, 128>}, {transform_indices = @transform_5, window_bounds = array<i64: 1, 4, 128, 128>}, {transform_indices = @transform_6, window_bounds = array<i64: 1, 4, 128, 128>}, {transform_indices = @transform_7, window_bounds = array<i64: 1, 4, 128, 128>}, {transform_indices = @transform_8, window_bounds = array<i64: 1, 4, 128, 128>}, {transform_indices = @transform_9, window_bounds = array<i64: 1, 1, 128>}, {transform_indices = @transform_10, window_bounds = array<i64: 1, 1, 128>}, {transform_indices = @transform_11, window_bounds = array<i64: 1, 1, 128>}, {transform_indices = @transform_12, window_bounds = array<i64: 1, 128, 128>}, {transform_indices = @transform_13, window_bounds = array<i64: 1, 1, 128>}, {transform_indices = @transform_14, window_bounds = array<i64: 1, 128, 128>}, {transform_indices = @transform_15, window_bounds = array<i64: 1, 1, 128>}, {pipeline_mode = #tpu.pipeline_mode<synchronous>, transform_indices = @transform_16, window_bounds = array<i64: 128, 128>}, {pipeline_mode = #tpu.pipeline_mode<synchronous>, transform_indices = @transform_17, window_bounds = array<i64: 1, 128>}, {transform_indices = @transform_18, window_bounds = array<i64: 8, 128>}]} {
    %c0_i32 = arith.constant 0 : i32
    %0 = arith.cmpi eq, %arg1, %c0_i32 : i32
    %1 = arith.extui %0 : i1 to i32
    %c0_i32_0 = arith.constant 0 : i32
    %2 = arith.cmpi ne, %1, %c0_i32_0 : i32
    scf.if %2 {
      %c0_144 = arith.constant 0 : index
      %c0_145 = arith.constant 0 : index
      %219 = vector.load %arg4[%c0_144, %c0_145] : memref<8x128xf32, #tpu.memory_space<vmem>>, vector<8x128xf32>
      %c1_i32_146 = arith.constant 1 : i32
      %220 = arith.muli %arg0, %c1_i32_146 : i32
      %c0_i32_147 = arith.constant 0 : i32
      %221 = arith.addi %220, %c0_i32_147 : i32
      %222 = arith.index_cast %221 : i32 to index
      %c0_148 = arith.constant 0 : index
      %223 = memref.load %arg2[%222, %c0_148] : memref<2x8xi32, #tpu.memory_space<smem>>
      %224 = arith.index_cast %223 : i32 to index
      %c0_149 = arith.constant 0 : index
      %225 = vector.load %arg3[%224, %c0_149] : memref<64x128xf32, #tpu.memory_space<vmem>>, vector<1x128xf32>
      %c1_i32_150 = arith.constant 1 : i32
      %226 = arith.muli %arg0, %c1_i32_150 : i32
      %c0_i32_151 = arith.constant 0 : i32
      %227 = arith.addi %226, %c0_i32_151 : i32
      %228 = arith.index_cast %227 : i32 to index
      %c1_152 = arith.constant 1 : index
      %229 = memref.load %arg2[%228, %c1_152] : memref<2x8xi32, #tpu.memory_space<smem>>
      %230 = arith.index_cast %229 : i32 to index
      %c0_153 = arith.constant 0 : index
      %231 = vector.load %arg3[%230, %c0_153] : memref<64x128xf32, #tpu.memory_space<vmem>>, vector<1x128xf32>
      %c1_i32_154 = arith.constant 1 : i32
      %232 = arith.muli %arg0, %c1_i32_154 : i32
      %c0_i32_155 = arith.constant 0 : i32
      %233 = arith.addi %232, %c0_i32_155 : i32
      %234 = arith.index_cast %233 : i32 to index
      %c2_156 = arith.constant 2 : index
      %235 = memref.load %arg2[%234, %c2_156] : memref<2x8xi32, #tpu.memory_space<smem>>
      %236 = arith.index_cast %235 : i32 to index
      %c0_157 = arith.constant 0 : index
      %237 = vector.load %arg3[%236, %c0_157] : memref<64x128xf32, #tpu.memory_space<vmem>>, vector<1x128xf32>
      %c1_i32_158 = arith.constant 1 : i32
      %238 = arith.muli %arg0, %c1_i32_158 : i32
      %c0_i32_159 = arith.constant 0 : i32
      %239 = arith.addi %238, %c0_i32_159 : i32
      %240 = arith.index_cast %239 : i32 to index
      %c3_160 = arith.constant 3 : index
      %241 = memref.load %arg2[%240, %c3_160] : memref<2x8xi32, #tpu.memory_space<smem>>
      %242 = arith.index_cast %241 : i32 to index
      %c0_161 = arith.constant 0 : index
      %243 = vector.load %arg3[%242, %c0_161] : memref<64x128xf32, #tpu.memory_space<vmem>>, vector<1x128xf32>
      %c1_i32_162 = arith.constant 1 : i32
      %244 = arith.muli %arg0, %c1_i32_162 : i32
      %c0_i32_163 = arith.constant 0 : i32
      %245 = arith.addi %244, %c0_i32_163 : i32
      %246 = arith.index_cast %245 : i32 to index
      %c4 = arith.constant 4 : index
      %247 = memref.load %arg2[%246, %c4] : memref<2x8xi32, #tpu.memory_space<smem>>
      %248 = arith.index_cast %247 : i32 to index
      %c0_164 = arith.constant 0 : index
      %249 = vector.load %arg3[%248, %c0_164] : memref<64x128xf32, #tpu.memory_space<vmem>>, vector<1x128xf32>
      %c1_i32_165 = arith.constant 1 : i32
      %250 = arith.muli %arg0, %c1_i32_165 : i32
      %c0_i32_166 = arith.constant 0 : i32
      %251 = arith.addi %250, %c0_i32_166 : i32
      %252 = arith.index_cast %251 : i32 to index
      %c5 = arith.constant 5 : index
      %253 = memref.load %arg2[%252, %c5] : memref<2x8xi32, #tpu.memory_space<smem>>
      %254 = arith.index_cast %253 : i32 to index
      %c0_167 = arith.constant 0 : index
      %255 = vector.load %arg3[%254, %c0_167] : memref<64x128xf32, #tpu.memory_space<vmem>>, vector<1x128xf32>
      %c1_i32_168 = arith.constant 1 : i32
      %256 = arith.muli %arg0, %c1_i32_168 : i32
      %c0_i32_169 = arith.constant 0 : i32
      %257 = arith.addi %256, %c0_i32_169 : i32
      %258 = arith.index_cast %257 : i32 to index
      %c6 = arith.constant 6 : index
      %259 = memref.load %arg2[%258, %c6] : memref<2x8xi32, #tpu.memory_space<smem>>
      %260 = arith.index_cast %259 : i32 to index
      %c0_170 = arith.constant 0 : index
      %261 = vector.load %arg3[%260, %c0_170] : memref<64x128xf32, #tpu.memory_space<vmem>>, vector<1x128xf32>
      %c1_i32_171 = arith.constant 1 : i32
      %262 = arith.muli %arg0, %c1_i32_171 : i32
      %c0_i32_172 = arith.constant 0 : i32
      %263 = arith.addi %262, %c0_i32_172 : i32
      %264 = arith.index_cast %263 : i32 to index
      %c7 = arith.constant 7 : index
      %265 = memref.load %arg2[%264, %c7] : memref<2x8xi32, #tpu.memory_space<smem>>
      %266 = arith.index_cast %265 : i32 to index
      %c0_173 = arith.constant 0 : index
      %267 = vector.load %arg3[%266, %c0_173] : memref<64x128xf32, #tpu.memory_space<vmem>>, vector<1x128xf32>
      %268 = tpu.concatenate %225, %231, %237, %243, %249, %255, %261, %267 in 0 : vector<1x128xf32>, vector<1x128xf32>, vector<1x128xf32>, vector<1x128xf32>, vector<1x128xf32>, vector<1x128xf32>, vector<1x128xf32>, vector<1x128xf32> -> vector<8x128xf32>
      %269 = arith.addf %268, %219 : vector<8x128xf32>
      %c0_174 = arith.constant 0 : index
      %c0_175 = arith.constant 0 : index
      %270 = vector.load %arg22[%c0_174, %c0_175] : memref<8x128xf32, #tpu.memory_space<vmem>>, vector<8x128xf32>
      tpu.vector_store %arg22[%c0_174, %c0_175], %269 {strides = array<i32>} : memref<8x128xf32, #tpu.memory_space<vmem>>, vector<8x128xf32>,
    } else {
    }
    %c0 = arith.constant 0 : index
    %c0_1 = arith.constant 0 : index
    %3 = vector.load %arg22[%c0, %c0_1] : memref<8x128xf32, #tpu.memory_space<vmem>>, vector<8x128xf32>
    %c0_2 = arith.constant 0 : index
    %c0_3 = arith.constant 0 : index
    %4 = vector.load %arg5[%c0_2, %c0_3] : memref<8x8xf32, #tpu.memory_space<vmem>>, vector<8x8xf32>
    %c0_4 = arith.constant 0 : index
    %c0_5 = arith.constant 0 : index
    %c0_6 = arith.constant 0 : index
    %5 = vector.load %arg6[%c0_4, %c0_5, %c0_6] : memref<1x1x128xf32, #tpu.memory_space<vmem>>, vector<1x1x128xf32>
    %6 = vector.shape_cast %5 : vector<1x1x128xf32> to vector<1x128xf32>
    %c0_7 = arith.constant 0 : index
    %c0_8 = arith.constant 0 : index
    %c0_9 = arith.constant 0 : index
    %7 = vector.load %arg7[%c0_7, %c0_8, %c0_9] : memref<1x1x128xf32, #tpu.memory_space<vmem>>, vector<1x1x128xf32>
    %8 = vector.shape_cast %7 : vector<1x1x128xf32> to vector<1x128xf32>
    %cst = arith.constant dense<0.000000e+00> : vector<8xf32>
    %9 = vector.multi_reduction <add>, %3, %cst [1] : vector<8x128xf32> to vector<8xf32>
    %10 = vector.shape_cast %9 : vector<8xf32> to vector<8x1xf32>
    %cst_10 = arith.constant 3.125000e-02 : f32
    %11 = vector.broadcast %cst_10 : f32 to vector<8x1xf32>
    %12 = arith.mulf %10, %11 : vector<8x1xf32>
    %13 = arith.mulf %3, %3 : vector<8x128xf32>
    %cst_11 = arith.constant dense<0.000000e+00> : vector<8xf32>
    %14 = vector.multi_reduction <add>, %13, %cst_11 [1] : vector<8x128xf32> to vector<8xf32>
    %15 = vector.shape_cast %14 : vector<8xf32> to vector<8x1xf32>
    %cst_12 = arith.constant 3.125000e-02 : f32
    %16 = vector.broadcast %cst_12 : f32 to vector<8x1xf32>
    %17 = arith.mulf %15, %16 : vector<8x1xf32>
    %18 = arith.mulf %12, %12 : vector<8x1xf32>
    %19 = arith.subf %17, %18 : vector<8x1xf32>
    %20 = vector.broadcast %12 : vector<8x1xf32> to vector<8x128xf32>
    %21 = arith.subf %3, %20 : vector<8x128xf32>
    %cst_13 = arith.constant 9.99999974E-6 : f32
    %22 = vector.broadcast %cst_13 : f32 to vector<8x1xf32>
    %23 = arith.addf %19, %22 : vector<8x1xf32>
    %24 = math.rsqrt %23 : vector<8x1xf32>
    %25 = vector.broadcast %24 : vector<8x1xf32> to vector<8x128xf32>
    %26 = arith.mulf %21, %25 : vector<8x128xf32>
    %27 = vector.broadcast %6 : vector<1x128xf32> to vector<8x128xf32>
    %28 = arith.mulf %26, %27 : vector<8x128xf32>
    %29 = vector.broadcast %8 : vector<1x128xf32> to vector<8x128xf32>
    %30 = arith.addf %28, %29 : vector<8x128xf32>
    %31 = arith.truncf %30 : vector<8x128xf32> to vector<8x128xbf16>
    %c0_14 = arith.constant 0 : index
    %c0_15 = arith.constant 0 : index
    %c0_16 = arith.constant 0 : index
    %c0_17 = arith.constant 0 : index
    %32 = vector.load %arg8[%c0_14, %c0_15, %c0_16, %c0_17] : memref<1x4x128x128xbf16, #tpu.memory_space<vmem>>, vector<1x1x128x128xbf16>
    %33 = vector.shape_cast %32 : vector<1x1x128x128xbf16> to vector<128x128xbf16>
    %cst_18 = arith.constant dense<0.000000e+00> : vector<8x128xf32>
    %34 = tpu.matmul %31, %33, %cst_18 {dimension_numbers = #tpu.dot_dimension_numbers<[1], [0], [0], [1], [0, 0, 1, 1], [], []>} : vector<8x128xbf16>, vector<128x128xbf16>, vector<8x128xf32> -> vector<8x128xf32>
    %c0_19 = arith.constant 0 : index
    %c1 = arith.constant 1 : index
    %c0_20 = arith.constant 0 : index
    %c0_21 = arith.constant 0 : index
    %35 = vector.load %arg8[%c0_19, %c1, %c0_20, %c0_21] : memref<1x4x128x128xbf16, #tpu.memory_space<vmem>>, vector<1x1x128x128xbf16>
    %36 = vector.shape_cast %35 : vector<1x1x128x128xbf16> to vector<128x128xbf16>
    %cst_22 = arith.constant dense<0.000000e+00> : vector<8x128xf32>
    %37 = tpu.matmul %31, %36, %cst_22 {dimension_numbers = #tpu.dot_dimension_numbers<[1], [0], [0], [1], [0, 0, 1, 1], [], []>} : vector<8x128xbf16>, vector<128x128xbf16>, vector<8x128xf32> -> vector<8x128xf32>
    %c0_23 = arith.constant 0 : index
    %c2 = arith.constant 2 : index
    %c0_24 = arith.constant 0 : index
    %c0_25 = arith.constant 0 : index
    %38 = vector.load %arg8[%c0_23, %c2, %c0_24, %c0_25] : memref<1x4x128x128xbf16, #tpu.memory_space<vmem>>, vector<1x1x128x128xbf16>
    %39 = vector.shape_cast %38 : vector<1x1x128x128xbf16> to vector<128x128xbf16>
    %cst_26 = arith.constant dense<0.000000e+00> : vector<8x128xf32>
    %40 = tpu.matmul %31, %39, %cst_26 {dimension_numbers = #tpu.dot_dimension_numbers<[1], [0], [0], [1], [0, 0, 1, 1], [], []>} : vector<8x128xbf16>, vector<128x128xbf16>, vector<8x128xf32> -> vector<8x128xf32>
    %c0_27 = arith.constant 0 : index
    %c3 = arith.constant 3 : index
    %c0_28 = arith.constant 0 : index
    %c0_29 = arith.constant 0 : index
    %41 = vector.load %arg8[%c0_27, %c3, %c0_28, %c0_29] : memref<1x4x128x128xbf16, #tpu.memory_space<vmem>>, vector<1x1x128x128xbf16>
    %42 = vector.shape_cast %41 : vector<1x1x128x128xbf16> to vector<128x128xbf16>
    %cst_30 = arith.constant dense<0.000000e+00> : vector<8x128xf32>
    %43 = tpu.matmul %31, %42, %cst_30 {dimension_numbers = #tpu.dot_dimension_numbers<[1], [0], [0], [1], [0, 0, 1, 1], [], []>} : vector<8x128xbf16>, vector<128x128xbf16>, vector<8x128xf32> -> vector<8x128xf32>
    %c0_31 = arith.constant 0 : index
    %c0_32 = arith.constant 0 : index
    %c0_33 = arith.constant 0 : index
    %c0_34 = arith.constant 0 : index
    %44 = vector.load %arg9[%c0_31, %c0_32, %c0_33, %c0_34] : memref<1x4x128x128xbf16, #tpu.memory_space<vmem>>, vector<1x1x128x128xbf16>
    %45 = vector.shape_cast %44 : vector<1x1x128x128xbf16> to vector<128x128xbf16>
    %cst_35 = arith.constant dense<0.000000e+00> : vector<8x128xf32>
    %46 = tpu.matmul %31, %45, %cst_35 {dimension_numbers = #tpu.dot_dimension_numbers<[1], [0], [0], [1], [0, 0, 1, 1], [], []>} : vector<8x128xbf16>, vector<128x128xbf16>, vector<8x128xf32> -> vector<8x128xf32>
    %c0_36 = arith.constant 0 : index
    %c1_37 = arith.constant 1 : index
    %c0_38 = arith.constant 0 : index
    %c0_39 = arith.constant 0 : index
    %47 = vector.load %arg9[%c0_36, %c1_37, %c0_38, %c0_39] : memref<1x4x128x128xbf16, #tpu.memory_space<vmem>>, vector<1x1x128x128xbf16>
    %48 = vector.shape_cast %47 : vector<1x1x128x128xbf16> to vector<128x128xbf16>
    %cst_40 = arith.constant dense<0.000000e+00> : vector<8x128xf32>
    %49 = tpu.matmul %31, %48, %cst_40 {dimension_numbers = #tpu.dot_dimension_numbers<[1], [0], [0], [1], [0, 0, 1, 1], [], []>} : vector<8x128xbf16>, vector<128x128xbf16>, vector<8x128xf32> -> vector<8x128xf32>
    %c0_41 = arith.constant 0 : index
    %c2_42 = arith.constant 2 : index
    %c0_43 = arith.constant 0 : index
    %c0_44 = arith.constant 0 : index
    %50 = vector.load %arg9[%c0_41, %c2_42, %c0_43, %c0_44] : memref<1x4x128x128xbf16, #tpu.memory_space<vmem>>, vector<1x1x128x128xbf16>
    %51 = vector.shape_cast %50 : vector<1x1x128x128xbf16> to vector<128x128xbf16>
    %cst_45 = arith.constant dense<0.000000e+00> : vector<8x128xf32>
    %52 = tpu.matmul %31, %51, %cst_45 {dimension_numbers = #tpu.dot_dimension_numbers<[1], [0], [0], [1], [0, 0, 1, 1], [], []>} : vector<8x128xbf16>, vector<128x128xbf16>, vector<8x128xf32> -> vector<8x128xf32>
    %c0_46 = arith.constant 0 : index
    %c3_47 = arith.constant 3 : index
    %c0_48 = arith.constant 0 : index
    %c0_49 = arith.constant 0 : index
    %53 = vector.load %arg9[%c0_46, %c3_47, %c0_48, %c0_49] : memref<1x4x128x128xbf16, #tpu.memory_space<vmem>>, vector<1x1x128x128xbf16>
    %54 = vector.shape_cast %53 : vector<1x1x128x128xbf16> to vector<128x128xbf16>
    %cst_50 = arith.constant dense<0.000000e+00> : vector<8x128xf32>
    %55 = tpu.matmul %31, %54, %cst_50 {dimension_numbers = #tpu.dot_dimension_numbers<[1], [0], [0], [1], [0, 0, 1, 1], [], []>} : vector<8x128xbf16>, vector<128x128xbf16>, vector<8x128xf32> -> vector<8x128xf32>
    %c0_51 = arith.constant 0 : index
    %c0_52 = arith.constant 0 : index
    %c0_53 = arith.constant 0 : index
    %c0_54 = arith.constant 0 : index
    %56 = vector.load %arg10[%c0_51, %c0_52, %c0_53, %c0_54] : memref<1x4x128x128xbf16, #tpu.memory_space<vmem>>, vector<1x1x128x128xbf16>
    %57 = vector.shape_cast %56 : vector<1x1x128x128xbf16> to vector<128x128xbf16>
    %cst_55 = arith.constant dense<0.000000e+00> : vector<8x128xf32>
    %58 = tpu.matmul %31, %57, %cst_55 {dimension_numbers = #tpu.dot_dimension_numbers<[1], [0], [0], [1], [0, 0, 1, 1], [], []>} : vector<8x128xbf16>, vector<128x128xbf16>, vector<8x128xf32> -> vector<8x128xf32>
    %c0_56 = arith.constant 0 : index
    %c1_57 = arith.constant 1 : index
    %c0_58 = arith.constant 0 : index
    %c0_59 = arith.constant 0 : index
    %59 = vector.load %arg10[%c0_56, %c1_57, %c0_58, %c0_59] : memref<1x4x128x128xbf16, #tpu.memory_space<vmem>>, vector<1x1x128x128xbf16>
    %60 = vector.shape_cast %59 : vector<1x1x128x128xbf16> to vector<128x128xbf16>
    %cst_60 = arith.constant dense<0.000000e+00> : vector<8x128xf32>
    %61 = tpu.matmul %31, %60, %cst_60 {dimension_numbers = #tpu.dot_dimension_numbers<[1], [0], [0], [1], [0, 0, 1, 1], [], []>} : vector<8x128xbf16>, vector<128x128xbf16>, vector<8x128xf32> -> vector<8x128xf32>
    %c0_61 = arith.constant 0 : index
    %c2_62 = arith.constant 2 : index
    %c0_63 = arith.constant 0 : index
    %c0_64 = arith.constant 0 : index
    %62 = vector.load %arg10[%c0_61, %c2_62, %c0_63, %c0_64] : memref<1x4x128x128xbf16, #tpu.memory_space<vmem>>, vector<1x1x128x128xbf16>
    %63 = vector.shape_cast %62 : vector<1x1x128x128xbf16> to vector<128x128xbf16>
    %cst_65 = arith.constant dense<0.000000e+00> : vector<8x128xf32>
    %64 = tpu.matmul %31, %63, %cst_65 {dimension_numbers = #tpu.dot_dimension_numbers<[1], [0], [0], [1], [0, 0, 1, 1], [], []>} : vector<8x128xbf16>, vector<128x128xbf16>, vector<8x128xf32> -> vector<8x128xf32>
    %c0_66 = arith.constant 0 : index
    %c3_67 = arith.constant 3 : index
    %c0_68 = arith.constant 0 : index
    %c0_69 = arith.constant 0 : index
    %65 = vector.load %arg10[%c0_66, %c3_67, %c0_68, %c0_69] : memref<1x4x128x128xbf16, #tpu.memory_space<vmem>>, vector<1x1x128x128xbf16>
    %66 = vector.shape_cast %65 : vector<1x1x128x128xbf16> to vector<128x128xbf16>
    %cst_70 = arith.constant dense<0.000000e+00> : vector<8x128xf32>
    %67 = tpu.matmul %31, %66, %cst_70 {dimension_numbers = #tpu.dot_dimension_numbers<[1], [0], [0], [1], [0, 0, 1, 1], [], []>} : vector<8x128xbf16>, vector<128x128xbf16>, vector<8x128xf32> -> vector<8x128xf32>
    %cst_71 = arith.constant 0.000000e+00 : f32
    %68 = vector.broadcast %cst_71 : f32 to vector<8x128xf32>
    %69 = arith.truncf %34 : vector<8x128xf32> to vector<8x128xbf16>
    %70 = arith.truncf %46 : vector<8x128xf32> to vector<8x128xbf16>
    %cst_72 = arith.constant dense<0.000000e+00> : vector<8x8xf32>
    %71 = tpu.matmul %69, %70, %cst_72 {dimension_numbers = #tpu.dot_dimension_numbers<[1], [1], [0], [0], [0, 0, 1, 0], [], []>} : vector<8x128xbf16>, vector<8x128xbf16>, vector<8x8xf32> -> vector<8x8xf32>
    %cst_73 = arith.constant 0.353553385 : f32
    %72 = vector.broadcast %cst_73 : f32 to vector<8x8xf32>
    %73 = arith.mulf %71, %72 : vector<8x8xf32>
    %74 = arith.addf %73, %4 : vector<8x8xf32>
    %cst_74 = arith.constant dense<0xFF800000> : vector<8xf32>
    %75 = vector.multi_reduction <maximumf>, %74, %cst_74 [1] : vector<8x8xf32> to vector<8xf32>
    %76 = vector.shape_cast %75 : vector<8xf32> to vector<8x1xf32>
    %77 = vector.broadcast %76 : vector<8x1xf32> to vector<8x8xf32>
    %78 = arith.subf %74, %77 : vector<8x8xf32>
    %79 = math.exp %78 : vector<8x8xf32>
    %cst_75 = arith.constant dense<0.000000e+00> : vector<8xf32>
    %80 = vector.multi_reduction <add>, %79, %cst_75 [1] : vector<8x8xf32> to vector<8xf32>
    %81 = vector.shape_cast %80 : vector<8xf32> to vector<8x1xf32>
    %82 = tpu.reciprocal %81 {approx = true} : vector<8x1xf32> -> vector<8x1xf32>
    %83 = vector.broadcast %82 : vector<8x1xf32> to vector<8x8xf32>
    %84 = arith.mulf %79, %83 : vector<8x8xf32>
    %85 = arith.truncf %84 : vector<8x8xf32> to vector<8x8xbf16>
    %86 = arith.truncf %58 : vector<8x128xf32> to vector<8x128xbf16>
    %cst_76 = arith.constant dense<0.000000e+00> : vector<8x128xf32>
    %87 = tpu.matmul %85, %86, %cst_76 {dimension_numbers = #tpu.dot_dimension_numbers<[1], [0], [0], [1], [0, 0, 1, 1], [], []>} : vector<8x8xbf16>, vector<8x128xbf16>, vector<8x128xf32> -> vector<8x128xf32>
    %88 = arith.truncf %87 : vector<8x128xf32> to vector<8x128xbf16>
    %c0_77 = arith.constant 0 : index
    %c0_78 = arith.constant 0 : index
    %c0_79 = arith.constant 0 : index
    %c0_80 = arith.constant 0 : index
    %89 = vector.load %arg11[%c0_77, %c0_78, %c0_79, %c0_80] : memref<1x4x128x128xbf16, #tpu.memory_space<vmem>>, vector<1x1x128x128xbf16>
    %90 = vector.shape_cast %89 : vector<1x1x128x128xbf16> to vector<128x128xbf16>
    %cst_81 = arith.constant dense<0.000000e+00> : vector<8x128xf32>
    %91 = tpu.matmul %88, %90, %cst_81 {dimension_numbers = #tpu.dot_dimension_numbers<[1], [0], [0], [1], [0, 0, 1, 1], [], []>} : vector<8x128xbf16>, vector<128x128xbf16>, vector<8x128xf32> -> vector<8x128xf32>
    %92 = arith.addf %68, %91 : vector<8x128xf32>
    %93 = arith.truncf %37 : vector<8x128xf32> to vector<8x128xbf16>
    %94 = arith.truncf %49 : vector<8x128xf32> to vector<8x128xbf16>
    %cst_82 = arith.constant dense<0.000000e+00> : vector<8x8xf32>
    %95 = tpu.matmul %93, %94, %cst_82 {dimension_numbers = #tpu.dot_dimension_numbers<[1], [1], [0], [0], [0, 0, 1, 0], [], []>} : vector<8x128xbf16>, vector<8x128xbf16>, vector<8x8xf32> -> vector<8x8xf32>
    %cst_83 = arith.constant 0.353553385 : f32
    %96 = vector.broadcast %cst_83 : f32 to vector<8x8xf32>
    %97 = arith.mulf %95, %96 : vector<8x8xf32>
    %98 = arith.addf %97, %4 : vector<8x8xf32>
    %cst_84 = arith.constant dense<0xFF800000> : vector<8xf32>
    %99 = vector.multi_reduction <maximumf>, %98, %cst_84 [1] : vector<8x8xf32> to vector<8xf32>
    %100 = vector.shape_cast %99 : vector<8xf32> to vector<8x1xf32>
    %101 = vector.broadcast %100 : vector<8x1xf32> to vector<8x8xf32>
    %102 = arith.subf %98, %101 : vector<8x8xf32>
    %103 = math.exp %102 : vector<8x8xf32>
    %cst_85 = arith.constant dense<0.000000e+00> : vector<8xf32>
    %104 = vector.multi_reduction <add>, %103, %cst_85 [1] : vector<8x8xf32> to vector<8xf32>
    %105 = vector.shape_cast %104 : vector<8xf32> to vector<8x1xf32>
    %106 = tpu.reciprocal %105 {approx = true} : vector<8x1xf32> -> vector<8x1xf32>
    %107 = vector.broadcast %106 : vector<8x1xf32> to vector<8x8xf32>
    %108 = arith.mulf %103, %107 : vector<8x8xf32>
    %109 = arith.truncf %108 : vector<8x8xf32> to vector<8x8xbf16>
    %110 = arith.truncf %61 : vector<8x128xf32> to vector<8x128xbf16>
    %cst_86 = arith.constant dense<0.000000e+00> : vector<8x128xf32>
    %111 = tpu.matmul %109, %110, %cst_86 {dimension_numbers = #tpu.dot_dimension_numbers<[1], [0], [0], [1], [0, 0, 1, 1], [], []>} : vector<8x8xbf16>, vector<8x128xbf16>, vector<8x128xf32> -> vector<8x128xf32>
    %112 = arith.truncf %111 : vector<8x128xf32> to vector<8x128xbf16>
    %c0_87 = arith.constant 0 : index
    %c1_88 = arith.constant 1 : index
    %c0_89 = arith.constant 0 : index
    %c0_90 = arith.constant 0 : index
    %113 = vector.load %arg11[%c0_87, %c1_88, %c0_89, %c0_90] : memref<1x4x128x128xbf16, #tpu.memory_space<vmem>>, vector<1x1x128x128xbf16>
    %114 = vector.shape_cast %113 : vector<1x1x128x128xbf16> to vector<128x128xbf16>
    %cst_91 = arith.constant dense<0.000000e+00> : vector<8x128xf32>
    %115 = tpu.matmul %112, %114, %cst_91 {dimension_numbers = #tpu.dot_dimension_numbers<[1], [0], [0], [1], [0, 0, 1, 1], [], []>} : vector<8x128xbf16>, vector<128x128xbf16>, vector<8x128xf32> -> vector<8x128xf32>
    %116 = arith.addf %92, %115 : vector<8x128xf32>
    %117 = arith.truncf %40 : vector<8x128xf32> to vector<8x128xbf16>
    %118 = arith.truncf %52 : vector<8x128xf32> to vector<8x128xbf16>
    %cst_92 = arith.constant dense<0.000000e+00> : vector<8x8xf32>
    %119 = tpu.matmul %117, %118, %cst_92 {dimension_numbers = #tpu.dot_dimension_numbers<[1], [1], [0], [0], [0, 0, 1, 0], [], []>} : vector<8x128xbf16>, vector<8x128xbf16>, vector<8x8xf32> -> vector<8x8xf32>
    %cst_93 = arith.constant 0.353553385 : f32
    %120 = vector.broadcast %cst_93 : f32 to vector<8x8xf32>
    %121 = arith.mulf %119, %120 : vector<8x8xf32>
    %122 = arith.addf %121, %4 : vector<8x8xf32>
    %cst_94 = arith.constant dense<0xFF800000> : vector<8xf32>
    %123 = vector.multi_reduction <maximumf>, %122, %cst_94 [1] : vector<8x8xf32> to vector<8xf32>
    %124 = vector.shape_cast %123 : vector<8xf32> to vector<8x1xf32>
    %125 = vector.broadcast %124 : vector<8x1xf32> to vector<8x8xf32>
    %126 = arith.subf %122, %125 : vector<8x8xf32>
    %127 = math.exp %126 : vector<8x8xf32>
    %cst_95 = arith.constant dense<0.000000e+00> : vector<8xf32>
    %128 = vector.multi_reduction <add>, %127, %cst_95 [1] : vector<8x8xf32> to vector<8xf32>
    %129 = vector.shape_cast %128 : vector<8xf32> to vector<8x1xf32>
    %130 = tpu.reciprocal %129 {approx = true} : vector<8x1xf32> -> vector<8x1xf32>
    %131 = vector.broadcast %130 : vector<8x1xf32> to vector<8x8xf32>
    %132 = arith.mulf %127, %131 : vector<8x8xf32>
    %133 = arith.truncf %132 : vector<8x8xf32> to vector<8x8xbf16>
    %134 = arith.truncf %64 : vector<8x128xf32> to vector<8x128xbf16>
    %cst_96 = arith.constant dense<0.000000e+00> : vector<8x128xf32>
    %135 = tpu.matmul %133, %134, %cst_96 {dimension_numbers = #tpu.dot_dimension_numbers<[1], [0], [0], [1], [0, 0, 1, 1], [], []>} : vector<8x8xbf16>, vector<8x128xbf16>, vector<8x128xf32> -> vector<8x128xf32>
    %136 = arith.truncf %135 : vector<8x128xf32> to vector<8x128xbf16>
    %c0_97 = arith.constant 0 : index
    %c2_98 = arith.constant 2 : index
    %c0_99 = arith.constant 0 : index
    %c0_100 = arith.constant 0 : index
    %137 = vector.load %arg11[%c0_97, %c2_98, %c0_99, %c0_100] : memref<1x4x128x128xbf16, #tpu.memory_space<vmem>>, vector<1x1x128x128xbf16>
    %138 = vector.shape_cast %137 : vector<1x1x128x128xbf16> to vector<128x128xbf16>
    %cst_101 = arith.constant dense<0.000000e+00> : vector<8x128xf32>
    %139 = tpu.matmul %136, %138, %cst_101 {dimension_numbers = #tpu.dot_dimension_numbers<[1], [0], [0], [1], [0, 0, 1, 1], [], []>} : vector<8x128xbf16>, vector<128x128xbf16>, vector<8x128xf32> -> vector<8x128xf32>
    %140 = arith.addf %116, %139 : vector<8x128xf32>
    %141 = arith.truncf %43 : vector<8x128xf32> to vector<8x128xbf16>
    %142 = arith.truncf %55 : vector<8x128xf32> to vector<8x128xbf16>
    %cst_102 = arith.constant dense<0.000000e+00> : vector<8x8xf32>
    %143 = tpu.matmul %141, %142, %cst_102 {dimension_numbers = #tpu.dot_dimension_numbers<[1], [1], [0], [0], [0, 0, 1, 0], [], []>} : vector<8x128xbf16>, vector<8x128xbf16>, vector<8x8xf32> -> vector<8x8xf32>
    %cst_103 = arith.constant 0.353553385 : f32
    %144 = vector.broadcast %cst_103 : f32 to vector<8x8xf32>
    %145 = arith.mulf %143, %144 : vector<8x8xf32>
    %146 = arith.addf %145, %4 : vector<8x8xf32>
    %cst_104 = arith.constant dense<0xFF800000> : vector<8xf32>
    %147 = vector.multi_reduction <maximumf>, %146, %cst_104 [1] : vector<8x8xf32> to vector<8xf32>
    %148 = vector.shape_cast %147 : vector<8xf32> to vector<8x1xf32>
    %149 = vector.broadcast %148 : vector<8x1xf32> to vector<8x8xf32>
    %150 = arith.subf %146, %149 : vector<8x8xf32>
    %151 = math.exp %150 : vector<8x8xf32>
    %cst_105 = arith.constant dense<0.000000e+00> : vector<8xf32>
    %152 = vector.multi_reduction <add>, %151, %cst_105 [1] : vector<8x8xf32> to vector<8xf32>
    %153 = vector.shape_cast %152 : vector<8xf32> to vector<8x1xf32>
    %154 = tpu.reciprocal %153 {approx = true} : vector<8x1xf32> -> vector<8x1xf32>
    %155 = vector.broadcast %154 : vector<8x1xf32> to vector<8x8xf32>
    %156 = arith.mulf %151, %155 : vector<8x8xf32>
    %157 = arith.truncf %156 : vector<8x8xf32> to vector<8x8xbf16>
    %158 = arith.truncf %67 : vector<8x128xf32> to vector<8x128xbf16>
    %cst_106 = arith.constant dense<0.000000e+00> : vector<8x128xf32>
    %159 = tpu.matmul %157, %158, %cst_106 {dimension_numbers = #tpu.dot_dimension_numbers<[1], [0], [0], [1], [0, 0, 1, 1], [], []>} : vector<8x8xbf16>, vector<8x128xbf16>, vector<8x128xf32> -> vector<8x128xf32>
    %160 = arith.truncf %159 : vector<8x128xf32> to vector<8x128xbf16>
    %c0_107 = arith.constant 0 : index
    %c3_108 = arith.constant 3 : index
    %c0_109 = arith.constant 0 : index
    %c0_110 = arith.constant 0 : index
    %161 = vector.load %arg11[%c0_107, %c3_108, %c0_109, %c0_110] : memref<1x4x128x128xbf16, #tpu.memory_space<vmem>>, vector<1x1x128x128xbf16>
    %162 = vector.shape_cast %161 : vector<1x1x128x128xbf16> to vector<128x128xbf16>
    %cst_111 = arith.constant dense<0.000000e+00> : vector<8x128xf32>
    %163 = tpu.matmul %160, %162, %cst_111 {dimension_numbers = #tpu.dot_dimension_numbers<[1], [0], [0], [1], [0, 0, 1, 1], [], []>} : vector<8x128xbf16>, vector<128x128xbf16>, vector<8x128xf32> -> vector<8x128xf32>
    %164 = arith.addf %140, %163 : vector<8x128xf32>
    %165 = arith.addf %3, %164 : vector<8x128xf32>
    %c0_112 = arith.constant 0 : index
    %c0_113 = arith.constant 0 : index
    %c0_114 = arith.constant 0 : index
    %166 = vector.load %arg12[%c0_112, %c0_113, %c0_114] : memref<1x1x128xf32, #tpu.memory_space<vmem>>, vector<1x1x128xf32>
    %167 = vector.shape_cast %166 : vector<1x1x128xf32> to vector<1x128xf32>
    %168 = vector.broadcast %167 : vector<1x128xf32> to vector<8x128xf32>
    %169 = arith.addf %165, %168 : vector<8x128xf32>
    %c0_115 = arith.constant 0 : index
    %c0_116 = arith.constant 0 : index
    %c0_117 = arith.constant 0 : index
    %170 = vector.load %arg13[%c0_115, %c0_116, %c0_117] : memref<1x1x128xf32, #tpu.memory_space<vmem>>, vector<1x1x128xf32>
    %171 = vector.shape_cast %170 : vector<1x1x128xf32> to vector<1x128xf32>
    %c0_118 = arith.constant 0 : index
    %c0_119 = arith.constant 0 : index
    %c0_120 = arith.constant 0 : index
    %172 = vector.load %arg14[%c0_118, %c0_119, %c0_120] : memref<1x1x128xf32, #tpu.memory_space<vmem>>, vector<1x1x128xf32>
    %173 = vector.shape_cast %172 : vector<1x1x128xf32> to vector<1x128xf32>
    %cst_121 = arith.constant dense<0.000000e+00> : vector<8xf32>
    %174 = vector.multi_reduction <add>, %169, %cst_121 [1] : vector<8x128xf32> to vector<8xf32>
    %175 = vector.shape_cast %174 : vector<8xf32> to vector<8x1xf32>
    %cst_122 = arith.constant 3.125000e-02 : f32
    %176 = vector.broadcast %cst_122 : f32 to vector<8x1xf32>
    %177 = arith.mulf %175, %176 : vector<8x1xf32>
    %178 = arith.mulf %169, %169 : vector<8x128xf32>
    %cst_123 = arith.constant dense<0.000000e+00> : vector<8xf32>
    %179 = vector.multi_reduction <add>, %178, %cst_123 [1] : vector<8x128xf32> to vector<8xf32>
    %180 = vector.shape_cast %179 : vector<8xf32> to vector<8x1xf32>
    %cst_124 = arith.constant 3.125000e-02 : f32
    %181 = vector.broadcast %cst_124 : f32 to vector<8x1xf32>
    %182 = arith.mulf %180, %181 : vector<8x1xf32>
    %183 = arith.mulf %177, %177 : vector<8x1xf32>
    %184 = arith.subf %182, %183 : vector<8x1xf32>
    %185 = vector.broadcast %177 : vector<8x1xf32> to vector<8x128xf32>
    %186 = arith.subf %169, %185 : vector<8x128xf32>
    %cst_125 = arith.constant 9.99999974E-6 : f32
    %187 = vector.broadcast %cst_125 : f32 to vector<8x1xf32>
    %188 = arith.addf %184, %187 : vector<8x1xf32>
    %189 = math.rsqrt %188 : vector<8x1xf32>
    %190 = vector.broadcast %189 : vector<8x1xf32> to vector<8x128xf32>
    %191 = arith.mulf %186, %190 : vector<8x128xf32>
    %192 = vector.broadcast %171 : vector<1x128xf32> to vector<8x128xf32>
    %193 = arith.mulf %191, %192 : vector<8x128xf32>
    %194 = vector.broadcast %173 : vector<1x128xf32> to vector<8x128xf32>
    %195 = arith.addf %193, %194 : vector<8x128xf32>
    %196 = arith.truncf %195 : vector<8x128xf32> to vector<8x128xbf16>
    %c0_126 = arith.constant 0 : index
    %c0_127 = arith.constant 0 : index
    %c0_128 = arith.constant 0 : index
    %197 = vector.load %arg15[%c0_126, %c0_127, %c0_128] : memref<1x128x128xbf16, #tpu.memory_space<vmem>>, vector<1x128x128xbf16>
    %198 = vector.shape_cast %197 : vector<1x128x128xbf16> to vector<128x128xbf16>
    %cst_129 = arith.constant dense<0.000000e+00> : vector<8x128xf32>
    %199 = tpu.matmul %196, %198, %cst_129 {dimension_numbers = #tpu.dot_dimension_numbers<[1], [0], [0], [1], [0, 0, 1, 1], [], []>} : vector<8x128xbf16>, vector<128x128xbf16>, vector<8x128xf32> -> vector<8x128xf32>
    %c0_130 = arith.constant 0 : index
    %c0_131 = arith.constant 0 : index
    %c0_132 = arith.constant 0 : index
    %200 = vector.load %arg16[%c0_130, %c0_131, %c0_132] : memref<1x1x128xf32, #tpu.memory_space<vmem>>, vector<1x1x128xf32>
    %201 = vector.shape_cast %200 : vector<1x1x128xf32> to vector<1x128xf32>
    %202 = vector.broadcast %201 : vector<1x128xf32> to vector<8x128xf32>
    %203 = arith.addf %199, %202 : vector<8x128xf32>
    %cst_133 = arith.constant 0.000000e+00 : f32
    %204 = vector.broadcast %cst_133 : f32 to vector<8x128xf32>
    %205 = arith.maximumf %203, %204 : vector<8x128xf32>
    %206 = arith.truncf %205 : vector<8x128xf32> to vector<8x128xbf16>
    %c0_134 = arith.constant 0 : index
    %c0_135 = arith.constant 0 : index
    %c0_136 = arith.constant 0 : index
    %207 = vector.load %arg17[%c0_134, %c0_135, %c0_136] : memref<1x128x128xbf16, #tpu.memory_space<vmem>>, vector<1x128x128xbf16>
    %208 = vector.shape_cast %207 : vector<1x128x128xbf16> to vector<128x128xbf16>
    %cst_137 = arith.constant dense<0.000000e+00> : vector<8x128xf32>
    %209 = tpu.matmul %206, %208, %cst_137 {dimension_numbers = #tpu.dot_dimension_numbers<[1], [0], [0], [1], [0, 0, 1, 1], [], []>} : vector<8x128xbf16>, vector<128x128xbf16>, vector<8x128xf32> -> vector<8x128xf32>
    %c0_138 = arith.constant 0 : index
    %c0_139 = arith.constant 0 : index
    %c0_140 = arith.constant 0 : index
    %210 = vector.load %arg18[%c0_138, %c0_139, %c0_140] : memref<1x1x128xf32, #tpu.memory_space<vmem>>, vector<1x1x128xf32>
    %211 = vector.shape_cast %210 : vector<1x1x128xf32> to vector<1x128xf32>
    %212 = vector.broadcast %211 : vector<1x128xf32> to vector<8x128xf32>
    %213 = arith.addf %209, %212 : vector<8x128xf32>
    %214 = arith.addf %169, %213 : vector<8x128xf32>
    %c0_141 = arith.constant 0 : index
    %c0_142 = arith.constant 0 : index
    %215 = vector.load %arg22[%c0_141, %c0_142] : memref<8x128xf32, #tpu.memory_space<vmem>>, vector<8x128xf32>
    tpu.vector_store %arg22[%c0_141, %c0_142], %214 {strides = array<i32>} : memref<8x128xf32, #tpu.memory_space<vmem>>, vector<8x128xf32>,
    %c1_i32 = arith.constant 1 : i32
    %216 = arith.cmpi eq, %arg1, %c1_i32 : i32
    %217 = arith.extui %216 : i1 to i32
    %c0_i32_143 = arith.constant 0 : i32
    %218 = arith.cmpi ne, %217, %c0_i32_143 : i32
    scf.if %218 {
      %219 = arith.truncf %214 : vector<8x128xf32> to vector<8x128xbf16>
      %c0_144 = arith.constant 0 : index
      %c0_145 = arith.constant 0 : index
      %220 = vector.load %arg19[%c0_144, %c0_145] : memref<128x128xbf16, #tpu.memory_space<vmem>>, vector<128x128xbf16>
      %cst_146 = arith.constant dense<0.000000e+00> : vector<8x128xf32>
      %221 = tpu.matmul %219, %220, %cst_146 {dimension_numbers = #tpu.dot_dimension_numbers<[1], [0], [0], [1], [0, 0, 1, 1], [], []>} : vector<8x128xbf16>, vector<128x128xbf16>, vector<8x128xf32> -> vector<8x128xf32>
      %c0_147 = arith.constant 0 : index
      %c0_148 = arith.constant 0 : index
      %222 = vector.load %arg20[%c0_147, %c0_148] : memref<1x128xf32, #tpu.memory_space<vmem>>, vector<1x128xf32>
      %223 = vector.broadcast %222 : vector<1x128xf32> to vector<8x128xf32>
      %224 = arith.addf %221, %223 : vector<8x128xf32>
      %c0_149 = arith.constant 0 : index
      %c0_150 = arith.constant 0 : index
      %225 = vector.load %arg21[%c0_149, %c0_150] : memref<8x128xf32, #tpu.memory_space<vmem>>, vector<8x128xf32>
      tpu.vector_store %arg21[%c0_149, %c0_150], %224 {strides = array<i32>} : memref<8x128xf32, #tpu.memory_space<vmem>>, vector<8x128xf32>,
    } else {
    }
    return
  }
  func.func @transform_0(%arg0: i32, %arg1: i32, %arg2: memref<2x8xi32, #tpu.memory_space<smem>>) -> (i32, i32) {
    %c0_i32 = arith.constant 0 : i32
    %c0_i32_0 = arith.constant 0 : i32
    %c0_i32_1 = arith.constant 0 : i32
    return %c0_i32, %c0_i32_0 : i32, i32
  }
  func.func @transform_1(%arg0: i32, %arg1: i32, %arg2: memref<2x8xi32, #tpu.memory_space<smem>>) -> (i32, i32) {
    %c0_i32 = arith.constant 0 : i32
    %c0_i32_0 = arith.constant 0 : i32
    %c0_i32_1 = arith.constant 0 : i32
    return %c0_i32, %c0_i32_0 : i32, i32
  }
  func.func @transform_2(%arg0: i32, %arg1: i32, %arg2: memref<2x8xi32, #tpu.memory_space<smem>>) -> (i32, i32) {
    %c0_i32 = arith.constant 0 : i32
    %c0_i32_0 = arith.constant 0 : i32
    %c0_i32_1 = arith.constant 0 : i32
    return %c0_i32, %c0_i32_0 : i32, i32
  }
  func.func @transform_3(%arg0: i32, %arg1: i32, %arg2: memref<2x8xi32, #tpu.memory_space<smem>>) -> (i32, i32, i32) {
    %c0_i32 = arith.constant 0 : i32
    %c0_i32_0 = arith.constant 0 : i32
    %c0_i32_1 = arith.constant 0 : i32
    return %arg1, %c0_i32, %c0_i32_0 : i32, i32, i32
  }
  func.func @transform_4(%arg0: i32, %arg1: i32, %arg2: memref<2x8xi32, #tpu.memory_space<smem>>) -> (i32, i32, i32) {
    %c0_i32 = arith.constant 0 : i32
    %c0_i32_0 = arith.constant 0 : i32
    %c0_i32_1 = arith.constant 0 : i32
    return %arg1, %c0_i32, %c0_i32_0 : i32, i32, i32
  }
  func.func @transform_5(%arg0: i32, %arg1: i32, %arg2: memref<2x8xi32, #tpu.memory_space<smem>>) -> (i32, i32, i32, i32) {
    %c0_i32 = arith.constant 0 : i32
    %c0_i32_0 = arith.constant 0 : i32
    %c0_i32_1 = arith.constant 0 : i32
    %c0_i32_2 = arith.constant 0 : i32
    return %arg1, %c0_i32, %c0_i32_0, %c0_i32_1 : i32, i32, i32, i32
  }
  func.func @transform_6(%arg0: i32, %arg1: i32, %arg2: memref<2x8xi32, #tpu.memory_space<smem>>) -> (i32, i32, i32, i32) {
    %c0_i32 = arith.constant 0 : i32
    %c0_i32_0 = arith.constant 0 : i32
    %c0_i32_1 = arith.constant 0 : i32
    %c0_i32_2 = arith.constant 0 : i32
    return %arg1, %c0_i32, %c0_i32_0, %c0_i32_1 : i32, i32, i32, i32
  }
  func.func @transform_7(%arg0: i32, %arg1: i32, %arg2: memref<2x8xi32, #tpu.memory_space<smem>>) -> (i32, i32, i32, i32) {
    %c0_i32 = arith.constant 0 : i32
    %c0_i32_0 = arith.constant 0 : i32
    %c0_i32_1 = arith.constant 0 : i32
    %c0_i32_2 = arith.constant 0 : i32
    return %arg1, %c0_i32, %c0_i32_0, %c0_i32_1 : i32, i32, i32, i32
  }
  func.func @transform_8(%arg0: i32, %arg1: i32, %arg2: memref<2x8xi32, #tpu.memory_space<smem>>) -> (i32, i32, i32, i32) {
    %c0_i32 = arith.constant 0 : i32
    %c0_i32_0 = arith.constant 0 : i32
    %c0_i32_1 = arith.constant 0 : i32
    %c0_i32_2 = arith.constant 0 : i32
    return %arg1, %c0_i32, %c0_i32_0, %c0_i32_1 : i32, i32, i32, i32
  }
  func.func @transform_9(%arg0: i32, %arg1: i32, %arg2: memref<2x8xi32, #tpu.memory_space<smem>>) -> (i32, i32, i32) {
    %c0_i32 = arith.constant 0 : i32
    %c0_i32_0 = arith.constant 0 : i32
    %c0_i32_1 = arith.constant 0 : i32
    return %arg1, %c0_i32, %c0_i32_0 : i32, i32, i32
  }
  func.func @transform_10(%arg0: i32, %arg1: i32, %arg2: memref<2x8xi32, #tpu.memory_space<smem>>) -> (i32, i32, i32) {
    %c0_i32 = arith.constant 0 : i32
    %c0_i32_0 = arith.constant 0 : i32
    %c0_i32_1 = arith.constant 0 : i32
    return %arg1, %c0_i32, %c0_i32_0 : i32, i32, i32
  }
  func.func @transform_11(%arg0: i32, %arg1: i32, %arg2: memref<2x8xi32, #tpu.memory_space<smem>>) -> (i32, i32, i32) {
    %c0_i32 = arith.constant 0 : i32
    %c0_i32_0 = arith.constant 0 : i32
    %c0_i32_1 = arith.constant 0 : i32
    return %arg1, %c0_i32, %c0_i32_0 : i32, i32, i32
  }
  func.func @transform_12(%arg0: i32, %arg1: i32, %arg2: memref<2x8xi32, #tpu.memory_space<smem>>) -> (i32, i32, i32) {
    %c0_i32 = arith.constant 0 : i32
    %c0_i32_0 = arith.constant 0 : i32
    %c0_i32_1 = arith.constant 0 : i32
    return %arg1, %c0_i32, %c0_i32_0 : i32, i32, i32
  }
  func.func @transform_13(%arg0: i32, %arg1: i32, %arg2: memref<2x8xi32, #tpu.memory_space<smem>>) -> (i32, i32, i32) {
    %c0_i32 = arith.constant 0 : i32
    %c0_i32_0 = arith.constant 0 : i32
    %c0_i32_1 = arith.constant 0 : i32
    return %arg1, %c0_i32, %c0_i32_0 : i32, i32, i32
  }
  func.func @transform_14(%arg0: i32, %arg1: i32, %arg2: memref<2x8xi32, #tpu.memory_space<smem>>) -> (i32, i32, i32) {
    %c0_i32 = arith.constant 0 : i32
    %c0_i32_0 = arith.constant 0 : i32
    %c0_i32_1 = arith.constant 0 : i32
    return %arg1, %c0_i32, %c0_i32_0 : i32, i32, i32
  }
  func.func @transform_15(%arg0: i32, %arg1: i32, %arg2: memref<2x8xi32, #tpu.memory_space<smem>>) -> (i32, i32, i32) {
    %c0_i32 = arith.constant 0 : i32
    %c0_i32_0 = arith.constant 0 : i32
    %c0_i32_1 = arith.constant 0 : i32
    return %arg1, %c0_i32, %c0_i32_0 : i32, i32, i32
  }
  func.func @transform_16(%arg0: i32, %arg1: i32, %arg2: memref<2x8xi32, #tpu.memory_space<smem>>) -> (i32, i32) {
    %c0_i32 = arith.constant 0 : i32
    %c0_i32_0 = arith.constant 0 : i32
    %c0_i32_1 = arith.constant 0 : i32
    return %c0_i32, %c0_i32_0 : i32, i32
  }
  func.func @transform_17(%arg0: i32, %arg1: i32, %arg2: memref<2x8xi32, #tpu.memory_space<smem>>) -> (i32, i32) {
    %c0_i32 = arith.constant 0 : i32
    %c0_i32_0 = arith.constant 0 : i32
    %c0_i32_1 = arith.constant 0 : i32
    return %c0_i32, %c0_i32_0 : i32, i32
  }
  func.func @transform_18(%arg0: i32, %arg1: i32, %arg2: memref<2x8xi32, #tpu.memory_space<smem>>) -> (i32, i32) {
    %c0_i32 = arith.constant 0 : i32
    %c0_i32_0 = arith.constant 0 : i32
    return %arg0, %c0_i32 : i32, i32
  }
}

module attributes {stable_mosaic.version = 11 : i64} {
  func.func @_gpt_kernel(%arg0: i32, %arg1: i32, %arg2: memref<2x8xi32, #tpu.memory_space<smem>>, %arg3: memref<64x128xf32, #tpu.memory_space<vmem>>, %arg4: memref<8x128xf32, #tpu.memory_space<vmem>>, %arg5: memref<8x8xf32, #tpu.memory_space<vmem>>, %arg6: memref<1x1x128xf32, #tpu.memory_space<vmem>>, %arg7: memref<1x1x128xf32, #tpu.memory_space<vmem>>, %arg8: memref<1x4x128x128xbf16, #tpu.memory_space<vmem>>, %arg9: memref<1x4x128x128xbf16, #tpu.memory_space<vmem>>, %arg10: memref<1x4x128x128xbf16, #tpu.memory_space<vmem>>, %arg11: memref<1x4x128x128xbf16, #tpu.memory_space<vmem>>, %arg12: memref<1x1x128xf32, #tpu.memory_space<vmem>>, %arg13: memref<1x1x128xf32, #tpu.memory_space<vmem>>, %arg14: memref<1x1x128xf32, #tpu.memory_space<vmem>>, %arg15: memref<1x128x128xbf16, #tpu.memory_space<vmem>>, %arg16: memref<1x1x128xf32, #tpu.memory_space<vmem>>, %arg17: memref<1x128x128xbf16, #tpu.memory_space<vmem>>, %arg18: memref<1x1x128xf32, #tpu.memory_space<vmem>>, %arg19: memref<128x128xbf16, #tpu.memory_space<vmem>>, %arg20: memref<1x128xf32, #tpu.memory_space<vmem>>, %arg21: memref<8x128xf32, #tpu.memory_space<vmem>>, %arg22: memref<8x128xf32, #tpu.memory_space<vmem>>) attributes {dimension_semantics = [#tpu.dimension_semantics<parallel>, #tpu.dimension_semantics<arbitrary>], iteration_bounds = array<i64: 2, 2>, scalar_prefetch = 1 : i64, scratch_operands = 1 : i64, tpu.core_type = #tpu.core_type<tc>, window_params = [{pipeline_mode = #tpu.pipeline_mode<synchronous>, transform_indices = @transform_0, window_bounds = array<i64: 64, 128>}, {pipeline_mode = #tpu.pipeline_mode<synchronous>, transform_indices = @transform_1, window_bounds = array<i64: 8, 128>}, {pipeline_mode = #tpu.pipeline_mode<synchronous>, transform_indices = @transform_2, window_bounds = array<i64: 8, 8>}, {transform_indices = @transform_3, window_bounds = array<i64: 1, 1, 128>}, {transform_indices = @transform_4, window_bounds = array<i64: 1, 1, 128>}, {transform_indices = @transform_5, window_bounds = array<i64: 1, 4, 128, 128>}, {transform_indices = @transform_6, window_bounds = array<i64: 1, 4, 128, 128>}, {transform_indices = @transform_7, window_bounds = array<i64: 1, 4, 128, 128>}, {transform_indices = @transform_8, window_bounds = array<i64: 1, 4, 128, 128>}, {transform_indices = @transform_9, window_bounds = array<i64: 1, 1, 128>}, {transform_indices = @transform_10, window_bounds = array<i64: 1, 1, 128>}, {transform_indices = @transform_11, window_bounds = array<i64: 1, 1, 128>}, {transform_indices = @transform_12, window_bounds = array<i64: 1, 128, 128>}, {transform_indices = @transform_13, window_bounds = array<i64: 1, 1, 128>}, {transform_indices = @transform_14, window_bounds = array<i64: 1, 128, 128>}, {transform_indices = @transform_15, window_bounds = array<i64: 1, 1, 128>}, {pipeline_mode = #tpu.pipeline_mode<synchronous>, transform_indices = @transform_16, window_bounds = array<i64: 128, 128>}, {pipeline_mode = #tpu.pipeline_mode<synchronous>, transform_indices = @transform_17, window_bounds = array<i64: 1, 128>}, {transform_indices = @transform_18, window_bounds = array<i64: 8, 128>}]} {
    %c0_i32 = arith.constant 0 : i32
    %0 = arith.cmpi eq, %arg1, %c0_i32 : i32
    %1 = arith.extui %0 : i1 to i32
    %c0_i32_0 = arith.constant 0 : i32
    %2 = arith.cmpi ne, %1, %c0_i32_0 : i32
    scf.if %2 {
      %c0_144 = arith.constant 0 : index
      %c0_145 = arith.constant 0 : index
      %219 = vector.load %arg4[%c0_144, %c0_145] : memref<8x128xf32, #tpu.memory_space<vmem>>, vector<8x128xf32>
      %c1_i32_146 = arith.constant 1 : i32
      %220 = arith.muli %arg0, %c1_i32_146 : i32
      %c0_i32_147 = arith.constant 0 : i32
      %221 = arith.addi %220, %c0_i32_147 : i32
      %222 = arith.index_cast %221 : i32 to index
      %c0_148 = arith.constant 0 : index
      %223 = memref.load %arg2[%222, %c0_148] : memref<2x8xi32, #tpu.memory_space<smem>>
      %224 = arith.index_cast %223 : i32 to index
      %c0_149 = arith.constant 0 : index
      %225 = vector.load %arg3[%224, %c0_149] : memref<64x128xf32, #tpu.memory_space<vmem>>, vector<1x128xf32>
      %c1_i32_150 = arith.constant 1 : i32
      %226 = arith.muli %arg0, %c1_i32_150 : i32
      %c0_i32_151 = arith.constant 0 : i32
      %227 = arith.addi %226, %c0_i32_151 : i32
      %228 = arith.index_cast %227 : i32 to index
      %c1_152 = arith.constant 1 : index
      %229 = memref.load %arg2[%228, %c1_152] : memref<2x8xi32, #tpu.memory_space<smem>>
      %230 = arith.index_cast %229 : i32 to index
      %c0_153 = arith.constant 0 : index
      %231 = vector.load %arg3[%230, %c0_153] : memref<64x128xf32, #tpu.memory_space<vmem>>, vector<1x128xf32>
      %c1_i32_154 = arith.constant 1 : i32
      %232 = arith.muli %arg0, %c1_i32_154 : i32
      %c0_i32_155 = arith.constant 0 : i32
      %233 = arith.addi %232, %c0_i32_155 : i32
      %234 = arith.index_cast %233 : i32 to index
      %c2_156 = arith.constant 2 : index
      %235 = memref.load %arg2[%234, %c2_156] : memref<2x8xi32, #tpu.memory_space<smem>>
      %236 = arith.index_cast %235 : i32 to index
      %c0_157 = arith.constant 0 : index
      %237 = vector.load %arg3[%236, %c0_157] : memref<64x128xf32, #tpu.memory_space<vmem>>, vector<1x128xf32>
      %c1_i32_158 = arith.constant 1 : i32
      %238 = arith.muli %arg0, %c1_i32_158 : i32
      %c0_i32_159 = arith.constant 0 : i32
      %239 = arith.addi %238, %c0_i32_159 : i32
      %240 = arith.index_cast %239 : i32 to index
      %c3_160 = arith.constant 3 : index
      %241 = memref.load %arg2[%240, %c3_160] : memref<2x8xi32, #tpu.memory_space<smem>>
      %242 = arith.index_cast %241 : i32 to index
      %c0_161 = arith.constant 0 : index
      %243 = vector.load %arg3[%242, %c0_161] : memref<64x128xf32, #tpu.memory_space<vmem>>, vector<1x128xf32>
      %c1_i32_162 = arith.constant 1 : i32
      %244 = arith.muli %arg0, %c1_i32_162 : i32
      %c0_i32_163 = arith.constant 0 : i32
      %245 = arith.addi %244, %c0_i32_163 : i32
      %246 = arith.index_cast %245 : i32 to index
      %c4 = arith.constant 4 : index
      %247 = memref.load %arg2[%246, %c4] : memref<2x8xi32, #tpu.memory_space<smem>>
      %248 = arith.index_cast %247 : i32 to index
      %c0_164 = arith.constant 0 : index
      %249 = vector.load %arg3[%248, %c0_164] : memref<64x128xf32, #tpu.memory_space<vmem>>, vector<1x128xf32>
      %c1_i32_165 = arith.constant 1 : i32
      %250 = arith.muli %arg0, %c1_i32_165 : i32
      %c0_i32_166 = arith.constant 0 : i32
      %251 = arith.addi %250, %c0_i32_166 : i32
      %252 = arith.index_cast %251 : i32 to index
      %c5 = arith.constant 5 : index
      %253 = memref.load %arg2[%252, %c5] : memref<2x8xi32, #tpu.memory_space<smem>>
      %254 = arith.index_cast %253 : i32 to index
      %c0_167 = arith.constant 0 : index
      %255 = vector.load %arg3[%254, %c0_167] : memref<64x128xf32, #tpu.memory_space<vmem>>, vector<1x128xf32>
      %c1_i32_168 = arith.constant 1 : i32
      %256 = arith.muli %arg0, %c1_i32_168 : i32
      %c0_i32_169 = arith.constant 0 : i32
      %257 = arith.addi %256, %c0_i32_169 : i32
      %258 = arith.index_cast %257 : i32 to index
      %c6 = arith.constant 6 : index
      %259 = memref.load %arg2[%258, %c6] : memref<2x8xi32, #tpu.memory_space<smem>>
      %260 = arith.index_cast %259 : i32 to index
      %c0_170 = arith.constant 0 : index
      %261 = vector.load %arg3[%260, %c0_170] : memref<64x128xf32, #tpu.memory_space<vmem>>, vector<1x128xf32>
      %c1_i32_171 = arith.constant 1 : i32
      %262 = arith.muli %arg0, %c1_i32_171 : i32
      %c0_i32_172 = arith.constant 0 : i32
      %263 = arith.addi %262, %c0_i32_172 : i32
      %264 = arith.index_cast %263 : i32 to index
      %c7 = arith.constant 7 : index
      %265 = memref.load %arg2[%264, %c7] : memref<2x8xi32, #tpu.memory_space<smem>>
      %266 = arith.index_cast %265 : i32 to index
      %c0_173 = arith.constant 0 : index
      %267 = vector.load %arg3[%266, %c0_173] : memref<64x128xf32, #tpu.memory_space<vmem>>, vector<1x128xf32>
      %268 = tpu.concatenate %225, %231, %237, %243, %249, %255, %261, %267 in 0 : vector<1x128xf32>, vector<1x128xf32>, vector<1x128xf32>, vector<1x128xf32>, vector<1x128xf32>, vector<1x128xf32>, vector<1x128xf32>, vector<1x128xf32> -> vector<8x128xf32>
      %269 = arith.addf %268, %219 : vector<8x128xf32>
      %c0_174 = arith.constant 0 : index
      %c0_175 = arith.constant 0 : index
      %270 = vector.load %arg22[%c0_174, %c0_175] : memref<8x128xf32, #tpu.memory_space<vmem>>, vector<8x128xf32>
      tpu.vector_store %arg22[%c0_174, %c0_175], %269 {strides = array<i32>} : memref<8x128xf32, #tpu.memory_space<vmem>>, vector<8x128xf32>,
    } else {
    }
    %c0 = arith.constant 0 : index
    %c0_1 = arith.constant 0 : index
    %3 = vector.load %arg22[%c0, %c0_1] : memref<8x128xf32, #tpu.memory_space<vmem>>, vector<8x128xf32>
    %c0_2 = arith.constant 0 : index
    %c0_3 = arith.constant 0 : index
    %4 = vector.load %arg5[%c0_2, %c0_3] : memref<8x8xf32, #tpu.memory_space<vmem>>, vector<8x8xf32>
    %c0_4 = arith.constant 0 : index
    %c0_5 = arith.constant 0 : index
    %c0_6 = arith.constant 0 : index
    %5 = vector.load %arg6[%c0_4, %c0_5, %c0_6] : memref<1x1x128xf32, #tpu.memory_space<vmem>>, vector<1x1x128xf32>
    %6 = vector.shape_cast %5 : vector<1x1x128xf32> to vector<1x128xf32>
    %c0_7 = arith.constant 0 : index
    %c0_8 = arith.constant 0 : index
    %c0_9 = arith.constant 0 : index
    %7 = vector.load %arg7[%c0_7, %c0_8, %c0_9] : memref<1x1x128xf32, #tpu.memory_space<vmem>>, vector<1x1x128xf32>
    %8 = vector.shape_cast %7 : vector<1x1x128xf32> to vector<1x128xf32>
    %cst = arith.constant dense<0.000000e+00> : vector<8xf32>
    %9 = vector.multi_reduction <add>, %3, %cst [1] : vector<8x128xf32> to vector<8xf32>
    %10 = vector.shape_cast %9 : vector<8xf32> to vector<8x1xf32>
    %cst_10 = arith.constant 3.125000e-02 : f32
    %11 = vector.broadcast %cst_10 : f32 to vector<8x1xf32>
    %12 = arith.mulf %10, %11 : vector<8x1xf32>
    %13 = arith.mulf %3, %3 : vector<8x128xf32>
    %cst_11 = arith.constant dense<0.000000e+00> : vector<8xf32>
    %14 = vector.multi_reduction <add>, %13, %cst_11 [1] : vector<8x128xf32> to vector<8xf32>
    %15 = vector.shape_cast %14 : vector<8xf32> to vector<8x1xf32>
    %cst_12 = arith.constant 3.125000e-02 : f32
    %16 = vector.broadcast %cst_12 : f32 to vector<8x1xf32>
    %17 = arith.mulf %15, %16 : vector<8x1xf32>
    %18 = arith.mulf %12, %12 : vector<8x1xf32>
    %19 = arith.subf %17, %18 : vector<8x1xf32>
    %20 = vector.broadcast %12 : vector<8x1xf32> to vector<8x128xf32>
    %21 = arith.subf %3, %20 : vector<8x128xf32>
    %cst_13 = arith.constant 9.99999974E-6 : f32
    %22 = vector.broadcast %cst_13 : f32 to vector<8x1xf32>
    %23 = arith.addf %19, %22 : vector<8x1xf32>
    %24 = math.rsqrt %23 : vector<8x1xf32>
    %25 = vector.broadcast %24 : vector<8x1xf32> to vector<8x128xf32>
    %26 = arith.mulf %21, %25 : vector<8x128xf32>
    %27 = vector.broadcast %6 : vector<1x128xf32> to vector<8x128xf32>
    %28 = arith.mulf %26, %27 : vector<8x128xf32>
    %29 = vector.broadcast %8 : vector<1x128xf32> to vector<8x128xf32>
    %30 = arith.addf %28, %29 : vector<8x128xf32>
    %31 = arith.truncf %30 : vector<8x128xf32> to vector<8x128xbf16>
    %c0_14 = arith.constant 0 : index
    %c0_15 = arith.constant 0 : index
    %c0_16 = arith.constant 0 : index
    %c0_17 = arith.constant 0 : index
    %32 = vector.load %arg8[%c0_14, %c0_15, %c0_16, %c0_17] : memref<1x4x128x128xbf16, #tpu.memory_space<vmem>>, vector<1x1x128x128xbf16>
    %33 = vector.shape_cast %32 : vector<1x1x128x128xbf16> to vector<128x128xbf16>
    %cst_18 = arith.constant dense<0.000000e+00> : vector<8x128xf32>
    %34 = tpu.matmul %31, %33, %cst_18 {dimension_numbers = #tpu.dot_dimension_numbers<[1], [0], [0], [1], [0, 0, 1, 1], [], []>} : vector<8x128xbf16>, vector<128x128xbf16>, vector<8x128xf32> -> vector<8x128xf32>
    %c0_19 = arith.constant 0 : index
    %c1 = arith.constant 1 : index
    %c0_20 = arith.constant 0 : index
    %c0_21 = arith.constant 0 : index
    %35 = vector.load %arg8[%c0_19, %c1, %c0_20, %c0_21] : memref<1x4x128x128xbf16, #tpu.memory_space<vmem>>, vector<1x1x128x128xbf16>
    %36 = vector.shape_cast %35 : vector<1x1x128x128xbf16> to vector<128x128xbf16>
    %cst_22 = arith.constant dense<0.000000e+00> : vector<8x128xf32>
    %37 = tpu.matmul %31, %36, %cst_22 {dimension_numbers = #tpu.dot_dimension_numbers<[1], [0], [0], [1], [0, 0, 1, 1], [], []>} : vector<8x128xbf16>, vector<128x128xbf16>, vector<8x128xf32> -> vector<8x128xf32>
    %c0_23 = arith.constant 0 : index
    %c2 = arith.constant 2 : index
    %c0_24 = arith.constant 0 : index
    %c0_25 = arith.constant 0 : index
    %38 = vector.load %arg8[%c0_23, %c2, %c0_24, %c0_25] : memref<1x4x128x128xbf16, #tpu.memory_space<vmem>>, vector<1x1x128x128xbf16>
    %39 = vector.shape_cast %38 : vector<1x1x128x128xbf16> to vector<128x128xbf16>
    %cst_26 = arith.constant dense<0.000000e+00> : vector<8x128xf32>
    %40 = tpu.matmul %31, %39, %cst_26 {dimension_numbers = #tpu.dot_dimension_numbers<[1], [0], [0], [1], [0, 0, 1, 1], [], []>} : vector<8x128xbf16>, vector<128x128xbf16>, vector<8x128xf32> -> vector<8x128xf32>
    %c0_27 = arith.constant 0 : index
    %c3 = arith.constant 3 : index
    %c0_28 = arith.constant 0 : index
    %c0_29 = arith.constant 0 : index
    %41 = vector.load %arg8[%c0_27, %c3, %c0_28, %c0_29] : memref<1x4x128x128xbf16, #tpu.memory_space<vmem>>, vector<1x1x128x128xbf16>
    %42 = vector.shape_cast %41 : vector<1x1x128x128xbf16> to vector<128x128xbf16>
    %cst_30 = arith.constant dense<0.000000e+00> : vector<8x128xf32>
    %43 = tpu.matmul %31, %42, %cst_30 {dimension_numbers = #tpu.dot_dimension_numbers<[1], [0], [0], [1], [0, 0, 1, 1], [], []>} : vector<8x128xbf16>, vector<128x128xbf16>, vector<8x128xf32> -> vector<8x128xf32>
    %c0_31 = arith.constant 0 : index
    %c0_32 = arith.constant 0 : index
    %c0_33 = arith.constant 0 : index
    %c0_34 = arith.constant 0 : index
    %44 = vector.load %arg9[%c0_31, %c0_32, %c0_33, %c0_34] : memref<1x4x128x128xbf16, #tpu.memory_space<vmem>>, vector<1x1x128x128xbf16>
    %45 = vector.shape_cast %44 : vector<1x1x128x128xbf16> to vector<128x128xbf16>
    %cst_35 = arith.constant dense<0.000000e+00> : vector<8x128xf32>
    %46 = tpu.matmul %31, %45, %cst_35 {dimension_numbers = #tpu.dot_dimension_numbers<[1], [0], [0], [1], [0, 0, 1, 1], [], []>} : vector<8x128xbf16>, vector<128x128xbf16>, vector<8x128xf32> -> vector<8x128xf32>
    %c0_36 = arith.constant 0 : index
    %c1_37 = arith.constant 1 : index
    %c0_38 = arith.constant 0 : index
    %c0_39 = arith.constant 0 : index
    %47 = vector.load %arg9[%c0_36, %c1_37, %c0_38, %c0_39] : memref<1x4x128x128xbf16, #tpu.memory_space<vmem>>, vector<1x1x128x128xbf16>
    %48 = vector.shape_cast %47 : vector<1x1x128x128xbf16> to vector<128x128xbf16>
    %cst_40 = arith.constant dense<0.000000e+00> : vector<8x128xf32>
    %49 = tpu.matmul %31, %48, %cst_40 {dimension_numbers = #tpu.dot_dimension_numbers<[1], [0], [0], [1], [0, 0, 1, 1], [], []>} : vector<8x128xbf16>, vector<128x128xbf16>, vector<8x128xf32> -> vector<8x128xf32>
    %c0_41 = arith.constant 0 : index
    %c2_42 = arith.constant 2 : index
    %c0_43 = arith.constant 0 : index
    %c0_44 = arith.constant 0 : index
    %50 = vector.load %arg9[%c0_41, %c2_42, %c0_43, %c0_44] : memref<1x4x128x128xbf16, #tpu.memory_space<vmem>>, vector<1x1x128x128xbf16>
    %51 = vector.shape_cast %50 : vector<1x1x128x128xbf16> to vector<128x128xbf16>
    %cst_45 = arith.constant dense<0.000000e+00> : vector<8x128xf32>
    %52 = tpu.matmul %31, %51, %cst_45 {dimension_numbers = #tpu.dot_dimension_numbers<[1], [0], [0], [1], [0, 0, 1, 1], [], []>} : vector<8x128xbf16>, vector<128x128xbf16>, vector<8x128xf32> -> vector<8x128xf32>
    %c0_46 = arith.constant 0 : index
    %c3_47 = arith.constant 3 : index
    %c0_48 = arith.constant 0 : index
    %c0_49 = arith.constant 0 : index
    %53 = vector.load %arg9[%c0_46, %c3_47, %c0_48, %c0_49] : memref<1x4x128x128xbf16, #tpu.memory_space<vmem>>, vector<1x1x128x128xbf16>
    %54 = vector.shape_cast %53 : vector<1x1x128x128xbf16> to vector<128x128xbf16>
    %cst_50 = arith.constant dense<0.000000e+00> : vector<8x128xf32>
    %55 = tpu.matmul %31, %54, %cst_50 {dimension_numbers = #tpu.dot_dimension_numbers<[1], [0], [0], [1], [0, 0, 1, 1], [], []>} : vector<8x128xbf16>, vector<128x128xbf16>, vector<8x128xf32> -> vector<8x128xf32>
    %c0_51 = arith.constant 0 : index
    %c0_52 = arith.constant 0 : index
    %c0_53 = arith.constant 0 : index
    %c0_54 = arith.constant 0 : index
    %56 = vector.load %arg10[%c0_51, %c0_52, %c0_53, %c0_54] : memref<1x4x128x128xbf16, #tpu.memory_space<vmem>>, vector<1x1x128x128xbf16>
    %57 = vector.shape_cast %56 : vector<1x1x128x128xbf16> to vector<128x128xbf16>
    %cst_55 = arith.constant dense<0.000000e+00> : vector<8x128xf32>
    %58 = tpu.matmul %31, %57, %cst_55 {dimension_numbers = #tpu.dot_dimension_numbers<[1], [0], [0], [1], [0, 0, 1, 1], [], []>} : vector<8x128xbf16>, vector<128x128xbf16>, vector<8x128xf32> -> vector<8x128xf32>
    %c0_56 = arith.constant 0 : index
    %c1_57 = arith.constant 1 : index
    %c0_58 = arith.constant 0 : index
    %c0_59 = arith.constant 0 : index
    %59 = vector.load %arg10[%c0_56, %c1_57, %c0_58, %c0_59] : memref<1x4x128x128xbf16, #tpu.memory_space<vmem>>, vector<1x1x128x128xbf16>
    %60 = vector.shape_cast %59 : vector<1x1x128x128xbf16> to vector<128x128xbf16>
    %cst_60 = arith.constant dense<0.000000e+00> : vector<8x128xf32>
    %61 = tpu.matmul %31, %60, %cst_60 {dimension_numbers = #tpu.dot_dimension_numbers<[1], [0], [0], [1], [0, 0, 1, 1], [], []>} : vector<8x128xbf16>, vector<128x128xbf16>, vector<8x128xf32> -> vector<8x128xf32>
    %c0_61 = arith.constant 0 : index
    %c2_62 = arith.constant 2 : index
    %c0_63 = arith.constant 0 : index
    %c0_64 = arith.constant 0 : index
    %62 = vector.load %arg10[%c0_61, %c2_62, %c0_63, %c0_64] : memref<1x4x128x128xbf16, #tpu.memory_space<vmem>>, vector<1x1x128x128xbf16>
    %63 = vector.shape_cast %62 : vector<1x1x128x128xbf16> to vector<128x128xbf16>
    %cst_65 = arith.constant dense<0.000000e+00> : vector<8x128xf32>
    %64 = tpu.matmul %31, %63, %cst_65 {dimension_numbers = #tpu.dot_dimension_numbers<[1], [0], [0], [1], [0, 0, 1, 1], [], []>} : vector<8x128xbf16>, vector<128x128xbf16>, vector<8x128xf32> -> vector<8x128xf32>
    %c0_66 = arith.constant 0 : index
    %c3_67 = arith.constant 3 : index
    %c0_68 = arith.constant 0 : index
    %c0_69 = arith.constant 0 : index
    %65 = vector.load %arg10[%c0_66, %c3_67, %c0_68, %c0_69] : memref<1x4x128x128xbf16, #tpu.memory_space<vmem>>, vector<1x1x128x128xbf16>
    %66 = vector.shape_cast %65 : vector<1x1x128x128xbf16> to vector<128x128xbf16>
    %cst_70 = arith.constant dense<0.000000e+00> : vector<8x128xf32>
    %67 = tpu.matmul %31, %66, %cst_70 {dimension_numbers = #tpu.dot_dimension_numbers<[1], [0], [0], [1], [0, 0, 1, 1], [], []>} : vector<8x128xbf16>, vector<128x128xbf16>, vector<8x128xf32> -> vector<8x128xf32>
    %cst_71 = arith.constant 0.000000e+00 : f32
    %68 = vector.broadcast %cst_71 : f32 to vector<8x128xf32>
    %69 = arith.truncf %34 : vector<8x128xf32> to vector<8x128xbf16>
    %70 = arith.truncf %46 : vector<8x128xf32> to vector<8x128xbf16>
    %cst_72 = arith.constant dense<0.000000e+00> : vector<8x8xf32>
    %71 = tpu.matmul %69, %70, %cst_72 {dimension_numbers = #tpu.dot_dimension_numbers<[1], [1], [0], [0], [0, 0, 1, 0], [], []>} : vector<8x128xbf16>, vector<8x128xbf16>, vector<8x8xf32> -> vector<8x8xf32>
    %cst_73 = arith.constant 0.353553385 : f32
    %72 = vector.broadcast %cst_73 : f32 to vector<8x8xf32>
    %73 = arith.mulf %71, %72 : vector<8x8xf32>
    %74 = arith.addf %73, %4 : vector<8x8xf32>
    %cst_74 = arith.constant dense<0xFF800000> : vector<8xf32>
    %75 = vector.multi_reduction <maximumf>, %74, %cst_74 [1] : vector<8x8xf32> to vector<8xf32>
    %76 = vector.shape_cast %75 : vector<8xf32> to vector<8x1xf32>
    %77 = vector.broadcast %76 : vector<8x1xf32> to vector<8x8xf32>
    %78 = arith.subf %74, %77 : vector<8x8xf32>
    %79 = math.exp %78 : vector<8x8xf32>
    %cst_75 = arith.constant dense<0.000000e+00> : vector<8xf32>
    %80 = vector.multi_reduction <add>, %79, %cst_75 [1] : vector<8x8xf32> to vector<8xf32>
    %81 = vector.shape_cast %80 : vector<8xf32> to vector<8x1xf32>
    %82 = tpu.reciprocal %81 {approx = true} : vector<8x1xf32> -> vector<8x1xf32>
    %83 = vector.broadcast %82 : vector<8x1xf32> to vector<8x8xf32>
    %84 = arith.mulf %79, %83 : vector<8x8xf32>
    %85 = arith.truncf %84 : vector<8x8xf32> to vector<8x8xbf16>
    %86 = arith.truncf %58 : vector<8x128xf32> to vector<8x128xbf16>
    %cst_76 = arith.constant dense<0.000000e+00> : vector<8x128xf32>
    %87 = tpu.matmul %85, %86, %cst_76 {dimension_numbers = #tpu.dot_dimension_numbers<[1], [0], [0], [1], [0, 0, 1, 1], [], []>} : vector<8x8xbf16>, vector<8x128xbf16>, vector<8x128xf32> -> vector<8x128xf32>
    %88 = arith.truncf %87 : vector<8x128xf32> to vector<8x128xbf16>
    %c0_77 = arith.constant 0 : index
    %c0_78 = arith.constant 0 : index
    %c0_79 = arith.constant 0 : index
    %c0_80 = arith.constant 0 : index
    %89 = vector.load %arg11[%c0_77, %c0_78, %c0_79, %c0_80] : memref<1x4x128x128xbf16, #tpu.memory_space<vmem>>, vector<1x1x128x128xbf16>
    %90 = vector.shape_cast %89 : vector<1x1x128x128xbf16> to vector<128x128xbf16>
    %cst_81 = arith.constant dense<0.000000e+00> : vector<8x128xf32>
    %91 = tpu.matmul %88, %90, %cst_81 {dimension_numbers = #tpu.dot_dimension_numbers<[1], [0], [0], [1], [0, 0, 1, 1], [], []>} : vector<8x128xbf16>, vector<128x128xbf16>, vector<8x128xf32> -> vector<8x128xf32>
    %92 = arith.addf %68, %91 : vector<8x128xf32>
    %93 = arith.truncf %37 : vector<8x128xf32> to vector<8x128xbf16>
    %94 = arith.truncf %49 : vector<8x128xf32> to vector<8x128xbf16>
    %cst_82 = arith.constant dense<0.000000e+00> : vector<8x8xf32>
    %95 = tpu.matmul %93, %94, %cst_82 {dimension_numbers = #tpu.dot_dimension_numbers<[1], [1], [0], [0], [0, 0, 1, 0], [], []>} : vector<8x128xbf16>, vector<8x128xbf16>, vector<8x8xf32> -> vector<8x8xf32>
    %cst_83 = arith.constant 0.353553385 : f32
    %96 = vector.broadcast %cst_83 : f32 to vector<8x8xf32>
    %97 = arith.mulf %95, %96 : vector<8x8xf32>
    %98 = arith.addf %97, %4 : vector<8x8xf32>
    %cst_84 = arith.constant dense<0xFF800000> : vector<8xf32>
    %99 = vector.multi_reduction <maximumf>, %98, %cst_84 [1] : vector<8x8xf32> to vector<8xf32>
    %100 = vector.shape_cast %99 : vector<8xf32> to vector<8x1xf32>
    %101 = vector.broadcast %100 : vector<8x1xf32> to vector<8x8xf32>
    %102 = arith.subf %98, %101 : vector<8x8xf32>
    %103 = math.exp %102 : vector<8x8xf32>
    %cst_85 = arith.constant dense<0.000000e+00> : vector<8xf32>
    %104 = vector.multi_reduction <add>, %103, %cst_85 [1] : vector<8x8xf32> to vector<8xf32>
    %105 = vector.shape_cast %104 : vector<8xf32> to vector<8x1xf32>
    %106 = tpu.reciprocal %105 {approx = true} : vector<8x1xf32> -> vector<8x1xf32>
    %107 = vector.broadcast %106 : vector<8x1xf32> to vector<8x8xf32>
    %108 = arith.mulf %103, %107 : vector<8x8xf32>
    %109 = arith.truncf %108 : vector<8x8xf32> to vector<8x8xbf16>
    %110 = arith.truncf %61 : vector<8x128xf32> to vector<8x128xbf16>
    %cst_86 = arith.constant dense<0.000000e+00> : vector<8x128xf32>
    %111 = tpu.matmul %109, %110, %cst_86 {dimension_numbers = #tpu.dot_dimension_numbers<[1], [0], [0], [1], [0, 0, 1, 1], [], []>} : vector<8x8xbf16>, vector<8x128xbf16>, vector<8x128xf32> -> vector<8x128xf32>
    %112 = arith.truncf %111 : vector<8x128xf32> to vector<8x128xbf16>
    %c0_87 = arith.constant 0 : index
    %c1_88 = arith.constant 1 : index
    %c0_89 = arith.constant 0 : index
    %c0_90 = arith.constant 0 : index
    %113 = vector.load %arg11[%c0_87, %c1_88, %c0_89, %c0_90] : memref<1x4x128x128xbf16, #tpu.memory_space<vmem>>, vector<1x1x128x128xbf16>
    %114 = vector.shape_cast %113 : vector<1x1x128x128xbf16> to vector<128x128xbf16>
    %cst_91 = arith.constant dense<0.000000e+00> : vector<8x128xf32>
    %115 = tpu.matmul %112, %114, %cst_91 {dimension_numbers = #tpu.dot_dimension_numbers<[1], [0], [0], [1], [0, 0, 1, 1], [], []>} : vector<8x128xbf16>, vector<128x128xbf16>, vector<8x128xf32> -> vector<8x128xf32>
    %116 = arith.addf %92, %115 : vector<8x128xf32>
    %117 = arith.truncf %40 : vector<8x128xf32> to vector<8x128xbf16>
    %118 = arith.truncf %52 : vector<8x128xf32> to vector<8x128xbf16>
    %cst_92 = arith.constant dense<0.000000e+00> : vector<8x8xf32>
    %119 = tpu.matmul %117, %118, %cst_92 {dimension_numbers = #tpu.dot_dimension_numbers<[1], [1], [0], [0], [0, 0, 1, 0], [], []>} : vector<8x128xbf16>, vector<8x128xbf16>, vector<8x8xf32> -> vector<8x8xf32>
    %cst_93 = arith.constant 0.353553385 : f32
    %120 = vector.broadcast %cst_93 : f32 to vector<8x8xf32>
    %121 = arith.mulf %119, %120 : vector<8x8xf32>
    %122 = arith.addf %121, %4 : vector<8x8xf32>
    %cst_94 = arith.constant dense<0xFF800000> : vector<8xf32>
    %123 = vector.multi_reduction <maximumf>, %122, %cst_94 [1] : vector<8x8xf32> to vector<8xf32>
    %124 = vector.shape_cast %123 : vector<8xf32> to vector<8x1xf32>
    %125 = vector.broadcast %124 : vector<8x1xf32> to vector<8x8xf32>
    %126 = arith.subf %122, %125 : vector<8x8xf32>
    %127 = math.exp %126 : vector<8x8xf32>
    %cst_95 = arith.constant dense<0.000000e+00> : vector<8xf32>
    %128 = vector.multi_reduction <add>, %127, %cst_95 [1] : vector<8x8xf32> to vector<8xf32>
    %129 = vector.shape_cast %128 : vector<8xf32> to vector<8x1xf32>
    %130 = tpu.reciprocal %129 {approx = true} : vector<8x1xf32> -> vector<8x1xf32>
    %131 = vector.broadcast %130 : vector<8x1xf32> to vector<8x8xf32>
    %132 = arith.mulf %127, %131 : vector<8x8xf32>
    %133 = arith.truncf %132 : vector<8x8xf32> to vector<8x8xbf16>
    %134 = arith.truncf %64 : vector<8x128xf32> to vector<8x128xbf16>
    %cst_96 = arith.constant dense<0.000000e+00> : vector<8x128xf32>
    %135 = tpu.matmul %133, %134, %cst_96 {dimension_numbers = #tpu.dot_dimension_numbers<[1], [0], [0], [1], [0, 0, 1, 1], [], []>} : vector<8x8xbf16>, vector<8x128xbf16>, vector<8x128xf32> -> vector<8x128xf32>
    %136 = arith.truncf %135 : vector<8x128xf32> to vector<8x128xbf16>
    %c0_97 = arith.constant 0 : index
    %c2_98 = arith.constant 2 : index
    %c0_99 = arith.constant 0 : index
    %c0_100 = arith.constant 0 : index
    %137 = vector.load %arg11[%c0_97, %c2_98, %c0_99, %c0_100] : memref<1x4x128x128xbf16, #tpu.memory_space<vmem>>, vector<1x1x128x128xbf16>
    %138 = vector.shape_cast %137 : vector<1x1x128x128xbf16> to vector<128x128xbf16>
    %cst_101 = arith.constant dense<0.000000e+00> : vector<8x128xf32>
    %139 = tpu.matmul %136, %138, %cst_101 {dimension_numbers = #tpu.dot_dimension_numbers<[1], [0], [0], [1], [0, 0, 1, 1], [], []>} : vector<8x128xbf16>, vector<128x128xbf16>, vector<8x128xf32> -> vector<8x128xf32>
    %140 = arith.addf %116, %139 : vector<8x128xf32>
    %141 = arith.truncf %43 : vector<8x128xf32> to vector<8x128xbf16>
    %142 = arith.truncf %55 : vector<8x128xf32> to vector<8x128xbf16>
    %cst_102 = arith.constant dense<0.000000e+00> : vector<8x8xf32>
    %143 = tpu.matmul %141, %142, %cst_102 {dimension_numbers = #tpu.dot_dimension_numbers<[1], [1], [0], [0], [0, 0, 1, 0], [], []>} : vector<8x128xbf16>, vector<8x128xbf16>, vector<8x8xf32> -> vector<8x8xf32>
    %cst_103 = arith.constant 0.353553385 : f32
    %144 = vector.broadcast %cst_103 : f32 to vector<8x8xf32>
    %145 = arith.mulf %143, %144 : vector<8x8xf32>
    %146 = arith.addf %145, %4 : vector<8x8xf32>
    %cst_104 = arith.constant dense<0xFF800000> : vector<8xf32>
    %147 = vector.multi_reduction <maximumf>, %146, %cst_104 [1] : vector<8x8xf32> to vector<8xf32>
    %148 = vector.shape_cast %147 : vector<8xf32> to vector<8x1xf32>
    %149 = vector.broadcast %148 : vector<8x1xf32> to vector<8x8xf32>
    %150 = arith.subf %146, %149 : vector<8x8xf32>
    %151 = math.exp %150 : vector<8x8xf32>
    %cst_105 = arith.constant dense<0.000000e+00> : vector<8xf32>
    %152 = vector.multi_reduction <add>, %151, %cst_105 [1] : vector<8x8xf32> to vector<8xf32>
    %153 = vector.shape_cast %152 : vector<8xf32> to vector<8x1xf32>
    %154 = tpu.reciprocal %153 {approx = true} : vector<8x1xf32> -> vector<8x1xf32>
    %155 = vector.broadcast %154 : vector<8x1xf32> to vector<8x8xf32>
    %156 = arith.mulf %151, %155 : vector<8x8xf32>
    %157 = arith.truncf %156 : vector<8x8xf32> to vector<8x8xbf16>
    %158 = arith.truncf %67 : vector<8x128xf32> to vector<8x128xbf16>
    %cst_106 = arith.constant dense<0.000000e+00> : vector<8x128xf32>
    %159 = tpu.matmul %157, %158, %cst_106 {dimension_numbers = #tpu.dot_dimension_numbers<[1], [0], [0], [1], [0, 0, 1, 1], [], []>} : vector<8x8xbf16>, vector<8x128xbf16>, vector<8x128xf32> -> vector<8x128xf32>
    %160 = arith.truncf %159 : vector<8x128xf32> to vector<8x128xbf16>
    %c0_107 = arith.constant 0 : index
    %c3_108 = arith.constant 3 : index
    %c0_109 = arith.constant 0 : index
    %c0_110 = arith.constant 0 : index
    %161 = vector.load %arg11[%c0_107, %c3_108, %c0_109, %c0_110] : memref<1x4x128x128xbf16, #tpu.memory_space<vmem>>, vector<1x1x128x128xbf16>
    %162 = vector.shape_cast %161 : vector<1x1x128x128xbf16> to vector<128x128xbf16>
    %cst_111 = arith.constant dense<0.000000e+00> : vector<8x128xf32>
    %163 = tpu.matmul %160, %162, %cst_111 {dimension_numbers = #tpu.dot_dimension_numbers<[1], [0], [0], [1], [0, 0, 1, 1], [], []>} : vector<8x128xbf16>, vector<128x128xbf16>, vector<8x128xf32> -> vector<8x128xf32>
    %164 = arith.addf %140, %163 : vector<8x128xf32>
    %165 = arith.addf %3, %164 : vector<8x128xf32>
    %c0_112 = arith.constant 0 : index
    %c0_113 = arith.constant 0 : index
    %c0_114 = arith.constant 0 : index
    %166 = vector.load %arg12[%c0_112, %c0_113, %c0_114] : memref<1x1x128xf32, #tpu.memory_space<vmem>>, vector<1x1x128xf32>
    %167 = vector.shape_cast %166 : vector<1x1x128xf32> to vector<1x128xf32>
    %168 = vector.broadcast %167 : vector<1x128xf32> to vector<8x128xf32>
    %169 = arith.addf %165, %168 : vector<8x128xf32>
    %c0_115 = arith.constant 0 : index
    %c0_116 = arith.constant 0 : index
    %c0_117 = arith.constant 0 : index
    %170 = vector.load %arg13[%c0_115, %c0_116, %c0_117] : memref<1x1x128xf32, #tpu.memory_space<vmem>>, vector<1x1x128xf32>
    %171 = vector.shape_cast %170 : vector<1x1x128xf32> to vector<1x128xf32>
    %c0_118 = arith.constant 0 : index
    %c0_119 = arith.constant 0 : index
    %c0_120 = arith.constant 0 : index
    %172 = vector.load %arg14[%c0_118, %c0_119, %c0_120] : memref<1x1x128xf32, #tpu.memory_space<vmem>>, vector<1x1x128xf32>
    %173 = vector.shape_cast %172 : vector<1x1x128xf32> to vector<1x128xf32>
    %cst_121 = arith.constant dense<0.000000e+00> : vector<8xf32>
    %174 = vector.multi_reduction <add>, %169, %cst_121 [1] : vector<8x128xf32> to vector<8xf32>
    %175 = vector.shape_cast %174 : vector<8xf32> to vector<8x1xf32>
    %cst_122 = arith.constant 3.125000e-02 : f32
    %176 = vector.broadcast %cst_122 : f32 to vector<8x1xf32>
    %177 = arith.mulf %175, %176 : vector<8x1xf32>
    %178 = arith.mulf %169, %169 : vector<8x128xf32>
    %cst_123 = arith.constant dense<0.000000e+00> : vector<8xf32>
    %179 = vector.multi_reduction <add>, %178, %cst_123 [1] : vector<8x128xf32> to vector<8xf32>
    %180 = vector.shape_cast %179 : vector<8xf32> to vector<8x1xf32>
    %cst_124 = arith.constant 3.125000e-02 : f32
    %181 = vector.broadcast %cst_124 : f32 to vector<8x1xf32>
    %182 = arith.mulf %180, %181 : vector<8x1xf32>
    %183 = arith.mulf %177, %177 : vector<8x1xf32>
    %184 = arith.subf %182, %183 : vector<8x1xf32>
    %185 = vector.broadcast %177 : vector<8x1xf32> to vector<8x128xf32>
    %186 = arith.subf %169, %185 : vector<8x128xf32>
    %cst_125 = arith.constant 9.99999974E-6 : f32
    %187 = vector.broadcast %cst_125 : f32 to vector<8x1xf32>
    %188 = arith.addf %184, %187 : vector<8x1xf32>
    %189 = math.rsqrt %188 : vector<8x1xf32>
    %190 = vector.broadcast %189 : vector<8x1xf32> to vector<8x128xf32>
    %191 = arith.mulf %186, %190 : vector<8x128xf32>
    %192 = vector.broadcast %171 : vector<1x128xf32> to vector<8x128xf32>
    %193 = arith.mulf %191, %192 : vector<8x128xf32>
    %194 = vector.broadcast %173 : vector<1x128xf32> to vector<8x128xf32>
    %195 = arith.addf %193, %194 : vector<8x128xf32>
    %196 = arith.truncf %195 : vector<8x128xf32> to vector<8x128xbf16>
    %c0_126 = arith.constant 0 : index
    %c0_127 = arith.constant 0 : index
    %c0_128 = arith.constant 0 : index
    %197 = vector.load %arg15[%c0_126, %c0_127, %c0_128] : memref<1x128x128xbf16, #tpu.memory_space<vmem>>, vector<1x128x128xbf16>
    %198 = vector.shape_cast %197 : vector<1x128x128xbf16> to vector<128x128xbf16>
    %cst_129 = arith.constant dense<0.000000e+00> : vector<8x128xf32>
    %199 = tpu.matmul %196, %198, %cst_129 {dimension_numbers = #tpu.dot_dimension_numbers<[1], [0], [0], [1], [0, 0, 1, 1], [], []>} : vector<8x128xbf16>, vector<128x128xbf16>, vector<8x128xf32> -> vector<8x128xf32>
    %c0_130 = arith.constant 0 : index
    %c0_131 = arith.constant 0 : index
    %c0_132 = arith.constant 0 : index
    %200 = vector.load %arg16[%c0_130, %c0_131, %c0_132] : memref<1x1x128xf32, #tpu.memory_space<vmem>>, vector<1x1x128xf32>
    %201 = vector.shape_cast %200 : vector<1x1x128xf32> to vector<1x128xf32>
    %202 = vector.broadcast %201 : vector<1x128xf32> to vector<8x128xf32>
    %203 = arith.addf %199, %202 : vector<8x128xf32>
    %cst_133 = arith.constant 0.000000e+00 : f32
    %204 = vector.broadcast %cst_133 : f32 to vector<8x128xf32>
    %205 = arith.maximumf %203, %204 : vector<8x128xf32>
    %206 = arith.truncf %205 : vector<8x128xf32> to vector<8x128xbf16>
    %c0_134 = arith.constant 0 : index
    %c0_135 = arith.constant 0 : index
    %c0_136 = arith.constant 0 : index
    %207 = vector.load %arg17[%c0_134, %c0_135, %c0_136] : memref<1x128x128xbf16, #tpu.memory_space<vmem>>, vector<1x128x128xbf16>
    %208 = vector.shape_cast %207 : vector<1x128x128xbf16> to vector<128x128xbf16>
    %cst_137 = arith.constant dense<0.000000e+00> : vector<8x128xf32>
    %209 = tpu.matmul %206, %208, %cst_137 {dimension_numbers = #tpu.dot_dimension_numbers<[1], [0], [0], [1], [0, 0, 1, 1], [], []>} : vector<8x128xbf16>, vector<128x128xbf16>, vector<8x128xf32> -> vector<8x128xf32>
    %c0_138 = arith.constant 0 : index
    %c0_139 = arith.constant 0 : index
    %c0_140 = arith.constant 0 : index
    %210 = vector.load %arg18[%c0_138, %c0_139, %c0_140] : memref<1x1x128xf32, #tpu.memory_space<vmem>>, vector<1x1x128xf32>
    %211 = vector.shape_cast %210 : vector<1x1x128xf32> to vector<1x128xf32>
    %212 = vector.broadcast %211 : vector<1x128xf32> to vector<8x128xf32>
    %213 = arith.addf %209, %212 : vector<8x128xf32>
    %214 = arith.addf %169, %213 : vector<8x128xf32>
    %c0_141 = arith.constant 0 : index
    %c0_142 = arith.constant 0 : index
    %215 = vector.load %arg22[%c0_141, %c0_142] : memref<8x128xf32, #tpu.memory_space<vmem>>, vector<8x128xf32>
    tpu.vector_store %arg22[%c0_141, %c0_142], %214 {strides = array<i32>} : memref<8x128xf32, #tpu.memory_space<vmem>>, vector<8x128xf32>,
    %c1_i32 = arith.constant 1 : i32
    %216 = arith.cmpi eq, %arg1, %c1_i32 : i32
    %217 = arith.extui %216 : i1 to i32
    %c0_i32_143 = arith.constant 0 : i32
    %218 = arith.cmpi ne, %217, %c0_i32_143 : i32
    scf.if %218 {
      %219 = arith.truncf %214 : vector<8x128xf32> to vector<8x128xbf16>
      %c0_144 = arith.constant 0 : index
      %c0_145 = arith.constant 0 : index
      %220 = vector.load %arg19[%c0_144, %c0_145] : memref<128x128xbf16, #tpu.memory_space<vmem>>, vector<128x128xbf16>
      %cst_146 = arith.constant dense<0.000000e+00> : vector<8x128xf32>
      %221 = tpu.matmul %219, %220, %cst_146 {dimension_numbers = #tpu.dot_dimension_numbers<[1], [0], [0], [1], [0, 0, 1, 1], [], []>} : vector<8x128xbf16>, vector<128x128xbf16>, vector<8x128xf32> -> vector<8x128xf32>
      %c0_147 = arith.constant 0 : index
      %c0_148 = arith.constant 0 : index
      %222 = vector.load %arg20[%c0_147, %c0_148] : memref<1x128xf32, #tpu.memory_space<vmem>>, vector<1x128xf32>
      %223 = vector.broadcast %222 : vector<1x128xf32> to vector<8x128xf32>
      %224 = arith.addf %221, %223 : vector<8x128xf32>
      %c0_149 = arith.constant 0 : index
      %c0_150 = arith.constant 0 : index
      %225 = vector.load %arg21[%c0_149, %c0_150] : memref<8x128xf32, #tpu.memory_space<vmem>>, vector<8x128xf32>
      tpu.vector_store %arg21[%c0_149, %c0_150], %224 {strides = array<i32>} : memref<8x128xf32, #tpu.memory_space<vmem>>, vector<8x128xf32>,
    } else {
    }
    return
  }
  func.func @transform_0(%arg0: i32, %arg1: i32, %arg2: memref<2x8xi32, #tpu.memory_space<smem>>) -> (i32, i32) {
    %c0_i32 = arith.constant 0 : i32
    %c0_i32_0 = arith.constant 0 : i32
    %c0_i32_1 = arith.constant 0 : i32
    return %c0_i32, %c0_i32_0 : i32, i32
  }
  func.func @transform_1(%arg0: i32, %arg1: i32, %arg2: memref<2x8xi32, #tpu.memory_space<smem>>) -> (i32, i32) {
    %c0_i32 = arith.constant 0 : i32
    %c0_i32_0 = arith.constant 0 : i32
    %c0_i32_1 = arith.constant 0 : i32
    return %c0_i32, %c0_i32_0 : i32, i32
  }
  func.func @transform_2(%arg0: i32, %arg1: i32, %arg2: memref<2x8xi32, #tpu.memory_space<smem>>) -> (i32, i32) {
    %c0_i32 = arith.constant 0 : i32
    %c0_i32_0 = arith.constant 0 : i32
    %c0_i32_1 = arith.constant 0 : i32
    return %c0_i32, %c0_i32_0 : i32, i32
  }
  func.func @transform_3(%arg0: i32, %arg1: i32, %arg2: memref<2x8xi32, #tpu.memory_space<smem>>) -> (i32, i32, i32) {
    %c0_i32 = arith.constant 0 : i32
    %c0_i32_0 = arith.constant 0 : i32
    %c0_i32_1 = arith.constant 0 : i32
    return %arg1, %c0_i32, %c0_i32_0 : i32, i32, i32
  }
  func.func @transform_4(%arg0: i32, %arg1: i32, %arg2: memref<2x8xi32, #tpu.memory_space<smem>>) -> (i32, i32, i32) {
    %c0_i32 = arith.constant 0 : i32
    %c0_i32_0 = arith.constant 0 : i32
    %c0_i32_1 = arith.constant 0 : i32
    return %arg1, %c0_i32, %c0_i32_0 : i32, i32, i32
  }
  func.func @transform_5(%arg0: i32, %arg1: i32, %arg2: memref<2x8xi32, #tpu.memory_space<smem>>) -> (i32, i32, i32, i32) {
    %c0_i32 = arith.constant 0 : i32
    %c0_i32_0 = arith.constant 0 : i32
    %c0_i32_1 = arith.constant 0 : i32
    %c0_i32_2 = arith.constant 0 : i32
    return %arg1, %c0_i32, %c0_i32_0, %c0_i32_1 : i32, i32, i32, i32
  }
  func.func @transform_6(%arg0: i32, %arg1: i32, %arg2: memref<2x8xi32, #tpu.memory_space<smem>>) -> (i32, i32, i32, i32) {
    %c0_i32 = arith.constant 0 : i32
    %c0_i32_0 = arith.constant 0 : i32
    %c0_i32_1 = arith.constant 0 : i32
    %c0_i32_2 = arith.constant 0 : i32
    return %arg1, %c0_i32, %c0_i32_0, %c0_i32_1 : i32, i32, i32, i32
  }
  func.func @transform_7(%arg0: i32, %arg1: i32, %arg2: memref<2x8xi32, #tpu.memory_space<smem>>) -> (i32, i32, i32, i32) {
    %c0_i32 = arith.constant 0 : i32
    %c0_i32_0 = arith.constant 0 : i32
    %c0_i32_1 = arith.constant 0 : i32
    %c0_i32_2 = arith.constant 0 : i32
    return %arg1, %c0_i32, %c0_i32_0, %c0_i32_1 : i32, i32, i32, i32
  }
  func.func @transform_8(%arg0: i32, %arg1: i32, %arg2: memref<2x8xi32, #tpu.memory_space<smem>>) -> (i32, i32, i32, i32) {
    %c0_i32 = arith.constant 0 : i32
    %c0_i32_0 = arith.constant 0 : i32
    %c0_i32_1 = arith.constant 0 : i32
    %c0_i32_2 = arith.constant 0 : i32
    return %arg1, %c0_i32, %c0_i32_0, %c0_i32_1 : i32, i32, i32, i32
  }
  func.func @transform_9(%arg0: i32, %arg1: i32, %arg2: memref<2x8xi32, #tpu.memory_space<smem>>) -> (i32, i32, i32) {
    %c0_i32 = arith.constant 0 : i32
    %c0_i32_0 = arith.constant 0 : i32
    %c0_i32_1 = arith.constant 0 : i32
    return %arg1, %c0_i32, %c0_i32_0 : i32, i32, i32
  }
  func.func @transform_10(%arg0: i32, %arg1: i32, %arg2: memref<2x8xi32, #tpu.memory_space<smem>>) -> (i32, i32, i32) {
    %c0_i32 = arith.constant 0 : i32
    %c0_i32_0 = arith.constant 0 : i32
    %c0_i32_1 = arith.constant 0 : i32
    return %arg1, %c0_i32, %c0_i32_0 : i32, i32, i32
  }
  func.func @transform_11(%arg0: i32, %arg1: i32, %arg2: memref<2x8xi32, #tpu.memory_space<smem>>) -> (i32, i32, i32) {
    %c0_i32 = arith.constant 0 : i32
    %c0_i32_0 = arith.constant 0 : i32
    %c0_i32_1 = arith.constant 0 : i32
    return %arg1, %c0_i32, %c0_i32_0 : i32, i32, i32
  }
  func.func @transform_12(%arg0: i32, %arg1: i32, %arg2: memref<2x8xi32, #tpu.memory_space<smem>>) -> (i32, i32, i32) {
    %c0_i32 = arith.constant 0 : i32
    %c0_i32_0 = arith.constant 0 : i32
    %c0_i32_1 = arith.constant 0 : i32
    return %arg1, %c0_i32, %c0_i32_0 : i32, i32, i32
  }
  func.func @transform_13(%arg0: i32, %arg1: i32, %arg2: memref<2x8xi32, #tpu.memory_space<smem>>) -> (i32, i32, i32) {
    %c0_i32 = arith.constant 0 : i32
    %c0_i32_0 = arith.constant 0 : i32
    %c0_i32_1 = arith.constant 0 : i32
    return %arg1, %c0_i32, %c0_i32_0 : i32, i32, i32
  }
  func.func @transform_14(%arg0: i32, %arg1: i32, %arg2: memref<2x8xi32, #tpu.memory_space<smem>>) -> (i32, i32, i32) {
    %c0_i32 = arith.constant 0 : i32
    %c0_i32_0 = arith.constant 0 : i32
    %c0_i32_1 = arith.constant 0 : i32
    return %arg1, %c0_i32, %c0_i32_0 : i32, i32, i32
  }
  func.func @transform_15(%arg0: i32, %arg1: i32, %arg2: memref<2x8xi32, #tpu.memory_space<smem>>) -> (i32, i32, i32) {
    %c0_i32 = arith.constant 0 : i32
    %c0_i32_0 = arith.constant 0 : i32
    %c0_i32_1 = arith.constant 0 : i32
    return %arg1, %c0_i32, %c0_i32_0 : i32, i32, i32
  }
  func.func @transform_16(%arg0: i32, %arg1: i32, %arg2: memref<2x8xi32, #tpu.memory_space<smem>>) -> (i32, i32) {
    %c0_i32 = arith.constant 0 : i32
    %c0_i32_0 = arith.constant 0 : i32
    %c0_i32_1 = arith.constant 0 : i32
    return %c0_i32, %c0_i32_0 : i32, i32
  }
  func.func @transform_17(%arg0: i32, %arg1: i32, %arg2: memref<2x8xi32, #tpu.memory_space<smem>>) -> (i32, i32) {
    %c0_i32 = arith.constant 0 : i32
    %c0_i32_0 = arith.constant 0 : i32
    %c0_i32_1 = arith.constant 0 : i32
    return %c0_i32, %c0_i32_0 : i32, i32
  }
  func.func @transform_18(%arg0: i32, %arg1: i32, %arg2: memref<2x8xi32, #tpu.memory_space<smem>>) -> (i32, i32) {
    %c0_i32 = arith.constant 0 : i32
    %c0_i32_0 = arith.constant 0 : i32
    return %arg0, %c0_i32 : i32, i32
  }
}

</mosaic_0001>

<bundles_post_ra>
// kernel: tpu_custom_call.1
= control target key start
LH: loop header
LB: loop body
LE: loop exit
PB: predicated region body
PF: predicated region fallthrough
CT: control target
= control target key end

     0   :  { %s7457_s0 = inlined_call_operand.hbm [shape: s32[2,8], index: 0, kind: input, shape index: {}]   ;;  %s7458_s1 = inlined_call_operand.hbm [shape: f32[64,128], index: 1, kind: input, shape index: {}]   ;;  %s7459_s2 = inlined_call_operand.hbm [shape: f32[8,128], index: 2, kind: input, shape index: {}]   ;;  %s7460_s3 = inlined_call_operand.hbm [shape: f32[8,8], index: 3, kind: input, shape index: {}]   ;;  %s7461_s4 = inlined_call_operand.hbm [shape: f32[2,1,128], index: 4, kind: input, shape index: {}]   ;;  %s7462_s5 = inlined_call_operand.hbm [shape: f32[2,1,128], index: 5, kind: input, shape index: {}]   ;;  %s7463_s6 = inlined_call_operand.hbm [shape: bf16[2,4,128,128], index: 6, kind: input, shape index: {}]   ;;  %s7464_s7 = inlined_call_operand.hbm [shape: bf16[2,4,128,128], index: 7, kind: input, shape index: {}]   ;;  %s7465_s8 = inlined_call_operand.hbm [shape: bf16[2,4,128,128], index: 8, kind: input, shape index: {}]   ;;  %s7466_s9 = inlined_call_operand.hbm [shape: bf16[2,4,128,128], index: 9, kind: input, shape index: {}]   ;;  %s7467_s10 = inlined_call_operand.hbm [shape: f32[2,1,128], index: 10, kind: input, shape index: {}]   ;;  %s7468_s11 = inlined_call_operand.hbm [shape: f32[2,1,128], index: 11, kind: input, shape index: {}]   ;;  %s7469_s12 = inlined_call_operand.hbm [shape: f32[2,1,128], index: 12, kind: input, shape index: {}]   ;;  %s7470_s13 = inlined_call_operand.hbm [shape: bf16[2,128,128], index: 13, kind: input, shape index: {}]   ;;  %s7471_s14 = inlined_call_operand.hbm [shape: f32[2,1,128], index: 14, kind: input, shape index: {}]   ;;  %s7472_s15 = inlined_call_operand.hbm [shape: bf16[2,128,128], index: 15, kind: input, shape index: {}]   ;;  %s7473_s16 = inlined_call_operand.hbm [shape: f32[2,1,128], index: 16, kind: input, shape index: {}]   ;;  %s7474_s17 = inlined_call_operand.vmem [shape: bf16[128,128], index: 17, kind: input, shape index: {}]   ;;  %s7475_s18 = inlined_call_operand.vmem [shape: f32[1,128], index: 18, kind: input, shape index: {}]   ;;  %s7476_s19 = inlined_call_operand.hbm [shape: f32[16,128], index: 19, kind: output, shape index: {}]  }
   0x1   :  { %7535 = sst [smem:[#allocation62_spill]] %s7457_s0 }
   0x2   :  { %7536 = sst [smem:[#allocation63_spill]] %s7458_s1  ;;  %s7555_s20 = sld [smem:[#allocation62_spill]] }
   0x3   :  { %7537 = sst [smem:[#allocation64_spill]] %s7459_s2 }
   0x4   :  { %7538 = sst [smem:[#allocation65_spill]] %s7460_s3 }
   0x5   :  { %7539 = sst [smem:[#allocation66_spill]] %s7461_s4 }
   0x6   :  { %7540 = sst [smem:[#allocation67_spill]] %s7462_s5 }
   0x7   :  { %7541 = sst [smem:[#allocation68_spill]] %s7463_s6 }
   0x8   :  { %7542 = sst [smem:[#allocation69_spill]] %s7464_s7 }
   0x9   :  { %7543 = sst [smem:[#allocation70_spill]] %s7465_s8 }
   0xa   :  { %7544 = sst [smem:[#allocation71_spill]] %s7466_s9 }
   0xb   :  { %7545 = sst [smem:[#allocation72_spill]] %s7467_s10 }
   0xc   :  { %7546 = sst [smem:[#allocation73_spill]] %s7468_s11 }
   0xd   :  { %7547 = sst [smem:[#allocation74_spill]] %s7469_s12 }
   0xe   :  { %7548 = sst [smem:[#allocation75_spill]] %s7470_s13  ;;  %s5429_s13 = scalar_lea.hbm %s7555_s20, 32 }
   0xf   :  { %7549 = sst [smem:[#allocation76_spill]] %s7471_s14  ;;  %p5430_p0 = scmp.ne.s32.totalorder %s7555_s20, %s5429_s13 }
  0x10   :  { %7550 = sst [smem:[#allocation77_spill]] %s7472_s15  ;;  %p5433_p1 = scmp.lt.u32.totalorder %s5429_s13, %s7555_s20 }
  0x11   :  { %7551 = sst [smem:[#allocation78_spill]] %s7473_s16 }
  0x12   :  { %7552 = sst [smem:[#allocation79_spill]] %s7474_s17  ;;  %p5435_p2 = pnand %p5433_p1, %p5430_p0 }
  0x13   :  { %7553 = sst [smem:[#allocation80_spill]] %s7475_s18 }
  0x14   :  { %7554 = sst [smem:[#allocation81_spill]] %s7476_s19 }
  0x15   :  { %5438 = shalt.err (!%p5435_p2)  }
  0x16   :  { %s6071_s23 = smov [#allocation4]  }
  0x17   :  { %25 = dma.hbm_to_smem %s7555_s20, 32, %s6071_s23, [#allocation3] }
  0x18   :  { %5985 = dma.done.wait [#allocation3], 32 }
  0x19   :  { %5986 = vsyncadd [#allocation3], 4294967264 }
  0x1a   :  { %27 = sfence }
  0x1b   :  { %28 = vsyncpa [#allocation6], 0 }
  0x1c   :  { %29 = vsyncpa [#allocation9], 0 }
  0x1d   :  { %30 = vsyncpa [#allocation12], 0 }
  0x1e   :  { %32 = vsyncpa [#allocation12 + $0x1], 0 }
  0x1f   :  { %33 = vsyncpa [#allocation15], 0 }
  0x20   :  { %35 = vsyncpa [#allocation15 + $0x1], 0 }
  0x21   :  { %36 = vsyncpa [#allocation18], 0 }
  0x22   :  { %38 = vsyncpa [#allocation18 + $0x1], 0 }
  0x23   :  { %39 = vsyncpa [#allocation21], 0 }
  0x24   :  { %41 = vsyncpa [#allocation21 + $0x1], 0 }
  0x25   :  { %42 = vsyncpa [#allocation24], 0 }
  0x26   :  { %44 = vsyncpa [#allocation24 + $0x1], 0 }
  0x27   :  { %45 = vsyncpa [#allocation27], 0 }
  0x28   :  { %47 = vsyncpa [#allocation27 + $0x1], 0 }
  0x29   :  { %48 = vsyncpa [#allocation30], 0 }
  0x2a   :  { %50 = vsyncpa [#allocation30 + $0x1], 0 }
  0x2b   :  { %51 = vsyncpa [#allocation7], 0 }
  0x2c   :  { %53 = vsyncpa [#allocation7 + $0x1], 0  ;;  %s6209_s13 = smov 0   ;;  %s6211_s3 = smov 0  }
  0x2d   :  { %s6213_s26 = smov 0   ;;  %s6215_s27 = smov 0  }
  0x2e   :  { %s6217_s28 = smov 0   ;;  %s6219_s29 = smov 0  }
  0x2f   :  { %s6221_s0 = smov 0   ;;  %s6223_s30 = smov 0  }
  0x30   :  { %s6225_s20 = smov 0   ;;  %s6227_s21 = smov 0  }
  0x31   :  { %s6229_s1 = smov 0  }
  0x32 LB: > { %7556 = sst [smem:[#allocation43_spill]] %s6029_s13  ;;  %s6263_s22 = sadd.s32 4294967295, %s6069_s1   ;;  %s6069_s1 = sphi %s6229_s1, %s59_s1   ;;  %s6065_s21 = sphi %s6227_s21, %s7673_s21   ;;  %s6061_s20 = sphi %s6225_s20, %s7672_s20   ;;  %s6057_s30 = sphi %s6223_s30, %s7671_s30   ;;  %s6053_s0 = sphi %s6221_s0, %s7670_s0   ;;  %s6049_s29 = sphi %s6219_s29, %s7669_s29   ;;  %s6045_s28 = sphi %s6217_s28, %s7668_s28   ;;  %s6041_s27 = sphi %s6215_s27, %s7667_s27   ;;  %s6037_s26 = sphi %s6213_s26, %s7666_s26   ;;  %s6033_s3 = sphi %s6211_s3, %s7665_s3   ;;  %s6029_s13 = sphi %s6209_s13, %s7664_s13  }
  0x33   : > { %7557 = sst [smem:[#allocation44_spill]] %s6033_s3  ;;  %s4028_s2 = sadd.s32 4294967294, %s6069_s1  }
  0x34   : > { %7558 = sst [smem:[#allocation45_spill]] %s6037_s26  ;;  %p148_p3 = scmp.ne.s32.totalorder %s6049_s29, %s6045_s28 }
  0x35   : > { %7559 = sst [smem:[#allocation46_spill]] %s6045_s28  ;;  %p149_p4 = scmp.eq.s32.totalorder %s6069_s1, 0 }
  0x36   : > { %7560 = sst [smem:[#allocation47_spill]] %s6049_s29  ;;  %p154_p5 = scmp.ne.s32.totalorder %s6045_s28, %s6041_s27 }
  0x37   : > { %7561 = sst [smem:[#allocation48_spill]] %s6053_s0  ;;  %p7495_p6 = scmp.eq.s32.totalorder %s6263_s22, 0 }
  0x38   : > { %7562 = sst [smem:[#allocation49_spill]] %s6057_s30  ;;  %p6273_p7 = por %p149_p4, %p148_p3 }
  0x39   : > { %7563 = sst [smem:[#allocation50_spill]] %s6061_s20  ;;  %p531_p8 = scmp.ne.s32.totalorder %s6037_s26, %s6033_s3 }
  0x3a   : > { %7564 = sst [smem:[#allocation51_spill]] %s6065_s21  ;;  %p6281_p9 = por %p7495_p6, %p154_p5 }
  0x3b   : > { %7565 = sst [smem:[#allocation52_spill]] %s6069_s1  ;;  %p532_p10 = scmp.eq.s32.totalorder %s6263_s22, 3 }
  0x3c   : > { %7566 = sst [smem:[#allocation53_spill]] %s6263_s22  ;;  %p537_p11 = scmp.ne.s32.totalorder %s6033_s3, %s6029_s13 }
  0x3d   : > { %s7568_s19 = scalar_select %p6281_p9, 1, 0 }
  0x3e   : > { %p538_p12 = scmp.eq.s32.totalorder %s4028_s2, 3  ;;  %p6288_p13 = por %p532_p10, %p531_p8 }
  0x3f   : > { %7569 = sst [smem:[#allocation54_spill]] %s7568_s19  ;;  %p4029_p0 = scmp.ge.s32.totalorder %s6069_s1, 1 }
  0x40   : > { %s7570_s27 = scalar_select %p6288_p13, 1, 0 }
  0x41   : > { %p6293_p1 = por %p538_p12, %p537_p11  ;;  %p545_p2 = scmp.lt.s32.totalorder %s6069_s1, 5 }
  0x42   : > { %7571 = sst [smem:[#allocation55_spill]] %s7570_s27  ;;  %s6072_s18 = smov [#allocation8]  }
  0x43   : > { %s7572_s24 = scalar_select %p6293_p1, 1, 0 }
  0x44   : > { %p6298_p3 = pnand %p4029_p0, %p545_p2  ;;  %s571_s17 = sshll.u32 %s6072_s18, 4  ;;  %s572_s17 = int_to_ptr.vmem [resolvable:$true] %s571_s17 }
  0x45   : > { %7573 = sst [smem:[#allocation56_spill]] %s7572_s24  ;;  %p5151_p5 = scmp.lt.s32.totalorder %s6069_s1, 4 }
  0x46   : > { %s7574_s23 = scalar_select %p6298_p3, 1, 0 }
  0x47   : > { %p5094_p4 = pneg %p6298_p3  ;;  %s6306_s2 = sand.u32 1, %s6049_s29  }
  0x48   : > { %7575 = sst [smem:[#allocation57_spill]] %s7574_s23  ;;  %p6316_p10 = pnand %p5151_p5, %p6273_p7 }
  0x49   : > { %p6310_p8 = pnand %p5094_p4, %p7495_p6  ;;  %s7578_s18 = sld [smem:[#allocation64_spill]] }
  0x4a   : > { %s7577_s24 = scalar_select %p6316_p10, 1, 0 }
  0x4b   : > { %s7576_s13 = scalar_select %p6310_p8, 1, 0 }
  0x4c   : > { %p6328_p12 = pneg %p6310_p8 }
  0x4e   : > { %s7579_s28 = scalar_select %p6328_p12, 1, 0 }
  0x4f   : > { %s5439_s0 = scalar_lea.hbm %s7578_s18, 128 }
  0x50   : > { %p5440_p11 = scmp.ne.s32.totalorder %s7578_s18, %s5439_s0  ;;  %p5446_p2 = scmp.lt.u32.totalorder %s5439_s0, %s7578_s18 }
  0x52   : > { %p5442_p0 = pnand %p6328_p12, %p5440_p11 }
  0x54   : > { %p5443_p7 = pneg %p5442_p0 }
  0x56   : > { %p5448_p4 = pnand %p5446_p2, %p5443_p7 }
  0x58   : > { %5451 = shalt.err (!%p5448_p4)
}
  0x59   : > { %s5452_s30 = scalar_lea.vmem %s572_s17, 128  ;;  %p5460_p13 = scmp.lt.s32.totalorder %s572_s17, %s572_s17 }
  0x5a   : > { %p5453_p5 = scmp.ne.s32.totalorder %s572_s17, %s5452_s30  ;;  %p5461_p9 = scmp.lt.s32.totalorder %s5452_s30, %s5452_s30 }
  0x5c   : > { %p5455_p6 = pnand %p5453_p5, %p6328_p12  ;;  %p5462_p3 = por %p5461_p9, %p5460_p13 }
  0x5e   : > { %p5456_p1 = pneg %p5455_p6 }
  0x60   : > { %p5463_p10 = pnand %p5462_p3, %p5456_p1 }
  0x62   : > { %5466 = shalt.err (!%p5463_p10)
}
  0x63   : > { %5100 = dma.hbm_to_vmem [thread:$0]  (!%p6310_p8), %s7578_s18, 128, %s572_s17, [#allocation9]  }
  0x64   : > { %s68_s0 = sadd.s32 1, %s6061_s20  ;;  %s71_s22 = sadd.s32 1, %s6065_s21 }
  0x65   : > { %p69_p6 = scmp.ge.s32.totalorder %s68_s0, 2  ;;  %s6347_s27 = sand.u32 1, %s6069_s1  }
  0x66   : > { %s6355_s30 = sshll.u32 %s6061_s20, 4  ;;  %s602_s19 = scalar_lea.vmem [#allocation11], %s6306_s2 }
  0x67   : > { %s7675_s0 = smov (%p69_p6, %s68_s0), 0  ;;  %s7677_s22 = smov (!%p69_p6, %s71_s22), %s6065_s21 }
  0x68   : > { %7580 = sst [smem:[#allocation58_spill]] %s7675_s0  ;;  %s138_s25 = ssub.s32 %s6061_s20, %s7675_s0 }
  0x69   : > { %p73_p9 = scmp.ge.s32.totalorder %s7677_s22, 2  ;;  %p139_p13 = scmp.eq.s32.totalorder %s138_s25, 0 }
  0x6a   : > { %s609_s3 = sshll.u32 %s602_s19, 4  ;;  %s7582_s17 = sadd.s32 1, %s6049_s29  ;;  %s6377_s3 = int_to_ptr.vmem [resolvable:$true] %s609_s3 }
  0x6b   : > { %s7679_s22 = smov (%p73_p9, %s7677_s22), 0  ;;  %s7584_s4 = sld [smem:[#allocation66_spill]] }
  0x6c   : > { %7581 = sst [smem:[#allocation59_spill]] %s7679_s22  ;;  %s518_s1 = ssub.s32 %s6065_s21, %s7679_s22 }
  0x6d   : > { %s6363_s18 = scalar_select %p139_p13, %s6049_s29, %s7582_s17  }
  0x6e   : > { %p6373_p1 = scmp.eq.s32.totalorder %s518_s1, 0  ;;  %p7586_p10 = scmp.ne.s32.totalorder %s7577_s24, 0 }
  0x6f   : > { %7583 = sst [smem:[#allocation60_spill]] %s6363_s18 }
  0x70   : > { %s7585_s25 = scalar_select %p6373_p1, 1, 0 }
  0x71   : > { %s6371_s15 = scalar_lea.hbm %s7584_s4, %s6355_s30  ;;  %p6384_p11 = pneg %p7586_p10 }
  0x72   : > { %s5467_s0 = scalar_lea.hbm %s6371_s15, 16  ;;  %s5472_s1 = scalar_lea.hbm %s7584_s4, 32 }
  0x73   : > { %p5468_p3 = scmp.ne.s32.totalorder %s6371_s15, %s5467_s0  ;;  %p5473_p2 = scmp.lt.u32.totalorder %s6371_s15, %s7584_s4 }
  0x74   : > { %s7587_s17 = scalar_select %p6384_p11, 1, 0 }
  0x75   : > { %p5470_p0 = pnand %p6384_p11, %p5468_p3  ;;  %p5474_p4 = scmp.lt.u32.totalorder %s5472_s1, %s5467_s0 }
  0x76   : > { %p5476_p6 = scmp.lt.u32.totalorder %s5467_s0, %s6371_s15 }
  0x77   : > { %p5471_p7 = pneg %p5470_p0  ;;  %p5475_p5 = por %p5474_p4, %p5473_p2 }
  0x79   : > { %p5477_p9 = por %p5476_p6, %p5475_p5 }
  0x7b   : > { %p5478_p13 = pnand %p5477_p9, %p5471_p7 }
  0x7d   : > { %5481 = shalt.err (!%p5478_p13)
}
  0x7e   : > { %s5482_s19 = scalar_lea.vmem %s6377_s3, 16  ;;  %s6073_s16 = smov [#allocation11]  }
  0x7f   : > { %p5483_p3 = scmp.ne.s32.totalorder %s6377_s3, %s5482_s19  ;;  %s5487_s23 = sshll.u32 %s6073_s16, 4  ;;  %s5488_s23 = int_to_ptr.vmem [resolvable:$false] %s5487_s23 }
  0x80   : > { %s5489_s21 = scalar_lea.vmem %s5488_s23, 32  ;;  %p5490_p12 = scmp.lt.s32.totalorder %s6377_s3, %s5488_s23 }
  0x81   : > { %p5485_p0 = pnand %p5483_p3, %p6384_p11  ;;  %p5491_p1 = scmp.lt.s32.totalorder %s5489_s21, %s5482_s19 }
  0x83   : > { %p5486_p8 = pneg %p5485_p0  ;;  %p5492_p2 = por %p5491_p1, %p5490_p12 }
  0x85   : > { %p5493_p4 = pnand %p5492_p2, %p5486_p8 }
  0x87   : > { %5496 = shalt.err (!%p5493_p4)
}
  0x88   : > { %s7588_s0 = scalar_lea.sflag [#allocation12], %s6347_s27  ;;  %s7589_s22 = sadd.s32 1, %s6037_s26 }
  0x89   : > { %5107 = dma.hbm_to_vmem [thread:$0]  (!%p7586_p10), %s6371_s15, 16, %s6377_s3, %s7588_s0  }
  0x8a   : > { %p7590_p7 = scmp.ne.s32.totalorder %s7585_s25, 0  ;;  %s6417_s1 = sshll.u32 %s6306_s2, 8 }
  0x8b   : > { %s6420_s16 = sshll.u32 %s6061_s20, 12  ;;  %s7592_s6 = sld [smem:[#allocation68_spill]] }
  0x8c   : > { %s6414_s19 = scalar_select %p7590_p7, %s6037_s26, %s7589_s22  }
  0x8d   : > { %s637_s15 = scalar_lea.vmem [#allocation14], %s6417_s1  ;;  %s7514_s25 = scalar_lea.sflag [#allocation15], %s6347_s27 }
  0x8e   : > { %7591 = sst [smem:[#allocation61_spill]] %s6414_s19  ;;  %s644_s3 = sshll.u32 %s637_s15, 4  ;;  %s6429_s3 = int_to_ptr.vmem [resolvable:$true] %s644_s3 }
  0x91   : > { %s6426_s4 = scalar_lea.hbm %s7592_s6, %s6420_s16  ;;  %s5502_s23 = scalar_lea.hbm %s7592_s6, 8192 }
  0x92   : > { %s5497_s0 = scalar_lea.hbm %s6426_s4, 4096  ;;  %p5503_p5 = scmp.lt.u32.totalorder %s6426_s4, %s7592_s6 }
  0x93   : > { %p5498_p8 = scmp.ne.s32.totalorder %s6426_s4, %s5497_s0  ;;  %p5504_p6 = scmp.lt.u32.totalorder %s5502_s23, %s5497_s0 }
  0x94   : > { %p5506_p13 = scmp.lt.u32.totalorder %s5497_s0, %s6426_s4 }
  0x95   : > { %p5500_p12 = pnand %p5498_p8, %p6384_p11  ;;  %p5505_p9 = por %p5504_p6, %p5503_p5 }
  0x97   : > { %p5501_p1 = pneg %p5500_p12  ;;  %p5507_p3 = por %p5506_p13, %p5505_p9 }
  0x99   : > { %p5508_p0 = pnand %p5507_p3, %p5501_p1 }
  0x9b   : > { %5511 = shalt.err (!%p5508_p0)
}
  0x9c   : > { %s5512_s15 = scalar_lea.vmem %s6429_s3, 4096  ;;  %s6074_s18 = smov [#allocation14]  }
  0x9d   : > { %p5513_p2 = scmp.ne.s32.totalorder %s6429_s3, %s5512_s15  ;;  %s5517_s22 = sshll.u32 %s6074_s18, 4  ;;  %s5518_s22 = int_to_ptr.vmem [resolvable:$false] %s5517_s22 }
  0x9e   : > { %s5519_s29 = scalar_lea.vmem %s5518_s22, 8192  ;;  %p5520_p8 = scmp.lt.s32.totalorder %s6429_s3, %s5518_s22 }
  0x9f   : > { %p5515_p4 = pnand %p5513_p2, %p6384_p11  ;;  %p5521_p12 = scmp.lt.s32.totalorder %s5519_s29, %s5512_s15 }
  0xa1   : > { %p5516_p7 = pneg %p5515_p4  ;;  %p5522_p5 = por %p5521_p12, %p5520_p8 }
  0xa3   : > { %p5523_p6 = pnand %p5522_p5, %p5516_p7 }
  0xa5   : > { %5526 = shalt.err (!%p5523_p6)
}
  0xa6   : > { %s7516_s0 = smov 64   ;;  %s7521_s23 = smov 4  }
  0xa7   : > { %5113 = dma.hbm_to_vmem [thread:$0]  (!%p7586_p10), %s6426_s4, 4096, %s6429_s3, %s7514_s25, %s7516_s0, %s7516_s0, %s7521_s23  }
  0xa8   : > { %s7593_s8 = sld [smem:[#allocation70_spill]]  ;;  %s679_s22 = scalar_lea.vmem [#allocation17], %s6417_s1 }
  0xa9   : > { %s686_s29 = sshll.u32 %s679_s22, 4  ;;  %s7515_s6 = scalar_lea.sflag [#allocation18], %s6347_s27  ;;  %s6465_s29 = int_to_ptr.vmem [resolvable:$true] %s686_s29 }
  0xae   : > { %s6462_s18 = scalar_lea.hbm %s7593_s8, %s6420_s16  ;;  %s5532_s21 = scalar_lea.hbm %s7593_s8, 8192 }
  0xaf   : > { %s5527_s19 = scalar_lea.hbm %s6462_s18, 4096  ;;  %p5533_p3 = scmp.lt.u32.totalorder %s6462_s18, %s7593_s8 }
  0xb0   : > { %p5528_p1 = scmp.ne.s32.totalorder %s6462_s18, %s5527_s19  ;;  %p5534_p0 = scmp.lt.u32.totalorder %s5532_s21, %s5527_s19 }
  0xb1   : > { %p5536_p4 = scmp.lt.u32.totalorder %s5527_s19, %s6462_s18 }
  0xb2   : > { %p5530_p9 = pnand %p5528_p1, %p6384_p11  ;;  %p5535_p2 = por %p5534_p0, %p5533_p3 }
  0xb4   : > { %p5531_p13 = pneg %p5530_p9  ;;  %p5537_p7 = por %p5536_p4, %p5535_p2 }
  0xb6   : > { %p5538_p8 = pnand %p5537_p7, %p5531_p13 }
  0xb8   : > { %5541 = shalt.err (!%p5538_p8)
}
  0xb9   : > { %s5542_s22 = scalar_lea.vmem %s6465_s29, 4096  ;;  %s6077_s4 = smov [#allocation17]  }
  0xba   : > { %p5543_p12 = scmp.ne.s32.totalorder %s6465_s29, %s5542_s22  ;;  %s5547_s3 = sshll.u32 %s6077_s4, 4  ;;  %s5548_s3 = int_to_ptr.vmem [resolvable:$false] %s5547_s3 }
  0xbb   : > { %s5549_s25 = scalar_lea.vmem %s5548_s3, 8192  ;;  %p5550_p1 = scmp.lt.s32.totalorder %s6465_s29, %s5548_s3 }
  0xbc   : > { %p5545_p5 = pnand %p5543_p12, %p6384_p11  ;;  %p5551_p9 = scmp.lt.s32.totalorder %s5549_s25, %s5542_s22 }
  0xbe   : > { %p5546_p6 = pneg %p5545_p5  ;;  %p5552_p3 = por %p5551_p9, %p5550_p1 }
  0xc0   : > { %p5553_p0 = pnand %p5552_p3, %p5546_p6 }
  0xc2   : > { %5556 = shalt.err (!%p5553_p0)
}
  0xc3   : > { %5119 = dma.hbm_to_vmem [thread:$0]  (!%p7586_p10), %s6462_s18, 4096, %s6465_s29, %s7515_s6, %s7516_s0, %s7516_s0, %s7521_s23  }
  0xc4   : > { %s7594_s10 = sld [smem:[#allocation72_spill]]  ;;  %s720_s22 = scalar_lea.vmem [#allocation20], %s6306_s2 }
  0xc5   : > { %s727_s4 = sshll.u32 %s720_s22, 4  ;;  %s7519_s3 = scalar_lea.sflag [#allocation21], %s6347_s27  ;;  %s728_s4 = int_to_ptr.vmem [resolvable:$true] %s727_s4 }
  0xca   : > { %s6498_s15 = scalar_lea.hbm %s7594_s10, %s6355_s30  ;;  %s5562_s29 = scalar_lea.hbm %s7594_s10, 32 }
  0xcb   : > { %s5557_s25 = scalar_lea.hbm %s6498_s15, 16  ;;  %p5563_p7 = scmp.lt.u32.totalorder %s6498_s15, %s7594_s10 }
  0xcc   : > { %p5558_p13 = scmp.ne.s32.totalorder %s6498_s15, %s5557_s25  ;;  %p5564_p8 = scmp.lt.u32.totalorder %s5562_s29, %s5557_s25 }
  0xcd   : > { %p5566_p5 = scmp.lt.u32.totalorder %s5557_s25, %s6498_s15 }
  0xce   : > { %p5560_p2 = pnand %p5558_p13, %p6384_p11  ;;  %p5565_p12 = por %p5564_p8, %p5563_p7 }
  0xd0   : > { %p5561_p4 = pneg %p5560_p2  ;;  %p5567_p6 = por %p5566_p5, %p5565_p12 }
  0xd2   : > { %p5568_p1 = pnand %p5567_p6, %p5561_p4 }
  0xd4   : > { %5571 = shalt.err (!%p5568_p1)
}
  0xd5   : > { %s5572_s22 = scalar_lea.vmem %s728_s4, 16  ;;  %s6078_s6 = smov [#allocation20]  }
  0xd6   : > { %p5573_p9 = scmp.ne.s32.totalorder %s728_s4, %s5572_s22  ;;  %s5577_s0 = sshll.u32 %s6078_s6, 4  ;;  %s5578_s0 = int_to_ptr.vmem [resolvable:$false] %s5577_s0 }
  0xd7   : > { %s5579_s8 = scalar_lea.vmem %s5578_s0, 32  ;;  %p5580_p13 = scmp.lt.s32.totalorder %s728_s4, %s5578_s0 }
  0xd8   : > { %p5575_p3 = pnand %p5573_p9, %p6384_p11  ;;  %p5581_p2 = scmp.lt.s32.totalorder %s5579_s8, %s5572_s22 }
  0xda   : > { %p5576_p0 = pneg %p5575_p3  ;;  %p5582_p10 = por %p5581_p2, %p5580_p13 }
  0xdc   : > { %p5583_p7 = pnand %p5582_p10, %p5576_p0 }
  0xde   : > { %5586 = shalt.err (!%p5583_p7)
}
  0xdf   : > { %p7595_p8 = scmp.ne.s32.totalorder %s7577_s24, 0  ;;  %s7596_s12 = sld [smem:[#allocation74_spill]] }
  0xe0   : > { %s754_s0 = scalar_lea.vmem [#allocation23], %s6306_s2  ;;  %s7520_s19 = scalar_lea.sflag [#allocation24], %s6347_s27 }
  0xe1   : > { %5125 = dma.hbm_to_vmem [thread:$0]  (!%p7595_p8), %s6498_s15, 16, %s728_s4, %s7519_s3  }
  0xe2   : > { %s761_s29 = sshll.u32 %s754_s0, 4  ;;  %s762_s29 = int_to_ptr.vmem [resolvable:$true] %s761_s29 }
  0xe5   : > { %s6525_s6 = scalar_lea.hbm %s7596_s12, %s6355_s30  ;;  %s5592_s4 = scalar_lea.hbm %s7596_s12, 32 }
  0xe6   : > { %s5587_s21 = scalar_lea.hbm %s6525_s6, 16  ;;  %p5593_p5 = scmp.lt.u32.totalorder %s6525_s6, %s7596_s12 }
  0xe7   : > { %p5588_p10 = scmp.ne.s32.totalorder %s6525_s6, %s5587_s21  ;;  %p5594_p6 = scmp.lt.u32.totalorder %s5592_s4, %s5587_s21 }
  0xe8   : > { %p5596_p9 = scmp.lt.u32.totalorder %s5587_s21, %s6525_s6 }
  0xe9   : > { %p5590_p4 = pnand %p5588_p10, %p6384_p11  ;;  %p5595_p1 = por %p5594_p6, %p5593_p5 }
  0xeb   : > { %p5591_p12 = pneg %p5590_p4  ;;  %p5597_p3 = por %p5596_p9, %p5595_p1 }
  0xed   : > { %p5598_p0 = pnand %p5597_p3, %p5591_p12 }
  0xef   : > { %5601 = shalt.err (!%p5598_p0)
}
  0xf0   : > { %s5602_s18 = scalar_lea.vmem %s762_s29, 16  ;;  %s6079_s0 = smov [#allocation23]  }
  0xf1   : > { %p5603_p13 = scmp.ne.s32.totalorder %s762_s29, %s5602_s18  ;;  %s5607_s3 = sshll.u32 %s6079_s0, 4  ;;  %s5608_s3 = int_to_ptr.vmem [resolvable:$false] %s5607_s3 }
  0xf2   : > { %s5609_s22 = scalar_lea.vmem %s5608_s3, 32  ;;  %p5610_p10 = scmp.lt.s32.totalorder %s762_s29, %s5608_s3 }
  0xf3   : > { %p5605_p2 = pnand %p5603_p13, %p6384_p11  ;;  %p5611_p4 = scmp.lt.s32.totalorder %s5609_s22, %s5602_s18 }
  0xf5   : > { %p5606_p7 = pneg %p5605_p2  ;;  %p5612_p8 = por %p5611_p4, %p5610_p10 }
  0xf7   : > { %p5613_p5 = pnand %p5612_p8, %p5606_p7 }
  0xf9   : > { %5616 = shalt.err (!%p5613_p5)
}
  0xfa   : > { %p7597_p6 = scmp.ne.s32.totalorder %s7577_s24, 0  ;;  %s7598_s14 = sld [smem:[#allocation76_spill]] }
  0xfb   : > { %s792_s3 = scalar_lea.vmem [#allocation26], %s6306_s2  ;;  %s7523_s25 = scalar_lea.sflag [#allocation27], %s6347_s27 }
  0xfc   : > { %5131 = dma.hbm_to_vmem [thread:$0]  (!%p7597_p6), %s6525_s6, 16, %s762_s29, %s7520_s19  }
  0xfd   : > { %s799_s8 = sshll.u32 %s792_s3, 4  ;;  %s800_s8 = int_to_ptr.vmem [resolvable:$true] %s799_s8 }
 0x100   : > { %s6552_s4 = scalar_lea.hbm %s7598_s14, %s6355_s30  ;;  %s5622_s29 = scalar_lea.hbm %s7598_s14, 32 }
 0x101   : > { %s5617_s18 = scalar_lea.hbm %s6552_s4, 16  ;;  %p5623_p9 = scmp.lt.u32.totalorder %s6552_s4, %s7598_s14 }
 0x102   : > { %p5618_p8 = scmp.ne.s32.totalorder %s6552_s4, %s5617_s18  ;;  %p5624_p3 = scmp.lt.u32.totalorder %s5622_s29, %s5617_s18 }
 0x103   : > { %p5626_p13 = scmp.lt.u32.totalorder %s5617_s18, %s6552_s4 }
 0x104   : > { %p5620_p12 = pnand %p5618_p8, %p6384_p11  ;;  %p5625_p0 = por %p5624_p3, %p5623_p9 }
 0x106   : > { %p5621_p1 = pneg %p5620_p12  ;;  %p5627_p2 = por %p5626_p13, %p5625_p0 }
 0x108   : > { %p5628_p7 = pnand %p5627_p2, %p5621_p1 }
 0x10a   : > { %5631 = shalt.err (!%p5628_p7)
}
 0x10b   : > { %s5632_s15 = scalar_lea.vmem %s800_s8, 16  ;;  %s6080_s3 = smov [#allocation26]  }
 0x10c   : > { %p5633_p10 = scmp.ne.s32.totalorder %s800_s8, %s5632_s15  ;;  %s5637_s19 = sshll.u32 %s6080_s3, 4  ;;  %s5638_s19 = int_to_ptr.vmem [resolvable:$false] %s5637_s19 }
 0x10d   : > { %s5639_s0 = scalar_lea.vmem %s5638_s19, 32  ;;  %p5640_p8 = scmp.lt.s32.totalorder %s800_s8, %s5638_s19 }
 0x10e   : > { %p5635_p4 = pnand %p5633_p10, %p6384_p11  ;;  %p5641_p12 = scmp.lt.s32.totalorder %s5639_s0, %s5632_s15 }
 0x110   : > { %p5636_p5 = pneg %p5635_p4  ;;  %p5642_p6 = por %p5641_p12, %p5640_p8 }
 0x112   : > { %p5643_p3 = pnand %p5642_p6, %p5636_p5 }
 0x114   : > { %5646 = shalt.err (!%p5643_p3)
}
 0x115   : > { %p7599_p9 = scmp.ne.s32.totalorder %s7577_s24, 0  ;;  %s6081_s18 = smov [#allocation5]  }
 0x116   : > { %s557_s6 = sshll.u32 %s6081_s18, 4  ;;  %s7600_s21 = sld [smem:[#allocation63_spill]]  ;;  %s558_s6 = int_to_ptr.vmem [resolvable:$true] %s557_s6 }
 0x117   : > { %5137 = dma.hbm_to_vmem [thread:$0]  (!%p7599_p9), %s6552_s4, 16, %s800_s8, %s7523_s25  }
 0x118   : > { %p7602_p6 = scmp.ne.s32.totalorder %s7579_s28, 0 }
 0x11c   : > { %s7601_s23 = smov %s7600_s21  ;;  %s5647_s3 = scalar_lea.hbm %s7600_s21, 1024 }
 0x11d   : > { %p5648_p1 = scmp.ne.s32.totalorder %s7601_s23, %s5647_s3  ;;  %p5654_p2 = scmp.lt.u32.totalorder %s5647_s3, %s7601_s23 }
 0x11f   : > { %p5650_p0 = pnand %p5648_p1, %p7602_p6 }
 0x121   : > { %p5651_p13 = pneg %p5650_p0 }
 0x123   : > { %p5656_p7 = pnand %p5654_p2, %p5651_p13 }
 0x125   : > { %5659 = shalt.err (!%p5656_p7)
}
 0x126   : > { %s5660_s4 = scalar_lea.vmem %s558_s6, 1024  ;;  %p5668_p8 = scmp.lt.s32.totalorder %s558_s6, %s558_s6 }
 0x127   : > { %p5661_p10 = scmp.ne.s32.totalorder %s558_s6, %s5660_s4  ;;  %p5669_p12 = scmp.lt.s32.totalorder %s5660_s4, %s5660_s4 }
 0x129   : > { %p5663_p4 = pnand %p5661_p10, %p7602_p6  ;;  %p5670_p3 = por %p5669_p12, %p5668_p8 }
 0x12b   : > { %p5664_p5 = pneg %p5663_p4 }
 0x12d   : > { %p5671_p9 = pnand %p5670_p3, %p5664_p5 }
 0x12f   : > { %5674 = shalt.err (!%p5671_p9)
}
 0x130   : > { %s6082_s10 = smov 128   ;;  %s6083_s8 = smov 8  }
 0x131   : > { %p7603_p1 = scmp.ne.s32.totalorder %s7576_s13, 0  ;;  %s6084_s22 = smov [#allocation10]  }
 0x132   : > { %s582_s21 = sshll.u32 %s6084_s22, 4  ;;  %s7604_s5 = sld [smem:[#allocation67_spill]]  ;;  %s583_s21 = int_to_ptr.vmem [resolvable:$true] %s582_s21 }
 0x133   : > { %5097 = dma.hbm_to_vmem [thread:$0]  (!%p7603_p1), %s7601_s23, 1024, %s558_s6, [#allocation6], %s6082_s10, %s6082_s10, %s6083_s8  }
 0x134   : > { %s619_s0 = scalar_lea.vmem [#allocation13], %s6306_s2  ;;  %s7605_s14 = sld [smem:[#allocation65_spill]] }
 0x135   : > { %s626_s4 = sshll.u32 %s619_s0, 4  ;;  %s627_s4 = int_to_ptr.vmem [resolvable:$true] %s626_s4 }
 0x138   : > { %s6597_s15 = scalar_lea.hbm %s7604_s5, %s6355_s30 }
 0x13a   : > { %s5675_s26 = scalar_lea.hbm %s7605_s14, 128 }
 0x13b   : > { %p5676_p9 = scmp.ne.s32.totalorder %s7605_s14, %s5675_s26  ;;  %p5682_p2 = scmp.lt.u32.totalorder %s5675_s26, %s7605_s14 }
 0x13d   : > { %p5678_p0 = pnand %p5676_p9, %p7602_p6 }
 0x13f   : > { %p5679_p13 = pneg %p5678_p0 }
 0x141   : > { %p5684_p7 = pnand %p5682_p2, %p5679_p13 }
 0x143   : > { %5687 = shalt.err (!%p5684_p7)
}
 0x144   : > { %s5688_s8 = scalar_lea.vmem %s583_s21, 128  ;;  %p5696_p8 = scmp.lt.s32.totalorder %s583_s21, %s583_s21 }
 0x145   : > { %p5689_p10 = scmp.ne.s32.totalorder %s583_s21, %s5688_s8  ;;  %p5697_p12 = scmp.lt.s32.totalorder %s5688_s8, %s5688_s8 }
 0x147   : > { %p5691_p4 = pnand %p5689_p10, %p7602_p6  ;;  %p5698_p3 = por %p5697_p12, %p5696_p8 }
 0x149   : > { %p5692_p5 = pneg %p5691_p4 }
 0x14b   : > { %p5699_p11 = pnand %p5698_p3, %p5692_p5 }
 0x14d   : > { %5702 = shalt.err (!%p5699_p11)
}
 0x14e   : > { %5103 = dma.hbm_to_vmem [thread:$0]  (!%p7603_p1), %s7605_s14, 128, %s583_s21, [#allocation9]  }
 0x14f   : > { %s5703_s26 = scalar_lea.hbm %s6597_s15, 16  ;;  %p7606_p9 = scmp.ne.s32.totalorder %s7587_s17, 0 }
 0x150   : > { %p5704_p6 = scmp.ne.s32.totalorder %s6597_s15, %s5703_s26  ;;  %s5708_s25 = scalar_lea.hbm %s7604_s5, 32 }
 0x151   : > { %p5709_p11 = scmp.lt.u32.totalorder %s6597_s15, %s7604_s5  ;;  %p5710_p2 = scmp.lt.u32.totalorder %s5708_s25, %s5703_s26 }
 0x152   : > { %p5706_p0 = pnand %p5704_p6, %p7606_p9  ;;  %p5712_p10 = scmp.lt.u32.totalorder %s5703_s26, %s6597_s15 }
 0x153   : > { %p5711_p7 = por %p5710_p2, %p5709_p11 }
 0x154   : > { %p5707_p13 = pneg %p5706_p0 }
 0x155   : > { %p5713_p4 = por %p5712_p10, %p5711_p7 }
 0x157   : > { %p5714_p5 = pnand %p5713_p4, %p5707_p13 }
 0x159   : > { %5717 = shalt.err (!%p5714_p5)
}
 0x15a   : > { %s5718_s29 = scalar_lea.vmem %s627_s4, 16  ;;  %s6085_s22 = smov [#allocation13]  }
 0x15b   : > { %p5719_p1 = scmp.ne.s32.totalorder %s627_s4, %s5718_s29  ;;  %s5723_s21 = sshll.u32 %s6085_s22, 4  ;;  %s5724_s21 = int_to_ptr.vmem [resolvable:$false] %s5723_s21 }
 0x15c   : > { %s5725_s3 = scalar_lea.vmem %s5724_s21, 32  ;;  %p5726_p3 = scmp.lt.s32.totalorder %s627_s4, %s5724_s21 }
 0x15d   : > { %p5721_p8 = pnand %p5719_p1, %p7606_p9  ;;  %p5727_p6 = scmp.lt.s32.totalorder %s5725_s3, %s5718_s29 }
 0x15f   : > { %p5722_p12 = pneg %p5721_p8  ;;  %p5728_p0 = por %p5727_p6, %p5726_p3 }
 0x161   : > { %p5729_p2 = pnand %p5728_p0, %p5722_p12 }
 0x163   : > { %5732 = shalt.err (!%p5729_p2)
}
 0x164   : > { %p7607_p11 = scmp.ne.s32.totalorder %s7577_s24, 0  ;;  %s7608_s19 = scalar_lea.sflag [#allocation12], %s6347_s27 }
 0x165   : > { %s7609_s7 = sld [smem:[#allocation69_spill]]  ;;  %s658_s8 = scalar_lea.vmem [#allocation16], %s6417_s1 }
 0x166   : > { %5110 = dma.hbm_to_vmem [thread:$0]  (!%p7607_p11), %s6597_s15, 16, %s627_s4, %s7608_s19  }
 0x167   : > { %s665_s11 = sshll.u32 %s658_s8, 4  ;;  %s6644_s11 = int_to_ptr.vmem [resolvable:$true] %s665_s11 }
 0x16b   : > { %s6641_s10 = scalar_lea.hbm %s7609_s7, %s6420_s16  ;;  %s5738_s4 = scalar_lea.hbm %s7609_s7, 8192 }
 0x16c   : > { %s5733_s12 = scalar_lea.hbm %s6641_s10, 4096  ;;  %p5739_p4 = scmp.lt.u32.totalorder %s6641_s10, %s7609_s7 }
 0x16d   : > { %p5734_p13 = scmp.ne.s32.totalorder %s6641_s10, %s5733_s12  ;;  %p5740_p5 = scmp.lt.u32.totalorder %s5738_s4, %s5733_s12 }
 0x16e   : > { %p5742_p8 = scmp.lt.u32.totalorder %s5733_s12, %s6641_s10 }
 0x16f   : > { %p5736_p7 = pnand %p5734_p13, %p7606_p9  ;;  %p5741_p1 = por %p5740_p5, %p5739_p4 }
 0x171   : > { %p5737_p10 = pneg %p5736_p7  ;;  %p5743_p12 = por %p5742_p8, %p5741_p1 }
 0x173   : > { %p5744_p3 = pnand %p5743_p12, %p5737_p10 }
 0x175   : > { %5747 = shalt.err (!%p5744_p3)
}
 0x176   : > { %s5748_s25 = scalar_lea.vmem %s6644_s11, 4096  ;;  %s6086_s13 = smov [#allocation16]  }
 0x177   : > { %p5749_p6 = scmp.ne.s32.totalorder %s6644_s11, %s5748_s25  ;;  %s5753_s18 = sshll.u32 %s6086_s13, 4  ;;  %s5754_s18 = int_to_ptr.vmem [resolvable:$false] %s5753_s18 }
 0x178   : > { %s5755_s29 = scalar_lea.vmem %s5754_s18, 8192  ;;  %p5756_p13 = scmp.lt.s32.totalorder %s6644_s11, %s5754_s18 }
 0x179   : > { %p5751_p0 = pnand %p5749_p6, %p7606_p9  ;;  %p5757_p7 = scmp.lt.s32.totalorder %s5755_s29, %s5748_s25 }
 0x17b   : > { %p5752_p2 = pneg %p5751_p0  ;;  %p5758_p4 = por %p5757_p7, %p5756_p13 }
 0x17d   : > { %p5759_p5 = pnand %p5758_p4, %p5752_p2 }
 0x17f   : > { %5762 = shalt.err (!%p5759_p5)
}
 0x180   : > { %s7610_s22 = smov 4   ;;  %s7611_s21 = smov 64  }
 0x181   : > { %s7612_s3 = scalar_lea.sflag [#allocation15], %s6347_s27  ;;  %s7613_s9 = sld [smem:[#allocation71_spill]] }
 0x182   : > { %5116 = dma.hbm_to_vmem [thread:$0]  (!%p7607_p11), %s6641_s10, 4096, %s6644_s11, %s7612_s3, %s7611_s21, %s7611_s21, %s7610_s22  }
 0x183   : > { %s700_s8 = scalar_lea.vmem [#allocation19], %s6417_s1 }
 0x184   : > { %s707_s12 = sshll.u32 %s700_s8, 4  ;;  %s6679_s12 = int_to_ptr.vmem [resolvable:$true] %s707_s12 }
 0x187   : > { %s6676_s6 = scalar_lea.hbm %s7613_s9, %s6420_s16  ;;  %s5768_s11 = scalar_lea.hbm %s7613_s9, 8192 }
 0x188   : > { %s5763_s26 = scalar_lea.hbm %s6676_s6, 4096  ;;  %p5769_p12 = scmp.lt.u32.totalorder %s6676_s6, %s7613_s9 }
 0x189   : > { %p5764_p10 = scmp.ne.s32.totalorder %s6676_s6, %s5763_s26  ;;  %p5770_p3 = scmp.lt.u32.totalorder %s5768_s11, %s5763_s26 }
 0x18a   : > { %p5772_p0 = scmp.lt.u32.totalorder %s5763_s26, %s6676_s6 }
 0x18b   : > { %p5766_p1 = pnand %p5764_p10, %p7606_p9  ;;  %p5771_p6 = por %p5770_p3, %p5769_p12 }
 0x18d   : > { %p5767_p8 = pneg %p5766_p1  ;;  %p5773_p2 = por %p5772_p0, %p5771_p6 }
 0x18f   : > { %p5774_p13 = pnand %p5773_p2, %p5767_p8 }
 0x191   : > { %5777 = shalt.err (!%p5774_p13)
}
 0x192   : > { %s5778_s1 = scalar_lea.vmem %s6679_s12, 4096  ;;  %s6087_s28 = smov [#allocation19]  }
 0x193   : > { %p5779_p7 = scmp.ne.s32.totalorder %s6679_s12, %s5778_s1  ;;  %s5783_s20 = sshll.u32 %s6087_s28, 4  ;;  %s5784_s20 = int_to_ptr.vmem [resolvable:$false] %s5783_s20 }
 0x194   : > { %s5785_s25 = scalar_lea.vmem %s5784_s20, 8192  ;;  %p5786_p10 = scmp.lt.s32.totalorder %s6679_s12, %s5784_s20 }
 0x195   : > { %p5781_p4 = pnand %p5779_p7, %p7606_p9  ;;  %p5787_p1 = scmp.lt.s32.totalorder %s5785_s25, %s5778_s1 }
 0x197   : > { %p5782_p5 = pneg %p5781_p4  ;;  %p5788_p12 = por %p5787_p1, %p5786_p10 }
 0x199   : > { %p5789_p3 = pnand %p5788_p12, %p5782_p5 }
 0x19b   : > { %5792 = shalt.err (!%p5789_p3)
}
 0x19c   : > { %s7614_s13 = scalar_lea.sflag [#allocation18], %s6347_s27  ;;  %s7615_s3 = sld [smem:[#allocation73_spill]] }
 0x19d   : > { %5122 = dma.hbm_to_vmem [thread:$0]  (!%p7607_p11), %s6676_s6, 4096, %s6679_s12, %s7614_s13, %s7611_s21, %s7611_s21, %s7610_s22  }
 0x19e   : > { %s737_s8 = scalar_lea.vmem [#allocation22], %s6306_s2  ;;  %s4051_s15 = sshll.u32 %s6306_s2, 6 }
 0x19f   : > { %s744_s26 = sshll.u32 %s737_s8, 4  ;;  %s745_s26 = int_to_ptr.vmem [resolvable:$true] %s744_s26 }
 0x1a2   : > { %s7616_s19 = smov %s7615_s3  ;;  %s6711_s0 = scalar_lea.hbm %s7615_s3, %s6355_s30 }
 0x1a3   : > { %s5793_s10 = scalar_lea.hbm %s6711_s0, 16  ;;  %s5798_s12 = scalar_lea.hbm %s7616_s19, 32 }
 0x1a4   : > { %p5794_p8 = scmp.ne.s32.totalorder %s6711_s0, %s5793_s10  ;;  %p5799_p2 = scmp.lt.u32.totalorder %s6711_s0, %s7616_s19 }
 0x1a5   : > { %p5800_p13 = scmp.lt.u32.totalorder %s5798_s12, %s5793_s10  ;;  %p5802_p4 = scmp.lt.u32.totalorder %s5793_s10, %s6711_s0 }
 0x1a6   : > { %p5796_p6 = pnand %p5794_p8, %p7606_p9 }
 0x1a7   : > { %p5801_p7 = por %p5800_p13, %p5799_p2 }
 0x1a8   : > { %p5797_p0 = pneg %p5796_p6 }
 0x1a9   : > { %p5803_p5 = por %p5802_p4, %p5801_p7 }
 0x1ab   : > { %p5804_p10 = pnand %p5803_p5, %p5797_p0 }
 0x1ad   : > { %5807 = shalt.err (!%p5804_p10)
}
 0x1ae   : > { %s5808_s1 = scalar_lea.vmem %s745_s26, 16  ;;  %s6088_s28 = smov [#allocation22]  }
 0x1af   : > { %p5809_p1 = scmp.ne.s32.totalorder %s745_s26, %s5808_s1  ;;  %s5813_s20 = sshll.u32 %s6088_s28, 4  ;;  %s5814_s20 = int_to_ptr.vmem [resolvable:$false] %s5813_s20 }
 0x1b0   : > { %s5815_s25 = scalar_lea.vmem %s5814_s20, 32  ;;  %p5816_p8 = scmp.lt.s32.totalorder %s745_s26, %s5814_s20 }
 0x1b1   : > { %p5811_p12 = pnand %p5809_p1, %p7606_p9  ;;  %p5817_p6 = scmp.lt.s32.totalorder %s5815_s25, %s5808_s1 }
 0x1b3   : > { %p5812_p3 = pneg %p5811_p12  ;;  %p5818_p11 = por %p5817_p6, %p5816_p8 }
 0x1b5   : > { %p5819_p2 = pnand %p5818_p11, %p5812_p3 }
 0x1b7   : > { %5822 = shalt.err (!%p5819_p2)
}
 0x1b8   : > { %p7617_p13 = scmp.ne.s32.totalorder %s7577_s24, 0  ;;  %s7618_s13 = scalar_lea.sflag [#allocation21], %s6347_s27 }
 0x1b9   : > { %s7619_s18 = sld [smem:[#allocation50_spill]]  ;;  %s7620_s10 = sld [smem:[#allocation75_spill]] }
 0x1ba   : > { %5128 = dma.hbm_to_vmem [thread:$0]  (!%p7617_p13), %s6711_s0, 16, %s745_s26, %s7618_s13  }
 0x1bb   : > { %s772_s6 = scalar_lea.vmem [#allocation25], %s4051_s15 }
 0x1bc   : > { %s779_s12 = sshll.u32 %s772_s6, 4  ;;  %s6744_s12 = int_to_ptr.vmem [resolvable:$true] %s779_s12 }
 0x1bf   : > { %s4437_s29 = sshll.u32 %s7619_s18, 10  ;;  %s5828_s16 = scalar_lea.hbm %s7620_s10, 2048 }
 0x1c0   : > { %s6740_s11 = scalar_lea.hbm %s7620_s10, %s4437_s29 }
 0x1c1   : > { %s5823_s4 = scalar_lea.hbm %s6740_s11, 1024  ;;  %p5829_p4 = scmp.lt.u32.totalorder %s6740_s11, %s7620_s10 }
 0x1c2   : > { %p5824_p11 = scmp.ne.s32.totalorder %s6740_s11, %s5823_s4  ;;  %p5830_p5 = scmp.lt.u32.totalorder %s5828_s16, %s5823_s4 }
 0x1c3   : > { %p5832_p1 = scmp.lt.u32.totalorder %s5823_s4, %s6740_s11 }
 0x1c4   : > { %p5826_p0 = pnand %p5824_p11, %p7606_p9  ;;  %p5831_p10 = por %p5830_p5, %p5829_p4 }
 0x1c6   : > { %p5827_p7 = pneg %p5826_p0  ;;  %p5833_p12 = por %p5832_p1, %p5831_p10 }
 0x1c8   : > { %p5834_p3 = pnand %p5833_p12, %p5827_p7 }
 0x1ca   : > { %5837 = shalt.err (!%p5834_p3)
}
 0x1cb   : > { %s5838_s20 = scalar_lea.vmem %s6744_s12, 1024  ;;  %s6089_s25 = smov [#allocation25]  }
 0x1cc   : > { %p5839_p8 = scmp.ne.s32.totalorder %s6744_s12, %s5838_s20  ;;  %s5843_s13 = sshll.u32 %s6089_s25, 4  ;;  %s5844_s13 = int_to_ptr.vmem [resolvable:$false] %s5843_s13 }
 0x1cd   : > { %s5845_s3 = scalar_lea.vmem %s5844_s13, 2048  ;;  %p5846_p11 = scmp.lt.s32.totalorder %s6744_s12, %s5844_s13 }
 0x1ce   : > { %p5841_p6 = pnand %p5839_p8, %p7606_p9  ;;  %p5847_p0 = scmp.lt.s32.totalorder %s5845_s3, %s5838_s20 }
 0x1d0   : > { %p5842_p2 = pneg %p5841_p6  ;;  %p5848_p4 = por %p5847_p0, %p5846_p11 }
 0x1d2   : > { %p5849_p5 = pnand %p5848_p4, %p5842_p2 }
 0x1d4   : > { %5852 = shalt.err (!%p5849_p5)
}
 0x1d5   : > { %s7621_s8 = scalar_lea.sflag [#allocation24], %s6347_s27  ;;  %s7622_s0 = sld [smem:[#allocation77_spill]] }
 0x1d6   : > { %5134 = dma.hbm_to_vmem [thread:$0]  (!%p7617_p13), %s6740_s11, 1024, %s6744_s12, %s7621_s8, %s7611_s21, %s7611_s21, %s7610_s22  }
 0x1d7   : > { %s810_s1 = scalar_lea.vmem [#allocation28], %s4051_s15 }
 0x1d8   : > { %s817_s28 = sshll.u32 %s810_s1, 4  ;;  %s6781_s28 = int_to_ptr.vmem [resolvable:$true] %s817_s28 }
 0x1db   : > { %s7623_s16 = smov %s7622_s0  ;;  %s6777_s26 = scalar_lea.hbm %s7622_s0, %s4437_s29 }
 0x1dc   : > { %s5853_s20 = scalar_lea.hbm %s6777_s26, 1024  ;;  %s5858_s12 = scalar_lea.hbm %s7623_s16, 2048 }
 0x1dd   : > { %p5854_p7 = scmp.ne.s32.totalorder %s6777_s26, %s5853_s20  ;;  %p5859_p12 = scmp.lt.u32.totalorder %s6777_s26, %s7623_s16 }
 0x1de   : > { %p5860_p3 = scmp.lt.u32.totalorder %s5858_s12, %s5853_s20  ;;  %p5862_p6 = scmp.lt.u32.totalorder %s5853_s20, %s6777_s26 }
 0x1df   : > { %p5856_p10 = pnand %p5854_p7, %p7606_p9 }
 0x1e0   : > { %p5861_p8 = por %p5860_p3, %p5859_p12 }
 0x1e1   : > { %p5857_p1 = pneg %p5856_p10 }
 0x1e2   : > { %p5863_p2 = por %p5862_p6, %p5861_p8 }
 0x1e4   : > { %p5864_p11 = pnand %p5863_p2, %p5857_p1 }
 0x1e6   : > { %5867 = shalt.err (!%p5864_p11)
}
 0x1e7   : > { %s5868_s15 = scalar_lea.vmem %s6781_s28, 1024  ;;  %s6090_s13 = smov [#allocation28]  }
 0x1e8   : > { %p5869_p0 = scmp.ne.s32.totalorder %s6781_s28, %s5868_s15  ;;  %s5873_s3 = sshll.u32 %s6090_s13, 4  ;;  %s5874_s3 = int_to_ptr.vmem [resolvable:$false] %s5873_s3 }
 0x1e9   : > { %s5875_s8 = scalar_lea.vmem %s5874_s3, 2048  ;;  %p5876_p7 = scmp.lt.s32.totalorder %s6781_s28, %s5874_s3 }
 0x1ea   : > { %p5871_p4 = pnand %p5869_p0, %p7606_p9  ;;  %p5877_p10 = scmp.lt.s32.totalorder %s5875_s8, %s5868_s15 }
 0x1ec   : > { %p5872_p5 = pneg %p5871_p4  ;;  %p5878_p12 = por %p5877_p10, %p5876_p7 }
 0x1ee   : > { %p5879_p3 = pnand %p5878_p12, %p5872_p5 }
 0x1f0   : > { %5882 = shalt.err (!%p5879_p3)
}
 0x1f1   : > { %s7624_s6 = scalar_lea.sflag [#allocation27], %s6347_s27  ;;  %s7625_s1 = sld [smem:[#allocation78_spill]] }
 0x1f2   : > { %5140 = dma.hbm_to_vmem [thread:$0]  (!%p7617_p13), %s6777_s26, 1024, %s6781_s28, %s7624_s6, %s7611_s21, %s7611_s21, %s7610_s22  }
 0x1f3   : > { %s830_s11 = scalar_lea.vmem [#allocation29], %s6306_s2  ;;  %s828_s27 = scalar_lea.sflag [#allocation30], %s6306_s2 }
 0x1f4   : > { %s837_s12 = sshll.u32 %s830_s11, 4  ;;  %s838_s12 = int_to_ptr.vmem [resolvable:$true] %s837_s12 }
 0x1f7   : > { %s7626_s18 = smov %s7625_s1  ;;  %s6813_s20 = scalar_lea.hbm %s7625_s1, %s6355_s30 }
 0x1f8   : > { %s5883_s29 = scalar_lea.hbm %s6813_s20, 16  ;;  %s5888_s21 = scalar_lea.hbm %s7626_s18, 32 }
 0x1f9   : > { %p5884_p1 = scmp.ne.s32.totalorder %s6813_s20, %s5883_s29  ;;  %p5889_p2 = scmp.lt.u32.totalorder %s6813_s20, %s7626_s18 }
 0x1fa   : > { %p5890_p11 = scmp.lt.u32.totalorder %s5888_s21, %s5883_s29  ;;  %p5892_p4 = scmp.lt.u32.totalorder %s5883_s29, %s6813_s20 }
 0x1fb   : > { %p5886_p8 = pnand %p5884_p1, %p7606_p9 }
 0x1fc   : > { %p5891_p0 = por %p5890_p11, %p5889_p2 }
 0x1fd   : > { %p5887_p6 = pneg %p5886_p8 }
 0x1fe   : > { %p5893_p5 = por %p5892_p4, %p5891_p0 }
 0x200   : > { %p5894_p7 = pnand %p5893_p5, %p5887_p6 }
 0x202   : > { %5897 = shalt.err (!%p5894_p7)
}
 0x203   : > { %s5898_s2 = scalar_lea.vmem %s838_s12, 16  ;;  %s6091_s28 = smov [#allocation29]  }
 0x204   : > { %p5899_p10 = scmp.ne.s32.totalorder %s838_s12, %s5898_s2  ;;  %s5903_s15 = sshll.u32 %s6091_s28, 4  ;;  %s5904_s15 = int_to_ptr.vmem [resolvable:$false] %s5903_s15 }
 0x205   : > { %s5905_s13 = scalar_lea.vmem %s5904_s15, 32  ;;  %p5906_p1 = scmp.lt.s32.totalorder %s838_s12, %s5904_s15 }
 0x206   : > { %p5901_p12 = pnand %p5899_p10, %p7606_p9  ;;  %p5907_p8 = scmp.lt.s32.totalorder %s5905_s13, %s5898_s2 }
 0x208   : > { %p5902_p3 = pneg %p5901_p12  ;;  %p5908_p13 = por %p5907_p8, %p5906_p1 }
 0x20a   : > { %p5909_p2 = pnand %p5908_p13, %p5902_p3 }
 0x20c   : > { %5912 = shalt.err (!%p5909_p2)
}
 0x20d   : > { %p7627_p11 = scmp.ne.s32.totalorder %s7577_s24, 0  ;;  %s7628_s3 = sld [smem:[#allocation57_spill]] }
 0x20f   : > { %5143 = dma.hbm_to_vmem [thread:$0]  (!%p7627_p11), %s6813_s20, 16, %s838_s12, %s828_s27  }
 0x213   : > { %p7629_p6 = scmp.ne.s32.totalorder %s7628_s3, 0 }
 0x214   : > { %s7630_s8 = sld [smem:[#allocation53_spill]] (!%p7629_p6) }
 0x215   : > { %846 = sbr.rel (%p7629_p6) target bundleno = 4714 (0x126a), region = 92 }
 0x21a   : > { %p7631_p0 = scmp.eq.s32.totalorder (!%p7629_p6), %s7630_s8, 0 }
 0x21c   : > { %5988 = dma.done.wait (%p7631_p0), [#allocation6], 1024   ;;  %p7632_p9 = pmov %p7631_p0 }
 0x21d   : > { %p7633_p4 = pmov %p7631_p0 }
 0x21e   : > { %5990 = vsyncadd (%p7632_p9), [#allocation6], 4294966272 }
 0x21f   : > { %5992 = dma.done.wait (%p7633_p4), [#allocation9], 256   ;;  %p7634_p5 = pmov %p7631_p0 }
 0x220   : > { %s7635_s17 = sld [smem:[#allocation46_spill]]  ;;  %s7636_s24 = sld [smem:[#allocation54_spill]] }
 0x221   : > { %5994 = vsyncadd (%p7634_p5), [#allocation9], 4294967040  ;;  %s6845_s6 = sand.u32 1, %s7630_s8  }
 0x222   : > { %s861_s0 = scalar_lea.sflag [#allocation12], %s6845_s6 }
 0x226   : > { %s6848_s4 = sand.u32 1, %s7635_s17   ;;  %p7637_p13 = scmp.ne.s32.totalorder %s7636_s24, 0 }
 0x228   : > { %5996 = dma.done.wait (%p7637_p13), %s861_s0, 32  }
 0x229   : > { %5998 = vsyncadd (%p7637_p13), %s861_s0, 4294967264  ;;  %s4063_s20 = sshll.u32 %s6848_s4, 8  ;;  %s877_s12 = scalar_lea.sflag [#allocation15], %s6845_s6 }
 0x22a   : > { %s6859_s27 = scalar_lea.vmem [#allocation14], %s4063_s20 }
 0x22b   : > { %6000 = dma.done.wait (%p7637_p13), %s877_s12, 8192  }
 0x22c   : > { %6002 = vsyncadd (%p7637_p13), %s877_s12, 4294959104  ;;  %s6865_s29 = scalar_lea.vmem [#allocation16], %s4063_s20  ;;  %s895_s25 = scalar_lea.sflag [#allocation18], %s6845_s6 }
 0x22d   : > { %s6868_s22 = scalar_lea.vmem [#allocation17], %s4063_s20 }
 0x22e   : > { %6004 = dma.done.wait (%p7637_p13), %s895_s25, 8192  }
 0x22f   : > { %6006 = vsyncadd (%p7637_p13), %s895_s25, 4294959104  ;;  %s6874_s21 = scalar_lea.vmem [#allocation19], %s4063_s20  ;;  %s913_s26 = scalar_lea.sflag [#allocation21], %s6845_s6 }
 0x230   : > { %6008 = dma.done.wait (%p7637_p13), %s913_s26, 32  }
 0x231   : > { %6010 = vsyncadd (%p7637_p13), %s913_s26, 4294967264  ;;  %s929_s28 = scalar_lea.sflag [#allocation24], %s6845_s6 }
 0x232   : > { %6012 = dma.done.wait (%p7637_p13), %s929_s28, 1040  }
 0x233   : > { %6014 = vsyncadd (%p7637_p13), %s929_s28, 4294966256  ;;  %s4067_s13 = sshll.u32 %s6848_s4, 6  ;;  %s946_s8 = scalar_lea.sflag [#allocation27], %s6845_s6 }
 0x234   : > { %s6890_s3 = scalar_lea.vmem [#allocation25], %s4067_s13 }
 0x235   : > { %6016 = dma.done.wait (%p7637_p13), %s946_s8, 1040  }
 0x236   : > { %6018 = vsyncadd (%p7637_p13), %s946_s8, 4294966256  ;;  %s6898_s0 = scalar_lea.vmem [#allocation28], %s4067_s13  ;;  %s963_s20 = scalar_lea.sflag [#allocation30], %s6848_s4 }
 0x237   : > { %6020 = dma.done.wait (%p7637_p13), %s963_s20, 16  }
 0x238   : > { %6022 = vsyncadd (%p7637_p13), %s963_s20, 4294967280  ;;  %s7638_s25 = sld [smem:[#allocation44_spill]]  ;;  %s7639_s8 = sld [smem:[#allocation48_spill]] }
 0x23e   : > { %s7532_s6 = sand.u32 1, %s7638_s25   ;;  %p4070_p7 = scmp.ne.s32.totalorder %s7639_s8, 0 }
 0x23f   : > { %s6909_s26 = sshll.u32 %s7532_s6, 3  ;;  %s7640_s13 = sld [smem:[#allocation49_spill]] (!%p4070_p7)  ;;  %vm1130_vm0 = vcmask (!%p4070_p7), 1040384   ;;  %vm1132_vm1 = vcmask (!%p4070_p7), 1041408   ;;  %vm1134_vm2 = vcmask (!%p4070_p7), 1042432   ;;  %vm1136_vm3 = vcmask (!%p4070_p7), 1043456  }
 0x240   : > { %1075 = sbr.rel (%p4070_p7) target bundleno = 604 (0x25c), region = 160  ;;  %vm1138_vm4 = vcmask (!%p4070_p7), 1044480   ;;  %vm1140_vm5 = vcmask (!%p4070_p7), 1045504   ;;  %vm1142_vm6 = vcmask (!%p4070_p7), 1046528   ;;  %v1076_v19 = vld [vmem:[#allocation8] sm:$0xff] (!%p4070_p7) }
 0x245   : > { %s4071_s17 = sshll.u32 (!%p4070_p7), %s7640_s13, 7 }
 0x246   : > { %s1078_s15 = sld [smem:[#allocation4 + %s4071_s17]] (!%p4070_p7)  ;;  %s1081_s12 = sadd.s32 (!%p4070_p7), 1, %s4071_s17 }
 0x247   : > { %s1082_s2 = sld [smem:[#allocation4 + %s1081_s12]]  ;;  %s1085_s30 = sadd.s32 2, %s4071_s17 }
 0x248   : > { %s1086_s11 = sld [smem:[#allocation4 + %s1085_s30]]  ;;  %s1089_s24 = sadd.s32 3, %s4071_s17 }
 0x249   : > { %s1090_s20 = sld [smem:[#allocation4 + %s1089_s24]]  ;;  %s1093_s1 = sadd.s32 4, %s4071_s17 }
 0x24a   : > { %s1094_s5 = sld [smem:[#allocation4 + %s1093_s1]]  ;;  %s1097_s7 = sadd.s32 5, %s4071_s17 }
 0x24b   : > { %s1098_s25 = sld [smem:[#allocation4 + %s1097_s7]]  ;;  %s1101_s6 = sadd.s32 6, %s4071_s17 }
 0x24c   : > { %s1102_s9 = sld [smem:[#allocation4 + %s1101_s6]]  ;;  %s1105_s10 = sadd.s32 7, %s4071_s17 }
 0x24d   : > { %s1079_s28 = scalar_lea.vmem [#allocation5], %s1078_s15  ;;  %s1083_s8 = scalar_lea.vmem [#allocation5], %s1082_s2 }
 0x24e   : > { %v1080_v0 = vld [vmem:[%s1079_s28] sm:$0x1]  ;;  %s1106_s13 = sld [smem:[#allocation4 + %s1105_s10]]  ;;  %s1087_s14 = scalar_lea.vmem [#allocation5], %s1086_s11 }
 0x24f   : > { %v1084_v1 = vld [vmem:[%s1083_s8] sm:$0x1]  ;;  %s1091_s30 = scalar_lea.vmem [#allocation5], %s1090_s20 }
 0x250   : > { %v1088_v2 = vld [vmem:[%s1087_s14] sm:$0x1]  ;;  %v1110_v3 = vrot.slane %v1084_v1, 7  ;;  %s1095_s1 = scalar_lea.vmem [#allocation5], %s1094_s5 }
 0x251   : > { %v1092_v4 = vld [vmem:[%s1091_s30] sm:$0x1]  ;;  %v1113_v5 = vrot.slane %v1088_v2, 6  ;;  %s1099_s7 = scalar_lea.vmem [#allocation5], %s1098_s25 }
 0x252   : > { %v1096_v6 = vld [vmem:[%s1095_s1] sm:$0x1]  ;;  %v1116_v7 = vrot.slane %v1092_v4, 5  ;;  %v1131_v8 = vsel %vm1130_vm0, %v1080_v0, %v1110_v3  ;;  %s1103_s10 = scalar_lea.vmem [#allocation5], %s1102_s9 }
 0x253   : > { %v1100_v9 = vld [vmem:[%s1099_s7] sm:$0x1]  ;;  %v1119_v10 = vrot.slane %v1096_v6, 4  ;;  %v1133_v11 = vsel %vm1132_vm1, %v1131_v8, %v1113_v5 }
 0x254   : > { %v1104_v12 = vld [vmem:[%s1103_s10] sm:$0x1]  ;;  %v1122_v13 = vrot.slane %v1100_v9, 3  ;;  %v1135_v14 = vsel %vm1134_vm2, %v1133_v11, %v1116_v7  ;;  %s1107_s14 = scalar_lea.vmem [#allocation5], %s1106_s13 }
 0x255   : > { %v1125_v15 = vrot.slane %v1104_v12, 2  ;;  %v1137_v16 = vsel %vm1136_vm3, %v1135_v14, %v1119_v10  ;;  %v1108_v17 = vld [vmem:[%s1107_s14] sm:$0x1] }
 0x256   : > { %v1139_v18 = vsel %vm1138_vm4, %v1137_v16, %v1122_v13  ;;  %v1128_v20 = vrot.slane %v1108_v17, 1 }
 0x257   : > { %v1141_v21 = vsel %vm1140_vm5, %v1139_v18, %v1125_v15 }
 0x258   : > { %v1143_v22 = vsel %vm1142_vm6, %v1141_v21, %v1128_v20 }
 0x259   : > { %v1144_v23 = vadd.f32 %v1143_v22, %v1076_v19 }
 0x25b   : > { %1145 = vst [vmem:[#allocation2] sm:$0xff] %v1144_v23 }
 0x25c PF: > { %v6092_v26 = vmov 0.0   ;;  %v5256_v27 = vld [vmem:[%s6859_s27] sm:$0xff]   ;;  %v5258_v29 = vld [vmem:[%s6859_s27 + $0x8] sm:$0xff]   ;;  %v5260_v31 = vld [vmem:[%s6859_s27 + $0x10] sm:$0xff]   ;;  %vm6093_vm7 = vmmov 0   ;;  %s7641_s5 = scalar_lea.vmem [#allocation11], %s6848_s4 }
 0x25d   : > { %4626 = vmatprep.subr.bf16.mxu0 %v6092_v26  ;;  %4646 = vmatprep.subr.bf16.mxu1 %v6092_v26  ;;  %v5257_v28 = vld [vmem:[%s6859_s27 + $0x40] sm:$0xff]   ;;  %v5259_v30 = vld [vmem:[%s6859_s27 + $0x48] sm:$0xff]   ;;  %v5261_v32 = vld [vmem:[%s6859_s27 + $0x50] sm:$0xff]   ;;  %s7642_s9 = scalar_lea.vmem [#allocation13], %s6848_s4  ;;  %vm2496_vm8 = vcmask 1043456   ;;  %vm2479_vm9 = vcmask 64512  }
 0x25e   : > { %4627 = vmatpush3.bf16.msra.mxu0 %v5256_v27  ;;  %4647 = vmatpush3.bf16.msra.mxu1 %v5257_v28  ;;  %v5262_v33 = vld [vmem:[%s6859_s27 + $0x18] sm:$0xff]   ;;  %v5264_v35 = vld [vmem:[%s6859_s27 + $0x20] sm:$0xff]   ;;  %v5266_v37 = vld [vmem:[%s6859_s27 + $0x28] sm:$0xff]   ;;  %s7643_s11 = scalar_lea.vmem [#allocation20], %s6848_s4  ;;  %s7648_s2 = sld [smem:[#allocation48_spill]] }
 0x25f   : > { %4628 = vmatprep.subr.bf16.mxu0 %v6092_v26  ;;  %4648 = vmatprep.subr.bf16.mxu1 %v6092_v26  ;;  %v5263_v34 = vld [vmem:[%s6859_s27 + $0x58] sm:$0xff]   ;;  %v5265_v36 = vld [vmem:[%s6859_s27 + $0x60] sm:$0xff]   ;;  %v5267_v38 = vld [vmem:[%s6859_s27 + $0x68] sm:$0xff]  }
 0x260   : > { %v5268_v39 = vld [vmem:[%s6859_s27 + $0x30] sm:$0xff]   ;;  %v5270_v41 = vld [vmem:[%s6859_s27 + $0x38] sm:$0xff]   ;;  %4642 = vmatprep.mubr.msk.bf16.mxu0 %vm6093_vm7, %v6092_v26  ;;  %4662 = vmatprep.mubr.msk.bf16.mxu1 %vm6093_vm7, %v6092_v26  ;;  %v4072_v52 = vld [vmem:[%s7641_s5] ss:$0 sm:$0xff] }
 0x261   : > { %v5269_v40 = vld [vmem:[%s6859_s27 + $0x70] sm:$0xff]   ;;  %v5271_v42 = vld [vmem:[%s6859_s27 + $0x78] sm:$0xff]   ;;  %v4073_v54 = vld [vmem:[%s7642_s9] ss:$0 sm:$0xff] }
 0x262   : > { %v6915_v24 = vld [vmem:[#allocation2] sm:$0xff]  ;;  %4629 = vmatpush3.bf16.msra.mxu0 %v5258_v29  ;;  %4649 = vmatpush3.bf16.msra.mxu1 %v5259_v30  ;;  %v5276_v62 = vld [vmem:[%s6859_s27 + $0x90] sm:$0xff]   ;;  %v5278_v0 = vld [vmem:[%s6859_s27 + $0x98] sm:$0xff]  }
 0x263   : > { %1150 = vadd.xlane.f32.xlu0 %v6915_v24  ;;  %v1153_v25 = vmul.f32 %v6915_v24, %v6915_v24  ;;  %4630 = vmatprep.subr.bf16.mxu0 %v6092_v26  ;;  %v5272_v57 = vld [vmem:[%s6859_s27 + $0x80] sm:$0xff]   ;;  %v5274_v60 = vld [vmem:[%s6859_s27 + $0x88] sm:$0xff]   ;;  %v5277_v63 = vld [vmem:[%s6859_s27 + $0xd0] sm:$0xff]  }
 0x264   : > { %4650 = vmatprep.subr.bf16.mxu1 %v6092_v26  ;;  %v5273_v58 = vld [vmem:[%s6859_s27 + $0xc0] sm:$0xff]   ;;  %v5275_v61 = vld [vmem:[%s6859_s27 + $0xc8] sm:$0xff]   ;;  %v5279_v1 = vld [vmem:[%s6859_s27 + $0xd8] sm:$0xff]   ;;  %p4419_p10 = scmp.ne.s32.totalorder %s7648_s2, 1 }
 0x265   : > { %v5280_v2 = vld [vmem:[%s6859_s27 + $0xa0] sm:$0xff]   ;;  %v5282_v4 = vld [vmem:[%s6859_s27 + $0xa8] sm:$0xff]   ;;  %v5284_v6 = vld [vmem:[%s6859_s27 + $0xb0] sm:$0xff]   ;;  %s7649_s17 = sld [smem:[#allocation79_spill]] (!%p4419_p10)  ;;  %vm6095_vm10 = vmmov (!%p4419_p10), 0   ;;  %s7650_s9 = sld [smem:[#allocation80_spill]] (!%p4419_p10) }
 0x266   : > { %4631 = vmatpush3.bf16.msra.mxu0 %v5260_v31  ;;  %4651 = vmatpush3.bf16.msra.mxu1 %v5261_v32  ;;  %v5281_v3 = vld [vmem:[%s6859_s27 + $0xe0] sm:$0xff]   ;;  %v5283_v5 = vld [vmem:[%s6859_s27 + $0xe8] sm:$0xff]   ;;  %v5285_v7 = vld [vmem:[%s6859_s27 + $0xf0] sm:$0xff]  }
 0x267   : > { %1154 = vadd.xlane.f32.xlu0 %v1153_v25  ;;  %4632 = vmatprep.subr.bf16.mxu0 %v6092_v26  ;;  %v5286_v8 = vld [vmem:[%s6859_s27 + $0xb8] sm:$0xff]   ;;  %v5288_v10 = vld [vmem:[%s6865_s29] sm:$0xff]   ;;  %v5290_v12 = vld [vmem:[%s6865_s29 + $0x8] sm:$0xff]  }
 0x268   : > { %4652 = vmatprep.subr.bf16.mxu1 %v6092_v26  ;;  %v5287_v9 = vld [vmem:[%s6859_s27 + $0xf8] sm:$0xff]   ;;  %v5289_v11 = vld [vmem:[%s6865_s29 + $0x40] sm:$0xff]   ;;  %v5291_v13 = vld [vmem:[%s6865_s29 + $0x48] sm:$0xff]   ;;  %s7644_s27 = scalar_lea.vmem [#allocation22], %s6848_s4 }
 0x269   : > { %v5292_v14 = vld [vmem:[%s6865_s29 + $0x10] sm:$0xff]   ;;  %v5294_v16 = vld [vmem:[%s6865_s29 + $0x18] sm:$0xff]   ;;  %v5296_v18 = vld [vmem:[%s6865_s29 + $0x20] sm:$0xff]  }
 0x26a   : > { %4633 = vmatpush3.bf16.msra.mxu0 %v5262_v33  ;;  %4653 = vmatpush3.bf16.msra.mxu1 %v5263_v34  ;;  %v5293_v15 = vld [vmem:[%s6865_s29 + $0x50] sm:$0xff]   ;;  %v5295_v17 = vld [vmem:[%s6865_s29 + $0x58] sm:$0xff]   ;;  %v5297_v19 = vld [vmem:[%s6865_s29 + $0x60] sm:$0xff]  }
 0x26b   : > { %4634 = vmatprep.subr.bf16.mxu0 %v6092_v26  ;;  %4654 = vmatprep.subr.bf16.mxu1 %v6092_v26  ;;  %v5298_v20 = vld [vmem:[%s6865_s29 + $0x28] sm:$0xff]   ;;  %v5300_v22 = vld [vmem:[%s6865_s29 + $0x30] sm:$0xff]   ;;  %v5303_v25 = vld [vmem:[%s6865_s29 + $0x78] sm:$0xff]  }
 0x26c   : > { %v5299_v21 = vld [vmem:[%s6865_s29 + $0x68] sm:$0xff]   ;;  %v5301_v23 = vld [vmem:[%s6865_s29 + $0x70] sm:$0xff]   ;;  %v5304_v27 = vld [vmem:[%s6865_s29 + $0x80] sm:$0xff]  }
 0x26d   : > { %v5305_v28 = vld [vmem:[%s6865_s29 + $0xc0] sm:$0xff]   ;;  %v5306_v29 = vld [vmem:[%s6865_s29 + $0x88] sm:$0xff]   ;;  %v5308_v31 = vld [vmem:[%s6865_s29 + $0x90] sm:$0xff]  }
 0x26e   : > { %4635 = vmatpush3.bf16.msra.mxu0 %v5264_v35  ;;  %4655 = vmatpush3.bf16.msra.mxu1 %v5265_v36  ;;  %v5307_v30 = vld [vmem:[%s6865_s29 + $0xc8] sm:$0xff]   ;;  %v5309_v32 = vld [vmem:[%s6865_s29 + $0xd0] sm:$0xff]   ;;  %v5310_v33 = vld [vmem:[%s6865_s29 + $0x98] sm:$0xff]  }
 0x26f   : > { %4636 = vmatprep.subr.bf16.mxu0 %v6092_v26  ;;  %4656 = vmatprep.subr.bf16.mxu1 %v6092_v26  ;;  %v5311_v34 = vld [vmem:[%s6865_s29 + $0xd8] sm:$0xff]   ;;  %v5312_v35 = vld [vmem:[%s6865_s29 + $0xa0] sm:$0xff]  }
 0x270   : > { %v5313_v36 = vld [vmem:[%s6865_s29 + $0xe0] sm:$0xff]  }
 0x272   : > { %4637 = vmatpush3.bf16.msra.mxu0 %v5266_v37  ;;  %4657 = vmatpush3.bf16.msra.mxu1 %v5267_v38  ;;  %v5314_v37 = vld [vmem:[%s6865_s29 + $0xa8] sm:$0xff]  }
 0x273   : > { %4638 = vmatprep.subr.bf16.mxu0 %v6092_v26  ;;  %4658 = vmatprep.subr.bf16.mxu1 %v6092_v26  ;;  %v5315_v38 = vld [vmem:[%s6865_s29 + $0xe8] sm:$0xff]  }
 0x276   : > { %4639 = vmatpush3.bf16.msra.mxu0 %v5268_v39  ;;  %4659 = vmatpush3.bf16.msra.mxu1 %v5269_v40  ;;  %v5316_v39 = vld [vmem:[%s6865_s29 + $0xb0] sm:$0xff]  }
 0x277   : > { %4640 = vmatprep.subr.bf16.mxu0 %v6092_v26  ;;  %4660 = vmatprep.subr.bf16.mxu1 %v6092_v26  ;;  %v5317_v40 = vld [vmem:[%s6865_s29 + $0xf0] sm:$0xff]  }
 0x27a   : > { %4641 = vmatpush3.bf16.msra.mxu0 %v5270_v41  ;;  %4661 = vmatpush3.bf16.msra.mxu1 %v5271_v42  ;;  %v5318_v41 = vld [vmem:[%s6865_s29 + $0xb8] sm:$0xff]  }
 0x27b   : > { %4666 = vmatprep.subr.bf16.mxu0 %v6092_v26  ;;  %4686 = vmatprep.subr.bf16.mxu1 %v6092_v26  ;;  %v5319_v42 = vld [vmem:[%s6865_s29 + $0xf8] sm:$0xff]  }
 0x2f0   : > { %v1151_v43 = vpop.xlane.xlu0 %1150 }
 0x2f1   : > { %v1152_v44 = vmul.f32 0.03125, %v1151_v43  ;;  %v5320_v43 = vld [vmem:[%s6868_s22] sm:$0xff]  }
 0x2f3   : > { %v1157_v46 = vmul.f32 %v1152_v44, %v1152_v44  ;;  %v1159_v50 = vsub.f32 %v6915_v24, %v1152_v44  ;;  %v5302_v24 = vld [vmem:[%s6865_s29 + $0x38] sm:$0xff]   ;;  %v5321_v44 = vld [vmem:[%s6868_s22 + $0x40] sm:$0xff]   ;;  %s7645_s29 = scalar_lea.vmem [#allocation23], %s6848_s4 }
 0x2f4   : > { %v1155_v45 = vpop.xlane.xlu0 %1154 }
 0x2f5   : > { %v1156_v47 = vmul.f32 0.03125, %v1155_v45  ;;  %v5322_v45 = vld [vmem:[%s6868_s22 + $0x8] sm:$0xff]  }
 0x2f7   : > { %v1158_v48 = vsub.f32 %v1156_v47, %v1157_v46  ;;  %v5323_v46 = vld [vmem:[%s6868_s22 + $0x48] sm:$0xff]   ;;  %v5324_v47 = vld [vmem:[%s6868_s22 + $0x10] sm:$0xff]  }
 0x2f9   : > { %v1160_v49 = vadd.f32 1e-05, %v1158_v48  ;;  %v5325_v48 = vld [vmem:[%s6868_s22 + $0x50] sm:$0xff]  }
 0x2fb   : > { %5400 = vrsqrt.f32 %v1160_v49  ;;  %v5326_v49 = vld [vmem:[%s6868_s22 + $0x18] sm:$0xff]  }
 0x305   : > { %v5401_v51 = vpop.eup %5400 }
 0x306   : > { %v1162_v53 = vmul.f32 %v5401_v51, %v1159_v50  ;;  %v5327_v50 = vld [vmem:[%s6868_s22 + $0x58] sm:$0xff]   ;;  %v5328_v51 = vld [vmem:[%s6868_s22 + $0x20] sm:$0xff]  }
 0x308   : > { %v1169_v55 = vmul.f32 %v4072_v52, %v1162_v53  ;;  %v5329_v52 = vld [vmem:[%s6868_s22 + $0x60] sm:$0xff]   ;;  %v5330_v53 = vld [vmem:[%s6868_s22 + $0x28] sm:$0xff]  }
 0x30a   : > { %v1176_v56 = vadd.f32 %v4073_v54, %v1169_v55  ;;  %v5331_v54 = vld [vmem:[%s6868_s22 + $0x68] sm:$0xff]   ;;  %v5332_v55 = vld [vmem:[%s6868_s22 + $0x30] sm:$0xff]  }
 0x30c   : > { %v6965_v59 = vpack.c.bf16 %v1176_v56, %v1176_v56  ;;  %v5333_v56 = vld [vmem:[%s6868_s22 + $0x70] sm:$0xff]  }
 0x30e   : > { %4643 = vmatmul.mubr.bf16.vlgmr.msra.gmra.mrb[0].mxu0 %v6965_v59  ;;  %4663 = vmatmul.mubr.bf16.vlgmr.msra.gmra.mrb[0].mxu1 %v6965_v59 }
 0x30f   : > { %4667 = vmatpush3.bf16.msra.mxu0 %v5272_v57  ;;  %4687 = vmatpush3.bf16.msra.mxu1 %v5273_v58  ;;  %v5334_v57 = vld [vmem:[%s6868_s22 + $0x38] sm:$0xff]  }
 0x310   : > { %4668 = vmatprep.subr.bf16.mxu0 %v6092_v26  ;;  %4688 = vmatprep.subr.bf16.mxu1 %v6092_v26  ;;  %v5335_v58 = vld [vmem:[%s6868_s22 + $0x78] sm:$0xff]  }
 0x311   : > { %4682 = vmatprep.mubr.msk.bf16.mxu0 %vm6093_vm7, %v6092_v26  ;;  %4702 = vmatprep.mubr.msk.bf16.mxu1 %vm6093_vm7, %v6092_v26 }
 0x313   : > { %4669 = vmatpush3.bf16.msra.mxu0 %v5274_v60  ;;  %4689 = vmatpush3.bf16.msra.mxu1 %v5275_v61  ;;  %v5336_v60 = vld [vmem:[%s6868_s22 + $0x80] sm:$0xff]  }
 0x314   : > { %4670 = vmatprep.subr.bf16.mxu0 %v6092_v26  ;;  %4690 = vmatprep.subr.bf16.mxu1 %v6092_v26  ;;  %v5337_v61 = vld [vmem:[%s6868_s22 + $0xc0] sm:$0xff]  }
 0x317   : > { %4671 = vmatpush3.bf16.msra.mxu0 %v5276_v62  ;;  %4691 = vmatpush3.bf16.msra.mxu1 %v5277_v63  ;;  %v5338_v62 = vld [vmem:[%s6868_s22 + $0x88] sm:$0xff]  }
 0x318   : > { %4672 = vmatprep.subr.bf16.mxu0 %v6092_v26  ;;  %4692 = vmatprep.subr.bf16.mxu1 %v6092_v26  ;;  %v5339_v63 = vld [vmem:[%s6868_s22 + $0xc8] sm:$0xff]  }
 0x31b   : > { %4673 = vmatpush3.bf16.msra.mxu0 %v5278_v0  ;;  %4693 = vmatpush3.bf16.msra.mxu1 %v5279_v1  ;;  %v5340_v0 = vld [vmem:[%s6868_s22 + $0x90] sm:$0xff]  }
 0x31c   : > { %4674 = vmatprep.subr.bf16.mxu0 %v6092_v26  ;;  %4694 = vmatprep.subr.bf16.mxu1 %v6092_v26  ;;  %v5341_v1 = vld [vmem:[%s6868_s22 + $0xd0] sm:$0xff]  }
 0x31f   : > { %4675 = vmatpush3.bf16.msra.mxu0 %v5280_v2  ;;  %4695 = vmatpush3.bf16.msra.mxu1 %v5281_v3  ;;  %v5342_v2 = vld [vmem:[%s6868_s22 + $0x98] sm:$0xff]  }
 0x320   : > { %4676 = vmatprep.subr.bf16.mxu0 %v6092_v26  ;;  %4696 = vmatprep.subr.bf16.mxu1 %v6092_v26  ;;  %v5343_v3 = vld [vmem:[%s6868_s22 + $0xd8] sm:$0xff]  }
 0x323   : > { %4677 = vmatpush3.bf16.msra.mxu0 %v5282_v4  ;;  %4697 = vmatpush3.bf16.msra.mxu1 %v5283_v5  ;;  %v5344_v4 = vld [vmem:[%s6868_s22 + $0xa0] sm:$0xff]  }
 0x324   : > { %4678 = vmatprep.subr.bf16.mxu0 %v6092_v26  ;;  %4698 = vmatprep.subr.bf16.mxu1 %v6092_v26  ;;  %v5345_v5 = vld [vmem:[%s6868_s22 + $0xe0] sm:$0xff]  }
 0x327   : > { %4679 = vmatpush3.bf16.msra.mxu0 %v5284_v6  ;;  %4699 = vmatpush3.bf16.msra.mxu1 %v5285_v7  ;;  %v5346_v6 = vld [vmem:[%s6868_s22 + $0xa8] sm:$0xff]  }
 0x328   : > { %4680 = vmatprep.subr.bf16.mxu0 %v6092_v26  ;;  %4700 = vmatprep.subr.bf16.mxu1 %v6092_v26  ;;  %v5347_v7 = vld [vmem:[%s6868_s22 + $0xe8] sm:$0xff]  }
 0x32b   : > { %4681 = vmatpush3.bf16.msra.mxu0 %v5286_v8  ;;  %4701 = vmatpush3.bf16.msra.mxu1 %v5287_v9  ;;  %v5348_v8 = vld [vmem:[%s6868_s22 + $0xb0] sm:$0xff]  }
 0x32c   : > { %4706 = vmatprep.subr.bf16.mxu0 %v6092_v26  ;;  %4726 = vmatprep.subr.bf16.mxu1 %v6092_v26  ;;  %v5349_v9 = vld [vmem:[%s6868_s22 + $0xf0] sm:$0xff]  }
 0x32e   : > { %4683 = vmatmul.mubr.bf16.vlgmr.msra.gmra.mrb[4].mxu0 %v6965_v59  ;;  %4703 = vmatmul.mubr.bf16.vlgmr.msra.gmra.mrb[4].mxu1 %v6965_v59 }
 0x32f   : > { %4707 = vmatpush3.bf16.msra.mxu0 %v5288_v10  ;;  %4727 = vmatpush3.bf16.msra.mxu1 %v5289_v11  ;;  %v5350_v10 = vld [vmem:[%s6868_s22 + $0xb8] sm:$0xff]  }
 0x330   : > { %4708 = vmatprep.subr.bf16.mxu0 %v6092_v26  ;;  %4728 = vmatprep.subr.bf16.mxu1 %v6092_v26  ;;  %v5351_v11 = vld [vmem:[%s6868_s22 + $0xf8] sm:$0xff]   ;;  %s7646_s22 = scalar_lea.vmem [#allocation26], %s6848_s4 }
 0x331   : > { %4722 = vmatprep.mubr.msk.bf16.mxu0 %vm6093_vm7, %v6092_v26  ;;  %4742 = vmatprep.mubr.msk.bf16.mxu1 %vm6093_vm7, %v6092_v26 }
 0x333   : > { %4709 = vmatpush3.bf16.msra.mxu0 %v5290_v12  ;;  %4729 = vmatpush3.bf16.msra.mxu1 %v5291_v13 }
 0x334   : > { %4710 = vmatprep.subr.bf16.mxu0 %v6092_v26  ;;  %4730 = vmatprep.subr.bf16.mxu1 %v6092_v26 }
 0x337   : > { %4711 = vmatpush3.bf16.msra.mxu0 %v5292_v14  ;;  %4731 = vmatpush3.bf16.msra.mxu1 %v5293_v15 }
 0x338   : > { %4712 = vmatprep.subr.bf16.mxu0 %v6092_v26  ;;  %4732 = vmatprep.subr.bf16.mxu1 %v6092_v26 }
 0x33b   : > { %4713 = vmatpush3.bf16.msra.mxu0 %v5294_v16  ;;  %4733 = vmatpush3.bf16.msra.mxu1 %v5295_v17 }
 0x33c   : > { %4714 = vmatprep.subr.bf16.mxu0 %v6092_v26  ;;  %4734 = vmatprep.subr.bf16.mxu1 %v6092_v26 }
 0x33f   : > { %4715 = vmatpush3.bf16.msra.mxu0 %v5296_v18  ;;  %4735 = vmatpush3.bf16.msra.mxu1 %v5297_v19 }
 0x340   : > { %4716 = vmatprep.subr.bf16.mxu0 %v6092_v26  ;;  %4736 = vmatprep.subr.bf16.mxu1 %v6092_v26 }
 0x343   : > { %4717 = vmatpush3.bf16.msra.mxu0 %v5298_v20  ;;  %4737 = vmatpush3.bf16.msra.mxu1 %v5299_v21 }
 0x344   : > { %4718 = vmatprep.subr.bf16.mxu0 %v6092_v26  ;;  %4738 = vmatprep.subr.bf16.mxu1 %v6092_v26 }
 0x347   : > { %4719 = vmatpush3.bf16.msra.mxu0 %v5300_v22  ;;  %4739 = vmatpush3.bf16.msra.mxu1 %v5301_v23 }
 0x348   : > { %4720 = vmatprep.subr.bf16.mxu0 %v6092_v26  ;;  %4740 = vmatprep.subr.bf16.mxu1 %v6092_v26 }
 0x34b   : > { %4721 = vmatpush3.bf16.msra.mxu0 %v5302_v24  ;;  %4741 = vmatpush3.bf16.msra.mxu1 %v5303_v25 }
 0x34c   : > { %4746 = vmatprep.subr.bf16.mxu0 %v6092_v26  ;;  %4766 = vmatprep.subr.bf16.mxu1 %v6092_v26 }
 0x34e   : > { %4723 = vmatmul.mubr.bf16.vlgmr.msra.gmra.mrb[8].mxu0 %v6965_v59  ;;  %4743 = vmatmul.mubr.bf16.vlgmr.msra.gmra.mrb[8].mxu1 %v6965_v59 }
 0x34f   : > { %4747 = vmatpush3.bf16.msra.mxu0 %v5304_v27  ;;  %4767 = vmatpush3.bf16.msra.mxu1 %v5305_v28 }
 0x350   : > { %4748 = vmatprep.subr.bf16.mxu0 %v6092_v26  ;;  %4768 = vmatprep.subr.bf16.mxu1 %v6092_v26 }
 0x351   : > { %4762 = vmatprep.mubr.msk.bf16.mxu0 %vm6093_vm7, %v6092_v26  ;;  %4782 = vmatprep.mubr.msk.bf16.mxu1 %vm6093_vm7, %v6092_v26 }
 0x353   : > { %4749 = vmatpush3.bf16.msra.mxu0 %v5306_v29  ;;  %4769 = vmatpush3.bf16.msra.mxu1 %v5307_v30 }
 0x354   : > { %4750 = vmatprep.subr.bf16.mxu0 %v6092_v26  ;;  %4770 = vmatprep.subr.bf16.mxu1 %v6092_v26 }
 0x357   : > { %4751 = vmatpush3.bf16.msra.mxu0 %v5308_v31  ;;  %4771 = vmatpush3.bf16.msra.mxu1 %v5309_v32 }
 0x358   : > { %4752 = vmatprep.subr.bf16.mxu0 %v6092_v26  ;;  %4772 = vmatprep.subr.bf16.mxu1 %v6092_v26 }
 0x35b   : > { %4753 = vmatpush3.bf16.msra.mxu0 %v5310_v33  ;;  %4773 = vmatpush3.bf16.msra.mxu1 %v5311_v34 }
 0x35c   : > { %4754 = vmatprep.subr.bf16.mxu0 %v6092_v26  ;;  %4774 = vmatprep.subr.bf16.mxu1 %v6092_v26 }
 0x35f   : > { %4755 = vmatpush3.bf16.msra.mxu0 %v5312_v35  ;;  %4775 = vmatpush3.bf16.msra.mxu1 %v5313_v36 }
 0x360   : > { %4756 = vmatprep.subr.bf16.mxu0 %v6092_v26  ;;  %4776 = vmatprep.subr.bf16.mxu1 %v6092_v26 }
 0x363   : > { %4757 = vmatpush3.bf16.msra.mxu0 %v5314_v37  ;;  %4777 = vmatpush3.bf16.msra.mxu1 %v5315_v38 }
 0x364   : > { %4758 = vmatprep.subr.bf16.mxu0 %v6092_v26  ;;  %4778 = vmatprep.subr.bf16.mxu1 %v6092_v26 }
 0x367   : > { %4759 = vmatpush3.bf16.msra.mxu0 %v5316_v39  ;;  %4779 = vmatpush3.bf16.msra.mxu1 %v5317_v40 }
 0x368   : > { %4760 = vmatprep.subr.bf16.mxu0 %v6092_v26  ;;  %4780 = vmatprep.subr.bf16.mxu1 %v6092_v26 }
 0x36b   : > { %4761 = vmatpush3.bf16.msra.mxu0 %v5318_v41  ;;  %4781 = vmatpush3.bf16.msra.mxu1 %v5319_v42 }
 0x36c   : > { %4786 = vmatprep.subr.bf16.mxu0 %v6092_v26  ;;  %4806 = vmatprep.subr.bf16.mxu1 %v6092_v26 }
 0x36e   : > { %4763 = vmatmul.mubr.bf16.vlgmr.msra.gmra.mrb[12].mxu0 %v6965_v59  ;;  %4783 = vmatmul.mubr.bf16.vlgmr.msra.gmra.mrb[12].mxu1 %v6965_v59 }
 0x36f   : > { %4787 = vmatpush3.bf16.msra.mxu0 %v5320_v43  ;;  %4807 = vmatpush3.bf16.msra.mxu1 %v5321_v44 }
 0x370   : > { %4788 = vmatprep.subr.bf16.mxu0 %v6092_v26  ;;  %4808 = vmatprep.subr.bf16.mxu1 %v6092_v26 }
 0x371   : > { %4802 = vmatprep.mubr.msk.bf16.mxu0 %vm6093_vm7, %v6092_v26  ;;  %4822 = vmatprep.mubr.msk.bf16.mxu1 %vm6093_vm7, %v6092_v26 }
 0x373   : > { %4789 = vmatpush3.bf16.msra.mxu0 %v5322_v45  ;;  %4809 = vmatpush3.bf16.msra.mxu1 %v5323_v46 }
 0x374   : > { %4790 = vmatprep.subr.bf16.mxu0 %v6092_v26  ;;  %4810 = vmatprep.subr.bf16.mxu1 %v6092_v26 }
 0x377   : > { %4791 = vmatpush3.bf16.msra.mxu0 %v5324_v47  ;;  %4811 = vmatpush3.bf16.msra.mxu1 %v5325_v48 }
 0x378   : > { %4792 = vmatprep.subr.bf16.mxu0 %v6092_v26  ;;  %4812 = vmatprep.subr.bf16.mxu1 %v6092_v26 }
 0x37b   : > { %4793 = vmatpush3.bf16.msra.mxu0 %v5326_v49  ;;  %4813 = vmatpush3.bf16.msra.mxu1 %v5327_v50 }
 0x37c   : > { %4794 = vmatprep.subr.bf16.mxu0 %v6092_v26  ;;  %4814 = vmatprep.subr.bf16.mxu1 %v6092_v26 }
 0x37f   : > { %4795 = vmatpush3.bf16.msra.mxu0 %v5328_v51  ;;  %4815 = vmatpush3.bf16.msra.mxu1 %v5329_v52 }
 0x380   : > { %4796 = vmatprep.subr.bf16.mxu0 %v6092_v26  ;;  %4816 = vmatprep.subr.bf16.mxu1 %v6092_v26 }
 0x383   : > { %4797 = vmatpush3.bf16.msra.mxu0 %v5330_v53  ;;  %4817 = vmatpush3.bf16.msra.mxu1 %v5331_v54 }
 0x384   : > { %4798 = vmatprep.subr.bf16.mxu0 %v6092_v26  ;;  %4818 = vmatprep.subr.bf16.mxu1 %v6092_v26 }
 0x387   : > { %4799 = vmatpush3.bf16.msra.mxu0 %v5332_v55  ;;  %4819 = vmatpush3.bf16.msra.mxu1 %v5333_v56 }
 0x388   : > { %4800 = vmatprep.subr.bf16.mxu0 %v6092_v26  ;;  %4820 = vmatprep.subr.bf16.mxu1 %v6092_v26 }
 0x38b   : > { %4801 = vmatpush3.bf16.msra.mxu0 %v5334_v57  ;;  %4821 = vmatpush3.bf16.msra.mxu1 %v5335_v58 }
 0x38c   : > { %4826 = vmatprep.subr.bf16.mxu0 %v6092_v26  ;;  %4846 = vmatprep.subr.bf16.mxu1 %v6092_v26 }
 0x38e   : > { %4803 = vmatmul.mubr.bf16.vlgmr.msra.gmra.mrb[16].mxu0 %v6965_v59  ;;  %4823 = vmatmul.mubr.bf16.vlgmr.msra.gmra.mrb[16].mxu1 %v6965_v59 }
 0x38f   : > { %4827 = vmatpush3.bf16.msra.mxu0 %v5336_v60  ;;  %4847 = vmatpush3.bf16.msra.mxu1 %v5337_v61 }
 0x390   : > { %4828 = vmatprep.subr.bf16.mxu0 %v6092_v26  ;;  %4848 = vmatprep.subr.bf16.mxu1 %v6092_v26 }
 0x391   : > { %4842 = vmatprep.mubr.msk.bf16.mxu0 %vm6093_vm7, %v6092_v26  ;;  %4862 = vmatprep.mubr.msk.bf16.mxu1 %vm6093_vm7, %v6092_v26 }
 0x393   : > { %4829 = vmatpush3.bf16.msra.mxu0 %v5338_v62  ;;  %4849 = vmatpush3.bf16.msra.mxu1 %v5339_v63 }
 0x394   : > { %4830 = vmatprep.subr.bf16.mxu0 %v6092_v26  ;;  %4850 = vmatprep.subr.bf16.mxu1 %v6092_v26 }
 0x397   : > { %4831 = vmatpush3.bf16.msra.mxu0 %v5340_v0  ;;  %4851 = vmatpush3.bf16.msra.mxu1 %v5341_v1 }
 0x398   : > { %4832 = vmatprep.subr.bf16.mxu0 %v6092_v26  ;;  %4852 = vmatprep.subr.bf16.mxu1 %v6092_v26 }
 0x39b   : > { %4833 = vmatpush3.bf16.msra.mxu0 %v5342_v2  ;;  %4853 = vmatpush3.bf16.msra.mxu1 %v5343_v3 }
 0x39c   : > { %4834 = vmatprep.subr.bf16.mxu0 %v6092_v26  ;;  %4854 = vmatprep.subr.bf16.mxu1 %v6092_v26 }
 0x39f   : > { %4835 = vmatpush3.bf16.msra.mxu0 %v5344_v4  ;;  %4855 = vmatpush3.bf16.msra.mxu1 %v5345_v5 }
 0x3a0   : > { %4836 = vmatprep.subr.bf16.mxu0 %v6092_v26  ;;  %4856 = vmatprep.subr.bf16.mxu1 %v6092_v26 }
 0x3a3   : > { %4837 = vmatpush3.bf16.msra.mxu0 %v5346_v6  ;;  %4857 = vmatpush3.bf16.msra.mxu1 %v5347_v7 }
 0x3a4   : > { %4838 = vmatprep.subr.bf16.mxu0 %v6092_v26  ;;  %4858 = vmatprep.subr.bf16.mxu1 %v6092_v26 }
 0x3a7   : > { %4839 = vmatpush3.bf16.msra.mxu0 %v5348_v8  ;;  %4859 = vmatpush3.bf16.msra.mxu1 %v5349_v9  ;;  %v7186_v8 = vld [vmem:[#allocation10] sm:$0xff] }
 0x3a8   : > { %4840 = vmatprep.subr.bf16.mxu0 %v6092_v26  ;;  %4860 = vmatprep.subr.bf16.mxu1 %v6092_v26 }
 0x3ab   : > { %4841 = vmatpush3.bf16.msra.mxu0 %v5350_v10  ;;  %4861 = vmatpush3.bf16.msra.mxu1 %v5351_v11 }
 0x3ac   : > { %4866 = vmatprep.subr.bf16.mxu0 %v6092_v26  ;;  %4884 = vmatprep.subr.bf16.mxu1 %v6092_v26 }
 0x3ae   : > { %4843 = vmatmul.mubr.bf16.vlgmr.msra.gmra.mrb[20].mxu0 %v6965_v59  ;;  %4863 = vmatmul.mubr.bf16.vlgmr.msra.gmra.mrb[20].mxu1 %v6965_v59 }
 0x3af   : > { %4868 = vmatprep.mubr.msk.bf16.mxu0 %vm6093_vm7, %v6092_v26  ;;  %4886 = vmatprep.mubr.msk.bf16.mxu1 %vm6093_vm7, %v6092_v26 }
 0x3e1   : > { %v1276_v12 = vpop.f32.mrb[0].mxu0  ;;  %v7161_v13 = vpop.f32.mrb[0].mxu1 }
 0x3e2   : > { %v4644_v14 = vpop.f32.mrb[1].mxu0  ;;  %v4664_v15 = vpop.f32.mrb[1].mxu1  ;;  %v2435_v37 = vpack.c.bf16 %v1276_v12, %v1276_v12 }
 0x3e3   : > { %v1279_v16 = vpop.f32.mrb[2].mxu0  ;;  %v1384_v17 = vpop.f32.mrb[2].mxu1 }
 0x3e4   : > { %v4645_v18 = vpop.f32.mrb[3].mxu0  ;;  %v4665_v19 = vpop.f32.mrb[3].mxu1 }
 0x401   : > { %v7163_v20 = vpop.f32.mrb[4].mxu0  ;;  %v7165_v21 = vpop.f32.mrb[4].mxu1 }
 0x402   : > { %v4684_v59 = vpop.f32.mrb[5].mxu0  ;;  %v4704_v22 = vpop.f32.mrb[5].mxu1 }
 0x403   : > { %v1489_v23 = vpop.f32.mrb[6].mxu0  ;;  %v1594_v24 = vpop.f32.mrb[6].mxu1 }
 0x404   : > { %v4685_v25 = vpop.f32.mrb[7].mxu0  ;;  %v4705_v27 = vpop.f32.mrb[7].mxu1 }
 0x421   : > { %v1695_v28 = vpop.f32.mrb[8].mxu0  ;;  %v7167_v29 = vpop.f32.mrb[8].mxu1 }
 0x422   : > { %v2436_v30 = vpack.c.bf16 %v1695_v28, %v1695_v28  ;;  %v4724_v31 = vpop.f32.mrb[9].mxu0  ;;  %v4744_v32 = vpop.f32.mrb[9].mxu1  ;;  %v2558_v27 = vpack.c.bf16 %v7167_v29, %v7167_v29  ;;  %v2557_v28 = vpack.c.bf16 %v7161_v13, %v7161_v13 }
 0x423   : > { %v1698_v33 = vpop.f32.mrb[10].mxu0  ;;  %v1803_v34 = vpop.f32.mrb[10].mxu1 }
 0x424   : > { %v4725_v35 = vpop.f32.mrb[11].mxu0  ;;  %v4745_v36 = vpop.f32.mrb[11].mxu1  ;;  %4867 = vmatpush3.bf16.xpose.msra.mxu0 %v2436_v30 }
 0x425   : > { %4872 = vmatprep.subr.bf16.mxu0 %v6092_v26 }
 0x42b   : > { %4869 = vmatmul.mubr.bf16.vlgmr.msra.gmra.mrb[24].mxu0 %v2435_v37 }
 0x42c   : > { %4874 = vmatprep.mubr.msk.bf16.mxu0 %vm6093_vm7, %v6092_v26 }
 0x441   : > { %v7172_v38 = vpop.f32.mrb[12].mxu0  ;;  %v7174_v39 = vpop.f32.mrb[12].mxu1 }
 0x442   : > { %v4764_v40 = vpop.f32.mrb[13].mxu0  ;;  %v4784_v41 = vpop.f32.mrb[13].mxu1 }
 0x443   : > { %v1908_v42 = vpop.f32.mrb[14].mxu0  ;;  %v2013_v43 = vpop.f32.mrb[14].mxu1 }
 0x444   : > { %v4765_v44 = vpop.f32.mrb[15].mxu0  ;;  %v4785_v45 = vpop.f32.mrb[15].mxu1 }
 0x461   : > { %v2114_v46 = vpop.f32.mrb[16].mxu0  ;;  %v2219_v47 = vpop.f32.mrb[16].mxu1 }
 0x462   : > { %v2492_v48 = vpack.c.bf16 %v2114_v46, %v2114_v46  ;;  %v2613_v49 = vpack.c.bf16 %v2219_v47, %v2219_v47  ;;  %v4804_v50 = vpop.f32.mrb[17].mxu0  ;;  %v4824_v51 = vpop.f32.mrb[17].mxu1  ;;  %v5360_v46 = vld [vmem:[%s6874_s21 + $0x40] sm:$0xff]   ;;  %v5361_v47 = vld [vmem:[%s6874_s21 + $0x48] sm:$0xff]  }
 0x463   : > { %v2117_v52 = vpop.f32.mrb[18].mxu0  ;;  %v2222_v53 = vpop.f32.mrb[18].mxu1  ;;  %v5364_v50 = vld [vmem:[%s6874_s21 + $0x60] sm:$0xff]   ;;  %v5365_v51 = vld [vmem:[%s6874_s21 + $0x68] sm:$0xff]  }
 0x464   : > { %v2498_v54 = vsel %vm2496_vm8, %v2492_v48, 0  ;;  %v2618_v55 = vsel %vm2496_vm8, %v2613_v49, 0  ;;  %v4805_v56 = vpop.f32.mrb[19].mxu0  ;;  %v4825_v57 = vpop.f32.mrb[19].mxu1  ;;  %v5362_v48 = vld [vmem:[%s6874_s21 + $0x50] sm:$0xff]   ;;  %v5363_v49 = vld [vmem:[%s6874_s21 + $0x58] sm:$0xff]  }
 0x465   : > { %4873 = vmatpush3.bf16.msra.mxu0 %v2498_v54  ;;  %4885 = vmatpush3.bf16.msra.mxu1 %v2618_v55  ;;  %v5366_v52 = vld [vmem:[%s6874_s21 + $0x70] sm:$0xff]   ;;  %v5367_v53 = vld [vmem:[%s6874_s21 + $0x78] sm:$0xff]   ;;  %v5352_v57 = vld [vmem:[%s6874_s21] sm:$0xff]  }
 0x466   : > { %4878 = vmatprep.subr.bf16.mxu0 %v6092_v26  ;;  %4910 = vmatprep.subr.bf16.mxu1 %v6092_v26 }
 0x481   : > { %v2324_v58 = vpop.f32.mrb[20].mxu0  ;;  %v2429_v60 = vpop.f32.mrb[20].mxu1 }
 0x482   : > { %v2910_v61 = vpack.c.bf16 %v2324_v58, %v2324_v58  ;;  %v3120_v62 = vpack.c.bf16 %v2429_v60, %v2429_v60  ;;  %v4844_v63 = vpop.f32.mrb[21].mxu0  ;;  %v4864_v0 = vpop.f32.mrb[21].mxu1  ;;  %v5353_v60 = vld [vmem:[%s6874_s21 + $0x8] sm:$0xff]  }
 0x483   : > { %v2327_v1 = vpop.f32.mrb[22].mxu0  ;;  %v2432_v2 = vpop.f32.mrb[22].mxu1  ;;  %v5356_v63 = vld [vmem:[%s6874_s21 + $0x20] sm:$0xff]   ;;  %v5357_v0 = vld [vmem:[%s6874_s21 + $0x28] sm:$0xff]  }
 0x484   : > { %v7181_v3 = vsel %vm2496_vm8, %v2910_v61, 0  ;;  %v7184_v4 = vsel %vm2496_vm8, %v3120_v62, 0  ;;  %v4845_v5 = vpop.f32.mrb[23].mxu0  ;;  %v4865_v6 = vpop.f32.mrb[23].mxu1  ;;  %v5354_v61 = vld [vmem:[%s6874_s21 + $0x10] sm:$0xff]   ;;  %v5355_v62 = vld [vmem:[%s6874_s21 + $0x18] sm:$0xff]  }
 0x485   : > { %v5358_v1 = vld [vmem:[%s6874_s21 + $0x30] sm:$0xff]   ;;  %v5359_v2 = vld [vmem:[%s6874_s21 + $0x38] sm:$0xff]  }
 0x4fe   : > { %v2471_v7 = vpop.f32.mrb[24].mxu0 }
 0x4ff   : > { %v2477_v9 = vmul.f32 0.35355338, %v2471_v7  ;;  %v4870_v10 = vpop.f32.mrb[25].mxu0 }
 0x500   : > { %v2474_v11 = vpop.f32.mrb[26].mxu0  ;;  %v2855_v10 = vpack.c.bf16 %v7172_v38, %v7172_v38 }
 0x501   : > { %v4871_v12 = vpop.f32.mrb[27].mxu0  ;;  %v2478_v14 = vadd.f32 %v2477_v9, %v7186_v8 }
 0x503   : > { %v2480_v15 = vsel %vm2479_vm9, %v2478_v14, -inf }
 0x504   : > { %2481 = vmax.xlane.f32.xlu1 %v2480_v15 }
 0x591   : > { %v2482_v16 = vpop.xlane.xlu1 %2481 }
 0x592   : > { %v2483_v17 = vsub.f32 %v2478_v14, %v2482_v16 }
 0x594   : > { %v2484_v18 = vmul.f32 1.442695, %v2483_v17 }
 0x596   : > { %5402 = vpow2.f32 %v2484_v18 }
 0x5a0   : > { %v5403_v19 = vpop.eup %5402 }
 0x5a1   : > { %v2486_v59 = vsel %vm2479_vm9, %v5403_v19, 0.0 }
 0x5a2   : > { %2487 = vadd.xlane.f32.xlu1 %v2486_v59 }
 0x62f   : > { %v2488_v22 = vpop.xlane.xlu1 %2487 }
 0x630   : > { %5404 = vrcp.f32 %v2488_v22 }
 0x63a   : > { %v5405_v23 = vpop.eup %5404 }
 0x63b   : > { %v2490_v24 = vmul.f32 %v5405_v23, %v5403_v19 }
 0x63d   : > { %v2491_v25 = vpack.c.bf16 %v2490_v24, %v2490_v24 }
 0x63f   : > { %4875 = vmatmul.mubr.msk.bf16.vlgmr.msra.gmra.mrb[28].mxu0 %vm2479_vm9, %v2491_v25 }
 0x640   : > { %4879 = vmatpush3.bf16.xpose.msra.mxu0 %v2558_v27  ;;  %4880 = vmatprep.mubr.msk.bf16.mxu0 %vm6093_vm7, %v6092_v26 }
 0x641   : > { %4890 = vmatprep.subr.bf16.mxu0 %v6092_v26 }
 0x647   : > { %4881 = vmatmul.mubr.bf16.vlgmr.msra.gmra.mrb[32].mxu0 %v2557_v28 }
 0x648   : > { %4906 = vmatprep.mubr.msk.bf16.mxu0 %vm6093_vm7, %v6092_v26  ;;  %4891 = vmatpush3.bf16.msra.mxu0 %v5360_v46 }
 0x649   : > { %4892 = vmatprep.subr.bf16.mxu0 %v6092_v26 }
 0x64c   : > { %4893 = vmatpush3.bf16.msra.mxu0 %v5361_v47  ;;  %v3065_v47 = vpack.c.bf16 %v7174_v39, %v7174_v39  ;;  %v5375_v39 = vld [vmem:[%s6874_s21 + $0xb8] sm:$0xff]  }
 0x64d   : > { %4894 = vmatprep.subr.bf16.mxu0 %v6092_v26 }
 0x650   : > { %4895 = vmatpush3.bf16.msra.mxu0 %v5362_v48  ;;  %v3064_v48 = vpack.c.bf16 %v7165_v21, %v7165_v21 }
 0x651   : > { %4896 = vmatprep.subr.bf16.mxu0 %v6092_v26 }
 0x654   : > { %4897 = vmatpush3.bf16.msra.mxu0 %v5363_v49 }
 0x655   : > { %4898 = vmatprep.subr.bf16.mxu0 %v6092_v26 }
 0x658   : > { %4899 = vmatpush3.bf16.msra.mxu0 %v5364_v50 }
 0x659   : > { %4900 = vmatprep.subr.bf16.mxu0 %v6092_v26 }
 0x65c   : > { %4901 = vmatpush3.bf16.msra.mxu0 %v5365_v51 }
 0x65d   : > { %4902 = vmatprep.subr.bf16.mxu0 %v6092_v26 }
 0x660   : > { %4903 = vmatpush3.bf16.msra.mxu0 %v5366_v52 }
 0x661   : > { %4904 = vmatprep.subr.bf16.mxu0 %v6092_v26 }
 0x664   : > { %4905 = vmatpush3.bf16.msra.mxu0 %v5367_v53 }
 0x665   : > { %4930 = vmatprep.subr.bf16.mxu0 %v6092_v26 }
 0x712   : > { %v7201_v30 = vpop.f32.mrb[28].mxu0 }
 0x713   : > { %v4876_v31 = vpop.f32.mrb[29].mxu0  ;;  %v2540_v5 = vpack.c.bf16 %v7201_v30, %v7201_v30 }
 0x714   : > { %v2537_v32 = vpop.f32.mrb[30].mxu0 }
 0x715   : > { %v4877_v29 = vpop.f32.mrb[31].mxu0 }
 0x71a   : > { %v2593_v33 = vpop.f32.mrb[32].mxu0 }
 0x71b   : > { %v2599_v34 = vmul.f32 0.35355338, %v2593_v33  ;;  %v4882_v35 = vpop.f32.mrb[33].mxu0 }
 0x71c   : > { %v2596_v36 = vpop.f32.mrb[34].mxu0  ;;  %v5368_v35 = vld [vmem:[%s6874_s21 + $0x80] sm:$0xff]  }
 0x71d   : > { %v4883_v37 = vpop.f32.mrb[35].mxu0  ;;  %v2600_v40 = vadd.f32 %v2599_v34, %v7186_v8  ;;  %v5369_v36 = vld [vmem:[%s6874_s21 + $0x88] sm:$0xff]  }
 0x71e   : > { %v5370_v37 = vld [vmem:[%s6874_s21 + $0x90] sm:$0xff]  }
 0x71f   : > { %v2601_v13 = vsel %vm2479_vm9, %v2600_v40, -inf }
 0x720   : > { %2602 = vmax.xlane.f32.xlu0 %v2601_v13  ;;  %v5372_v13 = vld [vmem:[%s6874_s21 + $0xa0] sm:$0xff]  }
 0x7ad   : > { %v2603_v41 = vpop.xlane.xlu0 %2602 }
 0x7ae   : > { %v2604_v42 = vsub.f32 %v2600_v40, %v2603_v41  ;;  %v5371_v40 = vld [vmem:[%s6874_s21 + $0x98] sm:$0xff]   ;;  %v5373_v41 = vld [vmem:[%s6874_s21 + $0xa8] sm:$0xff]  }
 0x7b0   : > { %v2605_v43 = vmul.f32 1.442695, %v2604_v42  ;;  %v5374_v42 = vld [vmem:[%s6874_s21 + $0xb0] sm:$0xff]  }
 0x7b2   : > { %5406 = vpow2.f32 %v2605_v43 }
 0x7bc   : > { %v5407_v44 = vpop.eup %5406 }
 0x7bd   : > { %v2607_v45 = vsel %vm2479_vm9, %v5407_v44, 0.0 }
 0x7be   : > { %2608 = vadd.xlane.f32.xlu1 %v2607_v45 }
 0x84b   : > { %v2609_v54 = vpop.xlane.xlu1 %2608 }
 0x84c   : > { %5408 = vrcp.f32 %v2609_v54 }
 0x856   : > { %v5409_v55 = vpop.eup %5408 }
 0x857   : > { %v2611_v56 = vmul.f32 %v5409_v55, %v5407_v44 }
 0x859   : > { %v2612_v58 = vpack.c.bf16 %v2611_v56, %v2611_v56 }
 0x85b   : > { %4887 = vmatmul.mubr.msk.bf16.vlgmr.msra.gmra.mrb[24].mxu1 %vm2479_vm9, %v2612_v58 }
 0x85c   : > { %4911 = vmatpush3.bf16.msra.mxu1 %v5352_v57  ;;  %4926 = vmatprep.mubr.msk.bf16.mxu1 %vm6093_vm7, %v6092_v26 }
 0x85d   : > { %4912 = vmatprep.subr.bf16.mxu1 %v6092_v26 }
 0x860   : > { %4913 = vmatpush3.bf16.msra.mxu1 %v5353_v60 }
 0x861   : > { %4914 = vmatprep.subr.bf16.mxu1 %v6092_v26 }
 0x864   : > { %4915 = vmatpush3.bf16.msra.mxu1 %v5354_v61 }
 0x865   : > { %4916 = vmatprep.subr.bf16.mxu1 %v6092_v26 }
 0x868   : > { %4917 = vmatpush3.bf16.msra.mxu1 %v5355_v62 }
 0x869   : > { %4918 = vmatprep.subr.bf16.mxu1 %v6092_v26 }
 0x86c   : > { %4919 = vmatpush3.bf16.msra.mxu1 %v5356_v63 }
 0x86d   : > { %4920 = vmatprep.subr.bf16.mxu1 %v6092_v26 }
 0x870   : > { %4921 = vmatpush3.bf16.msra.mxu1 %v5357_v0 }
 0x871   : > { %4922 = vmatprep.subr.bf16.mxu1 %v6092_v26 }
 0x874   : > { %4923 = vmatpush3.bf16.msra.mxu1 %v5358_v1 }
 0x875   : > { %4924 = vmatprep.subr.bf16.mxu1 %v6092_v26 }
 0x878   : > { %4925 = vmatpush3.bf16.msra.mxu1 %v5359_v2 }
 0x879   : > { %4936 = vmatprep.subr.bf16.mxu1 %v6092_v26 }
 0x87b   : > { %4927 = vmatmul.mubr.bf16.vlgmr.msra.gmra.mrb[28].mxu1 %v2540_v5 }
 0x87c   : > { %4937 = vmatpush3.bf16.msra.mxu1 %v7181_v3  ;;  %4938 = vmatprep.mubr.msk.bf16.mxu1 %vm6093_vm7, %v6092_v26  ;;  %v2854_v3 = vpack.c.bf16 %v7163_v20, %v7163_v20 }
 0x87d   : > { %4962 = vmatprep.subr.bf16.mxu1 %v6092_v26 }
 0x92e   : > { %v2654_v6 = vpop.f32.mrb[24].mxu1 }
 0x92f   : > { %v2660_v7 = vpack.c.bf16 %v2654_v6, %v2654_v6  ;;  %v4888_v9 = vpop.f32.mrb[25].mxu1 }
 0x930   : > { %v2657_v11 = vpop.f32.mrb[26].mxu1 }
 0x931   : > { %v4889_v12 = vpop.f32.mrb[27].mxu1  ;;  %4907 = vmatmul.mubr.bf16.vlgmr.msra.gmra.mrb[36].mxu0 %v2660_v7  ;;  %v5376_v11 = vld [vmem:[%s6874_s21 + $0xc0] sm:$0xff]  }
 0x932   : > { %4931 = vmatpush3.bf16.xpose.msra.mxu0 %v2855_v10  ;;  %4932 = vmatprep.mubr.msk.bf16.mxu0 %vm6093_vm7, %v6092_v26 }
 0x933   : > { %4942 = vmatprep.subr.bf16.mxu0 %v6092_v26 }
 0x939   : > { %4933 = vmatmul.mubr.bf16.vlgmr.msra.gmra.mrb[40].mxu0 %v2854_v3  ;;  %v5377_v3 = vld [vmem:[%s6874_s21 + $0xc8] sm:$0xff]  }
 0x93a   : > { %4958 = vmatprep.mubr.msk.bf16.mxu0 %vm6093_vm7, %v6092_v26  ;;  %4943 = vmatpush3.bf16.msra.mxu0 %v5368_v35 }
 0x93b   : > { %4944 = vmatprep.subr.bf16.mxu0 %v6092_v26 }
 0x93e   : > { %4945 = vmatpush3.bf16.msra.mxu0 %v5369_v36  ;;  %v5385_v36 = vld [vmem:[%s6890_s3 + $0x8] sm:$0xff]  }
 0x93f   : > { %4946 = vmatprep.subr.bf16.mxu0 %v6092_v26 }
 0x942   : > { %4947 = vmatpush3.bf16.msra.mxu0 %v5370_v37  ;;  %v5386_v37 = vld [vmem:[%s6890_s3 + $0x10] sm:$0xff]  }
 0x943   : > { %4948 = vmatprep.subr.bf16.mxu0 %v6092_v26 }
 0x946   : > { %4949 = vmatpush3.bf16.msra.mxu0 %v5371_v40  ;;  %v5387_v40 = vld [vmem:[%s6890_s3 + $0x18] sm:$0xff]  }
 0x947   : > { %4950 = vmatprep.subr.bf16.mxu0 %v6092_v26 }
 0x94a   : > { %4951 = vmatpush3.bf16.msra.mxu0 %v5372_v13  ;;  %v5388_v13 = vld [vmem:[%s6890_s3 + $0x20] sm:$0xff]  }
 0x94b   : > { %4952 = vmatprep.subr.bf16.mxu0 %v6092_v26 }
 0x94e   : > { %v2848_v14 = vpop.f32.mrb[28].mxu1  ;;  %4953 = vmatpush3.bf16.msra.mxu0 %v5373_v41  ;;  %v5389_v41 = vld [vmem:[%s6890_s3 + $0x28] sm:$0xff]  }
 0x94f   : > { %v4928_v15 = vpop.f32.mrb[29].mxu1  ;;  %4954 = vmatprep.subr.bf16.mxu0 %v6092_v26 }
 0x950   : > { %v2851_v16 = vpop.f32.mrb[30].mxu1  ;;  %v5379_v15 = vld [vmem:[%s6874_s21 + $0xd8] sm:$0xff]  }
 0x951   : > { %v4929_v38 = vpop.f32.mrb[31].mxu1  ;;  %v5380_v16 = vld [vmem:[%s6874_s21 + $0xe0] sm:$0xff]  }
 0x952   : > { %4955 = vmatpush3.bf16.msra.mxu0 %v5374_v42  ;;  %v5381_v38 = vld [vmem:[%s6874_s21 + $0xe8] sm:$0xff]   ;;  %v5390_v42 = vld [vmem:[%s6890_s3 + $0x30] sm:$0xff]  }
 0x953   : > { %4956 = vmatprep.subr.bf16.mxu0 %v6092_v26 }
 0x956   : > { %4957 = vmatpush3.bf16.msra.mxu0 %v5375_v39  ;;  %v5397_v39 = vld [vmem:[%s6898_s0 + $0x28] sm:$0xff]  }
 0x957   : > { %4994 = vmatprep.subr.bf16.mxu0 %v6092_v26 }
 0xa04   : > { %v2760_v17 = vpop.f32.mrb[36].mxu0 }
 0xa05   : > { %v7256_v18 = vadd.f32 %v2848_v14, %v2760_v17  ;;  %v4908_v19 = vpop.f32.mrb[37].mxu0  ;;  %v5378_v14 = vld [vmem:[%s6874_s21 + $0xd0] sm:$0xff]  }
 0xa06   : > { %v2763_v59 = vpop.f32.mrb[38].mxu0  ;;  %v5382_v17 = vld [vmem:[%s6874_s21 + $0xf0] sm:$0xff]  }
 0xa07   : > { %v4909_v22 = vpop.f32.mrb[39].mxu0 }
 0xa0c   : > { %v2890_v23 = vpop.f32.mrb[40].mxu0 }
 0xa0d   : > { %v2896_v24 = vmul.f32 0.35355338, %v2890_v23  ;;  %v4934_v25 = vpop.f32.mrb[41].mxu0 }
 0xa0e   : > { %v2893_v20 = vpop.f32.mrb[42].mxu0  ;;  %v5384_v25 = vld [vmem:[%s6890_s3] sm:$0xff]  }
 0xa0f   : > { %v4935_v27 = vpop.f32.mrb[43].mxu0  ;;  %v2897_v28 = vadd.f32 %v2896_v24, %v7186_v8 }
 0xa11   : > { %v2898_v30 = vsel %vm2479_vm9, %v2897_v28, -inf }
 0xa12   : > { %2899 = vmax.xlane.f32.xlu0 %v2898_v30  ;;  %v4398_v30 = vld [vmem:[%s7643_s11] ss:$0 sm:$0xff]  ;;  %s7651_s11 = scalar_lea.vmem (!%p4419_p10), [#allocation31], %s6909_s26 }
 0xa9f   : > { %v2900_v31 = vpop.xlane.xlu0 %2899 }
 0xaa0   : > { %v2901_v32 = vsub.f32 %v2897_v28, %v2900_v31 }
 0xaa2   : > { %v2902_v29 = vmul.f32 1.442695, %v2901_v32  ;;  %v5420_v32 = vld [vmem:[#allocation2] sm:$0xff] }
 0xaa4   : > { %5410 = vpow2.f32 %v2902_v29 }
 0xaae   : > { %v5411_v33 = vpop.eup %5410 }
 0xaaf   : > { %v2904_v34 = vsel %vm2479_vm9, %v5411_v33, 0.0 }
 0xab0   : > { %2905 = vadd.xlane.f32.xlu1 %v2904_v34 }
 0xb3d   : > { %v2906_v43 = vpop.xlane.xlu1 %2905 }
 0xb3e   : > { %5412 = vrcp.f32 %v2906_v43  ;;  %v5391_v43 = vld [vmem:[%s6890_s3 + $0x38] sm:$0xff]  }
 0xb48   : > { %v5413_v44 = vpop.eup %5412 }
 0xb49   : > { %v2908_v45 = vmul.f32 %v5413_v44, %v5411_v33  ;;  %v5392_v44 = vld [vmem:[%s6898_s0] sm:$0xff]  }
 0xb4b   : > { %v2909_v46 = vpack.c.bf16 %v2908_v45, %v2908_v45  ;;  %v5393_v45 = vld [vmem:[%s6898_s0 + $0x8] sm:$0xff]  }
 0xb4d   : > { %4939 = vmatmul.mubr.msk.bf16.vlgmr.msra.gmra.mrb[32].mxu1 %vm2479_vm9, %v2909_v46  ;;  %v5394_v46 = vld [vmem:[%s6898_s0 + $0x10] sm:$0xff]  }
 0xb4e   : > { %4963 = vmatpush3.bf16.xpose.msra.mxu1 %v3065_v47  ;;  %4964 = vmatprep.mubr.msk.bf16.mxu1 %vm6093_vm7, %v6092_v26  ;;  %v5395_v47 = vld [vmem:[%s6898_s0 + $0x18] sm:$0xff]  }
 0xb4f   : > { %4968 = vmatprep.subr.bf16.mxu1 %v6092_v26 }
 0xb55   : > { %4965 = vmatmul.mubr.bf16.vlgmr.msra.gmra.mrb[36].mxu1 %v3064_v48  ;;  %v5396_v48 = vld [vmem:[%s6898_s0 + $0x20] sm:$0xff]  }
 0xb56   : > { %4969 = vmatpush3.bf16.msra.mxu1 %v7184_v4  ;;  %4970 = vmatprep.mubr.msk.bf16.mxu1 %vm6093_vm7, %v6092_v26 }
 0xb57   : > { %4974 = vmatprep.subr.bf16.mxu1 %v6092_v26 }
 0xc20   : > { %v2951_v49 = vpop.f32.mrb[32].mxu1 }
 0xc21   : > { %v2957_v50 = vpack.c.bf16 %v2951_v49, %v2951_v49  ;;  %v4940_v51 = vpop.f32.mrb[33].mxu1 }
 0xc22   : > { %v2954_v52 = vpop.f32.mrb[34].mxu1 }
 0xc23   : > { %v4941_v53 = vpop.f32.mrb[35].mxu1  ;;  %4959 = vmatmul.mubr.bf16.vlgmr.msra.gmra.mrb[44].mxu0 %v2957_v50 }
 0xc24   : > { %5010 = vmatprep.mubr.msk.bf16.mxu0 %vm6093_vm7, %v6092_v26  ;;  %4995 = vmatpush3.bf16.msra.mxu0 %v5384_v25  ;;  %v5428_v25 = vld [vmem:[%s7649_s17 + $0x38] sm:$0xff] (!%p4419_p10)  }
 0xc25   : > { %4996 = vmatprep.subr.bf16.mxu0 %v6092_v26 }
 0xc28   : > { %v3100_v21 = vpop.f32.mrb[36].mxu1  ;;  %4997 = vmatpush3.bf16.msra.mxu0 %v5385_v36 }
 0xc29   : > { %v3106_v4 = vmul.f32 0.35355338, %v3100_v21  ;;  %v4966_v54 = vpop.f32.mrb[37].mxu1  ;;  %4998 = vmatprep.subr.bf16.mxu0 %v6092_v26 }
 0xc2a   : > { %v3103_v55 = vpop.f32.mrb[38].mxu1 }
 0xc2b   : > { %v4967_v56 = vpop.f32.mrb[39].mxu1  ;;  %v3107_v57 = vadd.f32 %v3106_v4, %v7186_v8 }
 0xc2c   : > { %4999 = vmatpush3.bf16.msra.mxu0 %v5386_v37  ;;  %v4399_v56 = vld [vmem:[%s7644_s27] ss:$0 sm:$0xff] }
 0xc2d   : > { %v3108_v58 = vsel %vm2479_vm9, %v3107_v57, -inf  ;;  %5000 = vmatprep.subr.bf16.mxu0 %v6092_v26 }
 0xc2e   : > { %3109 = vmax.xlane.f32.xlu0 %v3108_v58  ;;  %v4400_v58 = vld [vmem:[%s7645_s29] ss:$0 sm:$0xff] }
 0xc30   : > { %5001 = vmatpush3.bf16.msra.mxu0 %v5387_v40 }
 0xc31   : > { %5002 = vmatprep.subr.bf16.mxu0 %v6092_v26 }
 0xc34   : > { %5003 = vmatpush3.bf16.msra.mxu0 %v5388_v13 }
 0xc35   : > { %5004 = vmatprep.subr.bf16.mxu0 %v6092_v26 }
 0xc38   : > { %5005 = vmatpush3.bf16.msra.mxu0 %v5389_v41 }
 0xc39   : > { %5006 = vmatprep.subr.bf16.mxu0 %v6092_v26 }
 0xc3c   : > { %5007 = vmatpush3.bf16.msra.mxu0 %v5390_v42 }
 0xc3d   : > { %5008 = vmatprep.subr.bf16.mxu0 %v6092_v26 }
 0xc40   : > { %5009 = vmatpush3.bf16.msra.mxu0 %v5391_v43 }
 0xcbb   : > { %v3110_v60 = vpop.xlane.xlu0 %3109 }
 0xcbc   : > { %v3111_v61 = vsub.f32 %v3107_v57, %v3110_v60 }
 0xcbe   : > { %v3112_v62 = vmul.f32 1.442695, %v3111_v61 }
 0xcc0   : > { %5414 = vpow2.f32 %v3112_v62 }
 0xcca   : > { %v5415_v63 = vpop.eup %5414 }
 0xccb   : > { %v3114_v0 = vsel %vm2479_vm9, %v5415_v63, 0.0 }
 0xccc   : > { %3115 = vadd.xlane.f32.xlu1 %v3114_v0  ;;  %v5399_v0 = vld [vmem:[%s6898_s0 + $0x38] sm:$0xff]  }
 0xcf6   : > { %v3057_v1 = vpop.f32.mrb[44].mxu0 }
 0xcf7   : > { %v3063_v2 = vadd.f32 %v3057_v1, %v7256_v18  ;;  %v4960_v5 = vpop.f32.mrb[45].mxu0  ;;  %v5383_v18 = vld [vmem:[%s6874_s21 + $0xf8] sm:$0xff]   ;;  %v4401_v1 = vld [vmem:[%s7646_s22] ss:$0 sm:$0xff]  ;;  %s7647_s21 = scalar_lea.vmem [#allocation29], %s6848_s4 }
 0xcf8   : > { %v3060_v6 = vpop.f32.mrb[46].mxu0 }
 0xcf9   : > { %v4961_v8 = vpop.f32.mrb[47].mxu0 }
 0xd59   : > { %v3116_v7 = vpop.xlane.xlu1 %3115 }
 0xd5a   : > { %5416 = vrcp.f32 %v3116_v7 }
 0xd64   : > { %v5417_v9 = vpop.eup %5416 }
 0xd65   : > { %v3118_v10 = vmul.f32 %v5417_v9, %v5415_v63  ;;  %v5398_v63 = vld [vmem:[%s6898_s0 + $0x30] sm:$0xff]  }
 0xd67   : > { %v3119_v12 = vpack.c.bf16 %v3118_v10, %v3118_v10 }
 0xd69   : > { %4971 = vmatmul.mubr.msk.bf16.vlgmr.msra.gmra.mrb[40].mxu1 %vm2479_vm9, %v3119_v12 }
 0xd6a   : > { %4975 = vmatpush3.bf16.msra.mxu1 %v5376_v11  ;;  %4990 = vmatprep.mubr.msk.bf16.mxu1 %vm6093_vm7, %v6092_v26  ;;  %v4410_v11 = vld [vmem:[%s7647_s21] ss:$0 sm:$0xff] }
 0xd6b   : > { %4976 = vmatprep.subr.bf16.mxu1 %v6092_v26 }
 0xd6e   : > { %4977 = vmatpush3.bf16.msra.mxu1 %v5377_v3 }
 0xd6f   : > { %4978 = vmatprep.subr.bf16.mxu1 %v6092_v26 }
 0xd72   : > { %4979 = vmatpush3.bf16.msra.mxu1 %v5378_v14 }
 0xd73   : > { %4980 = vmatprep.subr.bf16.mxu1 %v6092_v26 }
 0xd76   : > { %4981 = vmatpush3.bf16.msra.mxu1 %v5379_v15 }
 0xd77   : > { %4982 = vmatprep.subr.bf16.mxu1 %v6092_v26 }
 0xd7a   : > { %4983 = vmatpush3.bf16.msra.mxu1 %v5380_v16 }
 0xd7b   : > { %4984 = vmatprep.subr.bf16.mxu1 %v6092_v26 }
 0xd7e   : > { %4985 = vmatpush3.bf16.msra.mxu1 %v5381_v38  ;;  %v5421_v38 = vld [vmem:[%s7649_s17] sm:$0xff] (!%p4419_p10)  }
 0xd7f   : > { %4986 = vmatprep.subr.bf16.mxu1 %v6092_v26 }
 0xd82   : > { %4987 = vmatpush3.bf16.msra.mxu1 %v5382_v17  ;;  %v6094_v17 = vmov (!%p4419_p10), 0.0  }
 0xd83   : > { %4988 = vmatprep.subr.bf16.mxu1 %v6092_v26  ;;  %5034 = vmatprep.subr.bf16.mxu0 (!%p4419_p10), %v6094_v17 }
 0xd86   : > { %4989 = vmatpush3.bf16.msra.mxu1 %v5383_v18  ;;  %v5422_v18 = vld [vmem:[%s7649_s17 + $0x8] sm:$0xff] (!%p4419_p10)  }
 0xd87   : > { %5014 = vmatprep.subr.bf16.mxu1 %v6092_v26 }
 0xe3c   : > { %v3161_v19 = vpop.f32.mrb[40].mxu1 }
 0xe3d   : > { %v3167_v59 = vpack.c.bf16 %v3161_v19, %v3161_v19  ;;  %v4972_v22 = vpop.f32.mrb[41].mxu1  ;;  %v5423_v19 = vld [vmem:[%s7649_s17 + $0x10] sm:$0xff] (!%p4419_p10)  }
 0xe3e   : > { %v3164_v23 = vpop.f32.mrb[42].mxu1  ;;  %v5425_v22 = vld [vmem:[%s7649_s17 + $0x20] sm:$0xff] (!%p4419_p10)  }
 0xe3f   : > { %v4973_v24 = vpop.f32.mrb[43].mxu1  ;;  %4991 = vmatmul.mubr.bf16.vlgmr.msra.gmra.mrb[44].mxu1 %v3167_v59  ;;  %v5424_v59 = vld [vmem:[%s7649_s17 + $0x18] sm:$0xff] (!%p4419_p10)   ;;  %v5426_v23 = vld [vmem:[%s7649_s17 + $0x28] sm:$0xff] (!%p4419_p10)  }
 0xe40   : > { %5030 = vmatprep.mubr.msk.bf16.mxu1 %vm6093_vm7, %v6092_v26  ;;  %5015 = vmatpush3.bf16.msra.mxu1 %v5392_v44  ;;  %v5427_v24 = vld [vmem:[%s7649_s17 + $0x30] sm:$0xff] (!%p4419_p10)  }
 0xe41   : > { %5016 = vmatprep.subr.bf16.mxu1 %v6092_v26 }
 0xe44   : > { %5017 = vmatpush3.bf16.msra.mxu1 %v5393_v45 }
 0xe45   : > { %5018 = vmatprep.subr.bf16.mxu1 %v6092_v26 }
 0xe48   : > { %5019 = vmatpush3.bf16.msra.mxu1 %v5394_v46 }
 0xe49   : > { %5020 = vmatprep.subr.bf16.mxu1 %v6092_v26 }
 0xe4c   : > { %5021 = vmatpush3.bf16.msra.mxu1 %v5395_v47 }
 0xe4d   : > { %5022 = vmatprep.subr.bf16.mxu1 %v6092_v26 }
 0xe50   : > { %5023 = vmatpush3.bf16.msra.mxu1 %v5396_v48 }
 0xe51   : > { %5024 = vmatprep.subr.bf16.mxu1 %v6092_v26 }
 0xe54   : > { %5025 = vmatpush3.bf16.msra.mxu1 %v5397_v39 }
 0xe55   : > { %5026 = vmatprep.subr.bf16.mxu1 %v6092_v26 }
 0xe58   : > { %5027 = vmatpush3.bf16.msra.mxu1 %v5398_v63 }
 0xe59   : > { %5028 = vmatprep.subr.bf16.mxu1 %v6092_v26 }
 0xe5c   : > { %5029 = vmatpush3.bf16.msra.mxu1 %v5399_v0 }
 0xf12   : > { %v3267_v20 = vpop.f32.mrb[44].mxu1 }
 0xf13   : > { %v3273_v27 = vadd.f32 %v3267_v20, %v3063_v2  ;;  %v4992_v28 = vpop.f32.mrb[45].mxu1 }
 0xf14   : > { %v3270_v31 = vpop.f32.mrb[46].mxu1 }
 0xf15   : > { %v3274_v29 = vadd.f32 %v5420_v32, %v3273_v27  ;;  %v4993_v33 = vpop.f32.mrb[47].mxu1  ;;  %v4420_v27 = vld [vmem:[%s7650_s9] ss:$0 sm:$0xff] (!%p4419_p10) }
 0xf17   : > { %v7320_v34 = vadd.f32 %v4398_v30, %v3274_v29 }
 0xf19   : > { %3285 = vadd.xlane.f32.xlu0 %v7320_v34  ;;  %v3288_v35 = vmul.f32 %v7320_v34, %v7320_v34 }
 0xf1b   : > { %3289 = vadd.xlane.f32.xlu1 %v3288_v35 }
 0xfa6   : > { %v3286_v49 = vpop.xlane.xlu0 %3285 }
 0xfa7   : > { %v3287_v50 = vmul.f32 0.03125, %v3286_v49 }
 0xfa8   : > { %v3290_v51 = vpop.xlane.xlu1 %3289 }
 0xfa9   : > { %v3292_v52 = vmul.f32 %v3287_v50, %v3287_v50  ;;  %v3291_v53 = vmul.f32 0.03125, %v3290_v51  ;;  %v3294_v54 = vsub.f32 %v7320_v34, %v3287_v50 }
 0xfab   : > { %v3293_v21 = vsub.f32 %v3291_v53, %v3292_v52 }
 0xfad   : > { %v3295_v4 = vadd.f32 1e-05, %v3293_v21 }
 0xfaf   : > { %5418 = vrsqrt.f32 %v3295_v4 }
 0xfb9   : > { %v5419_v55 = vpop.eup %5418 }
 0xfba   : > { %v3297_v57 = vmul.f32 %v5419_v55, %v3294_v54 }
 0xfbc   : > { %v3304_v60 = vmul.f32 %v4399_v56, %v3297_v57 }
 0xfbe   : > { %v3311_v61 = vadd.f32 %v4400_v58, %v3304_v60 }
 0xfc0   : > { %v3312_v62 = vpack.c.bf16 %v3311_v61, %v3311_v61 }
 0xfc2   : > { %5011 = vmatmul.mubr.bf16.vlgmr.msra.gmra.mrb[48].mxu0 %v3312_v62 }
 0xfc3   : > { %5035 = vmatpush3.bf16.msra.mxu0 (!%p4419_p10), %v5421_v38  ;;  %5050 = vmatprep.mubr.msk.bf16.mxu0 (!%p4419_p10), %vm6095_vm10, %v6094_v17 }
 0xfc4   : > { %5036 = vmatprep.subr.bf16.mxu0 (!%p4419_p10), %v6094_v17 }
 0xfc7   : > { %5037 = vmatpush3.bf16.msra.mxu0 (!%p4419_p10), %v5422_v18 }
 0xfc8   : > { %5038 = vmatprep.subr.bf16.mxu0 (!%p4419_p10), %v6094_v17 }
 0xfcb   : > { %5039 = vmatpush3.bf16.msra.mxu0 (!%p4419_p10), %v5423_v19 }
 0xfcc   : > { %5040 = vmatprep.subr.bf16.mxu0 (!%p4419_p10), %v6094_v17 }
 0xfcf   : > { %5041 = vmatpush3.bf16.msra.mxu0 (!%p4419_p10), %v5424_v59 }
 0xfd0   : > { %5042 = vmatprep.subr.bf16.mxu0 (!%p4419_p10), %v6094_v17 }
 0xfd3   : > { %5043 = vmatpush3.bf16.msra.mxu0 (!%p4419_p10), %v5425_v22 }
 0xfd4   : > { %5044 = vmatprep.subr.bf16.mxu0 (!%p4419_p10), %v6094_v17 }
 0xfd7   : > { %5045 = vmatpush3.bf16.msra.mxu0 (!%p4419_p10), %v5426_v23 }
 0xfd8   : > { %5046 = vmatprep.subr.bf16.mxu0 (!%p4419_p10), %v6094_v17 }
 0xfdb   : > { %5047 = vmatpush3.bf16.msra.mxu0 (!%p4419_p10), %v5427_v24 }
 0xfdc   : > { %5048 = vmatprep.subr.bf16.mxu0 (!%p4419_p10), %v6094_v17 }
 0xfdf   : > { %5049 = vmatpush3.bf16.msra.mxu0 (!%p4419_p10), %v5428_v25 }
0x1095   : > { %v3418_v2 = vpop.f32.mrb[48].mxu0 }
0x1096   : > { %v3419_v5 = vadd.f32 %v4401_v1, %v3418_v2  ;;  %v5012_v6 = vpop.f32.mrb[49].mxu0 }
0x1097   : > { %v3421_v8 = vpop.f32.mrb[50].mxu0 }
0x1098   : > { %v3424_v7 = vmax.f32 %v3419_v5, 0.0  ;;  %v5013_v9 = vpop.f32.mrb[51].mxu0 }
0x109a   : > { %v3425_v10 = vpack.c.bf16 %v3424_v7, %v3424_v7 }
0x109c   : > { %5031 = vmatmul.mubr.bf16.vlgmr.msra.gmra.mrb[48].mxu1 %v3425_v10 }
0x116e   : > { %3542 = sbr.rel (%p4419_p10) target bundleno = 4685 (0x124d), region = 164 }
0x116f   : > { %v3531_v12 = vpop.f32.mrb[48].mxu1 }
0x1170   : > { %v3532_v3 = vadd.f32 %v4410_v11, %v3531_v12  ;;  %v5032_v14 = vpop.f32.mrb[49].mxu1 }
0x1171   : > { %v3534_v15 = vpop.f32.mrb[50].mxu1 }
0x1172   : > { %v3537_v26 = vadd.f32 %v3532_v3, %v7320_v34  ;;  %v5033_v16 = vpop.f32.mrb[51].mxu1 }
0x1174   : > { %3538 = vst [vmem:[#allocation2] sm:$0xff] %v3537_v26  ;;  %v3543_v20 = vpack.c.bf16 (!%p4419_p10), %v3537_v26, %v3537_v26 }
0x1176   : > { %5051 = vmatmul.mubr.bf16.vlgmr.msra.gmra.mrb[0].mxu0 %v3543_v20 }
0x1249   : > { %v3649_v28 = vpop.f32.mrb[0].mxu0 }
0x124a   : > { %v3650_v30 = vadd.f32 %v4420_v27, %v3649_v28  ;;  %v5052_v31 = vpop.f32.mrb[1].mxu0 }
0x124b   : > { %v3652_v32 = vpop.f32.mrb[2].mxu0 }
0x124c   : > { %3655 = vst [vmem:[%s7651_s11] sm:$0xff] %v3650_v30  ;;  %v5053_v29 = vpop.f32.mrb[3].mxu0 }
0x124d PF: > { %s7652_s27 = sld [smem:[#allocation49_spill]]  ;;  %s7653_s29 = sld [smem:[#allocation44_spill]] }
0x124e   : > { %s7654_s22 = sld [smem:[#allocation55_spill]]  ;;  %s7655_s3 = sld [smem:[#allocation81_spill]] }
0x124f   : > { %s7657_s12 = scalar_lea.vmem [#allocation31], %s6909_s26  ;;  %s6096_s25 = smov [#allocation31]  }
0x1250   : > { %s3670_s6 = sshll.u32 %s7657_s12, 4  ;;  %s5917_s8 = sshll.u32 %s6096_s25, 4  ;;  %s3671_s6 = int_to_ptr.vmem [resolvable:$true] %s3670_s6  ;;  %s5918_s8 = int_to_ptr.vmem [resolvable:$false] %s5917_s8 }
0x1251   : > { %s5913_s20 = scalar_lea.vmem %s3671_s6, 128  ;;  %s5919_s13 = scalar_lea.vmem %s5918_s8, 256 }
0x1252   : > { %p5914_p12 = scmp.ne.s32.totalorder %s3671_s6, %s5913_s20  ;;  %p5920_p2 = scmp.lt.s32.totalorder %s3671_s6, %s5918_s8 }
0x1253   : > { %s4430_s21 = sshll.u32 %s7652_s27, 7  ;;  %s7658_s28 = sand.u32 1, %s7653_s29  }
0x1254   : > { %s7656_s4 = smov %s7655_s3  ;;  %s7397_s0 = scalar_lea.hbm %s7655_s3, %s4430_s21 }
0x1255   : > { %s3657_s24 = scalar_lea.sflag [#allocation7], %s7658_s28  ;;  %p7659_p3 = scmp.ne.s32.totalorder %s7654_s22, 0 }
0x1256   : > { %p5921_p11 = scmp.lt.s32.totalorder %s5919_s13, %s5913_s20 }
0x1257   : > { %p5915_p1 = pnand %p5914_p12, %p7659_p3 }
0x1258   : > { %p5922_p6 = por %p5921_p11, %p5920_p2 }
0x1259   : > { %p5916_p8 = pneg %p5915_p1 }
0x125b   : > { %p5923_p0 = pnand %p5922_p6, %p5916_p8 }
0x125d   : > { %5926 = shalt.err (!%p5923_p0)
}
0x125e   : > { %s5927_s26 = scalar_lea.hbm %s7397_s0, 128  ;;  %s5931_s7 = scalar_lea.hbm %s7656_s4, 256 }
0x125f   : > { %p5928_p9 = scmp.ne.s32.totalorder %s7397_s0, %s5927_s26  ;;  %p5932_p13 = scmp.lt.u32.totalorder %s7397_s0, %s7656_s4 }
0x1260   : > { %p5933_p7 = scmp.lt.u32.totalorder %s5931_s7, %s5927_s26  ;;  %p5935_p12 = scmp.lt.u32.totalorder %s5927_s26, %s7397_s0 }
0x1261   : > { %p5929_p4 = pnand %p5928_p9, %p7659_p3 }
0x1262   : > { %p5934_p10 = por %p5933_p7, %p5932_p13 }
0x1263   : > { %p5930_p5 = pneg %p5929_p4 }
0x1264   : > { %p5936_p1 = por %p5935_p12, %p5934_p10 }
0x1266   : > { %p5937_p8 = pnand %p5936_p1, %p5930_p5 }
0x1268   : > { %5940 = shalt.err (!%p5937_p8)
}
0x1269   : > { %5092 = dma.vmem_to_hbm [thread:$0]  (%p7659_p3), %s3671_s6, 128, %s7397_s0, %s3657_s24  }
0x126a PF: > { %s7660_s5 = sld [smem:[#allocation52_spill]]  ;;  %s7661_s9 = sld [smem:[#allocation43_spill]] }
0x126b   : > { %s7662_s11 = sld [smem:[#allocation56_spill]] }
0x1270   : > { %p5155_p2 = scmp.ge.s32.totalorder %s7660_s5, 2  ;;  %s3682_s27 = sand.u32 1, %s7661_s9  }
0x1271   : > { %p7663_p11 = scmp.ne.s32.totalorder %s7662_s11, 0  ;;  %s3683_s29 = scalar_lea.sflag [#allocation7], %s3682_s27 }
0x1273   : > { %p5145_p6 = pnand %p5155_p2, %p7663_p11 }
0x1275   : > { %6024 = dma.done.wait (!%p5145_p6), %s3683_s29, 128  }
0x1276   : > { %6026 = vsyncadd (!%p5145_p6), %s3683_s29, 4294967168  ;;  %s59_s1 = sadd.s32 1, %s7660_s5   ;;  %s7664_s13 = sld [smem:[#allocation44_spill]] }
0x1277   : > { %p56_p0 = scmp.ge.s32.totalorder %s59_s1, 6   ;;  %s7665_s3 = sld [smem:[#allocation45_spill]] }
0x1278   : > { %s7666_s26 = sld [smem:[#allocation61_spill]]  ;;  %s7667_s27 = sld [smem:[#allocation46_spill]] }
0x1279   : > { %s7668_s28 = sld [smem:[#allocation47_spill]]  ;;  %s7669_s29 = sld [smem:[#allocation60_spill]] }
0x127a   : > { %s7670_s0 = sld [smem:[#allocation50_spill]]  ;;  %s7671_s30 = sld [smem:[#allocation51_spill]] }
0x127b   : > { %s7672_s20 = sld [smem:[#allocation58_spill]]  ;;  %s7673_s21 = sld [smem:[#allocation59_spill]] }
0x127c   :  { %58 = sbr.rel (!%p56_p0) target bundleno = 50 (0x32), region = 322 }
0x1283   :  { %3688 = vsyncpa [#allocation6], 1 }
0x1284   :  { %3690 = vsyncpa [#allocation6 + $0x1], 1 }
0x1285   :  { %3691 = vsyncpa [#allocation9], 1 }
0x1286   :  { %3692 = vsyncpa [#allocation12], 1 }
0x1287   :  { %3694 = vsyncpa [#allocation12 + $0x1], 1 }
0x1288   :  { %3695 = vsyncpa [#allocation15], 1 }
0x1289   :  { %3697 = vsyncpa [#allocation15 + $0x1], 1 }
0x128a   :  { %3698 = vsyncpa [#allocation18], 1 }
0x128b   :  { %3700 = vsyncpa [#allocation18 + $0x1], 1 }
0x128c   :  { %3701 = vsyncpa [#allocation21], 1 }
0x128d   :  { %3703 = vsyncpa [#allocation21 + $0x1], 1 }
0x128e   :  { %3704 = vsyncpa [#allocation24], 1 }
0x128f   :  { %3706 = vsyncpa [#allocation24 + $0x1], 1 }
0x1290   :  { %3707 = vsyncpa [#allocation27], 1 }
0x1291   :  { %3709 = vsyncpa [#allocation27 + $0x1], 1 }
0x1292   :  { %3710 = vsyncpa [#allocation30], 1 }
0x1293   :  { %3712 = vsyncpa [#allocation30 + $0x1], 1 }
0x1294   :  { %3713 = vsyncpa [#allocation7], 1 }
0x1295   :  { %3715 = vsyncpa [#allocation7 + $0x1], 1 }

// kernel: tpu_custom_call.1
= control target key start
LH: loop header
LB: loop body
LE: loop exit
PB: predicated region body
PF: predicated region fallthrough
CT: control target
= control target key end

     0   :  { %s7457_s0 = inlined_call_operand.hbm [shape: s32[2,8], index: 0, kind: input, shape index: {}]   ;;  %s7458_s1 = inlined_call_operand.hbm [shape: f32[64,128], index: 1, kind: input, shape index: {}]   ;;  %s7459_s2 = inlined_call_operand.hbm [shape: f32[8,128], index: 2, kind: input, shape index: {}]   ;;  %s7460_s3 = inlined_call_operand.hbm [shape: f32[8,8], index: 3, kind: input, shape index: {}]   ;;  %s7461_s4 = inlined_call_operand.hbm [shape: f32[2,1,128], index: 4, kind: input, shape index: {}]   ;;  %s7462_s5 = inlined_call_operand.hbm [shape: f32[2,1,128], index: 5, kind: input, shape index: {}]   ;;  %s7463_s6 = inlined_call_operand.hbm [shape: bf16[2,4,128,128], index: 6, kind: input, shape index: {}]   ;;  %s7464_s7 = inlined_call_operand.hbm [shape: bf16[2,4,128,128], index: 7, kind: input, shape index: {}]   ;;  %s7465_s8 = inlined_call_operand.hbm [shape: bf16[2,4,128,128], index: 8, kind: input, shape index: {}]   ;;  %s7466_s9 = inlined_call_operand.hbm [shape: bf16[2,4,128,128], index: 9, kind: input, shape index: {}]   ;;  %s7467_s10 = inlined_call_operand.hbm [shape: f32[2,1,128], index: 10, kind: input, shape index: {}]   ;;  %s7468_s11 = inlined_call_operand.hbm [shape: f32[2,1,128], index: 11, kind: input, shape index: {}]   ;;  %s7469_s12 = inlined_call_operand.hbm [shape: f32[2,1,128], index: 12, kind: input, shape index: {}]   ;;  %s7470_s13 = inlined_call_operand.hbm [shape: bf16[2,128,128], index: 13, kind: input, shape index: {}]   ;;  %s7471_s14 = inlined_call_operand.hbm [shape: f32[2,1,128], index: 14, kind: input, shape index: {}]   ;;  %s7472_s15 = inlined_call_operand.hbm [shape: bf16[2,128,128], index: 15, kind: input, shape index: {}]   ;;  %s7473_s16 = inlined_call_operand.hbm [shape: f32[2,1,128], index: 16, kind: input, shape index: {}]   ;;  %s7474_s17 = inlined_call_operand.vmem [shape: bf16[128,128], index: 17, kind: input, shape index: {}]   ;;  %s7475_s18 = inlined_call_operand.vmem [shape: f32[1,128], index: 18, kind: input, shape index: {}]   ;;  %s7476_s19 = inlined_call_operand.hbm [shape: f32[16,128], index: 19, kind: output, shape index: {}]  }
   0x1   :  { %7535 = sst [smem:[#allocation62_spill]] %s7457_s0 }
   0x2   :  { %7536 = sst [smem:[#allocation63_spill]] %s7458_s1  ;;  %s7555_s20 = sld [smem:[#allocation62_spill]] }
   0x3   :  { %7537 = sst [smem:[#allocation64_spill]] %s7459_s2 }
   0x4   :  { %7538 = sst [smem:[#allocation65_spill]] %s7460_s3 }
   0x5   :  { %7539 = sst [smem:[#allocation66_spill]] %s7461_s4 }
   0x6   :  { %7540 = sst [smem:[#allocation67_spill]] %s7462_s5 }
   0x7   :  { %7541 = sst [smem:[#allocation68_spill]] %s7463_s6 }
   0x8   :  { %7542 = sst [smem:[#allocation69_spill]] %s7464_s7 }
   0x9   :  { %7543 = sst [smem:[#allocation70_spill]] %s7465_s8 }
   0xa   :  { %7544 = sst [smem:[#allocation71_spill]] %s7466_s9 }
   0xb   :  { %7545 = sst [smem:[#allocation72_spill]] %s7467_s10 }
   0xc   :  { %7546 = sst [smem:[#allocation73_spill]] %s7468_s11 }
   0xd   :  { %7547 = sst [smem:[#allocation74_spill]] %s7469_s12 }
   0xe   :  { %7548 = sst [smem:[#allocation75_spill]] %s7470_s13  ;;  %s5429_s13 = scalar_lea.hbm %s7555_s20, 32 }
   0xf   :  { %7549 = sst [smem:[#allocation76_spill]] %s7471_s14  ;;  %p5430_p0 = scmp.ne.s32.totalorder %s7555_s20, %s5429_s13 }
  0x10   :  { %7550 = sst [smem:[#allocation77_spill]] %s7472_s15  ;;  %p5433_p1 = scmp.lt.u32.totalorder %s5429_s13, %s7555_s20 }
  0x11   :  { %7551 = sst [smem:[#allocation78_spill]] %s7473_s16 }
  0x12   :  { %7552 = sst [smem:[#allocation79_spill]] %s7474_s17  ;;  %p5435_p2 = pnand %p5433_p1, %p5430_p0 }
  0x13   :  { %7553 = sst [smem:[#allocation80_spill]] %s7475_s18 }
  0x14   :  { %7554 = sst [smem:[#allocation81_spill]] %s7476_s19 }
  0x15   :  { %5438 = shalt.err (!%p5435_p2)  }
  0x16   :  { %s6071_s23 = smov [#allocation4]  }
  0x17   :  { %25 = dma.hbm_to_smem %s7555_s20, 32, %s6071_s23, [#allocation3] }
  0x18   :  { %5985 = dma.done.wait [#allocation3], 32 }
  0x19   :  { %5986 = vsyncadd [#allocation3], 4294967264 }
  0x1a   :  { %27 = sfence }
  0x1b   :  { %28 = vsyncpa [#allocation6], 0 }
  0x1c   :  { %29 = vsyncpa [#allocation9], 0 }
  0x1d   :  { %30 = vsyncpa [#allocation12], 0 }
  0x1e   :  { %32 = vsyncpa [#allocation12 + $0x1], 0 }
  0x1f   :  { %33 = vsyncpa [#allocation15], 0 }
  0x20   :  { %35 = vsyncpa [#allocation15 + $0x1], 0 }
  0x21   :  { %36 = vsyncpa [#allocation18], 0 }
  0x22   :  { %38 = vsyncpa [#allocation18 + $0x1], 0 }
  0x23   :  { %39 = vsyncpa [#allocation21], 0 }
  0x24   :  { %41 = vsyncpa [#allocation21 + $0x1], 0 }
  0x25   :  { %42 = vsyncpa [#allocation24], 0 }
  0x26   :  { %44 = vsyncpa [#allocation24 + $0x1], 0 }
  0x27   :  { %45 = vsyncpa [#allocation27], 0 }
  0x28   :  { %47 = vsyncpa [#allocation27 + $0x1], 0 }
  0x29   :  { %48 = vsyncpa [#allocation30], 0 }
  0x2a   :  { %50 = vsyncpa [#allocation30 + $0x1], 0 }
  0x2b   :  { %51 = vsyncpa [#allocation7], 0 }
  0x2c   :  { %53 = vsyncpa [#allocation7 + $0x1], 0  ;;  %s6209_s13 = smov 0   ;;  %s6211_s3 = smov 0  }
  0x2d   :  { %s6213_s26 = smov 0   ;;  %s6215_s27 = smov 0  }
  0x2e   :  { %s6217_s28 = smov 0   ;;  %s6219_s29 = smov 0  }
  0x2f   :  { %s6221_s0 = smov 0   ;;  %s6223_s30 = smov 0  }
  0x30   :  { %s6225_s20 = smov 0   ;;  %s6227_s21 = smov 0  }
  0x31   :  { %s6229_s1 = smov 0  }
  0x32 LB: > { %7556 = sst [smem:[#allocation43_spill]] %s6029_s13  ;;  %s6263_s22 = sadd.s32 4294967295, %s6069_s1   ;;  %s6069_s1 = sphi %s6229_s1, %s59_s1   ;;  %s6065_s21 = sphi %s6227_s21, %s7673_s21   ;;  %s6061_s20 = sphi %s6225_s20, %s7672_s20   ;;  %s6057_s30 = sphi %s6223_s30, %s7671_s30   ;;  %s6053_s0 = sphi %s6221_s0, %s7670_s0   ;;  %s6049_s29 = sphi %s6219_s29, %s7669_s29   ;;  %s6045_s28 = sphi %s6217_s28, %s7668_s28   ;;  %s6041_s27 = sphi %s6215_s27, %s7667_s27   ;;  %s6037_s26 = sphi %s6213_s26, %s7666_s26   ;;  %s6033_s3 = sphi %s6211_s3, %s7665_s3   ;;  %s6029_s13 = sphi %s6209_s13, %s7664_s13  }
  0x33   : > { %7557 = sst [smem:[#allocation44_spill]] %s6033_s3  ;;  %s4028_s2 = sadd.s32 4294967294, %s6069_s1  }
  0x34   : > { %7558 = sst [smem:[#allocation45_spill]] %s6037_s26  ;;  %p148_p3 = scmp.ne.s32.totalorder %s6049_s29, %s6045_s28 }
  0x35   : > { %7559 = sst [smem:[#allocation46_spill]] %s6045_s28  ;;  %p149_p4 = scmp.eq.s32.totalorder %s6069_s1, 0 }
  0x36   : > { %7560 = sst [smem:[#allocation47_spill]] %s6049_s29  ;;  %p154_p5 = scmp.ne.s32.totalorder %s6045_s28, %s6041_s27 }
  0x37   : > { %7561 = sst [smem:[#allocation48_spill]] %s6053_s0  ;;  %p7495_p6 = scmp.eq.s32.totalorder %s6263_s22, 0 }
  0x38   : > { %7562 = sst [smem:[#allocation49_spill]] %s6057_s30  ;;  %p6273_p7 = por %p149_p4, %p148_p3 }
  0x39   : > { %7563 = sst [smem:[#allocation50_spill]] %s6061_s20  ;;  %p531_p8 = scmp.ne.s32.totalorder %s6037_s26, %s6033_s3 }
  0x3a   : > { %7564 = sst [smem:[#allocation51_spill]] %s6065_s21  ;;  %p6281_p9 = por %p7495_p6, %p154_p5 }
  0x3b   : > { %7565 = sst [smem:[#allocation52_spill]] %s6069_s1  ;;  %p532_p10 = scmp.eq.s32.totalorder %s6263_s22, 3 }
  0x3c   : > { %7566 = sst [smem:[#allocation53_spill]] %s6263_s22  ;;  %p537_p11 = scmp.ne.s32.totalorder %s6033_s3, %s6029_s13 }
  0x3d   : > { %s7568_s19 = scalar_select %p6281_p9, 1, 0 }
  0x3e   : > { %p538_p12 = scmp.eq.s32.totalorder %s4028_s2, 3  ;;  %p6288_p13 = por %p532_p10, %p531_p8 }
  0x3f   : > { %7569 = sst [smem:[#allocation54_spill]] %s7568_s19  ;;  %p4029_p0 = scmp.ge.s32.totalorder %s6069_s1, 1 }
  0x40   : > { %s7570_s27 = scalar_select %p6288_p13, 1, 0 }
  0x41   : > { %p6293_p1 = por %p538_p12, %p537_p11  ;;  %p545_p2 = scmp.lt.s32.totalorder %s6069_s1, 5 }
  0x42   : > { %7571 = sst [smem:[#allocation55_spill]] %s7570_s27  ;;  %s6072_s18 = smov [#allocation8]  }
  0x43   : > { %s7572_s24 = scalar_select %p6293_p1, 1, 0 }
  0x44   : > { %p6298_p3 = pnand %p4029_p0, %p545_p2  ;;  %s571_s17 = sshll.u32 %s6072_s18, 4  ;;  %s572_s17 = int_to_ptr.vmem [resolvable:$true] %s571_s17 }
  0x45   : > { %7573 = sst [smem:[#allocation56_spill]] %s7572_s24  ;;  %p5151_p5 = scmp.lt.s32.totalorder %s6069_s1, 4 }
  0x46   : > { %s7574_s23 = scalar_select %p6298_p3, 1, 0 }
  0x47   : > { %p5094_p4 = pneg %p6298_p3  ;;  %s6306_s2 = sand.u32 1, %s6049_s29  }
  0x48   : > { %7575 = sst [smem:[#allocation57_spill]] %s7574_s23  ;;  %p6316_p10 = pnand %p5151_p5, %p6273_p7 }
  0x49   : > { %p6310_p8 = pnand %p5094_p4, %p7495_p6  ;;  %s7578_s18 = sld [smem:[#allocation64_spill]] }
  0x4a   : > { %s7577_s24 = scalar_select %p6316_p10, 1, 0 }
  0x4b   : > { %s7576_s13 = scalar_select %p6310_p8, 1, 0 }
  0x4c   : > { %p6328_p12 = pneg %p6310_p8 }
  0x4e   : > { %s7579_s28 = scalar_select %p6328_p12, 1, 0 }
  0x4f   : > { %s5439_s0 = scalar_lea.hbm %s7578_s18, 128 }
  0x50   : > { %p5440_p11 = scmp.ne.s32.totalorder %s7578_s18, %s5439_s0  ;;  %p5446_p2 = scmp.lt.u32.totalorder %s5439_s0, %s7578_s18 }
  0x52   : > { %p5442_p0 = pnand %p6328_p12, %p5440_p11 }
  0x54   : > { %p5443_p7 = pneg %p5442_p0 }
  0x56   : > { %p5448_p4 = pnand %p5446_p2, %p5443_p7 }
  0x58   : > { %5451 = shalt.err (!%p5448_p4)
}
  0x59   : > { %s5452_s30 = scalar_lea.vmem %s572_s17, 128  ;;  %p5460_p13 = scmp.lt.s32.totalorder %s572_s17, %s572_s17 }
  0x5a   : > { %p5453_p5 = scmp.ne.s32.totalorder %s572_s17, %s5452_s30  ;;  %p5461_p9 = scmp.lt.s32.totalorder %s5452_s30, %s5452_s30 }
  0x5c   : > { %p5455_p6 = pnand %p5453_p5, %p6328_p12  ;;  %p5462_p3 = por %p5461_p9, %p5460_p13 }
  0x5e   : > { %p5456_p1 = pneg %p5455_p6 }
  0x60   : > { %p5463_p10 = pnand %p5462_p3, %p5456_p1 }
  0x62   : > { %5466 = shalt.err (!%p5463_p10)
}
  0x63   : > { %5100 = dma.hbm_to_vmem [thread:$0]  (!%p6310_p8), %s7578_s18, 128, %s572_s17, [#allocation9]  }
  0x64   : > { %s68_s0 = sadd.s32 1, %s6061_s20  ;;  %s71_s22 = sadd.s32 1, %s6065_s21 }
  0x65   : > { %p69_p6 = scmp.ge.s32.totalorder %s68_s0, 2  ;;  %s6347_s27 = sand.u32 1, %s6069_s1  }
  0x66   : > { %s6355_s30 = sshll.u32 %s6061_s20, 4  ;;  %s602_s19 = scalar_lea.vmem [#allocation11], %s6306_s2 }
  0x67   : > { %s7675_s0 = smov (%p69_p6, %s68_s0), 0  ;;  %s7677_s22 = smov (!%p69_p6, %s71_s22), %s6065_s21 }
  0x68   : > { %7580 = sst [smem:[#allocation58_spill]] %s7675_s0  ;;  %s138_s25 = ssub.s32 %s6061_s20, %s7675_s0 }
  0x69   : > { %p73_p9 = scmp.ge.s32.totalorder %s7677_s22, 2  ;;  %p139_p13 = scmp.eq.s32.totalorder %s138_s25, 0 }
  0x6a   : > { %s609_s3 = sshll.u32 %s602_s19, 4  ;;  %s7582_s17 = sadd.s32 1, %s6049_s29  ;;  %s6377_s3 = int_to_ptr.vmem [resolvable:$true] %s609_s3 }
  0x6b   : > { %s7679_s22 = smov (%p73_p9, %s7677_s22), 0  ;;  %s7584_s4 = sld [smem:[#allocation66_spill]] }
  0x6c   : > { %7581 = sst [smem:[#allocation59_spill]] %s7679_s22  ;;  %s518_s1 = ssub.s32 %s6065_s21, %s7679_s22 }
  0x6d   : > { %s6363_s18 = scalar_select %p139_p13, %s6049_s29, %s7582_s17  }
  0x6e   : > { %p6373_p1 = scmp.eq.s32.totalorder %s518_s1, 0  ;;  %p7586_p10 = scmp.ne.s32.totalorder %s7577_s24, 0 }
  0x6f   : > { %7583 = sst [smem:[#allocation60_spill]] %s6363_s18 }
  0x70   : > { %s7585_s25 = scalar_select %p6373_p1, 1, 0 }
  0x71   : > { %s6371_s15 = scalar_lea.hbm %s7584_s4, %s6355_s30  ;;  %p6384_p11 = pneg %p7586_p10 }
  0x72   : > { %s5467_s0 = scalar_lea.hbm %s6371_s15, 16  ;;  %s5472_s1 = scalar_lea.hbm %s7584_s4, 32 }
  0x73   : > { %p5468_p3 = scmp.ne.s32.totalorder %s6371_s15, %s5467_s0  ;;  %p5473_p2 = scmp.lt.u32.totalorder %s6371_s15, %s7584_s4 }
  0x74   : > { %s7587_s17 = scalar_select %p6384_p11, 1, 0 }
  0x75   : > { %p5470_p0 = pnand %p6384_p11, %p5468_p3  ;;  %p5474_p4 = scmp.lt.u32.totalorder %s5472_s1, %s5467_s0 }
  0x76   : > { %p5476_p6 = scmp.lt.u32.totalorder %s5467_s0, %s6371_s15 }
  0x77   : > { %p5471_p7 = pneg %p5470_p0  ;;  %p5475_p5 = por %p5474_p4, %p5473_p2 }
  0x79   : > { %p5477_p9 = por %p5476_p6, %p5475_p5 }
  0x7b   : > { %p5478_p13 = pnand %p5477_p9, %p5471_p7 }
  0x7d   : > { %5481 = shalt.err (!%p5478_p13)
}
  0x7e   : > { %s5482_s19 = scalar_lea.vmem %s6377_s3, 16  ;;  %s6073_s16 = smov [#allocation11]  }
  0x7f   : > { %p5483_p3 = scmp.ne.s32.totalorder %s6377_s3, %s5482_s19  ;;  %s5487_s23 = sshll.u32 %s6073_s16, 4  ;;  %s5488_s23 = int_to_ptr.vmem [resolvable:$false] %s5487_s23 }
  0x80   : > { %s5489_s21 = scalar_lea.vmem %s5488_s23, 32  ;;  %p5490_p12 = scmp.lt.s32.totalorder %s6377_s3, %s5488_s23 }
  0x81   : > { %p5485_p0 = pnand %p5483_p3, %p6384_p11  ;;  %p5491_p1 = scmp.lt.s32.totalorder %s5489_s21, %s5482_s19 }
  0x83   : > { %p5486_p8 = pneg %p5485_p0  ;;  %p5492_p2 = por %p5491_p1, %p5490_p12 }
  0x85   : > { %p5493_p4 = pnand %p5492_p2, %p5486_p8 }
  0x87   : > { %5496 = shalt.err (!%p5493_p4)
}
  0x88   : > { %s7588_s0 = scalar_lea.sflag [#allocation12], %s6347_s27  ;;  %s7589_s22 = sadd.s32 1, %s6037_s26 }
  0x89   : > { %5107 = dma.hbm_to_vmem [thread:$0]  (!%p7586_p10), %s6371_s15, 16, %s6377_s3, %s7588_s0  }
  0x8a   : > { %p7590_p7 = scmp.ne.s32.totalorder %s7585_s25, 0  ;;  %s6417_s1 = sshll.u32 %s6306_s2, 8 }
  0x8b   : > { %s6420_s16 = sshll.u32 %s6061_s20, 12  ;;  %s7592_s6 = sld [smem:[#allocation68_spill]] }
  0x8c   : > { %s6414_s19 = scalar_select %p7590_p7, %s6037_s26, %s7589_s22  }
  0x8d   : > { %s637_s15 = scalar_lea.vmem [#allocation14], %s6417_s1  ;;  %s7514_s25 = scalar_lea.sflag [#allocation15], %s6347_s27 }
  0x8e   : > { %7591 = sst [smem:[#allocation61_spill]] %s6414_s19  ;;  %s644_s3 = sshll.u32 %s637_s15, 4  ;;  %s6429_s3 = int_to_ptr.vmem [resolvable:$true] %s644_s3 }
  0x91   : > { %s6426_s4 = scalar_lea.hbm %s7592_s6, %s6420_s16  ;;  %s5502_s23 = scalar_lea.hbm %s7592_s6, 8192 }
  0x92   : > { %s5497_s0 = scalar_lea.hbm %s6426_s4, 4096  ;;  %p5503_p5 = scmp.lt.u32.totalorder %s6426_s4, %s7592_s6 }
  0x93   : > { %p5498_p8 = scmp.ne.s32.totalorder %s6426_s4, %s5497_s0  ;;  %p5504_p6 = scmp.lt.u32.totalorder %s5502_s23, %s5497_s0 }
  0x94   : > { %p5506_p13 = scmp.lt.u32.totalorder %s5497_s0, %s6426_s4 }
  0x95   : > { %p5500_p12 = pnand %p5498_p8, %p6384_p11  ;;  %p5505_p9 = por %p5504_p6, %p5503_p5 }
  0x97   : > { %p5501_p1 = pneg %p5500_p12  ;;  %p5507_p3 = por %p5506_p13, %p5505_p9 }
  0x99   : > { %p5508_p0 = pnand %p5507_p3, %p5501_p1 }
  0x9b   : > { %5511 = shalt.err (!%p5508_p0)
}
  0x9c   : > { %s5512_s15 = scalar_lea.vmem %s6429_s3, 4096  ;;  %s6074_s18 = smov [#allocation14]  }
  0x9d   : > { %p5513_p2 = scmp.ne.s32.totalorder %s6429_s3, %s5512_s15  ;;  %s5517_s22 = sshll.u32 %s6074_s18, 4  ;;  %s5518_s22 = int_to_ptr.vmem [resolvable:$false] %s5517_s22 }
  0x9e   : > { %s5519_s29 = scalar_lea.vmem %s5518_s22, 8192  ;;  %p5520_p8 = scmp.lt.s32.totalorder %s6429_s3, %s5518_s22 }
  0x9f   : > { %p5515_p4 = pnand %p5513_p2, %p6384_p11  ;;  %p5521_p12 = scmp.lt.s32.totalorder %s5519_s29, %s5512_s15 }
  0xa1   : > { %p5516_p7 = pneg %p5515_p4  ;;  %p5522_p5 = por %p5521_p12, %p5520_p8 }
  0xa3   : > { %p5523_p6 = pnand %p5522_p5, %p5516_p7 }
  0xa5   : > { %5526 = shalt.err (!%p5523_p6)
}
  0xa6   : > { %s7516_s0 = smov 64   ;;  %s7521_s23 = smov 4  }
  0xa7   : > { %5113 = dma.hbm_to_vmem [thread:$0]  (!%p7586_p10), %s6426_s4, 4096, %s6429_s3, %s7514_s25, %s7516_s0, %s7516_s0, %s7521_s23  }
  0xa8   : > { %s7593_s8 = sld [smem:[#allocation70_spill]]  ;;  %s679_s22 = scalar_lea.vmem [#allocation17], %s6417_s1 }
  0xa9   : > { %s686_s29 = sshll.u32 %s679_s22, 4  ;;  %s7515_s6 = scalar_lea.sflag [#allocation18], %s6347_s27  ;;  %s6465_s29 = int_to_ptr.vmem [resolvable:$true] %s686_s29 }
  0xae   : > { %s6462_s18 = scalar_lea.hbm %s7593_s8, %s6420_s16  ;;  %s5532_s21 = scalar_lea.hbm %s7593_s8, 8192 }
  0xaf   : > { %s5527_s19 = scalar_lea.hbm %s6462_s18, 4096  ;;  %p5533_p3 = scmp.lt.u32.totalorder %s6462_s18, %s7593_s8 }
  0xb0   : > { %p5528_p1 = scmp.ne.s32.totalorder %s6462_s18, %s5527_s19  ;;  %p5534_p0 = scmp.lt.u32.totalorder %s5532_s21, %s5527_s19 }
  0xb1   : > { %p5536_p4 = scmp.lt.u32.totalorder %s5527_s19, %s6462_s18 }
  0xb2   : > { %p5530_p9 = pnand %p5528_p1, %p6384_p11  ;;  %p5535_p2 = por %p5534_p0, %p5533_p3 }
  0xb4   : > { %p5531_p13 = pneg %p5530_p9  ;;  %p5537_p7 = por %p5536_p4, %p5535_p2 }
  0xb6   : > { %p5538_p8 = pnand %p5537_p7, %p5531_p13 }
  0xb8   : > { %5541 = shalt.err (!%p5538_p8)
}
  0xb9   : > { %s5542_s22 = scalar_lea.vmem %s6465_s29, 4096  ;;  %s6077_s4 = smov [#allocation17]  }
  0xba   : > { %p5543_p12 = scmp.ne.s32.totalorder %s6465_s29, %s5542_s22  ;;  %s5547_s3 = sshll.u32 %s6077_s4, 4  ;;  %s5548_s3 = int_to_ptr.vmem [resolvable:$false] %s5547_s3 }
  0xbb   : > { %s5549_s25 = scalar_lea.vmem %s5548_s3, 8192  ;;  %p5550_p1 = scmp.lt.s32.totalorder %s6465_s29, %s5548_s3 }
  0xbc   : > { %p5545_p5 = pnand %p5543_p12, %p6384_p11  ;;  %p5551_p9 = scmp.lt.s32.totalorder %s5549_s25, %s5542_s22 }
  0xbe   : > { %p5546_p6 = pneg %p5545_p5  ;;  %p5552_p3 = por %p5551_p9, %p5550_p1 }
  0xc0   : > { %p5553_p0 = pnand %p5552_p3, %p5546_p6 }
  0xc2   : > { %5556 = shalt.err (!%p5553_p0)
}
  0xc3   : > { %5119 = dma.hbm_to_vmem [thread:$0]  (!%p7586_p10), %s6462_s18, 4096, %s6465_s29, %s7515_s6, %s7516_s0, %s7516_s0, %s7521_s23  }
  0xc4   : > { %s7594_s10 = sld [smem:[#allocation72_spill]]  ;;  %s720_s22 = scalar_lea.vmem [#allocation20], %s6306_s2 }
  0xc5   : > { %s727_s4 = sshll.u32 %s720_s22, 4  ;;  %s7519_s3 = scalar_lea.sflag [#allocation21], %s6347_s27  ;;  %s728_s4 = int_to_ptr.vmem [resolvable:$true] %s727_s4 }
  0xca   : > { %s6498_s15 = scalar_lea.hbm %s7594_s10, %s6355_s30  ;;  %s5562_s29 = scalar_lea.hbm %s7594_s10, 32 }
  0xcb   : > { %s5557_s25 = scalar_lea.hbm %s6498_s15, 16  ;;  %p5563_p7 = scmp.lt.u32.totalorder %s6498_s15, %s7594_s10 }
  0xcc   : > { %p5558_p13 = scmp.ne.s32.totalorder %s6498_s15, %s5557_s25  ;;  %p5564_p8 = scmp.lt.u32.totalorder %s5562_s29, %s5557_s25 }
  0xcd   : > { %p5566_p5 = scmp.lt.u32.totalorder %s5557_s25, %s6498_s15 }
  0xce   : > { %p5560_p2 = pnand %p5558_p13, %p6384_p11  ;;  %p5565_p12 = por %p5564_p8, %p5563_p7 }
  0xd0   : > { %p5561_p4 = pneg %p5560_p2  ;;  %p5567_p6 = por %p5566_p5, %p5565_p12 }
  0xd2   : > { %p5568_p1 = pnand %p5567_p6, %p5561_p4 }
  0xd4   : > { %5571 = shalt.err (!%p5568_p1)
}
  0xd5   : > { %s5572_s22 = scalar_lea.vmem %s728_s4, 16  ;;  %s6078_s6 = smov [#allocation20]  }
  0xd6   : > { %p5573_p9 = scmp.ne.s32.totalorder %s728_s4, %s5572_s22  ;;  %s5577_s0 = sshll.u32 %s6078_s6, 4  ;;  %s5578_s0 = int_to_ptr.vmem [resolvable:$false] %s5577_s0 }
  0xd7   : > { %s5579_s8 = scalar_lea.vmem %s5578_s0, 32  ;;  %p5580_p13 = scmp.lt.s32.totalorder %s728_s4, %s5578_s0 }
  0xd8   : > { %p5575_p3 = pnand %p5573_p9, %p6384_p11  ;;  %p5581_p2 = scmp.lt.s32.totalorder %s5579_s8, %s5572_s22 }
  0xda   : > { %p5576_p0 = pneg %p5575_p3  ;;  %p5582_p10 = por %p5581_p2, %p5580_p13 }
  0xdc   : > { %p5583_p7 = pnand %p5582_p10, %p5576_p0 }
  0xde   : > { %5586 = shalt.err (!%p5583_p7)
}
  0xdf   : > { %p7595_p8 = scmp.ne.s32.totalorder %s7577_s24, 0  ;;  %s7596_s12 = sld [smem:[#allocation74_spill]] }
  0xe0   : > { %s754_s0 = scalar_lea.vmem [#allocation23], %s6306_s2  ;;  %s7520_s19 = scalar_lea.sflag [#allocation24], %s6347_s27 }
  0xe1   : > { %5125 = dma.hbm_to_vmem [thread:$0]  (!%p7595_p8), %s6498_s15, 16, %s728_s4, %s7519_s3  }
  0xe2   : > { %s761_s29 = sshll.u32 %s754_s0, 4  ;;  %s762_s29 = int_to_ptr.vmem [resolvable:$true] %s761_s29 }
  0xe5   : > { %s6525_s6 = scalar_lea.hbm %s7596_s12, %s6355_s30  ;;  %s5592_s4 = scalar_lea.hbm %s7596_s12, 32 }
  0xe6   : > { %s5587_s21 = scalar_lea.hbm %s6525_s6, 16  ;;  %p5593_p5 = scmp.lt.u32.totalorder %s6525_s6, %s7596_s12 }
  0xe7   : > { %p5588_p10 = scmp.ne.s32.totalorder %s6525_s6, %s5587_s21  ;;  %p5594_p6 = scmp.lt.u32.totalorder %s5592_s4, %s5587_s21 }
  0xe8   : > { %p5596_p9 = scmp.lt.u32.totalorder %s5587_s21, %s6525_s6 }
  0xe9   : > { %p5590_p4 = pnand %p5588_p10, %p6384_p11  ;;  %p5595_p1 = por %p5594_p6, %p5593_p5 }
  0xeb   : > { %p5591_p12 = pneg %p5590_p4  ;;  %p5597_p3 = por %p5596_p9, %p5595_p1 }
  0xed   : > { %p5598_p0 = pnand %p5597_p3, %p5591_p12 }
  0xef   : > { %5601 = shalt.err (!%p5598_p0)
}
  0xf0   : > { %s5602_s18 = scalar_lea.vmem %s762_s29, 16  ;;  %s6079_s0 = smov [#allocation23]  }
  0xf1   : > { %p5603_p13 = scmp.ne.s32.totalorder %s762_s29, %s5602_s18  ;;  %s5607_s3 = sshll.u32 %s6079_s0, 4  ;;  %s5608_s3 = int_to_ptr.vmem [resolvable:$false] %s5607_s3 }
  0xf2   : > { %s5609_s22 = scalar_lea.vmem %s5608_s3, 32  ;;  %p5610_p10 = scmp.lt.s32.totalorder %s762_s29, %s5608_s3 }
  0xf3   : > { %p5605_p2 = pnand %p5603_p13, %p6384_p11  ;;  %p5611_p4 = scmp.lt.s32.totalorder %s5609_s22, %s5602_s18 }
  0xf5   : > { %p5606_p7 = pneg %p5605_p2  ;;  %p5612_p8 = por %p5611_p4, %p5610_p10 }
  0xf7   : > { %p5613_p5 = pnand %p5612_p8, %p5606_p7 }
  0xf9   : > { %5616 = shalt.err (!%p5613_p5)
}
  0xfa   : > { %p7597_p6 = scmp.ne.s32.totalorder %s7577_s24, 0  ;;  %s7598_s14 = sld [smem:[#allocation76_spill]] }
  0xfb   : > { %s792_s3 = scalar_lea.vmem [#allocation26], %s6306_s2  ;;  %s7523_s25 = scalar_lea.sflag [#allocation27], %s6347_s27 }
  0xfc   : > { %5131 = dma.hbm_to_vmem [thread:$0]  (!%p7597_p6), %s6525_s6, 16, %s762_s29, %s7520_s19  }
  0xfd   : > { %s799_s8 = sshll.u32 %s792_s3, 4  ;;  %s800_s8 = int_to_ptr.vmem [resolvable:$true] %s799_s8 }
 0x100   : > { %s6552_s4 = scalar_lea.hbm %s7598_s14, %s6355_s30  ;;  %s5622_s29 = scalar_lea.hbm %s7598_s14, 32 }
 0x101   : > { %s5617_s18 = scalar_lea.hbm %s6552_s4, 16  ;;  %p5623_p9 = scmp.lt.u32.totalorder %s6552_s4, %s7598_s14 }
 0x102   : > { %p5618_p8 = scmp.ne.s32.totalorder %s6552_s4, %s5617_s18  ;;  %p5624_p3 = scmp.lt.u32.totalorder %s5622_s29, %s5617_s18 }
 0x103   : > { %p5626_p13 = scmp.lt.u32.totalorder %s5617_s18, %s6552_s4 }
 0x104   : > { %p5620_p12 = pnand %p5618_p8, %p6384_p11  ;;  %p5625_p0 = por %p5624_p3, %p5623_p9 }
 0x106   : > { %p5621_p1 = pneg %p5620_p12  ;;  %p5627_p2 = por %p5626_p13, %p5625_p0 }
 0x108   : > { %p5628_p7 = pnand %p5627_p2, %p5621_p1 }
 0x10a   : > { %5631 = shalt.err (!%p5628_p7)
}
 0x10b   : > { %s5632_s15 = scalar_lea.vmem %s800_s8, 16  ;;  %s6080_s3 = smov [#allocation26]  }
 0x10c   : > { %p5633_p10 = scmp.ne.s32.totalorder %s800_s8, %s5632_s15  ;;  %s5637_s19 = sshll.u32 %s6080_s3, 4  ;;  %s5638_s19 = int_to_ptr.vmem [resolvable:$false] %s5637_s19 }
 0x10d   : > { %s5639_s0 = scalar_lea.vmem %s5638_s19, 32  ;;  %p5640_p8 = scmp.lt.s32.totalorder %s800_s8, %s5638_s19 }
 0x10e   : > { %p5635_p4 = pnand %p5633_p10, %p6384_p11  ;;  %p5641_p12 = scmp.lt.s32.totalorder %s5639_s0, %s5632_s15 }
 0x110   : > { %p5636_p5 = pneg %p5635_p4  ;;  %p5642_p6 = por %p5641_p12, %p5640_p8 }
 0x112   : > { %p5643_p3 = pnand %p5642_p6, %p5636_p5 }
 0x114   : > { %5646 = shalt.err (!%p5643_p3)
}
 0x115   : > { %p7599_p9 = scmp.ne.s32.totalorder %s7577_s24, 0  ;;  %s6081_s18 = smov [#allocation5]  }
 0x116   : > { %s557_s6 = sshll.u32 %s6081_s18, 4  ;;  %s7600_s21 = sld [smem:[#allocation63_spill]]  ;;  %s558_s6 = int_to_ptr.vmem [resolvable:$true] %s557_s6 }
 0x117   : > { %5137 = dma.hbm_to_vmem [thread:$0]  (!%p7599_p9), %s6552_s4, 16, %s800_s8, %s7523_s25  }
 0x118   : > { %p7602_p6 = scmp.ne.s32.totalorder %s7579_s28, 0 }
 0x11c   : > { %s7601_s23 = smov %s7600_s21  ;;  %s5647_s3 = scalar_lea.hbm %s7600_s21, 1024 }
 0x11d   : > { %p5648_p1 = scmp.ne.s32.totalorder %s7601_s23, %s5647_s3  ;;  %p5654_p2 = scmp.lt.u32.totalorder %s5647_s3, %s7601_s23 }
 0x11f   : > { %p5650_p0 = pnand %p5648_p1, %p7602_p6 }
 0x121   : > { %p5651_p13 = pneg %p5650_p0 }
 0x123   : > { %p5656_p7 = pnand %p5654_p2, %p5651_p13 }
 0x125   : > { %5659 = shalt.err (!%p5656_p7)
}
 0x126   : > { %s5660_s4 = scalar_lea.vmem %s558_s6, 1024  ;;  %p5668_p8 = scmp.lt.s32.totalorder %s558_s6, %s558_s6 }
 0x127   : > { %p5661_p10 = scmp.ne.s32.totalorder %s558_s6, %s5660_s4  ;;  %p5669_p12 = scmp.lt.s32.totalorder %s5660_s4, %s5660_s4 }
 0x129   : > { %p5663_p4 = pnand %p5661_p10, %p7602_p6  ;;  %p5670_p3 = por %p5669_p12, %p5668_p8 }
 0x12b   : > { %p5664_p5 = pneg %p5663_p4 }
 0x12d   : > { %p5671_p9 = pnand %p5670_p3, %p5664_p5 }
 0x12f   : > { %5674 = shalt.err (!%p5671_p9)
}
 0x130   : > { %s6082_s10 = smov 128   ;;  %s6083_s8 = smov 8  }
 0x131   : > { %p7603_p1 = scmp.ne.s32.totalorder %s7576_s13, 0  ;;  %s6084_s22 = smov [#allocation10]  }
 0x132   : > { %s582_s21 = sshll.u32 %s6084_s22, 4  ;;  %s7604_s5 = sld [smem:[#allocation67_spill]]  ;;  %s583_s21 = int_to_ptr.vmem [resolvable:$true] %s582_s21 }
 0x133   : > { %5097 = dma.hbm_to_vmem [thread:$0]  (!%p7603_p1), %s7601_s23, 1024, %s558_s6, [#allocation6], %s6082_s10, %s6082_s10, %s6083_s8  }
 0x134   : > { %s619_s0 = scalar_lea.vmem [#allocation13], %s6306_s2  ;;  %s7605_s14 = sld [smem:[#allocation65_spill]] }
 0x135   : > { %s626_s4 = sshll.u32 %s619_s0, 4  ;;  %s627_s4 = int_to_ptr.vmem [resolvable:$true] %s626_s4 }
 0x138   : > { %s6597_s15 = scalar_lea.hbm %s7604_s5, %s6355_s30 }
 0x13a   : > { %s5675_s26 = scalar_lea.hbm %s7605_s14, 128 }
 0x13b   : > { %p5676_p9 = scmp.ne.s32.totalorder %s7605_s14, %s5675_s26  ;;  %p5682_p2 = scmp.lt.u32.totalorder %s5675_s26, %s7605_s14 }
 0x13d   : > { %p5678_p0 = pnand %p5676_p9, %p7602_p6 }
 0x13f   : > { %p5679_p13 = pneg %p5678_p0 }
 0x141   : > { %p5684_p7 = pnand %p5682_p2, %p5679_p13 }
 0x143   : > { %5687 = shalt.err (!%p5684_p7)
}
 0x144   : > { %s5688_s8 = scalar_lea.vmem %s583_s21, 128  ;;  %p5696_p8 = scmp.lt.s32.totalorder %s583_s21, %s583_s21 }
 0x145   : > { %p5689_p10 = scmp.ne.s32.totalorder %s583_s21, %s5688_s8  ;;  %p5697_p12 = scmp.lt.s32.totalorder %s5688_s8, %s5688_s8 }
 0x147   : > { %p5691_p4 = pnand %p5689_p10, %p7602_p6  ;;  %p5698_p3 = por %p5697_p12, %p5696_p8 }
 0x149   : > { %p5692_p5 = pneg %p5691_p4 }
 0x14b   : > { %p5699_p11 = pnand %p5698_p3, %p5692_p5 }
 0x14d   : > { %5702 = shalt.err (!%p5699_p11)
}
 0x14e   : > { %5103 = dma.hbm_to_vmem [thread:$0]  (!%p7603_p1), %s7605_s14, 128, %s583_s21, [#allocation9]  }
 0x14f   : > { %s5703_s26 = scalar_lea.hbm %s6597_s15, 16  ;;  %p7606_p9 = scmp.ne.s32.totalorder %s7587_s17, 0 }
 0x150   : > { %p5704_p6 = scmp.ne.s32.totalorder %s6597_s15, %s5703_s26  ;;  %s5708_s25 = scalar_lea.hbm %s7604_s5, 32 }
 0x151   : > { %p5709_p11 = scmp.lt.u32.totalorder %s6597_s15, %s7604_s5  ;;  %p5710_p2 = scmp.lt.u32.totalorder %s5708_s25, %s5703_s26 }
 0x152   : > { %p5706_p0 = pnand %p5704_p6, %p7606_p9  ;;  %p5712_p10 = scmp.lt.u32.totalorder %s5703_s26, %s6597_s15 }
 0x153   : > { %p5711_p7 = por %p5710_p2, %p5709_p11 }
 0x154   : > { %p5707_p13 = pneg %p5706_p0 }
 0x155   : > { %p5713_p4 = por %p5712_p10, %p5711_p7 }
 0x157   : > { %p5714_p5 = pnand %p5713_p4, %p5707_p13 }
 0x159   : > { %5717 = shalt.err (!%p5714_p5)
}
 0x15a   : > { %s5718_s29 = scalar_lea.vmem %s627_s4, 16  ;;  %s6085_s22 = smov [#allocation13]  }
 0x15b   : > { %p5719_p1 = scmp.ne.s32.totalorder %s627_s4, %s5718_s29  ;;  %s5723_s21 = sshll.u32 %s6085_s22, 4  ;;  %s5724_s21 = int_to_ptr.vmem [resolvable:$false] %s5723_s21 }
 0x15c   : > { %s5725_s3 = scalar_lea.vmem %s5724_s21, 32  ;;  %p5726_p3 = scmp.lt.s32.totalorder %s627_s4, %s5724_s21 }
 0x15d   : > { %p5721_p8 = pnand %p5719_p1, %p7606_p9  ;;  %p5727_p6 = scmp.lt.s32.totalorder %s5725_s3, %s5718_s29 }
 0x15f   : > { %p5722_p12 = pneg %p5721_p8  ;;  %p5728_p0 = por %p5727_p6, %p5726_p3 }
 0x161   : > { %p5729_p2 = pnand %p5728_p0, %p5722_p12 }
 0x163   : > { %5732 = shalt.err (!%p5729_p2)
}
 0x164   : > { %p7607_p11 = scmp.ne.s32.totalorder %s7577_s24, 0  ;;  %s7608_s19 = scalar_lea.sflag [#allocation12], %s6347_s27 }
 0x165   : > { %s7609_s7 = sld [smem:[#allocation69_spill]]  ;;  %s658_s8 = scalar_lea.vmem [#allocation16], %s6417_s1 }
 0x166   : > { %5110 = dma.hbm_to_vmem [thread:$0]  (!%p7607_p11), %s6597_s15, 16, %s627_s4, %s7608_s19  }
 0x167   : > { %s665_s11 = sshll.u32 %s658_s8, 4  ;;  %s6644_s11 = int_to_ptr.vmem [resolvable:$true] %s665_s11 }
 0x16b   : > { %s6641_s10 = scalar_lea.hbm %s7609_s7, %s6420_s16  ;;  %s5738_s4 = scalar_lea.hbm %s7609_s7, 8192 }
 0x16c   : > { %s5733_s12 = scalar_lea.hbm %s6641_s10, 4096  ;;  %p5739_p4 = scmp.lt.u32.totalorder %s6641_s10, %s7609_s7 }
 0x16d   : > { %p5734_p13 = scmp.ne.s32.totalorder %s6641_s10, %s5733_s12  ;;  %p5740_p5 = scmp.lt.u32.totalorder %s5738_s4, %s5733_s12 }
 0x16e   : > { %p5742_p8 = scmp.lt.u32.totalorder %s5733_s12, %s6641_s10 }
 0x16f   : > { %p5736_p7 = pnand %p5734_p13, %p7606_p9  ;;  %p5741_p1 = por %p5740_p5, %p5739_p4 }
 0x171   : > { %p5737_p10 = pneg %p5736_p7  ;;  %p5743_p12 = por %p5742_p8, %p5741_p1 }
 0x173   : > { %p5744_p3 = pnand %p5743_p12, %p5737_p10 }
 0x175   : > { %5747 = shalt.err (!%p5744_p3)
}
 0x176   : > { %s5748_s25 = scalar_lea.vmem %s6644_s11, 4096  ;;  %s6086_s13 = smov [#allocation16]  }
 0x177   : > { %p5749_p6 = scmp.ne.s32.totalorder %s6644_s11, %s5748_s25  ;;  %s5753_s18 = sshll.u32 %s6086_s13, 4  ;;  %s5754_s18 = int_to_ptr.vmem [resolvable:$false] %s5753_s18 }
 0x178   : > { %s5755_s29 = scalar_lea.vmem %s5754_s18, 8192  ;;  %p5756_p13 = scmp.lt.s32.totalorder %s6644_s11, %s5754_s18 }
 0x179   : > { %p5751_p0 = pnand %p5749_p6, %p7606_p9  ;;  %p5757_p7 = scmp.lt.s32.totalorder %s5755_s29, %s5748_s25 }
 0x17b   : > { %p5752_p2 = pneg %p5751_p0  ;;  %p5758_p4 = por %p5757_p7, %p5756_p13 }
 0x17d   : > { %p5759_p5 = pnand %p5758_p4, %p5752_p2 }
 0x17f   : > { %5762 = shalt.err (!%p5759_p5)
}
 0x180   : > { %s7610_s22 = smov 4   ;;  %s7611_s21 = smov 64  }
 0x181   : > { %s7612_s3 = scalar_lea.sflag [#allocation15], %s6347_s27  ;;  %s7613_s9 = sld [smem:[#allocation71_spill]] }
 0x182   : > { %5116 = dma.hbm_to_vmem [thread:$0]  (!%p7607_p11), %s6641_s10, 4096, %s6644_s11, %s7612_s3, %s7611_s21, %s7611_s21, %s7610_s22  }
 0x183   : > { %s700_s8 = scalar_lea.vmem [#allocation19], %s6417_s1 }
 0x184   : > { %s707_s12 = sshll.u32 %s700_s8, 4  ;;  %s6679_s12 = int_to_ptr.vmem [resolvable:$true] %s707_s12 }
 0x187   : > { %s6676_s6 = scalar_lea.hbm %s7613_s9, %s6420_s16  ;;  %s5768_s11 = scalar_lea.hbm %s7613_s9, 8192 }
 0x188   : > { %s5763_s26 = scalar_lea.hbm %s6676_s6, 4096  ;;  %p5769_p12 = scmp.lt.u32.totalorder %s6676_s6, %s7613_s9 }
 0x189   : > { %p5764_p10 = scmp.ne.s32.totalorder %s6676_s6, %s5763_s26  ;;  %p5770_p3 = scmp.lt.u32.totalorder %s5768_s11, %s5763_s26 }
 0x18a   : > { %p5772_p0 = scmp.lt.u32.totalorder %s5763_s26, %s6676_s6 }
 0x18b   : > { %p5766_p1 = pnand %p5764_p10, %p7606_p9  ;;  %p5771_p6 = por %p5770_p3, %p5769_p12 }
 0x18d   : > { %p5767_p8 = pneg %p5766_p1  ;;  %p5773_p2 = por %p5772_p0, %p5771_p6 }
 0x18f   : > { %p5774_p13 = pnand %p5773_p2, %p5767_p8 }
 0x191   : > { %5777 = shalt.err (!%p5774_p13)
}
 0x192   : > { %s5778_s1 = scalar_lea.vmem %s6679_s12, 4096  ;;  %s6087_s28 = smov [#allocation19]  }
 0x193   : > { %p5779_p7 = scmp.ne.s32.totalorder %s6679_s12, %s5778_s1  ;;  %s5783_s20 = sshll.u32 %s6087_s28, 4  ;;  %s5784_s20 = int_to_ptr.vmem [resolvable:$false] %s5783_s20 }
 0x194   : > { %s5785_s25 = scalar_lea.vmem %s5784_s20, 8192  ;;  %p5786_p10 = scmp.lt.s32.totalorder %s6679_s12, %s5784_s20 }
 0x195   : > { %p5781_p4 = pnand %p5779_p7, %p7606_p9  ;;  %p5787_p1 = scmp.lt.s32.totalorder %s5785_s25, %s5778_s1 }
 0x197   : > { %p5782_p5 = pneg %p5781_p4  ;;  %p5788_p12 = por %p5787_p1, %p5786_p10 }
 0x199   : > { %p5789_p3 = pnand %p5788_p12, %p5782_p5 }
 0x19b   : > { %5792 = shalt.err (!%p5789_p3)
}
 0x19c   : > { %s7614_s13 = scalar_lea.sflag [#allocation18], %s6347_s27  ;;  %s7615_s3 = sld [smem:[#allocation73_spill]] }
 0x19d   : > { %5122 = dma.hbm_to_vmem [thread:$0]  (!%p7607_p11), %s6676_s6, 4096, %s6679_s12, %s7614_s13, %s7611_s21, %s7611_s21, %s7610_s22  }
 0x19e   : > { %s737_s8 = scalar_lea.vmem [#allocation22], %s6306_s2  ;;  %s4051_s15 = sshll.u32 %s6306_s2, 6 }
 0x19f   : > { %s744_s26 = sshll.u32 %s737_s8, 4  ;;  %s745_s26 = int_to_ptr.vmem [resolvable:$true] %s744_s26 }
 0x1a2   : > { %s7616_s19 = smov %s7615_s3  ;;  %s6711_s0 = scalar_lea.hbm %s7615_s3, %s6355_s30 }
 0x1a3   : > { %s5793_s10 = scalar_lea.hbm %s6711_s0, 16  ;;  %s5798_s12 = scalar_lea.hbm %s7616_s19, 32 }
 0x1a4   : > { %p5794_p8 = scmp.ne.s32.totalorder %s6711_s0, %s5793_s10  ;;  %p5799_p2 = scmp.lt.u32.totalorder %s6711_s0, %s7616_s19 }
 0x1a5   : > { %p5800_p13 = scmp.lt.u32.totalorder %s5798_s12, %s5793_s10  ;;  %p5802_p4 = scmp.lt.u32.totalorder %s5793_s10, %s6711_s0 }
 0x1a6   : > { %p5796_p6 = pnand %p5794_p8, %p7606_p9 }
 0x1a7   : > { %p5801_p7 = por %p5800_p13, %p5799_p2 }
 0x1a8   : > { %p5797_p0 = pneg %p5796_p6 }
 0x1a9   : > { %p5803_p5 = por %p5802_p4, %p5801_p7 }
 0x1ab   : > { %p5804_p10 = pnand %p5803_p5, %p5797_p0 }
 0x1ad   : > { %5807 = shalt.err (!%p5804_p10)
}
 0x1ae   : > { %s5808_s1 = scalar_lea.vmem %s745_s26, 16  ;;  %s6088_s28 = smov [#allocation22]  }
 0x1af   : > { %p5809_p1 = scmp.ne.s32.totalorder %s745_s26, %s5808_s1  ;;  %s5813_s20 = sshll.u32 %s6088_s28, 4  ;;  %s5814_s20 = int_to_ptr.vmem [resolvable:$false] %s5813_s20 }
 0x1b0   : > { %s5815_s25 = scalar_lea.vmem %s5814_s20, 32  ;;  %p5816_p8 = scmp.lt.s32.totalorder %s745_s26, %s5814_s20 }
 0x1b1   : > { %p5811_p12 = pnand %p5809_p1, %p7606_p9  ;;  %p5817_p6 = scmp.lt.s32.totalorder %s5815_s25, %s5808_s1 }
 0x1b3   : > { %p5812_p3 = pneg %p5811_p12  ;;  %p5818_p11 = por %p5817_p6, %p5816_p8 }
 0x1b5   : > { %p5819_p2 = pnand %p5818_p11, %p5812_p3 }
 0x1b7   : > { %5822 = shalt.err (!%p5819_p2)
}
 0x1b8   : > { %p7617_p13 = scmp.ne.s32.totalorder %s7577_s24, 0  ;;  %s7618_s13 = scalar_lea.sflag [#allocation21], %s6347_s27 }
 0x1b9   : > { %s7619_s18 = sld [smem:[#allocation50_spill]]  ;;  %s7620_s10 = sld [smem:[#allocation75_spill]] }
 0x1ba   : > { %5128 = dma.hbm_to_vmem [thread:$0]  (!%p7617_p13), %s6711_s0, 16, %s745_s26, %s7618_s13  }
 0x1bb   : > { %s772_s6 = scalar_lea.vmem [#allocation25], %s4051_s15 }
 0x1bc   : > { %s779_s12 = sshll.u32 %s772_s6, 4  ;;  %s6744_s12 = int_to_ptr.vmem [resolvable:$true] %s779_s12 }
 0x1bf   : > { %s4437_s29 = sshll.u32 %s7619_s18, 10  ;;  %s5828_s16 = scalar_lea.hbm %s7620_s10, 2048 }
 0x1c0   : > { %s6740_s11 = scalar_lea.hbm %s7620_s10, %s4437_s29 }
 0x1c1   : > { %s5823_s4 = scalar_lea.hbm %s6740_s11, 1024  ;;  %p5829_p4 = scmp.lt.u32.totalorder %s6740_s11, %s7620_s10 }
 0x1c2   : > { %p5824_p11 = scmp.ne.s32.totalorder %s6740_s11, %s5823_s4  ;;  %p5830_p5 = scmp.lt.u32.totalorder %s5828_s16, %s5823_s4 }
 0x1c3   : > { %p5832_p1 = scmp.lt.u32.totalorder %s5823_s4, %s6740_s11 }
 0x1c4   : > { %p5826_p0 = pnand %p5824_p11, %p7606_p9  ;;  %p5831_p10 = por %p5830_p5, %p5829_p4 }
 0x1c6   : > { %p5827_p7 = pneg %p5826_p0  ;;  %p5833_p12 = por %p5832_p1, %p5831_p10 }
 0x1c8   : > { %p5834_p3 = pnand %p5833_p12, %p5827_p7 }
 0x1ca   : > { %5837 = shalt.err (!%p5834_p3)
}
 0x1cb   : > { %s5838_s20 = scalar_lea.vmem %s6744_s12, 1024  ;;  %s6089_s25 = smov [#allocation25]  }
 0x1cc   : > { %p5839_p8 = scmp.ne.s32.totalorder %s6744_s12, %s5838_s20  ;;  %s5843_s13 = sshll.u32 %s6089_s25, 4  ;;  %s5844_s13 = int_to_ptr.vmem [resolvable:$false] %s5843_s13 }
 0x1cd   : > { %s5845_s3 = scalar_lea.vmem %s5844_s13, 2048  ;;  %p5846_p11 = scmp.lt.s32.totalorder %s6744_s12, %s5844_s13 }
 0x1ce   : > { %p5841_p6 = pnand %p5839_p8, %p7606_p9  ;;  %p5847_p0 = scmp.lt.s32.totalorder %s5845_s3, %s5838_s20 }
 0x1d0   : > { %p5842_p2 = pneg %p5841_p6  ;;  %p5848_p4 = por %p5847_p0, %p5846_p11 }
 0x1d2   : > { %p5849_p5 = pnand %p5848_p4, %p5842_p2 }
 0x1d4   : > { %5852 = shalt.err (!%p5849_p5)
}
 0x1d5   : > { %s7621_s8 = scalar_lea.sflag [#allocation24], %s6347_s27  ;;  %s7622_s0 = sld [smem:[#allocation77_spill]] }
 0x1d6   : > { %5134 = dma.hbm_to_vmem [thread:$0]  (!%p7617_p13), %s6740_s11, 1024, %s6744_s12, %s7621_s8, %s7611_s21, %s7611_s21, %s7610_s22  }
 0x1d7   : > { %s810_s1 = scalar_lea.vmem [#allocation28], %s4051_s15 }
 0x1d8   : > { %s817_s28 = sshll.u32 %s810_s1, 4  ;;  %s6781_s28 = int_to_ptr.vmem [resolvable:$true] %s817_s28 }
 0x1db   : > { %s7623_s16 = smov %s7622_s0  ;;  %s6777_s26 = scalar_lea.hbm %s7622_s0, %s4437_s29 }
 0x1dc   : > { %s5853_s20 = scalar_lea.hbm %s6777_s26, 1024  ;;  %s5858_s12 = scalar_lea.hbm %s7623_s16, 2048 }
 0x1dd   : > { %p5854_p7 = scmp.ne.s32.totalorder %s6777_s26, %s5853_s20  ;;  %p5859_p12 = scmp.lt.u32.totalorder %s6777_s26, %s7623_s16 }
 0x1de   : > { %p5860_p3 = scmp.lt.u32.totalorder %s5858_s12, %s5853_s20  ;;  %p5862_p6 = scmp.lt.u32.totalorder %s5853_s20, %s6777_s26 }
 0x1df   : > { %p5856_p10 = pnand %p5854_p7, %p7606_p9 }
 0x1e0   : > { %p5861_p8 = por %p5860_p3, %p5859_p12 }
 0x1e1   : > { %p5857_p1 = pneg %p5856_p10 }
 0x1e2   : > { %p5863_p2 = por %p5862_p6, %p5861_p8 }
 0x1e4   : > { %p5864_p11 = pnand %p5863_p2, %p5857_p1 }
 0x1e6   : > { %5867 = shalt.err (!%p5864_p11)
}
 0x1e7   : > { %s5868_s15 = scalar_lea.vmem %s6781_s28, 1024  ;;  %s6090_s13 = smov [#allocation28]  }
 0x1e8   : > { %p5869_p0 = scmp.ne.s32.totalorder %s6781_s28, %s5868_s15  ;;  %s5873_s3 = sshll.u32 %s6090_s13, 4  ;;  %s5874_s3 = int_to_ptr.vmem [resolvable:$false] %s5873_s3 }
 0x1e9   : > { %s5875_s8 = scalar_lea.vmem %s5874_s3, 2048  ;;  %p5876_p7 = scmp.lt.s32.totalorder %s6781_s28, %s5874_s3 }
 0x1ea   : > { %p5871_p4 = pnand %p5869_p0, %p7606_p9  ;;  %p5877_p10 = scmp.lt.s32.totalorder %s5875_s8, %s5868_s15 }
 0x1ec   : > { %p5872_p5 = pneg %p5871_p4  ;;  %p5878_p12 = por %p5877_p10, %p5876_p7 }
 0x1ee   : > { %p5879_p3 = pnand %p5878_p12, %p5872_p5 }
 0x1f0   : > { %5882 = shalt.err (!%p5879_p3)
}
 0x1f1   : > { %s7624_s6 = scalar_lea.sflag [#allocation27], %s6347_s27  ;;  %s7625_s1 = sld [smem:[#allocation78_spill]] }
 0x1f2   : > { %5140 = dma.hbm_to_vmem [thread:$0]  (!%p7617_p13), %s6777_s26, 1024, %s6781_s28, %s7624_s6, %s7611_s21, %s7611_s21, %s7610_s22  }
 0x1f3   : > { %s830_s11 = scalar_lea.vmem [#allocation29], %s6306_s2  ;;  %s828_s27 = scalar_lea.sflag [#allocation30], %s6306_s2 }
 0x1f4   : > { %s837_s12 = sshll.u32 %s830_s11, 4  ;;  %s838_s12 = int_to_ptr.vmem [resolvable:$true] %s837_s12 }
 0x1f7   : > { %s7626_s18 = smov %s7625_s1  ;;  %s6813_s20 = scalar_lea.hbm %s7625_s1, %s6355_s30 }
 0x1f8   : > { %s5883_s29 = scalar_lea.hbm %s6813_s20, 16  ;;  %s5888_s21 = scalar_lea.hbm %s7626_s18, 32 }
 0x1f9   : > { %p5884_p1 = scmp.ne.s32.totalorder %s6813_s20, %s5883_s29  ;;  %p5889_p2 = scmp.lt.u32.totalorder %s6813_s20, %s7626_s18 }
 0x1fa   : > { %p5890_p11 = scmp.lt.u32.totalorder %s5888_s21, %s5883_s29  ;;  %p5892_p4 = scmp.lt.u32.totalorder %s5883_s29, %s6813_s20 }
 0x1fb   : > { %p5886_p8 = pnand %p5884_p1, %p7606_p9 }
 0x1fc   : > { %p5891_p0 = por %p5890_p11, %p5889_p2 }
 0x1fd   : > { %p5887_p6 = pneg %p5886_p8 }
 0x1fe   : > { %p5893_p5 = por %p5892_p4, %p5891_p0 }
 0x200   : > { %p5894_p7 = pnand %p5893_p5, %p5887_p6 }
 0x202   : > { %5897 = shalt.err (!%p5894_p7)
}
 0x203   : > { %s5898_s2 = scalar_lea.vmem %s838_s12, 16  ;;  %s6091_s28 = smov [#allocation29]  }
 0x204   : > { %p5899_p10 = scmp.ne.s32.totalorder %s838_s12, %s5898_s2  ;;  %s5903_s15 = sshll.u32 %s6091_s28, 4  ;;  %s5904_s15 = int_to_ptr.vmem [resolvable:$false] %s5903_s15 }
 0x205   : > { %s5905_s13 = scalar_lea.vmem %s5904_s15, 32  ;;  %p5906_p1 = scmp.lt.s32.totalorder %s838_s12, %s5904_s15 }
 0x206   : > { %p5901_p12 = pnand %p5899_p10, %p7606_p9  ;;  %p5907_p8 = scmp.lt.s32.totalorder %s5905_s13, %s5898_s2 }
 0x208   : > { %p5902_p3 = pneg %p5901_p12  ;;  %p5908_p13 = por %p5907_p8, %p5906_p1 }
 0x20a   : > { %p5909_p2 = pnand %p5908_p13, %p5902_p3 }
 0x20c   : > { %5912 = shalt.err (!%p5909_p2)
}
 0x20d   : > { %p7627_p11 = scmp.ne.s32.totalorder %s7577_s24, 0  ;;  %s7628_s3 = sld [smem:[#allocation57_spill]] }
 0x20f   : > { %5143 = dma.hbm_to_vmem [thread:$0]  (!%p7627_p11), %s6813_s20, 16, %s838_s12, %s828_s27  }
 0x213   : > { %p7629_p6 = scmp.ne.s32.totalorder %s7628_s3, 0 }
 0x214   : > { %s7630_s8 = sld [smem:[#allocation53_spill]] (!%p7629_p6) }
 0x215   : > { %846 = sbr.rel (%p7629_p6) target bundleno = 4714 (0x126a), region = 92 }
 0x21a   : > { %p7631_p0 = scmp.eq.s32.totalorder (!%p7629_p6), %s7630_s8, 0 }
 0x21c   : > { %5988 = dma.done.wait (%p7631_p0), [#allocation6], 1024   ;;  %p7632_p9 = pmov %p7631_p0 }
 0x21d   : > { %p7633_p4 = pmov %p7631_p0 }
 0x21e   : > { %5990 = vsyncadd (%p7632_p9), [#allocation6], 4294966272 }
 0x21f   : > { %5992 = dma.done.wait (%p7633_p4), [#allocation9], 256   ;;  %p7634_p5 = pmov %p7631_p0 }
 0x220   : > { %s7635_s17 = sld [smem:[#allocation46_spill]]  ;;  %s7636_s24 = sld [smem:[#allocation54_spill]] }
 0x221   : > { %5994 = vsyncadd (%p7634_p5), [#allocation9], 4294967040  ;;  %s6845_s6 = sand.u32 1, %s7630_s8  }
 0x222   : > { %s861_s0 = scalar_lea.sflag [#allocation12], %s6845_s6 }
 0x226   : > { %s6848_s4 = sand.u32 1, %s7635_s17   ;;  %p7637_p13 = scmp.ne.s32.totalorder %s7636_s24, 0 }
 0x228   : > { %5996 = dma.done.wait (%p7637_p13), %s861_s0, 32  }
 0x229   : > { %5998 = vsyncadd (%p7637_p13), %s861_s0, 4294967264  ;;  %s4063_s20 = sshll.u32 %s6848_s4, 8  ;;  %s877_s12 = scalar_lea.sflag [#allocation15], %s6845_s6 }
 0x22a   : > { %s6859_s27 = scalar_lea.vmem [#allocation14], %s4063_s20 }
 0x22b   : > { %6000 = dma.done.wait (%p7637_p13), %s877_s12, 8192  }
 0x22c   : > { %6002 = vsyncadd (%p7637_p13), %s877_s12, 4294959104  ;;  %s6865_s29 = scalar_lea.vmem [#allocation16], %s4063_s20  ;;  %s895_s25 = scalar_lea.sflag [#allocation18], %s6845_s6 }
 0x22d   : > { %s6868_s22 = scalar_lea.vmem [#allocation17], %s4063_s20 }
 0x22e   : > { %6004 = dma.done.wait (%p7637_p13), %s895_s25, 8192  }
 0x22f   : > { %6006 = vsyncadd (%p7637_p13), %s895_s25, 4294959104  ;;  %s6874_s21 = scalar_lea.vmem [#allocation19], %s4063_s20  ;;  %s913_s26 = scalar_lea.sflag [#allocation21], %s6845_s6 }
 0x230   : > { %6008 = dma.done.wait (%p7637_p13), %s913_s26, 32  }
 0x231   : > { %6010 = vsyncadd (%p7637_p13), %s913_s26, 4294967264  ;;  %s929_s28 = scalar_lea.sflag [#allocation24], %s6845_s6 }
 0x232   : > { %6012 = dma.done.wait (%p7637_p13), %s929_s28, 1040  }
 0x233   : > { %6014 = vsyncadd (%p7637_p13), %s929_s28, 4294966256  ;;  %s4067_s13 = sshll.u32 %s6848_s4, 6  ;;  %s946_s8 = scalar_lea.sflag [#allocation27], %s6845_s6 }
 0x234   : > { %s6890_s3 = scalar_lea.vmem [#allocation25], %s4067_s13 }
 0x235   : > { %6016 = dma.done.wait (%p7637_p13), %s946_s8, 1040  }
 0x236   : > { %6018 = vsyncadd (%p7637_p13), %s946_s8, 4294966256  ;;  %s6898_s0 = scalar_lea.vmem [#allocation28], %s4067_s13  ;;  %s963_s20 = scalar_lea.sflag [#allocation30], %s6848_s4 }
 0x237   : > { %6020 = dma.done.wait (%p7637_p13), %s963_s20, 16  }
 0x238   : > { %6022 = vsyncadd (%p7637_p13), %s963_s20, 4294967280  ;;  %s7638_s25 = sld [smem:[#allocation44_spill]]  ;;  %s7639_s8 = sld [smem:[#allocation48_spill]] }
 0x23e   : > { %s7532_s6 = sand.u32 1, %s7638_s25   ;;  %p4070_p7 = scmp.ne.s32.totalorder %s7639_s8, 0 }
 0x23f   : > { %s6909_s26 = sshll.u32 %s7532_s6, 3  ;;  %s7640_s13 = sld [smem:[#allocation49_spill]] (!%p4070_p7)  ;;  %vm1130_vm0 = vcmask (!%p4070_p7), 1040384   ;;  %vm1132_vm1 = vcmask (!%p4070_p7), 1041408   ;;  %vm1134_vm2 = vcmask (!%p4070_p7), 1042432   ;;  %vm1136_vm3 = vcmask (!%p4070_p7), 1043456  }
 0x240   : > { %1075 = sbr.rel (%p4070_p7) target bundleno = 604 (0x25c), region = 160  ;;  %vm1138_vm4 = vcmask (!%p4070_p7), 1044480   ;;  %vm1140_vm5 = vcmask (!%p4070_p7), 1045504   ;;  %vm1142_vm6 = vcmask (!%p4070_p7), 1046528   ;;  %v1076_v19 = vld [vmem:[#allocation8] sm:$0xff] (!%p4070_p7) }
 0x245   : > { %s4071_s17 = sshll.u32 (!%p4070_p7), %s7640_s13, 7 }
 0x246   : > { %s1078_s15 = sld [smem:[#allocation4 + %s4071_s17]] (!%p4070_p7)  ;;  %s1081_s12 = sadd.s32 (!%p4070_p7), 1, %s4071_s17 }
 0x247   : > { %s1082_s2 = sld [smem:[#allocation4 + %s1081_s12]]  ;;  %s1085_s30 = sadd.s32 2, %s4071_s17 }
 0x248   : > { %s1086_s11 = sld [smem:[#allocation4 + %s1085_s30]]  ;;  %s1089_s24 = sadd.s32 3, %s4071_s17 }
 0x249   : > { %s1090_s20 = sld [smem:[#allocation4 + %s1089_s24]]  ;;  %s1093_s1 = sadd.s32 4, %s4071_s17 }
 0x24a   : > { %s1094_s5 = sld [smem:[#allocation4 + %s1093_s1]]  ;;  %s1097_s7 = sadd.s32 5, %s4071_s17 }
 0x24b   : > { %s1098_s25 = sld [smem:[#allocation4 + %s1097_s7]]  ;;  %s1101_s6 = sadd.s32 6, %s4071_s17 }
 0x24c   : > { %s1102_s9 = sld [smem:[#allocation4 + %s1101_s6]]  ;;  %s1105_s10 = sadd.s32 7, %s4071_s17 }
 0x24d   : > { %s1079_s28 = scalar_lea.vmem [#allocation5], %s1078_s15  ;;  %s1083_s8 = scalar_lea.vmem [#allocation5], %s1082_s2 }
 0x24e   : > { %v1080_v0 = vld [vmem:[%s1079_s28] sm:$0x1]  ;;  %s1106_s13 = sld [smem:[#allocation4 + %s1105_s10]]  ;;  %s1087_s14 = scalar_lea.vmem [#allocation5], %s1086_s11 }
 0x24f   : > { %v1084_v1 = vld [vmem:[%s1083_s8] sm:$0x1]  ;;  %s1091_s30 = scalar_lea.vmem [#allocation5], %s1090_s20 }
 0x250   : > { %v1088_v2 = vld [vmem:[%s1087_s14] sm:$0x1]  ;;  %v1110_v3 = vrot.slane %v1084_v1, 7  ;;  %s1095_s1 = scalar_lea.vmem [#allocation5], %s1094_s5 }
 0x251   : > { %v1092_v4 = vld [vmem:[%s1091_s30] sm:$0x1]  ;;  %v1113_v5 = vrot.slane %v1088_v2, 6  ;;  %s1099_s7 = scalar_lea.vmem [#allocation5], %s1098_s25 }
 0x252   : > { %v1096_v6 = vld [vmem:[%s1095_s1] sm:$0x1]  ;;  %v1116_v7 = vrot.slane %v1092_v4, 5  ;;  %v1131_v8 = vsel %vm1130_vm0, %v1080_v0, %v1110_v3  ;;  %s1103_s10 = scalar_lea.vmem [#allocation5], %s1102_s9 }
 0x253   : > { %v1100_v9 = vld [vmem:[%s1099_s7] sm:$0x1]  ;;  %v1119_v10 = vrot.slane %v1096_v6, 4  ;;  %v1133_v11 = vsel %vm1132_vm1, %v1131_v8, %v1113_v5 }
 0x254   : > { %v1104_v12 = vld [vmem:[%s1103_s10] sm:$0x1]  ;;  %v1122_v13 = vrot.slane %v1100_v9, 3  ;;  %v1135_v14 = vsel %vm1134_vm2, %v1133_v11, %v1116_v7  ;;  %s1107_s14 = scalar_lea.vmem [#allocation5], %s1106_s13 }
 0x255   : > { %v1125_v15 = vrot.slane %v1104_v12, 2  ;;  %v1137_v16 = vsel %vm1136_vm3, %v1135_v14, %v1119_v10  ;;  %v1108_v17 = vld [vmem:[%s1107_s14] sm:$0x1] }
 0x256   : > { %v1139_v18 = vsel %vm1138_vm4, %v1137_v16, %v1122_v13  ;;  %v1128_v20 = vrot.slane %v1108_v17, 1 }
 0x257   : > { %v1141_v21 = vsel %vm1140_vm5, %v1139_v18, %v1125_v15 }
 0x258   : > { %v1143_v22 = vsel %vm1142_vm6, %v1141_v21, %v1128_v20 }
 0x259   : > { %v1144_v23 = vadd.f32 %v1143_v22, %v1076_v19 }
 0x25b   : > { %1145 = vst [vmem:[#allocation2] sm:$0xff] %v1144_v23 }
 0x25c PF: > { %v6092_v26 = vmov 0.0   ;;  %v5256_v27 = vld [vmem:[%s6859_s27] sm:$0xff]   ;;  %v5258_v29 = vld [vmem:[%s6859_s27 + $0x8] sm:$0xff]   ;;  %v5260_v31 = vld [vmem:[%s6859_s27 + $0x10] sm:$0xff]   ;;  %vm6093_vm7 = vmmov 0   ;;  %s7641_s5 = scalar_lea.vmem [#allocation11], %s6848_s4 }
 0x25d   : > { %4626 = vmatprep.subr.bf16.mxu0 %v6092_v26  ;;  %4646 = vmatprep.subr.bf16.mxu1 %v6092_v26  ;;  %v5257_v28 = vld [vmem:[%s6859_s27 + $0x40] sm:$0xff]   ;;  %v5259_v30 = vld [vmem:[%s6859_s27 + $0x48] sm:$0xff]   ;;  %v5261_v32 = vld [vmem:[%s6859_s27 + $0x50] sm:$0xff]   ;;  %s7642_s9 = scalar_lea.vmem [#allocation13], %s6848_s4  ;;  %vm2496_vm8 = vcmask 1043456   ;;  %vm2479_vm9 = vcmask 64512  }
 0x25e   : > { %4627 = vmatpush3.bf16.msra.mxu0 %v5256_v27  ;;  %4647 = vmatpush3.bf16.msra.mxu1 %v5257_v28  ;;  %v5262_v33 = vld [vmem:[%s6859_s27 + $0x18] sm:$0xff]   ;;  %v5264_v35 = vld [vmem:[%s6859_s27 + $0x20] sm:$0xff]   ;;  %v5266_v37 = vld [vmem:[%s6859_s27 + $0x28] sm:$0xff]   ;;  %s7643_s11 = scalar_lea.vmem [#allocation20], %s6848_s4  ;;  %s7648_s2 = sld [smem:[#allocation48_spill]] }
 0x25f   : > { %4628 = vmatprep.subr.bf16.mxu0 %v6092_v26  ;;  %4648 = vmatprep.subr.bf16.mxu1 %v6092_v26  ;;  %v5263_v34 = vld [vmem:[%s6859_s27 + $0x58] sm:$0xff]   ;;  %v5265_v36 = vld [vmem:[%s6859_s27 + $0x60] sm:$0xff]   ;;  %v5267_v38 = vld [vmem:[%s6859_s27 + $0x68] sm:$0xff]  }
 0x260   : > { %v5268_v39 = vld [vmem:[%s6859_s27 + $0x30] sm:$0xff]   ;;  %v5270_v41 = vld [vmem:[%s6859_s27 + $0x38] sm:$0xff]   ;;  %4642 = vmatprep.mubr.msk.bf16.mxu0 %vm6093_vm7, %v6092_v26  ;;  %4662 = vmatprep.mubr.msk.bf16.mxu1 %vm6093_vm7, %v6092_v26  ;;  %v4072_v52 = vld [vmem:[%s7641_s5] ss:$0 sm:$0xff] }
 0x261   : > { %v5269_v40 = vld [vmem:[%s6859_s27 + $0x70] sm:$0xff]   ;;  %v5271_v42 = vld [vmem:[%s6859_s27 + $0x78] sm:$0xff]   ;;  %v4073_v54 = vld [vmem:[%s7642_s9] ss:$0 sm:$0xff] }
 0x262   : > { %v6915_v24 = vld [vmem:[#allocation2] sm:$0xff]  ;;  %4629 = vmatpush3.bf16.msra.mxu0 %v5258_v29  ;;  %4649 = vmatpush3.bf16.msra.mxu1 %v5259_v30  ;;  %v5276_v62 = vld [vmem:[%s6859_s27 + $0x90] sm:$0xff]   ;;  %v5278_v0 = vld [vmem:[%s6859_s27 + $0x98] sm:$0xff]  }
 0x263   : > { %1150 = vadd.xlane.f32.xlu0 %v6915_v24  ;;  %v1153_v25 = vmul.f32 %v6915_v24, %v6915_v24  ;;  %4630 = vmatprep.subr.bf16.mxu0 %v6092_v26  ;;  %v5272_v57 = vld [vmem:[%s6859_s27 + $0x80] sm:$0xff]   ;;  %v5274_v60 = vld [vmem:[%s6859_s27 + $0x88] sm:$0xff]   ;;  %v5277_v63 = vld [vmem:[%s6859_s27 + $0xd0] sm:$0xff]  }
 0x264   : > { %4650 = vmatprep.subr.bf16.mxu1 %v6092_v26  ;;  %v5273_v58 = vld [vmem:[%s6859_s27 + $0xc0] sm:$0xff]   ;;  %v5275_v61 = vld [vmem:[%s6859_s27 + $0xc8] sm:$0xff]   ;;  %v5279_v1 = vld [vmem:[%s6859_s27 + $0xd8] sm:$0xff]   ;;  %p4419_p10 = scmp.ne.s32.totalorder %s7648_s2, 1 }
 0x265   : > { %v5280_v2 = vld [vmem:[%s6859_s27 + $0xa0] sm:$0xff]   ;;  %v5282_v4 = vld [vmem:[%s6859_s27 + $0xa8] sm:$0xff]   ;;  %v5284_v6 = vld [vmem:[%s6859_s27 + $0xb0] sm:$0xff]   ;;  %s7649_s17 = sld [smem:[#allocation79_spill]] (!%p4419_p10)  ;;  %vm6095_vm10 = vmmov (!%p4419_p10), 0   ;;  %s7650_s9 = sld [smem:[#allocation80_spill]] (!%p4419_p10) }
 0x266   : > { %4631 = vmatpush3.bf16.msra.mxu0 %v5260_v31  ;;  %4651 = vmatpush3.bf16.msra.mxu1 %v5261_v32  ;;  %v5281_v3 = vld [vmem:[%s6859_s27 + $0xe0] sm:$0xff]   ;;  %v5283_v5 = vld [vmem:[%s6859_s27 + $0xe8] sm:$0xff]   ;;  %v5285_v7 = vld [vmem:[%s6859_s27 + $0xf0] sm:$0xff]  }
 0x267   : > { %1154 = vadd.xlane.f32.xlu0 %v1153_v25  ;;  %4632 = vmatprep.subr.bf16.mxu0 %v6092_v26  ;;  %v5286_v8 = vld [vmem:[%s6859_s27 + $0xb8] sm:$0xff]   ;;  %v5288_v10 = vld [vmem:[%s6865_s29] sm:$0xff]   ;;  %v5290_v12 = vld [vmem:[%s6865_s29 + $0x8] sm:$0xff]  }
 0x268   : > { %4652 = vmatprep.subr.bf16.mxu1 %v6092_v26  ;;  %v5287_v9 = vld [vmem:[%s6859_s27 + $0xf8] sm:$0xff]   ;;  %v5289_v11 = vld [vmem:[%s6865_s29 + $0x40] sm:$0xff]   ;;  %v5291_v13 = vld [vmem:[%s6865_s29 + $0x48] sm:$0xff]   ;;  %s7644_s27 = scalar_lea.vmem [#allocation22], %s6848_s4 }
 0x269   : > { %v5292_v14 = vld [vmem:[%s6865_s29 + $0x10] sm:$0xff]   ;;  %v5294_v16 = vld [vmem:[%s6865_s29 + $0x18] sm:$0xff]   ;;  %v5296_v18 = vld [vmem:[%s6865_s29 + $0x20] sm:$0xff]  }
 0x26a   : > { %4633 = vmatpush3.bf16.msra.mxu0 %v5262_v33  ;;  %4653 = vmatpush3.bf16.msra.mxu1 %v5263_v34  ;;  %v5293_v15 = vld [vmem:[%s6865_s29 + $0x50] sm:$0xff]   ;;  %v5295_v17 = vld [vmem:[%s6865_s29 + $0x58] sm:$0xff]   ;;  %v5297_v19 = vld [vmem:[%s6865_s29 + $0x60] sm:$0xff]  }
 0x26b   : > { %4634 = vmatprep.subr.bf16.mxu0 %v6092_v26  ;;  %4654 = vmatprep.subr.bf16.mxu1 %v6092_v26  ;;  %v5298_v20 = vld [vmem:[%s6865_s29 + $0x28] sm:$0xff]   ;;  %v5300_v22 = vld [vmem:[%s6865_s29 + $0x30] sm:$0xff]   ;;  %v5303_v25 = vld [vmem:[%s6865_s29 + $0x78] sm:$0xff]  }
 0x26c   : > { %v5299_v21 = vld [vmem:[%s6865_s29 + $0x68] sm:$0xff]   ;;  %v5301_v23 = vld [vmem:[%s6865_s29 + $0x70] sm:$0xff]   ;;  %v5304_v27 = vld [vmem:[%s6865_s29 + $0x80] sm:$0xff]  }
 0x26d   : > { %v5305_v28 = vld [vmem:[%s6865_s29 + $0xc0] sm:$0xff]   ;;  %v5306_v29 = vld [vmem:[%s6865_s29 + $0x88] sm:$0xff]   ;;  %v5308_v31 = vld [vmem:[%s6865_s29 + $0x90] sm:$0xff]  }
 0x26e   : > { %4635 = vmatpush3.bf16.msra.mxu0 %v5264_v35  ;;  %4655 = vmatpush3.bf16.msra.mxu1 %v5265_v36  ;;  %v5307_v30 = vld [vmem:[%s6865_s29 + $0xc8] sm:$0xff]   ;;  %v5309_v32 = vld [vmem:[%s6865_s29 + $0xd0] sm:$0xff]   ;;  %v5310_v33 = vld [vmem:[%s6865_s29 + $0x98] sm:$0xff]  }
 0x26f   : > { %4636 = vmatprep.subr.bf16.mxu0 %v6092_v26  ;;  %4656 = vmatprep.subr.bf16.mxu1 %v6092_v26  ;;  %v5311_v34 = vld [vmem:[%s6865_s29 + $0xd8] sm:$0xff]   ;;  %v5312_v35 = vld [vmem:[%s6865_s29 + $0xa0] sm:$0xff]  }
 0x270   : > { %v5313_v36 = vld [vmem:[%s6865_s29 + $0xe0] sm:$0xff]  }
 0x272   : > { %4637 = vmatpush3.bf16.msra.mxu0 %v5266_v37  ;;  %4657 = vmatpush3.bf16.msra.mxu1 %v5267_v38  ;;  %v5314_v37 = vld [vmem:[%s6865_s29 + $0xa8] sm:$0xff]  }
 0x273   : > { %4638 = vmatprep.subr.bf16.mxu0 %v6092_v26  ;;  %4658 = vmatprep.subr.bf16.mxu1 %v6092_v26  ;;  %v5315_v38 = vld [vmem:[%s6865_s29 + $0xe8] sm:$0xff]  }
 0x276   : > { %4639 = vmatpush3.bf16.msra.mxu0 %v5268_v39  ;;  %4659 = vmatpush3.bf16.msra.mxu1 %v5269_v40  ;;  %v5316_v39 = vld [vmem:[%s6865_s29 + $0xb0] sm:$0xff]  }
 0x277   : > { %4640 = vmatprep.subr.bf16.mxu0 %v6092_v26  ;;  %4660 = vmatprep.subr.bf16.mxu1 %v6092_v26  ;;  %v5317_v40 = vld [vmem:[%s6865_s29 + $0xf0] sm:$0xff]  }
 0x27a   : > { %4641 = vmatpush3.bf16.msra.mxu0 %v5270_v41  ;;  %4661 = vmatpush3.bf16.msra.mxu1 %v5271_v42  ;;  %v5318_v41 = vld [vmem:[%s6865_s29 + $0xb8] sm:$0xff]  }
 0x27b   : > { %4666 = vmatprep.subr.bf16.mxu0 %v6092_v26  ;;  %4686 = vmatprep.subr.bf16.mxu1 %v6092_v26  ;;  %v5319_v42 = vld [vmem:[%s6865_s29 + $0xf8] sm:$0xff]  }
 0x2f0   : > { %v1151_v43 = vpop.xlane.xlu0 %1150 }
 0x2f1   : > { %v1152_v44 = vmul.f32 0.03125, %v1151_v43  ;;  %v5320_v43 = vld [vmem:[%s6868_s22] sm:$0xff]  }
 0x2f3   : > { %v1157_v46 = vmul.f32 %v1152_v44, %v1152_v44  ;;  %v1159_v50 = vsub.f32 %v6915_v24, %v1152_v44  ;;  %v5302_v24 = vld [vmem:[%s6865_s29 + $0x38] sm:$0xff]   ;;  %v5321_v44 = vld [vmem:[%s6868_s22 + $0x40] sm:$0xff]   ;;  %s7645_s29 = scalar_lea.vmem [#allocation23], %s6848_s4 }
 0x2f4   : > { %v1155_v45 = vpop.xlane.xlu0 %1154 }
 0x2f5   : > { %v1156_v47 = vmul.f32 0.03125, %v1155_v45  ;;  %v5322_v45 = vld [vmem:[%s6868_s22 + $0x8] sm:$0xff]  }
 0x2f7   : > { %v1158_v48 = vsub.f32 %v1156_v47, %v1157_v46  ;;  %v5323_v46 = vld [vmem:[%s6868_s22 + $0x48] sm:$0xff]   ;;  %v5324_v47 = vld [vmem:[%s6868_s22 + $0x10] sm:$0xff]  }
 0x2f9   : > { %v1160_v49 = vadd.f32 1e-05, %v1158_v48  ;;  %v5325_v48 = vld [vmem:[%s6868_s22 + $0x50] sm:$0xff]  }
 0x2fb   : > { %5400 = vrsqrt.f32 %v1160_v49  ;;  %v5326_v49 = vld [vmem:[%s6868_s22 + $0x18] sm:$0xff]  }
 0x305   : > { %v5401_v51 = vpop.eup %5400 }
 0x306   : > { %v1162_v53 = vmul.f32 %v5401_v51, %v1159_v50  ;;  %v5327_v50 = vld [vmem:[%s6868_s22 + $0x58] sm:$0xff]   ;;  %v5328_v51 = vld [vmem:[%s6868_s22 + $0x20] sm:$0xff]  }
 0x308   : > { %v1169_v55 = vmul.f32 %v4072_v52, %v1162_v53  ;;  %v5329_v52 = vld [vmem:[%s6868_s22 + $0x60] sm:$0xff]   ;;  %v5330_v53 = vld [vmem:[%s6868_s22 + $0x28] sm:$0xff]  }
 0x30a   : > { %v1176_v56 = vadd.f32 %v4073_v54, %v1169_v55  ;;  %v5331_v54 = vld [vmem:[%s6868_s22 + $0x68] sm:$0xff]   ;;  %v5332_v55 = vld [vmem:[%s6868_s22 + $0x30] sm:$0xff]  }
 0x30c   : > { %v6965_v59 = vpack.c.bf16 %v1176_v56, %v1176_v56  ;;  %v5333_v56 = vld [vmem:[%s6868_s22 + $0x70] sm:$0xff]  }
 0x30e   : > { %4643 = vmatmul.mubr.bf16.vlgmr.msra.gmra.mrb[0].mxu0 %v6965_v59  ;;  %4663 = vmatmul.mubr.bf16.vlgmr.msra.gmra.mrb[0].mxu1 %v6965_v59 }
 0x30f   : > { %4667 = vmatpush3.bf16.msra.mxu0 %v5272_v57  ;;  %4687 = vmatpush3.bf16.msra.mxu1 %v5273_v58  ;;  %v5334_v57 = vld [vmem:[%s6868_s22 + $0x38] sm:$0xff]  }
 0x310   : > { %4668 = vmatprep.subr.bf16.mxu0 %v6092_v26  ;;  %4688 = vmatprep.subr.bf16.mxu1 %v6092_v26  ;;  %v5335_v58 = vld [vmem:[%s6868_s22 + $0x78] sm:$0xff]  }
 0x311   : > { %4682 = vmatprep.mubr.msk.bf16.mxu0 %vm6093_vm7, %v6092_v26  ;;  %4702 = vmatprep.mubr.msk.bf16.mxu1 %vm6093_vm7, %v6092_v26 }
 0x313   : > { %4669 = vmatpush3.bf16.msra.mxu0 %v5274_v60  ;;  %4689 = vmatpush3.bf16.msra.mxu1 %v5275_v61  ;;  %v5336_v60 = vld [vmem:[%s6868_s22 + $0x80] sm:$0xff]  }
 0x314   : > { %4670 = vmatprep.subr.bf16.mxu0 %v6092_v26  ;;  %4690 = vmatprep.subr.bf16.mxu1 %v6092_v26  ;;  %v5337_v61 = vld [vmem:[%s6868_s22 + $0xc0] sm:$0xff]  }
 0x317   : > { %4671 = vmatpush3.bf16.msra.mxu0 %v5276_v62  ;;  %4691 = vmatpush3.bf16.msra.mxu1 %v5277_v63  ;;  %v5338_v62 = vld [vmem:[%s6868_s22 + $0x88] sm:$0xff]  }
 0x318   : > { %4672 = vmatprep.subr.bf16.mxu0 %v6092_v26  ;;  %4692 = vmatprep.subr.bf16.mxu1 %v6092_v26  ;;  %v5339_v63 = vld [vmem:[%s6868_s22 + $0xc8] sm:$0xff]  }
 0x31b   : > { %4673 = vmatpush3.bf16.msra.mxu0 %v5278_v0  ;;  %4693 = vmatpush3.bf16.msra.mxu1 %v5279_v1  ;;  %v5340_v0 = vld [vmem:[%s6868_s22 + $0x90] sm:$0xff]  }
 0x31c   : > { %4674 = vmatprep.subr.bf16.mxu0 %v6092_v26  ;;  %4694 = vmatprep.subr.bf16.mxu1 %v6092_v26  ;;  %v5341_v1 = vld [vmem:[%s6868_s22 + $0xd0] sm:$0xff]  }
 0x31f   : > { %4675 = vmatpush3.bf16.msra.mxu0 %v5280_v2  ;;  %4695 = vmatpush3.bf16.msra.mxu1 %v5281_v3  ;;  %v5342_v2 = vld [vmem:[%s6868_s22 + $0x98] sm:$0xff]  }
 0x320   : > { %4676 = vmatprep.subr.bf16.mxu0 %v6092_v26  ;;  %4696 = vmatprep.subr.bf16.mxu1 %v6092_v26  ;;  %v5343_v3 = vld [vmem:[%s6868_s22 + $0xd8] sm:$0xff]  }
 0x323   : > { %4677 = vmatpush3.bf16.msra.mxu0 %v5282_v4  ;;  %4697 = vmatpush3.bf16.msra.mxu1 %v5283_v5  ;;  %v5344_v4 = vld [vmem:[%s6868_s22 + $0xa0] sm:$0xff]  }
 0x324   : > { %4678 = vmatprep.subr.bf16.mxu0 %v6092_v26  ;;  %4698 = vmatprep.subr.bf16.mxu1 %v6092_v26  ;;  %v5345_v5 = vld [vmem:[%s6868_s22 + $0xe0] sm:$0xff]  }
 0x327   : > { %4679 = vmatpush3.bf16.msra.mxu0 %v5284_v6  ;;  %4699 = vmatpush3.bf16.msra.mxu1 %v5285_v7  ;;  %v5346_v6 = vld [vmem:[%s6868_s22 + $0xa8] sm:$0xff]  }
 0x328   : > { %4680 = vmatprep.subr.bf16.mxu0 %v6092_v26  ;;  %4700 = vmatprep.subr.bf16.mxu1 %v6092_v26  ;;  %v5347_v7 = vld [vmem:[%s6868_s22 + $0xe8] sm:$0xff]  }
 0x32b   : > { %4681 = vmatpush3.bf16.msra.mxu0 %v5286_v8  ;;  %4701 = vmatpush3.bf16.msra.mxu1 %v5287_v9  ;;  %v5348_v8 = vld [vmem:[%s6868_s22 + $0xb0] sm:$0xff]  }
 0x32c   : > { %4706 = vmatprep.subr.bf16.mxu0 %v6092_v26  ;;  %4726 = vmatprep.subr.bf16.mxu1 %v6092_v26  ;;  %v5349_v9 = vld [vmem:[%s6868_s22 + $0xf0] sm:$0xff]  }
 0x32e   : > { %4683 = vmatmul.mubr.bf16.vlgmr.msra.gmra.mrb[4].mxu0 %v6965_v59  ;;  %4703 = vmatmul.mubr.bf16.vlgmr.msra.gmra.mrb[4].mxu1 %v6965_v59 }
 0x32f   : > { %4707 = vmatpush3.bf16.msra.mxu0 %v5288_v10  ;;  %4727 = vmatpush3.bf16.msra.mxu1 %v5289_v11  ;;  %v5350_v10 = vld [vmem:[%s6868_s22 + $0xb8] sm:$0xff]  }
 0x330   : > { %4708 = vmatprep.subr.bf16.mxu0 %v6092_v26  ;;  %4728 = vmatprep.subr.bf16.mxu1 %v6092_v26  ;;  %v5351_v11 = vld [vmem:[%s6868_s22 + $0xf8] sm:$0xff]   ;;  %s7646_s22 = scalar_lea.vmem [#allocation26], %s6848_s4 }
 0x331   : > { %4722 = vmatprep.mubr.msk.bf16.mxu0 %vm6093_vm7, %v6092_v26  ;;  %4742 = vmatprep.mubr.msk.bf16.mxu1 %vm6093_vm7, %v6092_v26 }
 0x333   : > { %4709 = vmatpush3.bf16.msra.mxu0 %v5290_v12  ;;  %4729 = vmatpush3.bf16.msra.mxu1 %v5291_v13 }
 0x334   : > { %4710 = vmatprep.subr.bf16.mxu0 %v6092_v26  ;;  %4730 = vmatprep.subr.bf16.mxu1 %v6092_v26 }
 0x337   : > { %4711 = vmatpush3.bf16.msra.mxu0 %v5292_v14  ;;  %4731 = vmatpush3.bf16.msra.mxu1 %v5293_v15 }
 0x338   : > { %4712 = vmatprep.subr.bf16.mxu0 %v6092_v26  ;;  %4732 = vmatprep.subr.bf16.mxu1 %v6092_v26 }
 0x33b   : > { %4713 = vmatpush3.bf16.msra.mxu0 %v5294_v16  ;;  %4733 = vmatpush3.bf16.msra.mxu1 %v5295_v17 }
 0x33c   : > { %4714 = vmatprep.subr.bf16.mxu0 %v6092_v26  ;;  %4734 = vmatprep.subr.bf16.mxu1 %v6092_v26 }
 0x33f   : > { %4715 = vmatpush3.bf16.msra.mxu0 %v5296_v18  ;;  %4735 = vmatpush3.bf16.msra.mxu1 %v5297_v19 }
 0x340   : > { %4716 = vmatprep.subr.bf16.mxu0 %v6092_v26  ;;  %4736 = vmatprep.subr.bf16.mxu1 %v6092_v26 }
 0x343   : > { %4717 = vmatpush3.bf16.msra.mxu0 %v5298_v20  ;;  %4737 = vmatpush3.bf16.msra.mxu1 %v5299_v21 }
 0x344   : > { %4718 = vmatprep.subr.bf16.mxu0 %v6092_v26  ;;  %4738 = vmatprep.subr.bf16.mxu1 %v6092_v26 }
 0x347   : > { %4719 = vmatpush3.bf16.msra.mxu0 %v5300_v22  ;;  %4739 = vmatpush3.bf16.msra.mxu1 %v5301_v23 }
 0x348   : > { %4720 = vmatprep.subr.bf16.mxu0 %v6092_v26  ;;  %4740 = vmatprep.subr.bf16.mxu1 %v6092_v26 }
 0x34b   : > { %4721 = vmatpush3.bf16.msra.mxu0 %v5302_v24  ;;  %4741 = vmatpush3.bf16.msra.mxu1 %v5303_v25 }
 0x34c   : > { %4746 = vmatprep.subr.bf16.mxu0 %v6092_v26  ;;  %4766 = vmatprep.subr.bf16.mxu1 %v6092_v26 }
 0x34e   : > { %4723 = vmatmul.mubr.bf16.vlgmr.msra.gmra.mrb[8].mxu0 %v6965_v59  ;;  %4743 = vmatmul.mubr.bf16.vlgmr.msra.gmra.mrb[8].mxu1 %v6965_v59 }
 0x34f   : > { %4747 = vmatpush3.bf16.msra.mxu0 %v5304_v27  ;;  %4767 = vmatpush3.bf16.msra.mxu1 %v5305_v28 }
 0x350   : > { %4748 = vmatprep.subr.bf16.mxu0 %v6092_v26  ;;  %4768 = vmatprep.subr.bf16.mxu1 %v6092_v26 }
 0x351   : > { %4762 = vmatprep.mubr.msk.bf16.mxu0 %vm6093_vm7, %v6092_v26  ;;  %4782 = vmatprep.mubr.msk.bf16.mxu1 %vm6093_vm7, %v6092_v26 }
 0x353   : > { %4749 = vmatpush3.bf16.msra.mxu0 %v5306_v29  ;;  %4769 = vmatpush3.bf16.msra.mxu1 %v5307_v30 }
 0x354   : > { %4750 = vmatprep.subr.bf16.mxu0 %v6092_v26  ;;  %4770 = vmatprep.subr.bf16.mxu1 %v6092_v26 }
 0x357   : > { %4751 = vmatpush3.bf16.msra.mxu0 %v5308_v31  ;;  %4771 = vmatpush3.bf16.msra.mxu1 %v5309_v32 }
 0x358   : > { %4752 = vmatprep.subr.bf16.mxu0 %v6092_v26  ;;  %4772 = vmatprep.subr.bf16.mxu1 %v6092_v26 }
 0x35b   : > { %4753 = vmatpush3.bf16.msra.mxu0 %v5310_v33  ;;  %4773 = vmatpush3.bf16.msra.mxu1 %v5311_v34 }
 0x35c   : > { %4754 = vmatprep.subr.bf16.mxu0 %v6092_v26  ;;  %4774 = vmatprep.subr.bf16.mxu1 %v6092_v26 }
 0x35f   : > { %4755 = vmatpush3.bf16.msra.mxu0 %v5312_v35  ;;  %4775 = vmatpush3.bf16.msra.mxu1 %v5313_v36 }
 0x360   : > { %4756 = vmatprep.subr.bf16.mxu0 %v6092_v26  ;;  %4776 = vmatprep.subr.bf16.mxu1 %v6092_v26 }
 0x363   : > { %4757 = vmatpush3.bf16.msra.mxu0 %v5314_v37  ;;  %4777 = vmatpush3.bf16.msra.mxu1 %v5315_v38 }
 0x364   : > { %4758 = vmatprep.subr.bf16.mxu0 %v6092_v26  ;;  %4778 = vmatprep.subr.bf16.mxu1 %v6092_v26 }
 0x367   : > { %4759 = vmatpush3.bf16.msra.mxu0 %v5316_v39  ;;  %4779 = vmatpush3.bf16.msra.mxu1 %v5317_v40 }
 0x368   : > { %4760 = vmatprep.subr.bf16.mxu0 %v6092_v26  ;;  %4780 = vmatprep.subr.bf16.mxu1 %v6092_v26 }
 0x36b   : > { %4761 = vmatpush3.bf16.msra.mxu0 %v5318_v41  ;;  %4781 = vmatpush3.bf16.msra.mxu1 %v5319_v42 }
 0x36c   : > { %4786 = vmatprep.subr.bf16.mxu0 %v6092_v26  ;;  %4806 = vmatprep.subr.bf16.mxu1 %v6092_v26 }
 0x36e   : > { %4763 = vmatmul.mubr.bf16.vlgmr.msra.gmra.mrb[12].mxu0 %v6965_v59  ;;  %4783 = vmatmul.mubr.bf16.vlgmr.msra.gmra.mrb[12].mxu1 %v6965_v59 }
 0x36f   : > { %4787 = vmatpush3.bf16.msra.mxu0 %v5320_v43  ;;  %4807 = vmatpush3.bf16.msra.mxu1 %v5321_v44 }
 0x370   : > { %4788 = vmatprep.subr.bf16.mxu0 %v6092_v26  ;;  %4808 = vmatprep.subr.bf16.mxu1 %v6092_v26 }
 0x371   : > { %4802 = vmatprep.mubr.msk.bf16.mxu0 %vm6093_vm7, %v6092_v26  ;;  %4822 = vmatprep.mubr.msk.bf16.mxu1 %vm6093_vm7, %v6092_v26 }
 0x373   : > { %4789 = vmatpush3.bf16.msra.mxu0 %v5322_v45  ;;  %4809 = vmatpush3.bf16.msra.mxu1 %v5323_v46 }
 0x374   : > { %4790 = vmatprep.subr.bf16.mxu0 %v6092_v26  ;;  %4810 = vmatprep.subr.bf16.mxu1 %v6092_v26 }
 0x377   : > { %4791 = vmatpush3.bf16.msra.mxu0 %v5324_v47  ;;  %4811 = vmatpush3.bf16.msra.mxu1 %v5325_v48 }
 0x378   : > { %4792 = vmatprep.subr.bf16.mxu0 %v6092_v26  ;;  %4812 = vmatprep.subr.bf16.mxu1 %v6092_v26 }
 0x37b   : > { %4793 = vmatpush3.bf16.msra.mxu0 %v5326_v49  ;;  %4813 = vmatpush3.bf16.msra.mxu1 %v5327_v50 }
 0x37c   : > { %4794 = vmatprep.subr.bf16.mxu0 %v6092_v26  ;;  %4814 = vmatprep.subr.bf16.mxu1 %v6092_v26 }
 0x37f   : > { %4795 = vmatpush3.bf16.msra.mxu0 %v5328_v51  ;;  %4815 = vmatpush3.bf16.msra.mxu1 %v5329_v52 }
 0x380   : > { %4796 = vmatprep.subr.bf16.mxu0 %v6092_v26  ;;  %4816 = vmatprep.subr.bf16.mxu1 %v6092_v26 }
 0x383   : > { %4797 = vmatpush3.bf16.msra.mxu0 %v5330_v53  ;;  %4817 = vmatpush3.bf16.msra.mxu1 %v5331_v54 }
 0x384   : > { %4798 = vmatprep.subr.bf16.mxu0 %v6092_v26  ;;  %4818 = vmatprep.subr.bf16.mxu1 %v6092_v26 }
 0x387   : > { %4799 = vmatpush3.bf16.msra.mxu0 %v5332_v55  ;;  %4819 = vmatpush3.bf16.msra.mxu1 %v5333_v56 }
 0x388   : > { %4800 = vmatprep.subr.bf16.mxu0 %v6092_v26  ;;  %4820 = vmatprep.subr.bf16.mxu1 %v6092_v26 }
 0x38b   : > { %4801 = vmatpush3.bf16.msra.mxu0 %v5334_v57  ;;  %4821 = vmatpush3.bf16.msra.mxu1 %v5335_v58 }
 0x38c   : > { %4826 = vmatprep.subr.bf16.mxu0 %v6092_v26  ;;  %4846 = vmatprep.subr.bf16.mxu1 %v6092_v26 }
 0x38e   : > { %4803 = vmatmul.mubr.bf16.vlgmr.msra.gmra.mrb[16].mxu0 %v6965_v59  ;;  %4823 = vmatmul.mubr.bf16.vlgmr.msra.gmra.mrb[16].mxu1 %v6965_v59 }
 0x38f   : > { %4827 = vmatpush3.bf16.msra.mxu0 %v5336_v60  ;;  %4847 = vmatpush3.bf16.msra.mxu1 %v5337_v61 }
 0x390   : > { %4828 = vmatprep.subr.bf16.mxu0 %v6092_v26  ;;  %4848 = vmatprep.subr.bf16.mxu1 %v6092_v26 }
 0x391   : > { %4842 = vmatprep.mubr.msk.bf16.mxu0 %vm6093_vm7, %v6092_v26  ;;  %4862 = vmatprep.mubr.msk.bf16.mxu1 %vm6093_vm7, %v6092_v26 }
 0x393   : > { %4829 = vmatpush3.bf16.msra.mxu0 %v5338_v62  ;;  %4849 = vmatpush3.bf16.msra.mxu1 %v5339_v63 }
 0x394   : > { %4830 = vmatprep.subr.bf16.mxu0 %v6092_v26  ;;  %4850 = vmatprep.subr.bf16.mxu1 %v6092_v26 }
 0x397   : > { %4831 = vmatpush3.bf16.msra.mxu0 %v5340_v0  ;;  %4851 = vmatpush3.bf16.msra.mxu1 %v5341_v1 }
 0x398   : > { %4832 = vmatprep.subr.bf16.mxu0 %v6092_v26  ;;  %4852 = vmatprep.subr.bf16.mxu1 %v6092_v26 }
 0x39b   : > { %4833 = vmatpush3.bf16.msra.mxu0 %v5342_v2  ;;  %4853 = vmatpush3.bf16.msra.mxu1 %v5343_v3 }
 0x39c   : > { %4834 = vmatprep.subr.bf16.mxu0 %v6092_v26  ;;  %4854 = vmatprep.subr.bf16.mxu1 %v6092_v26 }
 0x39f   : > { %4835 = vmatpush3.bf16.msra.mxu0 %v5344_v4  ;;  %4855 = vmatpush3.bf16.msra.mxu1 %v5345_v5 }
 0x3a0   : > { %4836 = vmatprep.subr.bf16.mxu0 %v6092_v26  ;;  %4856 = vmatprep.subr.bf16.mxu1 %v6092_v26 }
 0x3a3   : > { %4837 = vmatpush3.bf16.msra.mxu0 %v5346_v6  ;;  %4857 = vmatpush3.bf16.msra.mxu1 %v5347_v7 }
 0x3a4   : > { %4838 = vmatprep.subr.bf16.mxu0 %v6092_v26  ;;  %4858 = vmatprep.subr.bf16.mxu1 %v6092_v26 }
 0x3a7   : > { %4839 = vmatpush3.bf16.msra.mxu0 %v5348_v8  ;;  %4859 = vmatpush3.bf16.msra.mxu1 %v5349_v9  ;;  %v7186_v8 = vld [vmem:[#allocation10] sm:$0xff] }
 0x3a8   : > { %4840 = vmatprep.subr.bf16.mxu0 %v6092_v26  ;;  %4860 = vmatprep.subr.bf16.mxu1 %v6092_v26 }
 0x3ab   : > { %4841 = vmatpush3.bf16.msra.mxu0 %v5350_v10  ;;  %4861 = vmatpush3.bf16.msra.mxu1 %v5351_v11 }
 0x3ac   : > { %4866 = vmatprep.subr.bf16.mxu0 %v6092_v26  ;;  %4884 = vmatprep.subr.bf16.mxu1 %v6092_v26 }
 0x3ae   : > { %4843 = vmatmul.mubr.bf16.vlgmr.msra.gmra.mrb[20].mxu0 %v6965_v59  ;;  %4863 = vmatmul.mubr.bf16.vlgmr.msra.gmra.mrb[20].mxu1 %v6965_v59 }
 0x3af   : > { %4868 = vmatprep.mubr.msk.bf16.mxu0 %vm6093_vm7, %v6092_v26  ;;  %4886 = vmatprep.mubr.msk.bf16.mxu1 %vm6093_vm7, %v6092_v26 }
 0x3e1   : > { %v1276_v12 = vpop.f32.mrb[0].mxu0  ;;  %v7161_v13 = vpop.f32.mrb[0].mxu1 }
 0x3e2   : > { %v4644_v14 = vpop.f32.mrb[1].mxu0  ;;  %v4664_v15 = vpop.f32.mrb[1].mxu1  ;;  %v2435_v37 = vpack.c.bf16 %v1276_v12, %v1276_v12 }
 0x3e3   : > { %v1279_v16 = vpop.f32.mrb[2].mxu0  ;;  %v1384_v17 = vpop.f32.mrb[2].mxu1 }
 0x3e4   : > { %v4645_v18 = vpop.f32.mrb[3].mxu0  ;;  %v4665_v19 = vpop.f32.mrb[3].mxu1 }
 0x401   : > { %v7163_v20 = vpop.f32.mrb[4].mxu0  ;;  %v7165_v21 = vpop.f32.mrb[4].mxu1 }
 0x402   : > { %v4684_v59 = vpop.f32.mrb[5].mxu0  ;;  %v4704_v22 = vpop.f32.mrb[5].mxu1 }
 0x403   : > { %v1489_v23 = vpop.f32.mrb[6].mxu0  ;;  %v1594_v24 = vpop.f32.mrb[6].mxu1 }
 0x404   : > { %v4685_v25 = vpop.f32.mrb[7].mxu0  ;;  %v4705_v27 = vpop.f32.mrb[7].mxu1 }
 0x421   : > { %v1695_v28 = vpop.f32.mrb[8].mxu0  ;;  %v7167_v29 = vpop.f32.mrb[8].mxu1 }
 0x422   : > { %v2436_v30 = vpack.c.bf16 %v1695_v28, %v1695_v28  ;;  %v4724_v31 = vpop.f32.mrb[9].mxu0  ;;  %v4744_v32 = vpop.f32.mrb[9].mxu1  ;;  %v2558_v27 = vpack.c.bf16 %v7167_v29, %v7167_v29  ;;  %v2557_v28 = vpack.c.bf16 %v7161_v13, %v7161_v13 }
 0x423   : > { %v1698_v33 = vpop.f32.mrb[10].mxu0  ;;  %v1803_v34 = vpop.f32.mrb[10].mxu1 }
 0x424   : > { %v4725_v35 = vpop.f32.mrb[11].mxu0  ;;  %v4745_v36 = vpop.f32.mrb[11].mxu1  ;;  %4867 = vmatpush3.bf16.xpose.msra.mxu0 %v2436_v30 }
 0x425   : > { %4872 = vmatprep.subr.bf16.mxu0 %v6092_v26 }
 0x42b   : > { %4869 = vmatmul.mubr.bf16.vlgmr.msra.gmra.mrb[24].mxu0 %v2435_v37 }
 0x42c   : > { %4874 = vmatprep.mubr.msk.bf16.mxu0 %vm6093_vm7, %v6092_v26 }
 0x441   : > { %v7172_v38 = vpop.f32.mrb[12].mxu0  ;;  %v7174_v39 = vpop.f32.mrb[12].mxu1 }
 0x442   : > { %v4764_v40 = vpop.f32.mrb[13].mxu0  ;;  %v4784_v41 = vpop.f32.mrb[13].mxu1 }
 0x443   : > { %v1908_v42 = vpop.f32.mrb[14].mxu0  ;;  %v2013_v43 = vpop.f32.mrb[14].mxu1 }
 0x444   : > { %v4765_v44 = vpop.f32.mrb[15].mxu0  ;;  %v4785_v45 = vpop.f32.mrb[15].mxu1 }
 0x461   : > { %v2114_v46 = vpop.f32.mrb[16].mxu0  ;;  %v2219_v47 = vpop.f32.mrb[16].mxu1 }
 0x462   : > { %v2492_v48 = vpack.c.bf16 %v2114_v46, %v2114_v46  ;;  %v2613_v49 = vpack.c.bf16 %v2219_v47, %v2219_v47  ;;  %v4804_v50 = vpop.f32.mrb[17].mxu0  ;;  %v4824_v51 = vpop.f32.mrb[17].mxu1  ;;  %v5360_v46 = vld [vmem:[%s6874_s21 + $0x40] sm:$0xff]   ;;  %v5361_v47 = vld [vmem:[%s6874_s21 + $0x48] sm:$0xff]  }
 0x463   : > { %v2117_v52 = vpop.f32.mrb[18].mxu0  ;;  %v2222_v53 = vpop.f32.mrb[18].mxu1  ;;  %v5364_v50 = vld [vmem:[%s6874_s21 + $0x60] sm:$0xff]   ;;  %v5365_v51 = vld [vmem:[%s6874_s21 + $0x68] sm:$0xff]  }
 0x464   : > { %v2498_v54 = vsel %vm2496_vm8, %v2492_v48, 0  ;;  %v2618_v55 = vsel %vm2496_vm8, %v2613_v49, 0  ;;  %v4805_v56 = vpop.f32.mrb[19].mxu0  ;;  %v4825_v57 = vpop.f32.mrb[19].mxu1  ;;  %v5362_v48 = vld [vmem:[%s6874_s21 + $0x50] sm:$0xff]   ;;  %v5363_v49 = vld [vmem:[%s6874_s21 + $0x58] sm:$0xff]  }
 0x465   : > { %4873 = vmatpush3.bf16.msra.mxu0 %v2498_v54  ;;  %4885 = vmatpush3.bf16.msra.mxu1 %v2618_v55  ;;  %v5366_v52 = vld [vmem:[%s6874_s21 + $0x70] sm:$0xff]   ;;  %v5367_v53 = vld [vmem:[%s6874_s21 + $0x78] sm:$0xff]   ;;  %v5352_v57 = vld [vmem:[%s6874_s21] sm:$0xff]  }
 0x466   : > { %4878 = vmatprep.subr.bf16.mxu0 %v6092_v26  ;;  %4910 = vmatprep.subr.bf16.mxu1 %v6092_v26 }
 0x481   : > { %v2324_v58 = vpop.f32.mrb[20].mxu0  ;;  %v2429_v60 = vpop.f32.mrb[20].mxu1 }
 0x482   : > { %v2910_v61 = vpack.c.bf16 %v2324_v58, %v2324_v58  ;;  %v3120_v62 = vpack.c.bf16 %v2429_v60, %v2429_v60  ;;  %v4844_v63 = vpop.f32.mrb[21].mxu0  ;;  %v4864_v0 = vpop.f32.mrb[21].mxu1  ;;  %v5353_v60 = vld [vmem:[%s6874_s21 + $0x8] sm:$0xff]  }
 0x483   : > { %v2327_v1 = vpop.f32.mrb[22].mxu0  ;;  %v2432_v2 = vpop.f32.mrb[22].mxu1  ;;  %v5356_v63 = vld [vmem:[%s6874_s21 + $0x20] sm:$0xff]   ;;  %v5357_v0 = vld [vmem:[%s6874_s21 + $0x28] sm:$0xff]  }
 0x484   : > { %v7181_v3 = vsel %vm2496_vm8, %v2910_v61, 0  ;;  %v7184_v4 = vsel %vm2496_vm8, %v3120_v62, 0  ;;  %v4845_v5 = vpop.f32.mrb[23].mxu0  ;;  %v4865_v6 = vpop.f32.mrb[23].mxu1  ;;  %v5354_v61 = vld [vmem:[%s6874_s21 + $0x10] sm:$0xff]   ;;  %v5355_v62 = vld [vmem:[%s6874_s21 + $0x18] sm:$0xff]  }
 0x485   : > { %v5358_v1 = vld [vmem:[%s6874_s21 + $0x30] sm:$0xff]   ;;  %v5359_v2 = vld [vmem:[%s6874_s21 + $0x38] sm:$0xff]  }
 0x4fe   : > { %v2471_v7 = vpop.f32.mrb[24].mxu0 }
 0x4ff   : > { %v2477_v9 = vmul.f32 0.35355338, %v2471_v7  ;;  %v4870_v10 = vpop.f32.mrb[25].mxu0 }
 0x500   : > { %v2474_v11 = vpop.f32.mrb[26].mxu0  ;;  %v2855_v10 = vpack.c.bf16 %v7172_v38, %v7172_v38 }
 0x501   : > { %v4871_v12 = vpop.f32.mrb[27].mxu0  ;;  %v2478_v14 = vadd.f32 %v2477_v9, %v7186_v8 }
 0x503   : > { %v2480_v15 = vsel %vm2479_vm9, %v2478_v14, -inf }
 0x504   : > { %2481 = vmax.xlane.f32.xlu1 %v2480_v15 }
 0x591   : > { %v2482_v16 = vpop.xlane.xlu1 %2481 }
 0x592   : > { %v2483_v17 = vsub.f32 %v2478_v14, %v2482_v16 }
 0x594   : > { %v2484_v18 = vmul.f32 1.442695, %v2483_v17 }
 0x596   : > { %5402 = vpow2.f32 %v2484_v18 }
 0x5a0   : > { %v5403_v19 = vpop.eup %5402 }
 0x5a1   : > { %v2486_v59 = vsel %vm2479_vm9, %v5403_v19, 0.0 }
 0x5a2   : > { %2487 = vadd.xlane.f32.xlu1 %v2486_v59 }
 0x62f   : > { %v2488_v22 = vpop.xlane.xlu1 %2487 }
 0x630   : > { %5404 = vrcp.f32 %v2488_v22 }
 0x63a   : > { %v5405_v23 = vpop.eup %5404 }
 0x63b   : > { %v2490_v24 = vmul.f32 %v5405_v23, %v5403_v19 }
 0x63d   : > { %v2491_v25 = vpack.c.bf16 %v2490_v24, %v2490_v24 }
 0x63f   : > { %4875 = vmatmul.mubr.msk.bf16.vlgmr.msra.gmra.mrb[28].mxu0 %vm2479_vm9, %v2491_v25 }
 0x640   : > { %4879 = vmatpush3.bf16.xpose.msra.mxu0 %v2558_v27  ;;  %4880 = vmatprep.mubr.msk.bf16.mxu0 %vm6093_vm7, %v6092_v26 }
 0x641   : > { %4890 = vmatprep.subr.bf16.mxu0 %v6092_v26 }
 0x647   : > { %4881 = vmatmul.mubr.bf16.vlgmr.msra.gmra.mrb[32].mxu0 %v2557_v28 }
 0x648   : > { %4906 = vmatprep.mubr.msk.bf16.mxu0 %vm6093_vm7, %v6092_v26  ;;  %4891 = vmatpush3.bf16.msra.mxu0 %v5360_v46 }
 0x649   : > { %4892 = vmatprep.subr.bf16.mxu0 %v6092_v26 }
 0x64c   : > { %4893 = vmatpush3.bf16.msra.mxu0 %v5361_v47  ;;  %v3065_v47 = vpack.c.bf16 %v7174_v39, %v7174_v39  ;;  %v5375_v39 = vld [vmem:[%s6874_s21 + $0xb8] sm:$0xff]  }
 0x64d   : > { %4894 = vmatprep.subr.bf16.mxu0 %v6092_v26 }
 0x650   : > { %4895 = vmatpush3.bf16.msra.mxu0 %v5362_v48  ;;  %v3064_v48 = vpack.c.bf16 %v7165_v21, %v7165_v21 }
 0x651   : > { %4896 = vmatprep.subr.bf16.mxu0 %v6092_v26 }
 0x654   : > { %4897 = vmatpush3.bf16.msra.mxu0 %v5363_v49 }
 0x655   : > { %4898 = vmatprep.subr.bf16.mxu0 %v6092_v26 }
 0x658   : > { %4899 = vmatpush3.bf16.msra.mxu0 %v5364_v50 }
 0x659   : > { %4900 = vmatprep.subr.bf16.mxu0 %v6092_v26 }
 0x65c   : > { %4901 = vmatpush3.bf16.msra.mxu0 %v5365_v51 }
 0x65d   : > { %4902 = vmatprep.subr.bf16.mxu0 %v6092_v26 }
 0x660   : > { %4903 = vmatpush3.bf16.msra.mxu0 %v5366_v52 }
 0x661   : > { %4904 = vmatprep.subr.bf16.mxu0 %v6092_v26 }
 0x664   : > { %4905 = vmatpush3.bf16.msra.mxu0 %v5367_v53 }
 0x665   : > { %4930 = vmatprep.subr.bf16.mxu0 %v6092_v26 }
 0x712   : > { %v7201_v30 = vpop.f32.mrb[28].mxu0 }
 0x713   : > { %v4876_v31 = vpop.f32.mrb[29].mxu0  ;;  %v2540_v5 = vpack.c.bf16 %v7201_v30, %v7201_v30 }
 0x714   : > { %v2537_v32 = vpop.f32.mrb[30].mxu0 }
 0x715   : > { %v4877_v29 = vpop.f32.mrb[31].mxu0 }
 0x71a   : > { %v2593_v33 = vpop.f32.mrb[32].mxu0 }
 0x71b   : > { %v2599_v34 = vmul.f32 0.35355338, %v2593_v33  ;;  %v4882_v35 = vpop.f32.mrb[33].mxu0 }
 0x71c   : > { %v2596_v36 = vpop.f32.mrb[34].mxu0  ;;  %v5368_v35 = vld [vmem:[%s6874_s21 + $0x80] sm:$0xff]  }
 0x71d   : > { %v4883_v37 = vpop.f32.mrb[35].mxu0  ;;  %v2600_v40 = vadd.f32 %v2599_v34, %v7186_v8  ;;  %v5369_v36 = vld [vmem:[%s6874_s21 + $0x88] sm:$0xff]  }
 0x71e   : > { %v5370_v37 = vld [vmem:[%s6874_s21 + $0x90] sm:$0xff]  }
 0x71f   : > { %v2601_v13 = vsel %vm2479_vm9, %v2600_v40, -inf }
 0x720   : > { %2602 = vmax.xlane.f32.xlu0 %v2601_v13  ;;  %v5372_v13 = vld [vmem:[%s6874_s21 + $0xa0] sm:$0xff]  }
 0x7ad   : > { %v2603_v41 = vpop.xlane.xlu0 %2602 }
 0x7ae   : > { %v2604_v42 = vsub.f32 %v2600_v40, %v2603_v41  ;;  %v5371_v40 = vld [vmem:[%s6874_s21 + $0x98] sm:$0xff]   ;;  %v5373_v41 = vld [vmem:[%s6874_s21 + $0xa8] sm:$0xff]  }
 0x7b0   : > { %v2605_v43 = vmul.f32 1.442695, %v2604_v42  ;;  %v5374_v42 = vld [vmem:[%s6874_s21 + $0xb0] sm:$0xff]  }
 0x7b2   : > { %5406 = vpow2.f32 %v2605_v43 }
 0x7bc   : > { %v5407_v44 = vpop.eup %5406 }
 0x7bd   : > { %v2607_v45 = vsel %vm2479_vm9, %v5407_v44, 0.0 }
 0x7be   : > { %2608 = vadd.xlane.f32.xlu1 %v2607_v45 }
 0x84b   : > { %v2609_v54 = vpop.xlane.xlu1 %2608 }
 0x84c   : > { %5408 = vrcp.f32 %v2609_v54 }
 0x856   : > { %v5409_v55 = vpop.eup %5408 }
 0x857   : > { %v2611_v56 = vmul.f32 %v5409_v55, %v5407_v44 }
 0x859   : > { %v2612_v58 = vpack.c.bf16 %v2611_v56, %v2611_v56 }
 0x85b   : > { %4887 = vmatmul.mubr.msk.bf16.vlgmr.msra.gmra.mrb[24].mxu1 %vm2479_vm9, %v2612_v58 }
 0x85c   : > { %4911 = vmatpush3.bf16.msra.mxu1 %v5352_v57  ;;  %4926 = vmatprep.mubr.msk.bf16.mxu1 %vm6093_vm7, %v6092_v26 }
 0x85d   : > { %4912 = vmatprep.subr.bf16.mxu1 %v6092_v26 }
 0x860   : > { %4913 = vmatpush3.bf16.msra.mxu1 %v5353_v60 }
 0x861   : > { %4914 = vmatprep.subr.bf16.mxu1 %v6092_v26 }
 0x864   : > { %4915 = vmatpush3.bf16.msra.mxu1 %v5354_v61 }
 0x865   : > { %4916 = vmatprep.subr.bf16.mxu1 %v6092_v26 }
 0x868   : > { %4917 = vmatpush3.bf16.msra.mxu1 %v5355_v62 }
 0x869   : > { %4918 = vmatprep.subr.bf16.mxu1 %v6092_v26 }
 0x86c   : > { %4919 = vmatpush3.bf16.msra.mxu1 %v5356_v63 }
 0x86d   : > { %4920 = vmatprep.subr.bf16.mxu1 %v6092_v26 }
 0x870   : > { %4921 = vmatpush3.bf16.msra.mxu1 %v5357_v0 }
 0x871   : > { %4922 = vmatprep.subr.bf16.mxu1 %v6092_v26 }
 0x874   : > { %4923 = vmatpush3.bf16.msra.mxu1 %v5358_v1 }
 0x875   : > { %4924 = vmatprep.subr.bf16.mxu1 %v6092_v26 }
 0x878   : > { %4925 = vmatpush3.bf16.msra.mxu1 %v5359_v2 }
 0x879   : > { %4936 = vmatprep.subr.bf16.mxu1 %v6092_v26 }
 0x87b   : > { %4927 = vmatmul.mubr.bf16.vlgmr.msra.gmra.mrb[28].mxu1 %v2540_v5 }
 0x87c   : > { %4937 = vmatpush3.bf16.msra.mxu1 %v7181_v3  ;;  %4938 = vmatprep.mubr.msk.bf16.mxu1 %vm6093_vm7, %v6092_v26  ;;  %v2854_v3 = vpack.c.bf16 %v7163_v20, %v7163_v20 }
 0x87d   : > { %4962 = vmatprep.subr.bf16.mxu1 %v6092_v26 }
 0x92e   : > { %v2654_v6 = vpop.f32.mrb[24].mxu1 }
 0x92f   : > { %v2660_v7 = vpack.c.bf16 %v2654_v6, %v2654_v6  ;;  %v4888_v9 = vpop.f32.mrb[25].mxu1 }
 0x930   : > { %v2657_v11 = vpop.f32.mrb[26].mxu1 }
 0x931   : > { %v4889_v12 = vpop.f32.mrb[27].mxu1  ;;  %4907 = vmatmul.mubr.bf16.vlgmr.msra.gmra.mrb[36].mxu0 %v2660_v7  ;;  %v5376_v11 = vld [vmem:[%s6874_s21 + $0xc0] sm:$0xff]  }
 0x932   : > { %4931 = vmatpush3.bf16.xpose.msra.mxu0 %v2855_v10  ;;  %4932 = vmatprep.mubr.msk.bf16.mxu0 %vm6093_vm7, %v6092_v26 }
 0x933   : > { %4942 = vmatprep.subr.bf16.mxu0 %v6092_v26 }
 0x939   : > { %4933 = vmatmul.mubr.bf16.vlgmr.msra.gmra.mrb[40].mxu0 %v2854_v3  ;;  %v5377_v3 = vld [vmem:[%s6874_s21 + $0xc8] sm:$0xff]  }
 0x93a   : > { %4958 = vmatprep.mubr.msk.bf16.mxu0 %vm6093_vm7, %v6092_v26  ;;  %4943 = vmatpush3.bf16.msra.mxu0 %v5368_v35 }
 0x93b   : > { %4944 = vmatprep.subr.bf16.mxu0 %v6092_v26 }
 0x93e   : > { %4945 = vmatpush3.bf16.msra.mxu0 %v5369_v36  ;;  %v5385_v36 = vld [vmem:[%s6890_s3 + $0x8] sm:$0xff]  }
 0x93f   : > { %4946 = vmatprep.subr.bf16.mxu0 %v6092_v26 }
 0x942   : > { %4947 = vmatpush3.bf16.msra.mxu0 %v5370_v37  ;;  %v5386_v37 = vld [vmem:[%s6890_s3 + $0x10] sm:$0xff]  }
 0x943   : > { %4948 = vmatprep.subr.bf16.mxu0 %v6092_v26 }
 0x946   : > { %4949 = vmatpush3.bf16.msra.mxu0 %v5371_v40  ;;  %v5387_v40 = vld [vmem:[%s6890_s3 + $0x18] sm:$0xff]  }
 0x947   : > { %4950 = vmatprep.subr.bf16.mxu0 %v6092_v26 }
 0x94a   : > { %4951 = vmatpush3.bf16.msra.mxu0 %v5372_v13  ;;  %v5388_v13 = vld [vmem:[%s6890_s3 + $0x20] sm:$0xff]  }
 0x94b   : > { %4952 = vmatprep.subr.bf16.mxu0 %v6092_v26 }
 0x94e   : > { %v2848_v14 = vpop.f32.mrb[28].mxu1  ;;  %4953 = vmatpush3.bf16.msra.mxu0 %v5373_v41  ;;  %v5389_v41 = vld [vmem:[%s6890_s3 + $0x28] sm:$0xff]  }
 0x94f   : > { %v4928_v15 = vpop.f32.mrb[29].mxu1  ;;  %4954 = vmatprep.subr.bf16.mxu0 %v6092_v26 }
 0x950   : > { %v2851_v16 = vpop.f32.mrb[30].mxu1  ;;  %v5379_v15 = vld [vmem:[%s6874_s21 + $0xd8] sm:$0xff]  }
 0x951   : > { %v4929_v38 = vpop.f32.mrb[31].mxu1  ;;  %v5380_v16 = vld [vmem:[%s6874_s21 + $0xe0] sm:$0xff]  }
 0x952   : > { %4955 = vmatpush3.bf16.msra.mxu0 %v5374_v42  ;;  %v5381_v38 = vld [vmem:[%s6874_s21 + $0xe8] sm:$0xff]   ;;  %v5390_v42 = vld [vmem:[%s6890_s3 + $0x30] sm:$0xff]  }
 0x953   : > { %4956 = vmatprep.subr.bf16.mxu0 %v6092_v26 }
 0x956   : > { %4957 = vmatpush3.bf16.msra.mxu0 %v5375_v39  ;;  %v5397_v39 = vld [vmem:[%s6898_s0 + $0x28] sm:$0xff]  }
 0x957   : > { %4994 = vmatprep.subr.bf16.mxu0 %v6092_v26 }
 0xa04   : > { %v2760_v17 = vpop.f32.mrb[36].mxu0 }
 0xa05   : > { %v7256_v18 = vadd.f32 %v2848_v14, %v2760_v17  ;;  %v4908_v19 = vpop.f32.mrb[37].mxu0  ;;  %v5378_v14 = vld [vmem:[%s6874_s21 + $0xd0] sm:$0xff]  }
 0xa06   : > { %v2763_v59 = vpop.f32.mrb[38].mxu0  ;;  %v5382_v17 = vld [vmem:[%s6874_s21 + $0xf0] sm:$0xff]  }
 0xa07   : > { %v4909_v22 = vpop.f32.mrb[39].mxu0 }
 0xa0c   : > { %v2890_v23 = vpop.f32.mrb[40].mxu0 }
 0xa0d   : > { %v2896_v24 = vmul.f32 0.35355338, %v2890_v23  ;;  %v4934_v25 = vpop.f32.mrb[41].mxu0 }
 0xa0e   : > { %v2893_v20 = vpop.f32.mrb[42].mxu0  ;;  %v5384_v25 = vld [vmem:[%s6890_s3] sm:$0xff]  }
 0xa0f   : > { %v4935_v27 = vpop.f32.mrb[43].mxu0  ;;  %v2897_v28 = vadd.f32 %v2896_v24, %v7186_v8 }
 0xa11   : > { %v2898_v30 = vsel %vm2479_vm9, %v2897_v28, -inf }
 0xa12   : > { %2899 = vmax.xlane.f32.xlu0 %v2898_v30  ;;  %v4398_v30 = vld [vmem:[%s7643_s11] ss:$0 sm:$0xff]  ;;  %s7651_s11 = scalar_lea.vmem (!%p4419_p10), [#allocation31], %s6909_s26 }
 0xa9f   : > { %v2900_v31 = vpop.xlane.xlu0 %2899 }
 0xaa0   : > { %v2901_v32 = vsub.f32 %v2897_v28, %v2900_v31 }
 0xaa2   : > { %v2902_v29 = vmul.f32 1.442695, %v2901_v32  ;;  %v5420_v32 = vld [vmem:[#allocation2] sm:$0xff] }
 0xaa4   : > { %5410 = vpow2.f32 %v2902_v29 }
 0xaae   : > { %v5411_v33 = vpop.eup %5410 }
 0xaaf   : > { %v2904_v34 = vsel %vm2479_vm9, %v5411_v33, 0.0 }
 0xab0   : > { %2905 = vadd.xlane.f32.xlu1 %v2904_v34 }
 0xb3d   : > { %v2906_v43 = vpop.xlane.xlu1 %2905 }
 0xb3e   : > { %5412 = vrcp.f32 %v2906_v43  ;;  %v5391_v43 = vld [vmem:[%s6890_s3 + $0x38] sm:$0xff]  }
 0xb48   : > { %v5413_v44 = vpop.eup %5412 }
 0xb49   : > { %v2908_v45 = vmul.f32 %v5413_v44, %v5411_v33  ;;  %v5392_v44 = vld [vmem:[%s6898_s0] sm:$0xff]  }
 0xb4b   : > { %v2909_v46 = vpack.c.bf16 %v2908_v45, %v2908_v45  ;;  %v5393_v45 = vld [vmem:[%s6898_s0 + $0x8] sm:$0xff]  }
 0xb4d   : > { %4939 = vmatmul.mubr.msk.bf16.vlgmr.msra.gmra.mrb[32].mxu1 %vm2479_vm9, %v2909_v46  ;;  %v5394_v46 = vld [vmem:[%s6898_s0 + $0x10] sm:$0xff]  }
 0xb4e   : > { %4963 = vmatpush3.bf16.xpose.msra.mxu1 %v3065_v47  ;;  %4964 = vmatprep.mubr.msk.bf16.mxu1 %vm6093_vm7, %v6092_v26  ;;  %v5395_v47 = vld [vmem:[%s6898_s0 + $0x18] sm:$0xff]  }
 0xb4f   : > { %4968 = vmatprep.subr.bf16.mxu1 %v6092_v26 }
 0xb55   : > { %4965 = vmatmul.mubr.bf16.vlgmr.msra.gmra.mrb[36].mxu1 %v3064_v48  ;;  %v5396_v48 = vld [vmem:[%s6898_s0 + $0x20] sm:$0xff]  }
 0xb56   : > { %4969 = vmatpush3.bf16.msra.mxu1 %v7184_v4  ;;  %4970 = vmatprep.mubr.msk.bf16.mxu1 %vm6093_vm7, %v6092_v26 }
 0xb57   : > { %4974 = vmatprep.subr.bf16.mxu1 %v6092_v26 }
 0xc20   : > { %v2951_v49 = vpop.f32.mrb[32].mxu1 }
 0xc21   : > { %v2957_v50 = vpack.c.bf16 %v2951_v49, %v2951_v49  ;;  %v4940_v51 = vpop.f32.mrb[33].mxu1 }
 0xc22   : > { %v2954_v52 = vpop.f32.mrb[34].mxu1 }
 0xc23   : > { %v4941_v53 = vpop.f32.mrb[35].mxu1  ;;  %4959 = vmatmul.mubr.bf16.vlgmr.msra.gmra.mrb[44].mxu0 %v2957_v50 }
 0xc24   : > { %5010 = vmatprep.mubr.msk.bf16.mxu0 %vm6093_vm7, %v6092_v26  ;;  %4995 = vmatpush3.bf16.msra.mxu0 %v5384_v25  ;;  %v5428_v25 = vld [vmem:[%s7649_s17 + $0x38] sm:$0xff] (!%p4419_p10)  }
 0xc25   : > { %4996 = vmatprep.subr.bf16.mxu0 %v6092_v26 }
 0xc28   : > { %v3100_v21 = vpop.f32.mrb[36].mxu1  ;;  %4997 = vmatpush3.bf16.msra.mxu0 %v5385_v36 }
 0xc29   : > { %v3106_v4 = vmul.f32 0.35355338, %v3100_v21  ;;  %v4966_v54 = vpop.f32.mrb[37].mxu1  ;;  %4998 = vmatprep.subr.bf16.mxu0 %v6092_v26 }
 0xc2a   : > { %v3103_v55 = vpop.f32.mrb[38].mxu1 }
 0xc2b   : > { %v4967_v56 = vpop.f32.mrb[39].mxu1  ;;  %v3107_v57 = vadd.f32 %v3106_v4, %v7186_v8 }
 0xc2c   : > { %4999 = vmatpush3.bf16.msra.mxu0 %v5386_v37  ;;  %v4399_v56 = vld [vmem:[%s7644_s27] ss:$0 sm:$0xff] }
 0xc2d   : > { %v3108_v58 = vsel %vm2479_vm9, %v3107_v57, -inf  ;;  %5000 = vmatprep.subr.bf16.mxu0 %v6092_v26 }
 0xc2e   : > { %3109 = vmax.xlane.f32.xlu0 %v3108_v58  ;;  %v4400_v58 = vld [vmem:[%s7645_s29] ss:$0 sm:$0xff] }
 0xc30   : > { %5001 = vmatpush3.bf16.msra.mxu0 %v5387_v40 }
 0xc31   : > { %5002 = vmatprep.subr.bf16.mxu0 %v6092_v26 }
 0xc34   : > { %5003 = vmatpush3.bf16.msra.mxu0 %v5388_v13 }
 0xc35   : > { %5004 = vmatprep.subr.bf16.mxu0 %v6092_v26 }
 0xc38   : > { %5005 = vmatpush3.bf16.msra.mxu0 %v5389_v41 }
 0xc39   : > { %5006 = vmatprep.subr.bf16.mxu0 %v6092_v26 }
 0xc3c   : > { %5007 = vmatpush3.bf16.msra.mxu0 %v5390_v42 }
 0xc3d   : > { %5008 = vmatprep.subr.bf16.mxu0 %v6092_v26 }
 0xc40   : > { %5009 = vmatpush3.bf16.msra.mxu0 %v5391_v43 }
 0xcbb   : > { %v3110_v60 = vpop.xlane.xlu0 %3109 }
 0xcbc   : > { %v3111_v61 = vsub.f32 %v3107_v57, %v3110_v60 }
 0xcbe   : > { %v3112_v62 = vmul.f32 1.442695, %v3111_v61 }
 0xcc0   : > { %5414 = vpow2.f32 %v3112_v62 }
 0xcca   : > { %v5415_v63 = vpop.eup %5414 }
 0xccb   : > { %v3114_v0 = vsel %vm2479_vm9, %v5415_v63, 0.0 }
 0xccc   : > { %3115 = vadd.xlane.f32.xlu1 %v3114_v0  ;;  %v5399_v0 = vld [vmem:[%s6898_s0 + $0x38] sm:$0xff]  }
 0xcf6   : > { %v3057_v1 = vpop.f32.mrb[44].mxu0 }
 0xcf7   : > { %v3063_v2 = vadd.f32 %v3057_v1, %v7256_v18  ;;  %v4960_v5 = vpop.f32.mrb[45].mxu0  ;;  %v5383_v18 = vld [vmem:[%s6874_s21 + $0xf8] sm:$0xff]   ;;  %v4401_v1 = vld [vmem:[%s7646_s22] ss:$0 sm:$0xff]  ;;  %s7647_s21 = scalar_lea.vmem [#allocation29], %s6848_s4 }
 0xcf8   : > { %v3060_v6 = vpop.f32.mrb[46].mxu0 }
 0xcf9   : > { %v4961_v8 = vpop.f32.mrb[47].mxu0 }
 0xd59   : > { %v3116_v7 = vpop.xlane.xlu1 %3115 }
 0xd5a   : > { %5416 = vrcp.f32 %v3116_v7 }
 0xd64   : > { %v5417_v9 = vpop.eup %5416 }
 0xd65   : > { %v3118_v10 = vmul.f32 %v5417_v9, %v5415_v63  ;;  %v5398_v63 = vld [vmem:[%s6898_s0 + $0x30] sm:$0xff]  }
 0xd67   : > { %v3119_v12 = vpack.c.bf16 %v3118_v10, %v3118_v10 }
 0xd69   : > { %4971 = vmatmul.mubr.msk.bf16.vlgmr.msra.gmra.mrb[40].mxu1 %vm2479_vm9, %v3119_v12 }
 0xd6a   : > { %4975 = vmatpush3.bf16.msra.mxu1 %v5376_v11  ;;  %4990 = vmatprep.mubr.msk.bf16.mxu1 %vm6093_vm7, %v6092_v26  ;;  %v4410_v11 = vld [vmem:[%s7647_s21] ss:$0 sm:$0xff] }
 0xd6b   : > { %4976 = vmatprep.subr.bf16.mxu1 %v6092_v26 }
 0xd6e   : > { %4977 = vmatpush3.bf16.msra.mxu1 %v5377_v3 }
 0xd6f   : > { %4978 = vmatprep.subr.bf16.mxu1 %v6092_v26 }
 0xd72   : > { %4979 = vmatpush3.bf16.msra.mxu1 %v5378_v14 }
 0xd73   : > { %4980 = vmatprep.subr.bf16.mxu1 %v6092_v26 }
 0xd76   : > { %4981 = vmatpush3.bf16.msra.mxu1 %v5379_v15 }
 0xd77   : > { %4982 = vmatprep.subr.bf16.mxu1 %v6092_v26 }
 0xd7a   : > { %4983 = vmatpush3.bf16.msra.mxu1 %v5380_v16 }
 0xd7b   : > { %4984 = vmatprep.subr.bf16.mxu1 %v6092_v26 }
 0xd7e   : > { %4985 = vmatpush3.bf16.msra.mxu1 %v5381_v38  ;;  %v5421_v38 = vld [vmem:[%s7649_s17] sm:$0xff] (!%p4419_p10)  }
 0xd7f   : > { %4986 = vmatprep.subr.bf16.mxu1 %v6092_v26 }
 0xd82   : > { %4987 = vmatpush3.bf16.msra.mxu1 %v5382_v17  ;;  %v6094_v17 = vmov (!%p4419_p10), 0.0  }
 0xd83   : > { %4988 = vmatprep.subr.bf16.mxu1 %v6092_v26  ;;  %5034 = vmatprep.subr.bf16.mxu0 (!%p4419_p10), %v6094_v17 }
 0xd86   : > { %4989 = vmatpush3.bf16.msra.mxu1 %v5383_v18  ;;  %v5422_v18 = vld [vmem:[%s7649_s17 + $0x8] sm:$0xff] (!%p4419_p10)  }
 0xd87   : > { %5014 = vmatprep.subr.bf16.mxu1 %v6092_v26 }
 0xe3c   : > { %v3161_v19 = vpop.f32.mrb[40].mxu1 }
 0xe3d   : > { %v3167_v59 = vpack.c.bf16 %v3161_v19, %v3161_v19  ;;  %v4972_v22 = vpop.f32.mrb[41].mxu1  ;;  %v5423_v19 = vld [vmem:[%s7649_s17 + $0x10] sm:$0xff] (!%p4419_p10)  }
 0xe3e   : > { %v3164_v23 = vpop.f32.mrb[42].mxu1  ;;  %v5425_v22 = vld [vmem:[%s7649_s17 + $0x20] sm:$0xff] (!%p4419_p10)  }
 0xe3f   : > { %v4973_v24 = vpop.f32.mrb[43].mxu1  ;;  %4991 = vmatmul.mubr.bf16.vlgmr.msra.gmra.mrb[44].mxu1 %v3167_v59  ;;  %v5424_v59 = vld [vmem:[%s7649_s17 + $0x18] sm:$0xff] (!%p4419_p10)   ;;  %v5426_v23 = vld [vmem:[%s7649_s17 + $0x28] sm:$0xff] (!%p4419_p10)  }
 0xe40   : > { %5030 = vmatprep.mubr.msk.bf16.mxu1 %vm6093_vm7, %v6092_v26  ;;  %5015 = vmatpush3.bf16.msra.mxu1 %v5392_v44  ;;  %v5427_v24 = vld [vmem:[%s7649_s17 + $0x30] sm:$0xff] (!%p4419_p10)  }
 0xe41   : > { %5016 = vmatprep.subr.bf16.mxu1 %v6092_v26 }
 0xe44   : > { %5017 = vmatpush3.bf16.msra.mxu1 %v5393_v45 }
 0xe45   : > { %5018 = vmatprep.subr.bf16.mxu1 %v6092_v26 }
 0xe48   : > { %5019 = vmatpush3.bf16.msra.mxu1 %v5394_v46 }
 0xe49   : > { %5020 = vmatprep.subr.bf16.mxu1 %v6092_v26 }
 0xe4c   : > { %5021 = vmatpush3.bf16.msra.mxu1 %v5395_v47 }
 0xe4d   : > { %5022 = vmatprep.subr.bf16.mxu1 %v6092_v26 }
 0xe50   : > { %5023 = vmatpush3.bf16.msra.mxu1 %v5396_v48 }
 0xe51   : > { %5024 = vmatprep.subr.bf16.mxu1 %v6092_v26 }
 0xe54   : > { %5025 = vmatpush3.bf16.msra.mxu1 %v5397_v39 }
 0xe55   : > { %5026 = vmatprep.subr.bf16.mxu1 %v6092_v26 }
 0xe58   : > { %5027 = vmatpush3.bf16.msra.mxu1 %v5398_v63 }
 0xe59   : > { %5028 = vmatprep.subr.bf16.mxu1 %v6092_v26 }
 0xe5c   : > { %5029 = vmatpush3.bf16.msra.mxu1 %v5399_v0 }
 0xf12   : > { %v3267_v20 = vpop.f32.mrb[44].mxu1 }
 0xf13   : > { %v3273_v27 = vadd.f32 %v3267_v20, %v3063_v2  ;;  %v4992_v28 = vpop.f32.mrb[45].mxu1 }
 0xf14   : > { %v3270_v31 = vpop.f32.mrb[46].mxu1 }
 0xf15   : > { %v3274_v29 = vadd.f32 %v5420_v32, %v3273_v27  ;;  %v4993_v33 = vpop.f32.mrb[47].mxu1  ;;  %v4420_v27 = vld [vmem:[%s7650_s9] ss:$0 sm:$0xff] (!%p4419_p10) }
 0xf17   : > { %v7320_v34 = vadd.f32 %v4398_v30, %v3274_v29 }
 0xf19   : > { %3285 = vadd.xlane.f32.xlu0 %v7320_v34  ;;  %v3288_v35 = vmul.f32 %v7320_v34, %v7320_v34 }
 0xf1b   : > { %3289 = vadd.xlane.f32.xlu1 %v3288_v35 }
 0xfa6   : > { %v3286_v49 = vpop.xlane.xlu0 %3285 }
 0xfa7   : > { %v3287_v50 = vmul.f32 0.03125, %v3286_v49 }
 0xfa8   : > { %v3290_v51 = vpop.xlane.xlu1 %3289 }
 0xfa9   : > { %v3292_v52 = vmul.f32 %v3287_v50, %v3287_v50  ;;  %v3291_v53 = vmul.f32 0.03125, %v3290_v51  ;;  %v3294_v54 = vsub.f32 %v7320_v34, %v3287_v50 }
 0xfab   : > { %v3293_v21 = vsub.f32 %v3291_v53, %v3292_v52 }
 0xfad   : > { %v3295_v4 = vadd.f32 1e-05, %v3293_v21 }
 0xfaf   : > { %5418 = vrsqrt.f32 %v3295_v4 }
 0xfb9   : > { %v5419_v55 = vpop.eup %5418 }
 0xfba   : > { %v3297_v57 = vmul.f32 %v5419_v55, %v3294_v54 }
 0xfbc   : > { %v3304_v60 = vmul.f32 %v4399_v56, %v3297_v57 }
 0xfbe   : > { %v3311_v61 = vadd.f32 %v4400_v58, %v3304_v60 }
 0xfc0   : > { %v3312_v62 = vpack.c.bf16 %v3311_v61, %v3311_v61 }
 0xfc2   : > { %5011 = vmatmul.mubr.bf16.vlgmr.msra.gmra.mrb[48].mxu0 %v3312_v62 }
 0xfc3   : > { %5035 = vmatpush3.bf16.msra.mxu0 (!%p4419_p10), %v5421_v38  ;;  %5050 = vmatprep.mubr.msk.bf16.mxu0 (!%p4419_p10), %vm6095_vm10, %v6094_v17 }
 0xfc4   : > { %5036 = vmatprep.subr.bf16.mxu0 (!%p4419_p10), %v6094_v17 }
 0xfc7   : > { %5037 = vmatpush3.bf16.msra.mxu0 (!%p4419_p10), %v5422_v18 }
 0xfc8   : > { %5038 = vmatprep.subr.bf16.mxu0 (!%p4419_p10), %v6094_v17 }
 0xfcb   : > { %5039 = vmatpush3.bf16.msra.mxu0 (!%p4419_p10), %v5423_v19 }
 0xfcc   : > { %5040 = vmatprep.subr.bf16.mxu0 (!%p4419_p10), %v6094_v17 }
 0xfcf   : > { %5041 = vmatpush3.bf16.msra.mxu0 (!%p4419_p10), %v5424_v59 }
 0xfd0   : > { %5042 = vmatprep.subr.bf16.mxu0 (!%p4419_p10), %v6094_v17 }
 0xfd3   : > { %5043 = vmatpush3.bf16.msra.mxu0 (!%p4419_p10), %v5425_v22 }
 0xfd4   : > { %5044 = vmatprep.subr.bf16.mxu0 (!%p4419_p10), %v6094_v17 }
 0xfd7   : > { %5045 = vmatpush3.bf16.msra.mxu0 (!%p4419_p10), %v5426_v23 }
 0xfd8   : > { %5046 = vmatprep.subr.bf16.mxu0 (!%p4419_p10), %v6094_v17 }
 0xfdb   : > { %5047 = vmatpush3.bf16.msra.mxu0 (!%p4419_p10), %v5427_v24 }
 0xfdc   : > { %5048 = vmatprep.subr.bf16.mxu0 (!%p4419_p10), %v6094_v17 }
 0xfdf   : > { %5049 = vmatpush3.bf16.msra.mxu0 (!%p4419_p10), %v5428_v25 }
0x1095   : > { %v3418_v2 = vpop.f32.mrb[48].mxu0 }
0x1096   : > { %v3419_v5 = vadd.f32 %v4401_v1, %v3418_v2  ;;  %v5012_v6 = vpop.f32.mrb[49].mxu0 }
0x1097   : > { %v3421_v8 = vpop.f32.mrb[50].mxu0 }
0x1098   : > { %v3424_v7 = vmax.f32 %v3419_v5, 0.0  ;;  %v5013_v9 = vpop.f32.mrb[51].mxu0 }
0x109a   : > { %v3425_v10 = vpack.c.bf16 %v3424_v7, %v3424_v7 }
0x109c   : > { %5031 = vmatmul.mubr.bf16.vlgmr.msra.gmra.mrb[48].mxu1 %v3425_v10 }
0x116e   : > { %3542 = sbr.rel (%p4419_p10) target bundleno = 4685 (0x124d), region = 164 }
0x116f   : > { %v3531_v12 = vpop.f32.mrb[48].mxu1 }
0x1170   : > { %v3532_v3 = vadd.f32 %v4410_v11, %v3531_v12  ;;  %v5032_v14 = vpop.f32.mrb[49].mxu1 }
0x1171   : > { %v3534_v15 = vpop.f32.mrb[50].mxu1 }
0x1172   : > { %v3537_v26 = vadd.f32 %v3532_v3, %v7320_v34  ;;  %v5033_v16 = vpop.f32.mrb[51].mxu1 }
0x1174   : > { %3538 = vst [vmem:[#allocation2] sm:$0xff] %v3537_v26  ;;  %v3543_v20 = vpack.c.bf16 (!%p4419_p10), %v3537_v26, %v3537_v26 }
0x1176   : > { %5051 = vmatmul.mubr.bf16.vlgmr.msra.gmra.mrb[0].mxu0 %v3543_v20 }
0x1249   : > { %v3649_v28 = vpop.f32.mrb[0].mxu0 }
0x124a   : > { %v3650_v30 = vadd.f32 %v4420_v27, %v3649_v28  ;;  %v5052_v31 = vpop.f32.mrb[1].mxu0 }
0x124b   : > { %v3652_v32 = vpop.f32.mrb[2].mxu0 }
0x124c   : > { %3655 = vst [vmem:[%s7651_s11] sm:$0xff] %v3650_v30  ;;  %v5053_v29 = vpop.f32.mrb[3].mxu0 }
0x124d PF: > { %s7652_s27 = sld [smem:[#allocation49_spill]]  ;;  %s7653_s29 = sld [smem:[#allocation44_spill]] }
0x124e   : > { %s7654_s22 = sld [smem:[#allocation55_spill]]  ;;  %s7655_s3 = sld [smem:[#allocation81_spill]] }
0x124f   : > { %s7657_s12 = scalar_lea.vmem [#allocation31], %s6909_s26  ;;  %s6096_s25 = smov [#allocation31]  }
0x1250   : > { %s3670_s6 = sshll.u32 %s7657_s12, 4  ;;  %s5917_s8 = sshll.u32 %s6096_s25, 4  ;;  %s3671_s6 = int_to_ptr.vmem [resolvable:$true] %s3670_s6  ;;  %s5918_s8 = int_to_ptr.vmem [resolvable:$false] %s5917_s8 }
0x1251   : > { %s5913_s20 = scalar_lea.vmem %s3671_s6, 128  ;;  %s5919_s13 = scalar_lea.vmem %s5918_s8, 256 }
0x1252   : > { %p5914_p12 = scmp.ne.s32.totalorder %s3671_s6, %s5913_s20  ;;  %p5920_p2 = scmp.lt.s32.totalorder %s3671_s6, %s5918_s8 }
0x1253   : > { %s4430_s21 = sshll.u32 %s7652_s27, 7  ;;  %s7658_s28 = sand.u32 1, %s7653_s29  }
0x1254   : > { %s7656_s4 = smov %s7655_s3  ;;  %s7397_s0 = scalar_lea.hbm %s7655_s3, %s4430_s21 }
0x1255   : > { %s3657_s24 = scalar_lea.sflag [#allocation7], %s7658_s28  ;;  %p7659_p3 = scmp.ne.s32.totalorder %s7654_s22, 0 }
0x1256   : > { %p5921_p11 = scmp.lt.s32.totalorder %s5919_s13, %s5913_s20 }
0x1257   : > { %p5915_p1 = pnand %p5914_p12, %p7659_p3 }
0x1258   : > { %p5922_p6 = por %p5921_p11, %p5920_p2 }
0x1259   : > { %p5916_p8 = pneg %p5915_p1 }
0x125b   : > { %p5923_p0 = pnand %p5922_p6, %p5916_p8 }
0x125d   : > { %5926 = shalt.err (!%p5923_p0)
}
0x125e   : > { %s5927_s26 = scalar_lea.hbm %s7397_s0, 128  ;;  %s5931_s7 = scalar_lea.hbm %s7656_s4, 256 }
0x125f   : > { %p5928_p9 = scmp.ne.s32.totalorder %s7397_s0, %s5927_s26  ;;  %p5932_p13 = scmp.lt.u32.totalorder %s7397_s0, %s7656_s4 }
0x1260   : > { %p5933_p7 = scmp.lt.u32.totalorder %s5931_s7, %s5927_s26  ;;  %p5935_p12 = scmp.lt.u32.totalorder %s5927_s26, %s7397_s0 }
0x1261   : > { %p5929_p4 = pnand %p5928_p9, %p7659_p3 }
0x1262   : > { %p5934_p10 = por %p5933_p7, %p5932_p13 }
0x1263   : > { %p5930_p5 = pneg %p5929_p4 }
0x1264   : > { %p5936_p1 = por %p5935_p12, %p5934_p10 }
0x1266   : > { %p5937_p8 = pnand %p5936_p1, %p5930_p5 }
0x1268   : > { %5940 = shalt.err (!%p5937_p8)
}
0x1269   : > { %5092 = dma.vmem_to_hbm [thread:$0]  (%p7659_p3), %s3671_s6, 128, %s7397_s0, %s3657_s24  }
0x126a PF: > { %s7660_s5 = sld [smem:[#allocation52_spill]]  ;;  %s7661_s9 = sld [smem:[#allocation43_spill]] }
0x126b   : > { %s7662_s11 = sld [smem:[#allocation56_spill]] }
0x1270   : > { %p5155_p2 = scmp.ge.s32.totalorder %s7660_s5, 2  ;;  %s3682_s27 = sand.u32 1, %s7661_s9  }
0x1271   : > { %p7663_p11 = scmp.ne.s32.totalorder %s7662_s11, 0  ;;  %s3683_s29 = scalar_lea.sflag [#allocation7], %s3682_s27 }
0x1273   : > { %p5145_p6 = pnand %p5155_p2, %p7663_p11 }
0x1275   : > { %6024 = dma.done.wait (!%p5145_p6), %s3683_s29, 128  }
0x1276   : > { %6026 = vsyncadd (!%p5145_p6), %s3683_s29, 4294967168  ;;  %s59_s1 = sadd.s32 1, %s7660_s5   ;;  %s7664_s13 = sld [smem:[#allocation44_spill]] }
0x1277   : > { %p56_p0 = scmp.ge.s32.totalorder %s59_s1, 6   ;;  %s7665_s3 = sld [smem:[#allocation45_spill]] }
0x1278   : > { %s7666_s26 = sld [smem:[#allocation61_spill]]  ;;  %s7667_s27 = sld [smem:[#allocation46_spill]] }
0x1279   : > { %s7668_s28 = sld [smem:[#allocation47_spill]]  ;;  %s7669_s29 = sld [smem:[#allocation60_spill]] }
0x127a   : > { %s7670_s0 = sld [smem:[#allocation50_spill]]  ;;  %s7671_s30 = sld [smem:[#allocation51_spill]] }
0x127b   : > { %s7672_s20 = sld [smem:[#allocation58_spill]]  ;;  %s7673_s21 = sld [smem:[#allocation59_spill]] }
0x127c   :  { %58 = sbr.rel (!%p56_p0) target bundleno = 50 (0x32), region = 322 }
0x1283   :  { %3688 = vsyncpa [#allocation6], 1 }
0x1284   :  { %3690 = vsyncpa [#allocation6 + $0x1], 1 }
0x1285   :  { %3691 = vsyncpa [#allocation9], 1 }
0x1286   :  { %3692 = vsyncpa [#allocation12], 1 }
0x1287   :  { %3694 = vsyncpa [#allocation12 + $0x1], 1 }
0x1288   :  { %3695 = vsyncpa [#allocation15], 1 }
0x1289   :  { %3697 = vsyncpa [#allocation15 + $0x1], 1 }
0x128a   :  { %3698 = vsyncpa [#allocation18], 1 }
0x128b   :  { %3700 = vsyncpa [#allocation18 + $0x1], 1 }
0x128c   :  { %3701 = vsyncpa [#allocation21], 1 }
0x128d   :  { %3703 = vsyncpa [#allocation21 + $0x1], 1 }
0x128e   :  { %3704 = vsyncpa [#allocation24], 1 }
0x128f   :  { %3706 = vsyncpa [#allocation24 + $0x1], 1 }
0x1290   :  { %3707 = vsyncpa [#allocation27], 1 }
0x1291   :  { %3709 = vsyncpa [#allocation27 + $0x1], 1 }
0x1292   :  { %3710 = vsyncpa [#allocation30], 1 }
0x1293   :  { %3712 = vsyncpa [#allocation30 + $0x1], 1 }
0x1294   :  { %3713 = vsyncpa [#allocation7], 1 }
0x1295   :  { %3715 = vsyncpa [#allocation7 + $0x1], 1 }

</bundles_post_ra>
